<compile_context>
chip_gen: v6e
topology: v6e:2x2x1
jax: 0.10.0
libtpu: 0.0.40
codegen_flags: <defaults>
</compile_context>

<pallas_src>
import jax
import jax.numpy as jnp
from jax.experimental import pallas as pl
from jax.experimental.pallas import tpu as pltpu

EPS = 1e-5
MXU_DTYPE = jnp.bfloat16            # MXU operand dtype (f32 accumulation)


# ----------------------------- Pallas kernels ------------------------------

def _make_conv3x3_kernel(w_out, c_in, n_valid_pixels):
    """3x3 'same' conv on a row tile.  Taps are built in-kernel from the three
    row-shifted input views; the 9 (rows, Cin)@(Cin, Co) matmuls accumulate in
    f32.  Also emits masked per-tile BatchNorm partials [sum; sum-of-squares].
    """
    def kernel(x0_ref, x1_ref, x2_ref, w_ref, b_ref, raw_ref, st_ref):
        xs = (x0_ref[...], x1_ref[...], x2_ref[...])      # (rb, w_out+2, Cin) bf16
        rb = xs[0].shape[0]
        co = b_ref.shape[-1]
        rows = rb * w_out

        acc = jnp.zeros((rows, co), jnp.float32)
        for dy in range(3):                               # static unrolled taps
            xd = xs[dy]
            for dx in range(3):
                tap = xd[:, dx:dx + w_out, :].reshape(rows, c_in)        # bf16
                w_tap = w_ref[(dy * 3 + dx) * c_in:(dy * 3 + dx + 1) * c_in, :]
                acc = acc + jnp.dot(tap, w_tap,
                                    preferred_element_type=jnp.float32)
        raw = acc + b_ref[...]                            # f32 (rows, co)
        raw_ref[...] = raw                                # single lane-dense store

        # masked per-tile BatchNorm partial statistics (tail padding excluded)
        r0 = pl.program_id(0) * rows
        ridx = jax.lax.broadcasted_iota(jnp.int32, (rows, 1), 0) + r0
        valid = (ridx < n_valid_pixels).astype(jnp.float32)
        rv = raw * valid
        st = jnp.concatenate([jnp.sum(rv, axis=0, keepdims=True),
                              jnp.sum(rv * raw, axis=0, keepdims=True)], axis=0)
        st_ref[...] = st[None]                            # (1, 2, co)
    return kernel


# ------------------------------ Pallas calls --------------------------------

def _conv3x3_call(xpad, w_mat, b_row, *, w_out, row_block):
    """Tiled 3x3 conv over an NHWC zero-padded input.

    xpad  : (B, Hout+2, Wout+2, Cin) zero-padded input
    w_mat : (9*Cin, Co) tap-major weight, b_row: (1, Co) f32 bias.
    Returns (raw (rows_padded*Wout, Co), stat_sums (2, Co), n_valid_pixels).
    """
    B, Hp, Wp, c_in = xpad.shape
    h_out = Hp - 2
    co = w_mat.shape[1]
    assert w_mat.shape[0] == 9 * c_in

    xb = xpad.astype(MXU_DTYPE)
    n_rows = B * h_out                                   # image rows
    rb = max(1, min(row_block, n_rows))
    pad_r = (-n_rows) % rb
    shifted = []
    for dy in range(3):                                  # 3 row-shifted views
        s = xb[:, dy:dy + h_out, :, :].reshape(n_rows, Wp, c_in)
        if pad_r:
            s = jnp.pad(s, ((0, pad_r), (0, 0), (0, 0)))
        shifted.append(s)
    rows_p = n_rows + pad_r
    n_tiles = rows_p // rb
    n_pix = n_rows * w_out

    kernel = _make_conv3x3_kernel(w_out, c_in, n_pix)
    raw, st = pl.pallas_call(
        kernel,
        grid=(n_tiles,),
        in_specs=[pl.BlockSpec((rb, Wp, c_in), lambda i: (i, 0, 0))] * 3
                 + [pl.BlockSpec((9 * c_in, co), lambda i: (0, 0)),    # resident
                    pl.BlockSpec((1, co), lambda i: (0, 0))],          # resident
        out_specs=[pl.BlockSpec((rb * w_out, co), lambda i: (i, 0)),
                   pl.BlockSpec((1, 2, co), lambda i: (i, 0, 0))],
        out_shape=[jax.ShapeDtypeStruct((rows_p * w_out, co), jnp.float32),
                   jax.ShapeDtypeStruct((n_tiles, 2, co), jnp.float32)],
        compiler_params=pltpu.CompilerParams(
            dimension_semantics=("parallel",)),
    )(shifted[0], shifted[1], shifted[2], w_mat.astype(MXU_DTYPE), b_row)

    stats = st.sum(axis=0)                               # tiny (2, Co) reduce
    return raw, stats, n_pix


def _up_bn_post(raw, sc_row, sh_row, half, *, block_rows):
    """One pass over the fused (rows, 8*Cout) up-conv output:
       y = raw*scale + shift  (per lane);
       out1 = relu(y[:, :half]) cast to bf16 (feeds the head conv),
       out2 = y[:, half:]      kept f32      (residual branch, BN applied).
    """
    n, c = raw.shape
    pb = max(1, min(block_rows, n))
    pad = (-n) % pb
    if pad:
        raw = jnp.pad(raw, ((0, pad), (0, 0)))
    np_ = n + pad

    def kernel(x_ref, sc_ref, sh_ref, y1_ref, y2_ref):
        y = x_ref[...] * sc_ref[...] + sh_ref[...]
        y1_ref[...] = jnp.maximum(y[:, :half], 0.0).astype(y1_ref.dtype)
        y2_ref[...] = y[:, half:]

    y1a, y2n = pl.pallas_call(
        kernel,
        grid=(np_ // pb,),
        in_specs=[pl.BlockSpec((pb, c), lambda i: (i, 0)),
                  pl.BlockSpec((1, c), lambda i: (0, 0)),
                  pl.BlockSpec((1, c), lambda i: (0, 0))],
        out_specs=[pl.BlockSpec((pb, half), lambda i: (i, 0)),
                   pl.BlockSpec((pb, half), lambda i: (i, 0))],
        out_shape=[jax.ShapeDtypeStruct((np_, half), MXU_DTYPE),
                   jax.ShapeDtypeStruct((np_, half), jnp.float32)],
        compiler_params=pltpu.CompilerParams(
            dimension_semantics=("parallel",)),
    )(raw, sc_row, sh_row)
    return y1a[:n], y2n[:n]


def _head_finalize(raw_h, y2n, sc_h, sh_h, *, block_rows):
    """out = relu( BN_head(raw_head) + y2_normalized ), tiled over rows."""
    n, c = raw_h.shape
    assert y2n.shape == (n, c)
    pb = max(1, min(block_rows, n))
    pad = (-n) % pb
    if pad:
        raw_h = jnp.pad(raw_h, ((0, pad), (0, 0)))
        y2n = jnp.pad(y2n, ((0, pad), (0, 0)))
    np_ = n + pad

    def kernel(zh_ref, y2_ref, sch_ref, shh_ref, o_ref):
        zh = zh_ref[...] * sch_ref[...] + shh_ref[...]
        o_ref[...] = jnp.maximum(zh + y2_ref[...], 0.0)

    out = pl.pallas_call(
        kernel,
        grid=(np_ // pb,),
        in_specs=[pl.BlockSpec((pb, c), lambda i: (i, 0)),
                  pl.BlockSpec((pb, c), lambda i: (i, 0)),
                  pl.BlockSpec((1, c), lambda i: (0, 0)),
                  pl.BlockSpec((1, c), lambda i: (0, 0))],
        out_specs=pl.BlockSpec((pb, c), lambda i: (i, 0)),
        out_shape=jax.ShapeDtypeStruct((np_, c), jnp.float32),
        compiler_params=pltpu.CompilerParams(
            dimension_semantics=("parallel",)),
    )(raw_h, y2n, sc_h, sh_h)
    return out[:n]


# ------------------------------- JAX glue ----------------------------------

def _bn_from_stats(ssum, ssq, count, gamma, beta):
    """Per-channel finalize (O(C) scalar math): sums -> BN scale/shift."""
    mean = ssum / count
    var = jnp.maximum(ssq / count - mean * mean, 0.0)    # clamp cancellation
    scale = gamma * jax.lax.rsqrt(var + EPS)
    shift = beta - mean * scale
    return scale, shift


def _pixel_shuffle(z, B, H, W, C):
    """(B*H*W, 4*C) block-major [ee,eo,oe,oo] -> (B, 2H, 2W, C).  Layout only."""
    z = z.reshape(B, H, W, 2, 2, C)
    z = jnp.transpose(z, (0, 1, 3, 2, 4, 5))
    return z.reshape(B, 2 * H, 2 * W, C)


def fast_up_projection(x_nchw, params, *, row_block=8, row_block_head=8):
    # row_block* are image-rows per grid step; tune so rb*W lands at 512-1024+
    # pixel rows per tile on real shapes (smaller on v7x's 64 MiB VMEM).
    x = jnp.transpose(x_nchw, (0, 2, 3, 1)).astype(jnp.float32)   # NHWC
    B, H, W, _ = x.shape
    c_out = params["head"]["b"].shape[-1]

    # ---- both UpConv modules fused into one conv pass (8*Cout lanes) ----
    w_cat = jnp.concatenate([params["up1"]["w_cat"], params["up2"]["w_cat"]], axis=1)
    b_cat = jnp.concatenate([params["up1"]["b_cat"], params["up2"]["b_cat"]], axis=1)
    xp = jnp.pad(x, ((0, 0), (1, 1), (1, 1), (0, 0)))
    raw_up, st_up, n_pix = _conv3x3_call(
        xp, w_cat, b_cat, w_out=W, row_block=row_block)

    # ---- BatchNorm finalize (global stats; O(C) math in wrapper) ----
    ssum = st_up[0].reshape(2, 4, c_out).sum(axis=1)     # fold 4 sub-pixel blocks
    ssq = st_up[1].reshape(2, 4, c_out).sum(axis=1)
    scale1, shift1 = _bn_from_stats(ssum[0], ssq[0], 4.0 * n_pix,
                                    params["up1"]["gamma"], params["up1"]["beta"])
    scale2, shift2 = _bn_from_stats(ssum[1], ssq[1], 4.0 * n_pix,
                                    params["up2"]["gamma"], params["up2"]["beta"])

    # ---- one elementwise pass over the fused raw: BN apply (both modules),
    #      ReLU + bf16 cast for the up1 half ----
    sc_full = jnp.concatenate([jnp.tile(scale1, 4), jnp.tile(scale2, 4)])[None, :]
    sh_full = jnp.concatenate([jnp.tile(shift1, 4), jnp.tile(shift2, 4)])[None, :]
    y1a, y2n = _up_bn_post(raw_up, sc_full, sh_full, 4 * c_out,
                           block_rows=row_block * W)

    # ---- pixel-shuffle (layout glue) ----
    y1a = _pixel_shuffle(y1a[:n_pix], B, H, W, c_out)    # (B, 2H, 2W, C) bf16
    y2s = _pixel_shuffle(y2n[:n_pix], B, H, W, c_out)    # f32, BN already applied

    # ---- head 3x3 conv (taps built in-kernel) + its BN partials ----
    y1p = jnp.pad(y1a, ((0, 0), (1, 1), (1, 1), (0, 0)))
    raw_h, st_h, n_pix2 = _conv3x3_call(
        y1p, params["head"]["w_mat"], params["head"]["b"],
        w_out=2 * W, row_block=row_block_head)
    scale_h, shift_h = _bn_from_stats(st_h[0], st_h[1], float(n_pix2),
                                      params["head"]["gamma"], params["head"]["beta"])

    # ---- finalize: head BN + residual add + ReLU (tiled Pallas) ----
    y2f = y2s.reshape(-1, c_out)
    extra = raw_h.shape[0] - y2f.shape[0]
    if extra:
        y2f = jnp.pad(y2f, ((0, extra), (0, 0)))
    out = _head_finalize(raw_h, y2f, scale_h[None, :], shift_h[None, :],
                         block_rows=row_block_head * 2 * W)

    out = out[:n_pix2].reshape(B, 2 * H, 2 * W, c_out)
    return jnp.transpose(out, (0, 3, 1, 2))              # back to NCHW


# -------------------------- deterministic params ----------------------------

def init_params(key, cin, cout):
    def conv_p(k, kh, kw, ci, co):
        kw_, kb_ = jax.random.split(k)
        w = jax.random.normal(kw_, (kh, kw, ci, co), jnp.float32) * 0.1   # HWIO
        b = jax.random.normal(kb_, (co,), jnp.float32) * 0.1
        return w, b

    def upconv_p(k):
        k1, k2, k3, k4 = jax.random.split(k, 4)
        w1, b1 = conv_p(k1, 3, 3, cin, cout)   # -> even row / even col
        w2, b2 = conv_p(k2, 2, 3, cin, cout)   # -> odd  row / even col
        w3, b3 = conv_p(k3, 3, 2, cin, cout)   # -> even row / odd  col
        w4, b4 = conv_p(k4, 2, 2, cin, cout)   # -> odd  row / odd  col
        # Fuse the 4 sub-convs into a single (9*cin, 4*cout) tap matrix.
        # Sub-pixel block order [ee, eo, oe, oo] == [conv1, conv3, conv2, conv4]
        wf = jnp.zeros((3, 3, cin, 4, cout), jnp.float32)
        wf = wf.at[:, :, :, 0, :].set(w1)
        wf = wf.at[:, 0:2, :, 1, :].set(w3)
        wf = wf.at[0:2, :, :, 2, :].set(w2)
        wf = wf.at[0:2, 0:2, :, 3, :].set(w4)
        return {"w_cat": wf.reshape(9 * cin, 4 * cout),
                "b_cat": jnp.concatenate([b1, b3, b2, b4])[None, :],
                "gamma": jnp.ones((cout,), jnp.float32),
                "beta": jnp.zeros((cout,), jnp.float32),
                "_hwio": (w1, w2, w3, w4),
                "_bias": (b1, b2, b3, b4)}

    k1, k2, k3 = jax.random.split(key, 3)
    wh, bh = conv_p(k3, 3, 3, cout, cout)
    return {"up1": upconv_p(k1),
            "up2": upconv_p(k2),
            "head": {"w_mat": wh.reshape(9 * cout, cout),
                     "b": bh[None, :],
                     "gamma": jnp.ones((cout,), jnp.float32),
                     "beta": jnp.zeros((cout,), jnp.float32),
                     "_hwio": wh}}


# --------------------------- pure-JAX reference -----------------------------
# Mirrors the PyTorch forward, with matmul *operands* rounded to bf16 exactly
# as the kernel's precision policy does (accumulation / bias / BN stay f32).

def _round_mxu(t):
    return t.astype(MXU_DTYPE).astype(jnp.float32)


def _conv_nchw(x, w_hwio, b, pad_lrtb):
    l, r, t, bo = pad_lrtb
    xp = jnp.pad(x, ((0, 0), (0, 0), (t, bo), (l, r)))
    w_oihw = jnp.transpose(w_hwio, (3, 2, 0, 1))
    y = jax.lax.conv_general_dilated(
        xp, w_oihw, window_strides=(1, 1), padding="VALID",
        dimension_numbers=("NCHW", "OIHW", "NCHW"))
    return y + b.reshape(1, -1, 1, 1)


def _bn_train_nchw(x, g, bta):
    mean = x.mean(axis=(0, 2, 3), keepdims=True)
    var = x.var(axis=(0, 2, 3), keepdims=True)
    scale = g.reshape(1, -1, 1, 1) * jax.lax.rsqrt(var + EPS)
    return x * scale + (bta.reshape(1, -1, 1, 1) - mean * scale)


def _ref_upconv(x, p):
    w1, w2, w3, w4 = p["_hwio"]
    b1, b2, b3, b4 = p["_bias"]
    o1 = _conv_nchw(x, _round_mxu(w1), b1, (1, 1, 1, 1))
    o2 = _conv_nchw(x, _round_mxu(w2), b2, (1, 1, 1, 0))
    o3 = _conv_nchw(x, _round_mxu(w3), b3, (1, 0, 1, 1))
    o4 = _conv_nchw(x, _round_mxu(w4), b4, (1, 0, 1, 0))
    B, C, H, W = o1.shape
    row_even = jnp.stack([o1, o3], axis=4).reshape(B, C, H, 2 * W)
    row_odd = jnp.stack([o2, o4], axis=4).reshape(B, C, H, 2 * W)
    Y = jnp.stack([row_even, row_odd], axis=3).reshape(B, C, 2 * H, 2 * W)
    return _bn_train_nchw(Y, p["gamma"], p["beta"])


def _ref_forward(x, params):
    xr = _round_mxu(x)
    y1 = _ref_upconv(xr, params["up1"])
    y2 = _ref_upconv(xr, params["up2"])
    a = _round_mxu(jnp.maximum(y1, 0.0))
    z = _conv_nchw(a, _round_mxu(params["head"]["_hwio"]),
                   params["head"]["b"].reshape(-1), (1, 1, 1, 1))
    zbn = _bn_train_nchw(z, params["head"]["gamma"], params["head"]["beta"])
    return jnp.maximum(zbn + y2, 0.0)


# ----------------------------------- main -----------------------------------

if __name__ == "__main__":
    B, Cin, Cout, H, W = 2, 4, 8, 16, 16
    key = jax.random.PRNGKey(0)
    kx, kp = jax.random.split(key)
    x = jax.random.normal(kx, (B, Cin, H, W), jnp.float32)   # NCHW like PyTorch
    params = init_params(kp, Cin, Cout)

    fwd = jax.jit(fast_up_projection)
    out = jax.block_until_ready(fwd(x, params))
    assert out.shape == (B, Cout, 2 * H, 2 * W), out.shape

    ref = _ref_forward(x, params)
    max_err = float(jnp.max(jnp.abs(out - ref)))
    if not bool(jnp.allclose(out, ref, atol=1e-2, rtol=1e-2)):
        raise AssertionError(f"mismatch vs reference, max abs err = {max_err}")
    print("KERNEL_OK")
</pallas_src>

<mosaic_0001>
module attributes {stable_mosaic.version = 11 : i64} {
  func.func @kernel(%arg0: i32, %arg1: memref<8x18x4xbf16, #tpu.memory_space<vmem>>, %arg2: memref<8x18x4xbf16, #tpu.memory_space<vmem>>, %arg3: memref<8x18x4xbf16, #tpu.memory_space<vmem>>, %arg4: memref<36x64xbf16, #tpu.memory_space<vmem>>, %arg5: memref<1x64xf32, #tpu.memory_space<vmem>>, %arg6: memref<128x64xf32, #tpu.memory_space<vmem>>, %arg7: memref<1x2x64xf32, #tpu.memory_space<vmem>>) attributes {dimension_semantics = [#tpu.dimension_semantics<parallel>], iteration_bounds = array<i64: 4>, scalar_prefetch = 0 : i64, scratch_operands = 0 : i64, tpu.core_type = #tpu.core_type<tc>, window_params = [{transform_indices = @transform_0, window_bounds = array<i64: 8, 18, 4>}, {transform_indices = @transform_1, window_bounds = array<i64: 8, 18, 4>}, {transform_indices = @transform_2, window_bounds = array<i64: 8, 18, 4>}, {pipeline_mode = #tpu.pipeline_mode<synchronous>, transform_indices = @transform_3, window_bounds = array<i64: 36, 64>}, {pipeline_mode = #tpu.pipeline_mode<synchronous>, transform_indices = @transform_4, window_bounds = array<i64: 1, 64>}, {transform_indices = @transform_5, window_bounds = array<i64: 128, 64>}, {transform_indices = @transform_6, window_bounds = array<i64: 1, 2, 64>}]} {
    %c0 = arith.constant 0 : index
    %c0_0 = arith.constant 0 : index
    %c0_1 = arith.constant 0 : index
    %0 = vector.load %arg1[%c0, %c0_0, %c0_1] : memref<8x18x4xbf16, #tpu.memory_space<vmem>>, vector<8x18x4xbf16>
    %c0_2 = arith.constant 0 : index
    %c0_3 = arith.constant 0 : index
    %c0_4 = arith.constant 0 : index
    %1 = vector.load %arg2[%c0_2, %c0_3, %c0_4] : memref<8x18x4xbf16, #tpu.memory_space<vmem>>, vector<8x18x4xbf16>
    %c0_5 = arith.constant 0 : index
    %c0_6 = arith.constant 0 : index
    %c0_7 = arith.constant 0 : index
    %2 = vector.load %arg3[%c0_5, %c0_6, %c0_7] : memref<8x18x4xbf16, #tpu.memory_space<vmem>>, vector<8x18x4xbf16>
    %cst = arith.constant 0.000000e+00 : f32
    %3 = vector.broadcast %cst : f32 to vector<128x64xf32>
    %4 = vector.extract_strided_slice %0 {offsets = [0, 0, 0], sizes = [8, 16, 4], strides = [1, 1, 1]} : vector<8x18x4xbf16> to vector<8x16x4xbf16>
    %5 = vector.shape_cast %4 : vector<8x16x4xbf16> to vector<128x4xbf16>
    %c0_8 = arith.constant 0 : index
    %c0_9 = arith.constant 0 : index
    %6 = vector.load %arg4[%c0_8, %c0_9] : memref<36x64xbf16, #tpu.memory_space<vmem>>, vector<4x64xbf16>
    %cst_10 = arith.constant dense<0.000000e+00> : vector<128x64xf32>
    %7 = tpu.matmul %5, %6, %cst_10 {dimension_numbers = #tpu.dot_dimension_numbers<[1], [0], [0], [1], [0, 0, 1, 1], [], []>} : vector<128x4xbf16>, vector<4x64xbf16>, vector<128x64xf32> -> vector<128x64xf32>
    %8 = arith.addf %3, %7 : vector<128x64xf32>
    %9 = vector.extract_strided_slice %0 {offsets = [0, 1, 0], sizes = [8, 16, 4], strides = [1, 1, 1]} : vector<8x18x4xbf16> to vector<8x16x4xbf16>
    %10 = vector.shape_cast %9 : vector<8x16x4xbf16> to vector<128x4xbf16>
    %c4 = arith.constant 4 : index
    %c0_11 = arith.constant 0 : index
    %11 = vector.load %arg4[%c4, %c0_11] : memref<36x64xbf16, #tpu.memory_space<vmem>>, vector<4x64xbf16>
    %cst_12 = arith.constant dense<0.000000e+00> : vector<128x64xf32>
    %12 = tpu.matmul %10, %11, %cst_12 {dimension_numbers = #tpu.dot_dimension_numbers<[1], [0], [0], [1], [0, 0, 1, 1], [], []>} : vector<128x4xbf16>, vector<4x64xbf16>, vector<128x64xf32> -> vector<128x64xf32>
    %13 = arith.addf %8, %12 : vector<128x64xf32>
    %14 = vector.extract_strided_slice %0 {offsets = [0, 2, 0], sizes = [8, 16, 4], strides = [1, 1, 1]} : vector<8x18x4xbf16> to vector<8x16x4xbf16>
    %15 = vector.shape_cast %14 : vector<8x16x4xbf16> to vector<128x4xbf16>
    %c8 = arith.constant 8 : index
    %c0_13 = arith.constant 0 : index
    %16 = vector.load %arg4[%c8, %c0_13] : memref<36x64xbf16, #tpu.memory_space<vmem>>, vector<4x64xbf16>
    %cst_14 = arith.constant dense<0.000000e+00> : vector<128x64xf32>
    %17 = tpu.matmul %15, %16, %cst_14 {dimension_numbers = #tpu.dot_dimension_numbers<[1], [0], [0], [1], [0, 0, 1, 1], [], []>} : vector<128x4xbf16>, vector<4x64xbf16>, vector<128x64xf32> -> vector<128x64xf32>
    %18 = arith.addf %13, %17 : vector<128x64xf32>
    %19 = vector.extract_strided_slice %1 {offsets = [0, 0, 0], sizes = [8, 16, 4], strides = [1, 1, 1]} : vector<8x18x4xbf16> to vector<8x16x4xbf16>
    %20 = vector.shape_cast %19 : vector<8x16x4xbf16> to vector<128x4xbf16>
    %c12 = arith.constant 12 : index
    %c0_15 = arith.constant 0 : index
    %21 = vector.load %arg4[%c12, %c0_15] : memref<36x64xbf16, #tpu.memory_space<vmem>>, vector<4x64xbf16>
    %cst_16 = arith.constant dense<0.000000e+00> : vector<128x64xf32>
    %22 = tpu.matmul %20, %21, %cst_16 {dimension_numbers = #tpu.dot_dimension_numbers<[1], [0], [0], [1], [0, 0, 1, 1], [], []>} : vector<128x4xbf16>, vector<4x64xbf16>, vector<128x64xf32> -> vector<128x64xf32>
    %23 = arith.addf %18, %22 : vector<128x64xf32>
    %24 = vector.extract_strided_slice %1 {offsets = [0, 1, 0], sizes = [8, 16, 4], strides = [1, 1, 1]} : vector<8x18x4xbf16> to vector<8x16x4xbf16>
    %25 = vector.shape_cast %24 : vector<8x16x4xbf16> to vector<128x4xbf16>
    %c16 = arith.constant 16 : index
    %c0_17 = arith.constant 0 : index
    %26 = vector.load %arg4[%c16, %c0_17] : memref<36x64xbf16, #tpu.memory_space<vmem>>, vector<4x64xbf16>
    %cst_18 = arith.constant dense<0.000000e+00> : vector<128x64xf32>
    %27 = tpu.matmul %25, %26, %cst_18 {dimension_numbers = #tpu.dot_dimension_numbers<[1], [0], [0], [1], [0, 0, 1, 1], [], []>} : vector<128x4xbf16>, vector<4x64xbf16>, vector<128x64xf32> -> vector<128x64xf32>
    %28 = arith.addf %23, %27 : vector<128x64xf32>
    %29 = vector.extract_strided_slice %1 {offsets = [0, 2, 0], sizes = [8, 16, 4], strides = [1, 1, 1]} : vector<8x18x4xbf16> to vector<8x16x4xbf16>
    %30 = vector.shape_cast %29 : vector<8x16x4xbf16> to vector<128x4xbf16>
    %c20 = arith.constant 20 : index
    %c0_19 = arith.constant 0 : index
    %31 = vector.load %arg4[%c20, %c0_19] : memref<36x64xbf16, #tpu.memory_space<vmem>>, vector<4x64xbf16>
    %cst_20 = arith.constant dense<0.000000e+00> : vector<128x64xf32>
    %32 = tpu.matmul %30, %31, %cst_20 {dimension_numbers = #tpu.dot_dimension_numbers<[1], [0], [0], [1], [0, 0, 1, 1], [], []>} : vector<128x4xbf16>, vector<4x64xbf16>, vector<128x64xf32> -> vector<128x64xf32>
    %33 = arith.addf %28, %32 : vector<128x64xf32>
    %34 = vector.extract_strided_slice %2 {offsets = [0, 0, 0], sizes = [8, 16, 4], strides = [1, 1, 1]} : vector<8x18x4xbf16> to vector<8x16x4xbf16>
    %35 = vector.shape_cast %34 : vector<8x16x4xbf16> to vector<128x4xbf16>
    %c24 = arith.constant 24 : index
    %c0_21 = arith.constant 0 : index
    %36 = vector.load %arg4[%c24, %c0_21] : memref<36x64xbf16, #tpu.memory_space<vmem>>, vector<4x64xbf16>
    %cst_22 = arith.constant dense<0.000000e+00> : vector<128x64xf32>
    %37 = tpu.matmul %35, %36, %cst_22 {dimension_numbers = #tpu.dot_dimension_numbers<[1], [0], [0], [1], [0, 0, 1, 1], [], []>} : vector<128x4xbf16>, vector<4x64xbf16>, vector<128x64xf32> -> vector<128x64xf32>
    %38 = arith.addf %33, %37 : vector<128x64xf32>
    %39 = vector.extract_strided_slice %2 {offsets = [0, 1, 0], sizes = [8, 16, 4], strides = [1, 1, 1]} : vector<8x18x4xbf16> to vector<8x16x4xbf16>
    %40 = vector.shape_cast %39 : vector<8x16x4xbf16> to vector<128x4xbf16>
    %c28 = arith.constant 28 : index
    %c0_23 = arith.constant 0 : index
    %41 = vector.load %arg4[%c28, %c0_23] : memref<36x64xbf16, #tpu.memory_space<vmem>>, vector<4x64xbf16>
    %cst_24 = arith.constant dense<0.000000e+00> : vector<128x64xf32>
    %42 = tpu.matmul %40, %41, %cst_24 {dimension_numbers = #tpu.dot_dimension_numbers<[1], [0], [0], [1], [0, 0, 1, 1], [], []>} : vector<128x4xbf16>, vector<4x64xbf16>, vector<128x64xf32> -> vector<128x64xf32>
    %43 = arith.addf %38, %42 : vector<128x64xf32>
    %44 = vector.extract_strided_slice %2 {offsets = [0, 2, 0], sizes = [8, 16, 4], strides = [1, 1, 1]} : vector<8x18x4xbf16> to vector<8x16x4xbf16>
    %45 = vector.shape_cast %44 : vector<8x16x4xbf16> to vector<128x4xbf16>
    %c32 = arith.constant 32 : index
    %c0_25 = arith.constant 0 : index
    %46 = vector.load %arg4[%c32, %c0_25] : memref<36x64xbf16, #tpu.memory_space<vmem>>, vector<4x64xbf16>
    %cst_26 = arith.constant dense<0.000000e+00> : vector<128x64xf32>
    %47 = tpu.matmul %45, %46, %cst_26 {dimension_numbers = #tpu.dot_dimension_numbers<[1], [0], [0], [1], [0, 0, 1, 1], [], []>} : vector<128x4xbf16>, vector<4x64xbf16>, vector<128x64xf32> -> vector<128x64xf32>
    %48 = arith.addf %43, %47 : vector<128x64xf32>
    %c0_27 = arith.constant 0 : index
    %c0_28 = arith.constant 0 : index
    %49 = vector.load %arg5[%c0_27, %c0_28] : memref<1x64xf32, #tpu.memory_space<vmem>>, vector<1x64xf32>
    %50 = vector.broadcast %49 : vector<1x64xf32> to vector<128x64xf32>
    %51 = arith.addf %48, %50 : vector<128x64xf32>
    %c0_29 = arith.constant 0 : index
    %c0_30 = arith.constant 0 : index
    %52 = vector.load %arg6[%c0_29, %c0_30] : memref<128x64xf32, #tpu.memory_space<vmem>>, vector<128x64xf32>
    tpu.vector_store %arg6[%c0_29, %c0_30], %51 {strides = array<i32>} : memref<128x64xf32, #tpu.memory_space<vmem>>, vector<128x64xf32>,
    %c128_i32 = arith.constant 128 : i32
    %53 = arith.muli %arg0, %c128_i32 : i32
    %54 = tpu.iota {dimensions = array<i32: 0>} : vector<128x1xi32>
    %55 = vector.broadcast %53 : i32 to vector<128x1xi32>
    %56 = arith.addi %54, %55 : vector<128x1xi32>
    %c512_i32 = arith.constant 512 : i32
    %57 = vector.broadcast %c512_i32 : i32 to vector<128x1xi32>
    %58 = arith.cmpi slt, %56, %57 : vector<128x1xi32>
    %59 = arith.extui %58 : vector<128x1xi1> to vector<128x1xi32>
    %60 = arith.sitofp %59 : vector<128x1xi32> to vector<128x1xf32>
    %61 = vector.broadcast %60 : vector<128x1xf32> to vector<128x64xf32>
    %62 = arith.mulf %51, %61 : vector<128x64xf32>
    %cst_31 = arith.constant dense<0.000000e+00> : vector<64xf32>
    %63 = vector.multi_reduction <add>, %62, %cst_31 [0] : vector<128x64xf32> to vector<64xf32>
    %64 = vector.shape_cast %63 : vector<64xf32> to vector<1x64xf32>
    %65 = arith.mulf %62, %51 : vector<128x64xf32>
    %cst_32 = arith.constant dense<0.000000e+00> : vector<64xf32>
    %66 = vector.multi_reduction <add>, %65, %cst_32 [0] : vector<128x64xf32> to vector<64xf32>
    %67 = vector.shape_cast %66 : vector<64xf32> to vector<1x64xf32>
    %68 = tpu.concatenate %64, %67 in 0 : vector<1x64xf32>, vector<1x64xf32> -> vector<2x64xf32>
    %69 = vector.shape_cast %68 : vector<2x64xf32> to vector<1x2x64xf32>
    %c0_33 = arith.constant 0 : index
    %c0_34 = arith.constant 0 : index
    %c0_35 = arith.constant 0 : index
    %70 = vector.load %arg7[%c0_33, %c0_34, %c0_35] : memref<1x2x64xf32, #tpu.memory_space<vmem>>, vector<1x2x64xf32>
    tpu.vector_store %arg7[%c0_33, %c0_34, %c0_35], %69 {strides = array<i32>} : memref<1x2x64xf32, #tpu.memory_space<vmem>>, vector<1x2x64xf32>,
    return
  }
  func.func @transform_0(%arg0: i32) -> (i32, i32, i32) {
    %c0_i32 = arith.constant 0 : i32
    %c0_i32_0 = arith.constant 0 : i32
    %c0_i32_1 = arith.constant 0 : i32
    return %arg0, %c0_i32, %c0_i32_0 : i32, i32, i32
  }
  func.func @transform_1(%arg0: i32) -> (i32, i32, i32) {
    %c0_i32 = arith.constant 0 : i32
    %c0_i32_0 = arith.constant 0 : i32
    %c0_i32_1 = arith.constant 0 : i32
    return %arg0, %c0_i32, %c0_i32_0 : i32, i32, i32
  }
  func.func @transform_2(%arg0: i32) -> (i32, i32, i32) {
    %c0_i32 = arith.constant 0 : i32
    %c0_i32_0 = arith.constant 0 : i32
    %c0_i32_1 = arith.constant 0 : i32
    return %arg0, %c0_i32, %c0_i32_0 : i32, i32, i32
  }
  func.func @transform_3(%arg0: i32) -> (i32, i32) {
    %c0_i32 = arith.constant 0 : i32
    %c0_i32_0 = arith.constant 0 : i32
    %c0_i32_1 = arith.constant 0 : i32
    return %c0_i32, %c0_i32_0 : i32, i32
  }
  func.func @transform_4(%arg0: i32) -> (i32, i32) {
    %c0_i32 = arith.constant 0 : i32
    %c0_i32_0 = arith.constant 0 : i32
    %c0_i32_1 = arith.constant 0 : i32
    return %c0_i32, %c0_i32_0 : i32, i32
  }
  func.func @transform_5(%arg0: i32) -> (i32, i32) {
    %c0_i32 = arith.constant 0 : i32
    %c0_i32_0 = arith.constant 0 : i32
    return %arg0, %c0_i32 : i32, i32
  }
  func.func @transform_6(%arg0: i32) -> (i32, i32, i32) {
    %c0_i32 = arith.constant 0 : i32
    %c0_i32_0 = arith.constant 0 : i32
    %c0_i32_1 = arith.constant 0 : i32
    return %arg0, %c0_i32, %c0_i32_0 : i32, i32, i32
  }
}

module attributes {stable_mosaic.version = 11 : i64} {
  func.func @kernel(%arg0: i32, %arg1: memref<128x64xf32, #tpu.memory_space<vmem>>, %arg2: memref<1x64xf32, #tpu.memory_space<vmem>>, %arg3: memref<1x64xf32, #tpu.memory_space<vmem>>, %arg4: memref<128x32xbf16, #tpu.memory_space<vmem>>, %arg5: memref<128x32xf32, #tpu.memory_space<vmem>>) attributes {dimension_semantics = [#tpu.dimension_semantics<parallel>], iteration_bounds = array<i64: 4>, scalar_prefetch = 0 : i64, scratch_operands = 0 : i64, tpu.core_type = #tpu.core_type<tc>, window_params = [{transform_indices = @transform_0, window_bounds = array<i64: 128, 64>}, {pipeline_mode = #tpu.pipeline_mode<synchronous>, transform_indices = @transform_1, window_bounds = array<i64: 1, 64>}, {pipeline_mode = #tpu.pipeline_mode<synchronous>, transform_indices = @transform_2, window_bounds = array<i64: 1, 64>}, {transform_indices = @transform_3, window_bounds = array<i64: 128, 32>}, {transform_indices = @transform_4, window_bounds = array<i64: 128, 32>}]} {
    %c0 = arith.constant 0 : index
    %c0_0 = arith.constant 0 : index
    %0 = vector.load %arg1[%c0, %c0_0] : memref<128x64xf32, #tpu.memory_space<vmem>>, vector<128x64xf32>
    %c0_1 = arith.constant 0 : index
    %c0_2 = arith.constant 0 : index
    %1 = vector.load %arg2[%c0_1, %c0_2] : memref<1x64xf32, #tpu.memory_space<vmem>>, vector<1x64xf32>
    %2 = vector.broadcast %1 : vector<1x64xf32> to vector<128x64xf32>
    %3 = arith.mulf %0, %2 : vector<128x64xf32>
    %c0_3 = arith.constant 0 : index
    %c0_4 = arith.constant 0 : index
    %4 = vector.load %arg3[%c0_3, %c0_4] : memref<1x64xf32, #tpu.memory_space<vmem>>, vector<1x64xf32>
    %5 = vector.broadcast %4 : vector<1x64xf32> to vector<128x64xf32>
    %6 = arith.addf %3, %5 : vector<128x64xf32>
    %7 = vector.extract_strided_slice %6 {offsets = [0, 0], sizes = [128, 32], strides = [1, 1]} : vector<128x64xf32> to vector<128x32xf32>
    %cst = arith.constant 0.000000e+00 : f32
    %8 = vector.broadcast %cst : f32 to vector<128x32xf32>
    %9 = arith.maximumf %7, %8 : vector<128x32xf32>
    %10 = arith.truncf %9 : vector<128x32xf32> to vector<128x32xbf16>
    %c0_5 = arith.constant 0 : index
    %c0_6 = arith.constant 0 : index
    %11 = vector.load %arg4[%c0_5, %c0_6] : memref<128x32xbf16, #tpu.memory_space<vmem>>, vector<128x32xbf16>
    tpu.vector_store %arg4[%c0_5, %c0_6], %10 {strides = array<i32>} : memref<128x32xbf16, #tpu.memory_space<vmem>>, vector<128x32xbf16>,
    %12 = vector.extract_strided_slice %6 {offsets = [0, 32], sizes = [128, 32], strides = [1, 1]} : vector<128x64xf32> to vector<128x32xf32>
    %c0_7 = arith.constant 0 : index
    %c0_8 = arith.constant 0 : index
    %13 = vector.load %arg5[%c0_7, %c0_8] : memref<128x32xf32, #tpu.memory_space<vmem>>, vector<128x32xf32>
    tpu.vector_store %arg5[%c0_7, %c0_8], %12 {strides = array<i32>} : memref<128x32xf32, #tpu.memory_space<vmem>>, vector<128x32xf32>,
    return
  }
  func.func @transform_0(%arg0: i32) -> (i32, i32) {
    %c0_i32 = arith.constant 0 : i32
    %c0_i32_0 = arith.constant 0 : i32
    return %arg0, %c0_i32 : i32, i32
  }
  func.func @transform_1(%arg0: i32) -> (i32, i32) {
    %c0_i32 = arith.constant 0 : i32
    %c0_i32_0 = arith.constant 0 : i32
    %c0_i32_1 = arith.constant 0 : i32
    return %c0_i32, %c0_i32_0 : i32, i32
  }
  func.func @transform_2(%arg0: i32) -> (i32, i32) {
    %c0_i32 = arith.constant 0 : i32
    %c0_i32_0 = arith.constant 0 : i32
    %c0_i32_1 = arith.constant 0 : i32
    return %c0_i32, %c0_i32_0 : i32, i32
  }
  func.func @transform_3(%arg0: i32) -> (i32, i32) {
    %c0_i32 = arith.constant 0 : i32
    %c0_i32_0 = arith.constant 0 : i32
    return %arg0, %c0_i32 : i32, i32
  }
  func.func @transform_4(%arg0: i32) -> (i32, i32) {
    %c0_i32 = arith.constant 0 : i32
    %c0_i32_0 = arith.constant 0 : i32
    return %arg0, %c0_i32 : i32, i32
  }
}

module attributes {stable_mosaic.version = 11 : i64} {
  func.func @kernel(%arg0: i32, %arg1: memref<8x34x8xbf16, #tpu.memory_space<vmem>>, %arg2: memref<8x34x8xbf16, #tpu.memory_space<vmem>>, %arg3: memref<8x34x8xbf16, #tpu.memory_space<vmem>>, %arg4: memref<72x8xbf16, #tpu.memory_space<vmem>>, %arg5: memref<1x8xf32, #tpu.memory_space<vmem>>, %arg6: memref<256x8xf32, #tpu.memory_space<vmem>>, %arg7: memref<1x2x8xf32, #tpu.memory_space<vmem>>) attributes {dimension_semantics = [#tpu.dimension_semantics<parallel>], iteration_bounds = array<i64: 8>, scalar_prefetch = 0 : i64, scratch_operands = 0 : i64, tpu.core_type = #tpu.core_type<tc>, window_params = [{transform_indices = @transform_0, window_bounds = array<i64: 8, 34, 8>}, {transform_indices = @transform_1, window_bounds = array<i64: 8, 34, 8>}, {transform_indices = @transform_2, window_bounds = array<i64: 8, 34, 8>}, {pipeline_mode = #tpu.pipeline_mode<synchronous>, transform_indices = @transform_3, window_bounds = array<i64: 72, 8>}, {pipeline_mode = #tpu.pipeline_mode<synchronous>, transform_indices = @transform_4, window_bounds = array<i64: 1, 8>}, {transform_indices = @transform_5, window_bounds = array<i64: 256, 8>}, {transform_indices = @transform_6, window_bounds = array<i64: 1, 2, 8>}]} {
    %c0 = arith.constant 0 : index
    %c0_0 = arith.constant 0 : index
    %c0_1 = arith.constant 0 : index
    %0 = vector.load %arg1[%c0, %c0_0, %c0_1] : memref<8x34x8xbf16, #tpu.memory_space<vmem>>, vector<8x34x8xbf16>
    %c0_2 = arith.constant 0 : index
    %c0_3 = arith.constant 0 : index
    %c0_4 = arith.constant 0 : index
    %1 = vector.load %arg2[%c0_2, %c0_3, %c0_4] : memref<8x34x8xbf16, #tpu.memory_space<vmem>>, vector<8x34x8xbf16>
    %c0_5 = arith.constant 0 : index
    %c0_6 = arith.constant 0 : index
    %c0_7 = arith.constant 0 : index
    %2 = vector.load %arg3[%c0_5, %c0_6, %c0_7] : memref<8x34x8xbf16, #tpu.memory_space<vmem>>, vector<8x34x8xbf16>
    %cst = arith.constant 0.000000e+00 : f32
    %3 = vector.broadcast %cst : f32 to vector<256x8xf32>
    %4 = vector.extract_strided_slice %0 {offsets = [0, 0, 0], sizes = [8, 32, 8], strides = [1, 1, 1]} : vector<8x34x8xbf16> to vector<8x32x8xbf16>
    %5 = vector.shape_cast %4 : vector<8x32x8xbf16> to vector<256x8xbf16>
    %c0_8 = arith.constant 0 : index
    %c0_9 = arith.constant 0 : index
    %6 = vector.load %arg4[%c0_8, %c0_9] : memref<72x8xbf16, #tpu.memory_space<vmem>>, vector<8x8xbf16>
    %cst_10 = arith.constant dense<0.000000e+00> : vector<256x8xf32>
    %7 = tpu.matmul %5, %6, %cst_10 {dimension_numbers = #tpu.dot_dimension_numbers<[1], [0], [0], [1], [0, 0, 1, 1], [], []>} : vector<256x8xbf16>, vector<8x8xbf16>, vector<256x8xf32> -> vector<256x8xf32>
    %8 = arith.addf %3, %7 : vector<256x8xf32>
    %9 = vector.extract_strided_slice %0 {offsets = [0, 1, 0], sizes = [8, 32, 8], strides = [1, 1, 1]} : vector<8x34x8xbf16> to vector<8x32x8xbf16>
    %10 = vector.shape_cast %9 : vector<8x32x8xbf16> to vector<256x8xbf16>
    %c8 = arith.constant 8 : index
    %c0_11 = arith.constant 0 : index
    %11 = vector.load %arg4[%c8, %c0_11] : memref<72x8xbf16, #tpu.memory_space<vmem>>, vector<8x8xbf16>
    %cst_12 = arith.constant dense<0.000000e+00> : vector<256x8xf32>
    %12 = tpu.matmul %10, %11, %cst_12 {dimension_numbers = #tpu.dot_dimension_numbers<[1], [0], [0], [1], [0, 0, 1, 1], [], []>} : vector<256x8xbf16>, vector<8x8xbf16>, vector<256x8xf32> -> vector<256x8xf32>
    %13 = arith.addf %8, %12 : vector<256x8xf32>
    %14 = vector.extract_strided_slice %0 {offsets = [0, 2, 0], sizes = [8, 32, 8], strides = [1, 1, 1]} : vector<8x34x8xbf16> to vector<8x32x8xbf16>
    %15 = vector.shape_cast %14 : vector<8x32x8xbf16> to vector<256x8xbf16>
    %c16 = arith.constant 16 : index
    %c0_13 = arith.constant 0 : index
    %16 = vector.load %arg4[%c16, %c0_13] : memref<72x8xbf16, #tpu.memory_space<vmem>>, vector<8x8xbf16>
    %cst_14 = arith.constant dense<0.000000e+00> : vector<256x8xf32>
    %17 = tpu.matmul %15, %16, %cst_14 {dimension_numbers = #tpu.dot_dimension_numbers<[1], [0], [0], [1], [0, 0, 1, 1], [], []>} : vector<256x8xbf16>, vector<8x8xbf16>, vector<256x8xf32> -> vector<256x8xf32>
    %18 = arith.addf %13, %17 : vector<256x8xf32>
    %19 = vector.extract_strided_slice %1 {offsets = [0, 0, 0], sizes = [8, 32, 8], strides = [1, 1, 1]} : vector<8x34x8xbf16> to vector<8x32x8xbf16>
    %20 = vector.shape_cast %19 : vector<8x32x8xbf16> to vector<256x8xbf16>
    %c24 = arith.constant 24 : index
    %c0_15 = arith.constant 0 : index
    %21 = vector.load %arg4[%c24, %c0_15] : memref<72x8xbf16, #tpu.memory_space<vmem>>, vector<8x8xbf16>
    %cst_16 = arith.constant dense<0.000000e+00> : vector<256x8xf32>
    %22 = tpu.matmul %20, %21, %cst_16 {dimension_numbers = #tpu.dot_dimension_numbers<[1], [0], [0], [1], [0, 0, 1, 1], [], []>} : vector<256x8xbf16>, vector<8x8xbf16>, vector<256x8xf32> -> vector<256x8xf32>
    %23 = arith.addf %18, %22 : vector<256x8xf32>
    %24 = vector.extract_strided_slice %1 {offsets = [0, 1, 0], sizes = [8, 32, 8], strides = [1, 1, 1]} : vector<8x34x8xbf16> to vector<8x32x8xbf16>
    %25 = vector.shape_cast %24 : vector<8x32x8xbf16> to vector<256x8xbf16>
    %c32 = arith.constant 32 : index
    %c0_17 = arith.constant 0 : index
    %26 = vector.load %arg4[%c32, %c0_17] : memref<72x8xbf16, #tpu.memory_space<vmem>>, vector<8x8xbf16>
    %cst_18 = arith.constant dense<0.000000e+00> : vector<256x8xf32>
    %27 = tpu.matmul %25, %26, %cst_18 {dimension_numbers = #tpu.dot_dimension_numbers<[1], [0], [0], [1], [0, 0, 1, 1], [], []>} : vector<256x8xbf16>, vector<8x8xbf16>, vector<256x8xf32> -> vector<256x8xf32>
    %28 = arith.addf %23, %27 : vector<256x8xf32>
    %29 = vector.extract_strided_slice %1 {offsets = [0, 2, 0], sizes = [8, 32, 8], strides = [1, 1, 1]} : vector<8x34x8xbf16> to vector<8x32x8xbf16>
    %30 = vector.shape_cast %29 : vector<8x32x8xbf16> to vector<256x8xbf16>
    %c40 = arith.constant 40 : index
    %c0_19 = arith.constant 0 : index
    %31 = vector.load %arg4[%c40, %c0_19] : memref<72x8xbf16, #tpu.memory_space<vmem>>, vector<8x8xbf16>
    %cst_20 = arith.constant dense<0.000000e+00> : vector<256x8xf32>
    %32 = tpu.matmul %30, %31, %cst_20 {dimension_numbers = #tpu.dot_dimension_numbers<[1], [0], [0], [1], [0, 0, 1, 1], [], []>} : vector<256x8xbf16>, vector<8x8xbf16>, vector<256x8xf32> -> vector<256x8xf32>
    %33 = arith.addf %28, %32 : vector<256x8xf32>
    %34 = vector.extract_strided_slice %2 {offsets = [0, 0, 0], sizes = [8, 32, 8], strides = [1, 1, 1]} : vector<8x34x8xbf16> to vector<8x32x8xbf16>
    %35 = vector.shape_cast %34 : vector<8x32x8xbf16> to vector<256x8xbf16>
    %c48 = arith.constant 48 : index
    %c0_21 = arith.constant 0 : index
    %36 = vector.load %arg4[%c48, %c0_21] : memref<72x8xbf16, #tpu.memory_space<vmem>>, vector<8x8xbf16>
    %cst_22 = arith.constant dense<0.000000e+00> : vector<256x8xf32>
    %37 = tpu.matmul %35, %36, %cst_22 {dimension_numbers = #tpu.dot_dimension_numbers<[1], [0], [0], [1], [0, 0, 1, 1], [], []>} : vector<256x8xbf16>, vector<8x8xbf16>, vector<256x8xf32> -> vector<256x8xf32>
    %38 = arith.addf %33, %37 : vector<256x8xf32>
    %39 = vector.extract_strided_slice %2 {offsets = [0, 1, 0], sizes = [8, 32, 8], strides = [1, 1, 1]} : vector<8x34x8xbf16> to vector<8x32x8xbf16>
    %40 = vector.shape_cast %39 : vector<8x32x8xbf16> to vector<256x8xbf16>
    %c56 = arith.constant 56 : index
    %c0_23 = arith.constant 0 : index
    %41 = vector.load %arg4[%c56, %c0_23] : memref<72x8xbf16, #tpu.memory_space<vmem>>, vector<8x8xbf16>
    %cst_24 = arith.constant dense<0.000000e+00> : vector<256x8xf32>
    %42 = tpu.matmul %40, %41, %cst_24 {dimension_numbers = #tpu.dot_dimension_numbers<[1], [0], [0], [1], [0, 0, 1, 1], [], []>} : vector<256x8xbf16>, vector<8x8xbf16>, vector<256x8xf32> -> vector<256x8xf32>
    %43 = arith.addf %38, %42 : vector<256x8xf32>
    %44 = vector.extract_strided_slice %2 {offsets = [0, 2, 0], sizes = [8, 32, 8], strides = [1, 1, 1]} : vector<8x34x8xbf16> to vector<8x32x8xbf16>
    %45 = vector.shape_cast %44 : vector<8x32x8xbf16> to vector<256x8xbf16>
    %c64 = arith.constant 64 : index
    %c0_25 = arith.constant 0 : index
    %46 = vector.load %arg4[%c64, %c0_25] : memref<72x8xbf16, #tpu.memory_space<vmem>>, vector<8x8xbf16>
    %cst_26 = arith.constant dense<0.000000e+00> : vector<256x8xf32>
    %47 = tpu.matmul %45, %46, %cst_26 {dimension_numbers = #tpu.dot_dimension_numbers<[1], [0], [0], [1], [0, 0, 1, 1], [], []>} : vector<256x8xbf16>, vector<8x8xbf16>, vector<256x8xf32> -> vector<256x8xf32>
    %48 = arith.addf %43, %47 : vector<256x8xf32>
    %c0_27 = arith.constant 0 : index
    %c0_28 = arith.constant 0 : index
    %49 = vector.load %arg5[%c0_27, %c0_28] : memref<1x8xf32, #tpu.memory_space<vmem>>, vector<1x8xf32>
    %50 = vector.broadcast %49 : vector<1x8xf32> to vector<256x8xf32>
    %51 = arith.addf %48, %50 : vector<256x8xf32>
    %c0_29 = arith.constant 0 : index
    %c0_30 = arith.constant 0 : index
    %52 = vector.load %arg6[%c0_29, %c0_30] : memref<256x8xf32, #tpu.memory_space<vmem>>, vector<256x8xf32>
    tpu.vector_store %arg6[%c0_29, %c0_30], %51 {strides = array<i32>} : memref<256x8xf32, #tpu.memory_space<vmem>>, vector<256x8xf32>,
    %c256_i32 = arith.constant 256 : i32
    %53 = arith.muli %arg0, %c256_i32 : i32
    %54 = tpu.iota {dimensions = array<i32: 0>} : vector<256x1xi32>
    %55 = vector.broadcast %53 : i32 to vector<256x1xi32>
    %56 = arith.addi %54, %55 : vector<256x1xi32>
    %c2048_i32 = arith.constant 2048 : i32
    %57 = vector.broadcast %c2048_i32 : i32 to vector<256x1xi32>
    %58 = arith.cmpi slt, %56, %57 : vector<256x1xi32>
    %59 = arith.extui %58 : vector<256x1xi1> to vector<256x1xi32>
    %60 = arith.sitofp %59 : vector<256x1xi32> to vector<256x1xf32>
    %61 = vector.broadcast %60 : vector<256x1xf32> to vector<256x8xf32>
    %62 = arith.mulf %51, %61 : vector<256x8xf32>
    %cst_31 = arith.constant dense<0.000000e+00> : vector<8xf32>
    %63 = vector.multi_reduction <add>, %62, %cst_31 [0] : vector<256x8xf32> to vector<8xf32>
    %64 = vector.shape_cast %63 : vector<8xf32> to vector<1x8xf32>
    %65 = arith.mulf %62, %51 : vector<256x8xf32>
    %cst_32 = arith.constant dense<0.000000e+00> : vector<8xf32>
    %66 = vector.multi_reduction <add>, %65, %cst_32 [0] : vector<256x8xf32> to vector<8xf32>
    %67 = vector.shape_cast %66 : vector<8xf32> to vector<1x8xf32>
    %68 = tpu.concatenate %64, %67 in 0 : vector<1x8xf32>, vector<1x8xf32> -> vector<2x8xf32>
    %69 = vector.shape_cast %68 : vector<2x8xf32> to vector<1x2x8xf32>
    %c0_33 = arith.constant 0 : index
    %c0_34 = arith.constant 0 : index
    %c0_35 = arith.constant 0 : index
    %70 = vector.load %arg7[%c0_33, %c0_34, %c0_35] : memref<1x2x8xf32, #tpu.memory_space<vmem>>, vector<1x2x8xf32>
    tpu.vector_store %arg7[%c0_33, %c0_34, %c0_35], %69 {strides = array<i32>} : memref<1x2x8xf32, #tpu.memory_space<vmem>>, vector<1x2x8xf32>,
    return
  }
  func.func @transform_0(%arg0: i32) -> (i32, i32, i32) {
    %c0_i32 = arith.constant 0 : i32
    %c0_i32_0 = arith.constant 0 : i32
    %c0_i32_1 = arith.constant 0 : i32
    return %arg0, %c0_i32, %c0_i32_0 : i32, i32, i32
  }
  func.func @transform_1(%arg0: i32) -> (i32, i32, i32) {
    %c0_i32 = arith.constant 0 : i32
    %c0_i32_0 = arith.constant 0 : i32
    %c0_i32_1 = arith.constant 0 : i32
    return %arg0, %c0_i32, %c0_i32_0 : i32, i32, i32
  }
  func.func @transform_2(%arg0: i32) -> (i32, i32, i32) {
    %c0_i32 = arith.constant 0 : i32
    %c0_i32_0 = arith.constant 0 : i32
    %c0_i32_1 = arith.constant 0 : i32
    return %arg0, %c0_i32, %c0_i32_0 : i32, i32, i32
  }
  func.func @transform_3(%arg0: i32) -> (i32, i32) {
    %c0_i32 = arith.constant 0 : i32
    %c0_i32_0 = arith.constant 0 : i32
    %c0_i32_1 = arith.constant 0 : i32
    return %c0_i32, %c0_i32_0 : i32, i32
  }
  func.func @transform_4(%arg0: i32) -> (i32, i32) {
    %c0_i32 = arith.constant 0 : i32
    %c0_i32_0 = arith.constant 0 : i32
    %c0_i32_1 = arith.constant 0 : i32
    return %c0_i32, %c0_i32_0 : i32, i32
  }
  func.func @transform_5(%arg0: i32) -> (i32, i32) {
    %c0_i32 = arith.constant 0 : i32
    %c0_i32_0 = arith.constant 0 : i32
    return %arg0, %c0_i32 : i32, i32
  }
  func.func @transform_6(%arg0: i32) -> (i32, i32, i32) {
    %c0_i32 = arith.constant 0 : i32
    %c0_i32_0 = arith.constant 0 : i32
    %c0_i32_1 = arith.constant 0 : i32
    return %arg0, %c0_i32, %c0_i32_0 : i32, i32, i32
  }
}

module attributes {stable_mosaic.version = 11 : i64} {
  func.func @kernel(%arg0: i32, %arg1: memref<256x8xf32, #tpu.memory_space<vmem>>, %arg2: memref<256x8xf32, #tpu.memory_space<vmem>>, %arg3: memref<1x8xf32, #tpu.memory_space<vmem>>, %arg4: memref<1x8xf32, #tpu.memory_space<vmem>>, %arg5: memref<256x8xf32, #tpu.memory_space<vmem>>) attributes {dimension_semantics = [#tpu.dimension_semantics<parallel>], iteration_bounds = array<i64: 8>, scalar_prefetch = 0 : i64, scratch_operands = 0 : i64, tpu.core_type = #tpu.core_type<tc>, window_params = [{transform_indices = @transform_0, window_bounds = array<i64: 256, 8>}, {transform_indices = @transform_1, window_bounds = array<i64: 256, 8>}, {pipeline_mode = #tpu.pipeline_mode<synchronous>, transform_indices = @transform_2, window_bounds = array<i64: 1, 8>}, {pipeline_mode = #tpu.pipeline_mode<synchronous>, transform_indices = @transform_3, window_bounds = array<i64: 1, 8>}, {transform_indices = @transform_4, window_bounds = array<i64: 256, 8>}]} {
    %c0 = arith.constant 0 : index
    %c0_0 = arith.constant 0 : index
    %0 = vector.load %arg1[%c0, %c0_0] : memref<256x8xf32, #tpu.memory_space<vmem>>, vector<256x8xf32>
    %c0_1 = arith.constant 0 : index
    %c0_2 = arith.constant 0 : index
    %1 = vector.load %arg3[%c0_1, %c0_2] : memref<1x8xf32, #tpu.memory_space<vmem>>, vector<1x8xf32>
    %2 = vector.broadcast %1 : vector<1x8xf32> to vector<256x8xf32>
    %3 = arith.mulf %0, %2 : vector<256x8xf32>
    %c0_3 = arith.constant 0 : index
    %c0_4 = arith.constant 0 : index
    %4 = vector.load %arg4[%c0_3, %c0_4] : memref<1x8xf32, #tpu.memory_space<vmem>>, vector<1x8xf32>
    %5 = vector.broadcast %4 : vector<1x8xf32> to vector<256x8xf32>
    %6 = arith.addf %3, %5 : vector<256x8xf32>
    %c0_5 = arith.constant 0 : index
    %c0_6 = arith.constant 0 : index
    %7 = vector.load %arg2[%c0_5, %c0_6] : memref<256x8xf32, #tpu.memory_space<vmem>>, vector<256x8xf32>
    %8 = arith.addf %6, %7 : vector<256x8xf32>
    %cst = arith.constant 0.000000e+00 : f32
    %9 = vector.broadcast %cst : f32 to vector<256x8xf32>
    %10 = arith.maximumf %8, %9 : vector<256x8xf32>
    %c0_7 = arith.constant 0 : index
    %c0_8 = arith.constant 0 : index
    %11 = vector.load %arg5[%c0_7, %c0_8] : memref<256x8xf32, #tpu.memory_space<vmem>>, vector<256x8xf32>
    tpu.vector_store %arg5[%c0_7, %c0_8], %10 {strides = array<i32>} : memref<256x8xf32, #tpu.memory_space<vmem>>, vector<256x8xf32>,
    return
  }
  func.func @transform_0(%arg0: i32) -> (i32, i32) {
    %c0_i32 = arith.constant 0 : i32
    %c0_i32_0 = arith.constant 0 : i32
    return %arg0, %c0_i32 : i32, i32
  }
  func.func @transform_1(%arg0: i32) -> (i32, i32) {
    %c0_i32 = arith.constant 0 : i32
    %c0_i32_0 = arith.constant 0 : i32
    return %arg0, %c0_i32 : i32, i32
  }
  func.func @transform_2(%arg0: i32) -> (i32, i32) {
    %c0_i32 = arith.constant 0 : i32
    %c0_i32_0 = arith.constant 0 : i32
    %c0_i32_1 = arith.constant 0 : i32
    return %c0_i32, %c0_i32_0 : i32, i32
  }
  func.func @transform_3(%arg0: i32) -> (i32, i32) {
    %c0_i32 = arith.constant 0 : i32
    %c0_i32_0 = arith.constant 0 : i32
    %c0_i32_1 = arith.constant 0 : i32
    return %c0_i32, %c0_i32_0 : i32, i32
  }
  func.func @transform_4(%arg0: i32) -> (i32, i32) {
    %c0_i32 = arith.constant 0 : i32
    %c0_i32_0 = arith.constant 0 : i32
    return %arg0, %c0_i32 : i32, i32
  }
}

</mosaic_0001>

<bundles_post_ra>
// kernel: squeeze.8
= control target key start
LH: loop header
LB: loop body
LE: loop exit
PB: predicated region body
PF: predicated region fallthrough
CT: control target
= control target key end

     0   :  { %s75_s8 = smov 104   ;;  %vm8_vm0 = vcmask 64512   ;;  %s76_s9 = smov 112   ;;  %s108_s0 = inlined_call_operand.vmem [shape: f32[64], index: 0, kind: input, shape index: {}]   ;;  %s109_s1 = inlined_call_operand.vmem [shape: f32[2,4,8], index: 1, kind: output, shape index: {}]  }
   0x1   :  { %v5_v0 = vld [vmem:[%s108_s0] sm:$0x1]  ;;  %s74_s0 = smov 120   ;;  %s77_s10 = smov 96  }
   0x2   :  { %6 = vst [vmem:[#allocation1] sm:$0x1] %v5_v0  ;;  %s78_s11 = smov 88   ;;  %s79_s12 = smov 80  }
   0x3   :  { %s80_s13 = smov 72  }
   0x9   :  { %v10_v1 = vld [vmem:[#allocation1] sm:$0x1]  }
   0xa   :  { %v22_v2 = vld [vmem:[#allocation1] sm:$0x1]   ;;  %11 = vrot.lane.b32.xlu0 %v10_v1, %s74_s0 }
   0xb   :  { %23 = vrot.lane.b32.xlu1 %v22_v2, %s75_s8  ;;  %v16_v3 = vld [vmem:[#allocation1] sm:$0x1]  }
   0xc   :  { %v28_v4 = vld [vmem:[#allocation1] sm:$0x1]  }
   0xd   :  { %v7_v5 = vld [vmem:[#allocation1] sm:$0x1]  }
   0xe   :  { %9 = vst.msk [vmem:[#allocation0] sm:$0x1] %vm8_vm0, %v7_v5   ;;  %17 = vrot.lane.b32.xlu0 %v16_v3, %s76_s9  ;;  %v34_v6 = vld [vmem:[#allocation1] sm:$0x1]  }
   0xf   :  { %29 = vrot.lane.b32.xlu1 %v28_v4, %s77_s10  ;;  %v40_v7 = vld [vmem:[#allocation1] sm:$0x1]  }
  0x10   :  { %v46_v8 = vld [vmem:[#allocation1] sm:$0x1]  }
  0x12   :  { %35 = vrot.lane.b32.xlu0 %v34_v6, %s78_s11 }
  0x13   :  { %41 = vrot.lane.b32.xlu1 %v40_v7, %s79_s12 }
  0x16   :  { %47 = vrot.lane.b32.xlu0 %v46_v8, %s80_s13 }
  0x7c   :  { %v12_v9 = vpop.permute.xlu0 %11  }
  0x7d   :  { %v24_v10 = vpop.permute.xlu1 %23   ;;  %15 = vst.msk [vmem:[#allocation0 + $0x1] sm:$0x1] %vm8_vm0, %v12_v9  }
  0x7e   :  { %27 = vst.msk [vmem:[#allocation0 + $0x3] sm:$0x1] %vm8_vm0, %v24_v10  }
  0x80   :  { %v18_v11 = vpop.permute.xlu0 %17  }
  0x81   :  { %v30_v12 = vpop.permute.xlu1 %29   ;;  %21 = vst.msk [vmem:[#allocation0 + $0x2] sm:$0x1] %vm8_vm0, %v18_v11  }
  0x82   :  { %33 = vst.msk [vmem:[#allocation0 + $0x8] sm:$0x1] %vm8_vm0, %v30_v12  }
  0x84   :  { %v36_v13 = vpop.permute.xlu0 %35  }
  0x85   :  { %v42_v14 = vpop.permute.xlu1 %41   ;;  %39 = vst.msk [vmem:[#allocation0 + $0x9] sm:$0x1] %vm8_vm0, %v36_v13  }
  0x86   :  { %45 = vst.msk [vmem:[#allocation0 + $0xa] sm:$0x1] %vm8_vm0, %v42_v14  }
  0x88   :  { %v56_v15 = vld [vmem:[#allocation0] sm:$0xf]  ;;  %v48_v16 = vpop.permute.xlu0 %47  }
  0x89   :  { %59 = vst [vmem:[%s109_s1] sm:$0xf] %v56_v15  ;;  %51 = vst.msk [vmem:[#allocation0 + $0xb] sm:$0x1] %vm8_vm0, %v48_v16  }
  0x90   :  { %v61_v17 = vld [vmem:[#allocation0 + $0x8] sm:$0xf] }
  0x91   :  { %66 = vst [vmem:[%s109_s1 + $0x4] sm:$0xf] %v61_v17 }

// kernel: tile.23
= control target key start
LH: loop header
LB: loop body
LE: loop exit
PB: predicated region body
PF: predicated region fallthrough
CT: control target
= control target key end

     0   :  { %s22_s0 = inlined_call_operand.vmem [shape: f32[8], index: 0, kind: input, shape index: {}]   ;;  %s23_s1 = inlined_call_operand.vmem [shape: f32[4,8], index: 1, kind: output, shape index: {}]  }
   0x1   :  { %v4_v0 = vld [vmem:[%s22_s0] ss:$0 sm:$0xff] }
   0x2   :  { %5 = vst [vmem:[%s23_s1] sm:$0xf] %v4_v0 }

// kernel: tile.24
= control target key start
LH: loop header
LB: loop body
LE: loop exit
PB: predicated region body
PF: predicated region fallthrough
CT: control target
= control target key end

     0   :  { %vm8_vm0 = vcmask 64512   ;;  %s40_s8 = smov 8   ;;  %s41_s9 = smov 16   ;;  %vm14_vm1 = vcmask 261312   ;;  %vm20_vm2 = vcmask 195712   ;;  %vm26_vm3 = vcmask 130112   ;;  %s58_s0 = inlined_call_operand.vmem [shape: f32[4,8], index: 0, kind: input, shape index: {}]   ;;  %s59_s1 = inlined_call_operand.vmem [shape: f32[32], index: 1, kind: output, shape index: {}]  }
   0x1   :  { %v5_v0 = vld [vmem:[%s58_s0] sm:$0xf]  ;;  %s39_s0 = smov 24  }
   0x2   :  { %6 = vst [vmem:[#allocation1] sm:$0xf] %v5_v0 }
   0x9   :  { %v11_v1 = vld [vmem:[#allocation1 + $0x3] sm:$0x1]   ;;  %v23_v2 = vld [vmem:[#allocation1 + $0x1] sm:$0x1]   ;;  %v7_v3 = vld [vmem:[#allocation1] sm:$0x1]  }
   0xa   :  { %12 = vrot.lane.b32.xlu0 %v11_v1, %s39_s0  ;;  %24 = vrot.lane.b32.xlu1 %v23_v2, %s40_s8  ;;  %v17_v4 = vld [vmem:[#allocation1 + $0x2] sm:$0x1]   ;;  %9 = vst.msk [vmem:[#allocation0] sm:$0x1] %vm8_vm0, %v7_v3  }
   0xe   :  { %18 = vrot.lane.b32.xlu0 %v17_v4, %s41_s9 }
  0x7c   :  { %v13_v5 = vpop.permute.xlu0 %12   ;;  %v25_v6 = vpop.permute.xlu1 %24  }
  0x7d   :  { %15 = vst.msk [vmem:[#allocation0] sm:$0x1] %vm14_vm1, %v13_v5  }
  0x80   :  { %v19_v7 = vpop.permute.xlu0 %18  }
  0x81   :  { %21 = vst.msk [vmem:[#allocation0] sm:$0x1] %vm20_vm2, %v19_v7  }
  0x82   :  { %27 = vst.msk [vmem:[#allocation0] sm:$0x1] %vm26_vm3, %v25_v6  }
  0x89   :  { %v32_v8 = vld [vmem:[#allocation0] sm:$0x1] }
  0x8a   :  { %35 = vst [vmem:[%s59_s1] sm:$0x1] %v32_v8 }

// kernel: fast_up_projection.5
= control target key start
LH: loop header
LB: loop body
LE: loop exit
PB: predicated region body
PF: predicated region fallthrough
CT: control target
= control target key end

     0   :  { %s635_s15 = smov 0   ;;  %s811_s0 = inlined_call_operand.vmem [shape: f32[512,64], index: 0, kind: input, shape index: {}]   ;;  %s812_s1 = inlined_call_operand.vmem [shape: f32[1,64], index: 1, kind: input, shape index: {}]   ;;  %s813_s2 = inlined_call_operand.vmem [shape: f32[1,64], index: 2, kind: input, shape index: {}]   ;;  %s814_s3 = inlined_call_operand.vmem [shape: bf16[512,32], index: 3, kind: output, shape index: {0}]   ;;  %s815_s4 = inlined_call_operand.vmem [shape: f32[512,32], index: 4, kind: output, shape index: {1}]  }
   0x1 LB: > { %s545_s16 = sadd.s32 4294967295, %s607_s15   ;;  %p549_p0 = scmp.ge.s32.totalorder %s607_s15, 1  ;;  %s607_s15 = sphi %s635_s15, %s15_s15  }
   0x2   : > { %p166_p1 = scmp.lt.s32.totalorder %s607_s15, 5 }
   0x4   : > { %p167_p2 = pnand %p549_p0, %p166_p1 }
   0x5   : > { %s550_s17 = sshll.u32 (!%p167_p2), %s545_s16, 4  ;;  %s609_s27 = smov (!%p167_p2), 96  }
   0x6   : > { %170 = sbr.rel (%p167_p2) target bundleno = 164 (0xa4), region = 32  ;;  %p198_p3 = scmp.lt.s32.totalorder (!%p167_p2), %s550_s17, 63 }
   0xb   : > { %s817_s17 = smov (!%p198_p3, %s550_s17), 63  ;;  %v649_v0 = vld [vmem:[%s812_s1] ss:$0 sm:$0xff]  ;;  %vm357_vm0 = vcmask 257024   ;;  %vm438_vm1 = vcmask 261120  }
   0xc   : > { %s551_s18 = sshll.u32 %s817_s17, 3  ;;  %v661_v1 = vld [vmem:[%s813_s2] ss:$0 sm:$0xff]  ;;  %s553_s26 = sshll.u32 %s817_s17, 2 }
   0xd   : > { %s656_s23 = scalar_lea.vmem %s811_s0, %s551_s18  ;;  %s694_s30 = scalar_lea.vmem %s814_s3, %s553_s26 }
   0xe   : > { %v217_v2 = vld [vmem:[%s656_s23 + $0x10] sm:$0xff]  ;;  %v215_v3 = vld [vmem:[%s656_s23] sm:$0xff]  ;;  %v218_v4 = vld [vmem:[%s656_s23 + $0x18] sm:$0xff]  ;;  %s774_s7 = scalar_lea.vmem %s815_s4, %s551_s18 }
   0xf   : > { %v240_v5 = vmul.f32 %v649_v0, %v217_v2  ;;  %v238_v6 = vmul.f32 %v649_v0, %v215_v3  ;;  %v241_v7 = vmul.f32 %v649_v0, %v218_v4  ;;  %v216_v8 = vld [vmem:[%s656_s23 + $0x8] sm:$0xff]  ;;  %v219_v10 = vld [vmem:[%s656_s23 + $0x20] sm:$0xff]  ;;  %v222_v14 = vld [vmem:[%s656_s23 + $0x38] sm:$0xff] }
  0x10   : > { %v220_v9 = vld [vmem:[%s656_s23 + $0x28] sm:$0xff]  ;;  %v239_v11 = vmul.f32 %v649_v0, %v216_v8  ;;  %v242_v13 = vmul.f32 %v649_v0, %v219_v10  ;;  %v221_v15 = vld [vmem:[%s656_s23 + $0x30] sm:$0xff]  ;;  %v245_v19 = vmul.f32 %v649_v0, %v222_v14  ;;  %v223_v33 = vld [vmem:[%s656_s23 + $0x40] sm:$0xff] }
  0x11   : > { %v243_v12 = vmul.f32 %v649_v0, %v220_v9  ;;  %v263_v16 = vadd.f32 %v661_v1, %v240_v5  ;;  %v261_v17 = vadd.f32 %v661_v1, %v238_v6  ;;  %v264_v18 = vadd.f32 %v661_v1, %v241_v7  ;;  %v224_v32 = vld [vmem:[%s656_s23 + $0x48] sm:$0xff]  ;;  %v226_v38 = vld [vmem:[%s656_s23 + $0x58] sm:$0xff]  ;;  %v225_v39 = vld [vmem:[%s656_s23 + $0x50] sm:$0xff] }
  0x12   : > { %v262_v20 = vadd.f32 %v661_v1, %v239_v11  ;;  %v265_v22 = vadd.f32 %v661_v1, %v242_v13  ;;  %v244_v23 = vmul.f32 %v649_v0, %v221_v15  ;;  %v689_v27 = vadd.f32 %v661_v1, %v245_v19  ;;  %v228_v40 = vld [vmem:[%s656_s23 + $0x68] sm:$0xff]  ;;  %v227_v45 = vld [vmem:[%s656_s23 + $0x60] sm:$0xff]  ;;  %v230_v46 = vld [vmem:[%s656_s23 + $0x78] sm:$0xff] }
  0x13   : > { %v266_v21 = vadd.f32 %v661_v1, %v243_v12  ;;  %394 = vrot.lane.b32.xlu1 %v263_v16, %s609_s27  ;;  %v279_v24 = vmax.f32 %v263_v16, 0.0  ;;  %390 = vrot.lane.b32.xlu0 %v261_v17, %s609_s27  ;;  %v277_v25 = vmax.f32 %v261_v17, 0.0  ;;  %v280_v26 = vmax.f32 %v264_v18, 0.0  ;;  %v229_v50 = vld [vmem:[%s656_s23 + $0x70] sm:$0xff] }
  0x14   : > { %v278_v28 = vmax.f32 %v262_v20, 0.0  ;;  %v281_v30 = vmax.f32 %v265_v22, 0.0  ;;  %v267_v31 = vadd.f32 %v661_v1, %v244_v23  ;;  %v284_v37 = vmax.f32 %v689_v27, 0.0 }
  0x15   : > { %v282_v29 = vmax.f32 %v266_v21, 0.0  ;;  %v578_v34 = vpack.c.bf16 %v279_v24, %v279_v24  ;;  %v576_v35 = vpack.c.bf16 %v277_v25, %v277_v25  ;;  %v579_v36 = vpack.c.bf16 %v280_v26, %v280_v26 }
  0x16   : > { %v577_v41 = vpack.c.bf16 %v278_v28, %v278_v28  ;;  %v580_v43 = vpack.c.bf16 %v281_v30, %v281_v30  ;;  %v283_v44 = vmax.f32 %v267_v31, 0.0  ;;  %v583_v47 = vpack.c.bf16 %v284_v37, %v284_v37 }
  0x17   : > { %v581_v42 = vpack.c.bf16 %v282_v29, %v282_v29  ;;  %360 = vst.msk [vmem:[%s694_s30 + $0x8] sm:$0xf] %vm357_vm0, %v578_v34  ;;  %358 = vst.msk [vmem:[%s694_s30] sm:$0xf] %vm357_vm0, %v576_v35  ;;  %396 = vrot.lane.b32.xlu1 %v264_v18, %s609_s27  ;;  %392 = vrot.lane.b32.xlu0 %v262_v20, %s609_s27  ;;  %v247_v48 = vmul.f32 %v649_v0, %v224_v32 }
  0x18   : > { %361 = vst.msk [vmem:[%s694_s30 + $0xc] sm:$0xf] %vm357_vm0, %v579_v36  ;;  %v246_v49 = vmul.f32 %v649_v0, %v223_v33  ;;  %359 = vst.msk [vmem:[%s694_s30 + $0x4] sm:$0xf] %vm357_vm0, %v577_v41  ;;  %v582_v51 = vpack.c.bf16 %v283_v44, %v283_v44  ;;  %v249_v52 = vmul.f32 %v649_v0, %v226_v38 }
  0x19   : > { %363 = vst.msk [vmem:[%s694_s30 + $0x14] sm:$0xf] %vm357_vm0, %v581_v42  ;;  %362 = vst.msk [vmem:[%s694_s30 + $0x10] sm:$0xf] %vm357_vm0, %v580_v43  ;;  %v248_v53 = vmul.f32 %v649_v0, %v225_v39  ;;  %v251_v54 = vmul.f32 %v649_v0, %v228_v40  ;;  %v270_v55 = vadd.f32 %v661_v1, %v247_v48 }
  0x1a   : > { %365 = vst.msk [vmem:[%s694_s30 + $0x1c] sm:$0xf] %vm357_vm0, %v583_v47  ;;  %v269_v56 = vadd.f32 %v661_v1, %v246_v49  ;;  %v250_v57 = vmul.f32 %v649_v0, %v227_v45  ;;  %v253_v58 = vmul.f32 %v649_v0, %v230_v46  ;;  %364 = vst.msk [vmem:[%s694_s30 + $0x18] sm:$0xf] %vm357_vm0, %v582_v51 }
  0x1b   : > { %v272_v59 = vadd.f32 %v661_v1, %v249_v52  ;;  %v271_v60 = vadd.f32 %v661_v1, %v248_v53  ;;  %v274_v61 = vadd.f32 %v661_v1, %v251_v54  ;;  %v252_v62 = vmul.f32 %v649_v0, %v229_v50  ;;  %400 = vrot.lane.b32.xlu1 %v266_v21, %s609_s27 }
  0x1c   : > { %398 = vrot.lane.b32.xlu0 %v265_v22, %s609_s27  ;;  %v286_v63 = vmax.f32 %v270_v55, 0.0  ;;  %v285_v2 = vmax.f32 %v269_v56, 0.0  ;;  %v273_v3 = vadd.f32 %v661_v1, %v250_v57  ;;  %v276_v4 = vadd.f32 %v661_v1, %v253_v58 }
  0x1d   : > { %v288_v5 = vmax.f32 %v272_v59, 0.0  ;;  %v287_v6 = vmax.f32 %v271_v60, 0.0  ;;  %v290_v7 = vmax.f32 %v274_v61, 0.0  ;;  %v275_v8 = vadd.f32 %v661_v1, %v252_v62 }
  0x1e   : > { %v585_v0 = vpack.c.bf16 %v286_v63, %v286_v63  ;;  %v584_v9 = vpack.c.bf16 %v285_v2, %v285_v2  ;;  %v289_v10 = vmax.f32 %v273_v3, 0.0  ;;  %v292_v11 = vmax.f32 %v276_v4, 0.0 }
  0x1f   : > { %v587_v12 = vpack.c.bf16 %v288_v5, %v288_v5  ;;  %v586_v13 = vpack.c.bf16 %v287_v6, %v287_v6  ;;  %v589_v14 = vpack.c.bf16 %v290_v7, %v290_v7  ;;  %v291_v15 = vmax.f32 %v275_v8, 0.0  ;;  %404 = vrot.lane.b32.xlu1 %v689_v27, %s609_s27 }
  0x20   : > { %402 = vrot.lane.b32.xlu0 %v267_v31, %s609_s27  ;;  %367 = vst.msk [vmem:[%s694_s30 + $0x24] sm:$0xf] %vm357_vm0, %v585_v0  ;;  %366 = vst.msk [vmem:[%s694_s30 + $0x20] sm:$0xf] %vm357_vm0, %v584_v9  ;;  %v588_v1 = vpack.c.bf16 %v289_v10, %v289_v10  ;;  %v591_v16 = vpack.c.bf16 %v292_v11, %v292_v11 }
  0x21   : > { %369 = vst.msk [vmem:[%s694_s30 + $0x2c] sm:$0xf] %vm357_vm0, %v587_v12  ;;  %368 = vst.msk [vmem:[%s694_s30 + $0x28] sm:$0xf] %vm357_vm0, %v586_v13  ;;  %v590_v17 = vpack.c.bf16 %v291_v15, %v291_v15 }
  0x22   : > { %371 = vst.msk [vmem:[%s694_s30 + $0x34] sm:$0xf] %vm357_vm0, %v589_v14  ;;  %370 = vst.msk [vmem:[%s694_s30 + $0x30] sm:$0xf] %vm357_vm0, %v588_v1 }
  0x23   : > { %373 = vst.msk [vmem:[%s694_s30 + $0x3c] sm:$0xf] %vm357_vm0, %v591_v16  ;;  %372 = vst.msk [vmem:[%s694_s30 + $0x38] sm:$0xf] %vm357_vm0, %v590_v17  ;;  %408 = vrot.lane.b32.xlu1 %v270_v55, %s609_s27 }
  0x24   : > { %406 = vrot.lane.b32.xlu0 %v269_v56, %s609_s27 }
  0x27   : > { %412 = vrot.lane.b32.xlu1 %v272_v59, %s609_s27 }
  0x28   : > { %410 = vrot.lane.b32.xlu0 %v271_v60, %s609_s27 }
  0x2b   : > { %416 = vrot.lane.b32.xlu1 %v274_v61, %s609_s27 }
  0x2c   : > { %414 = vrot.lane.b32.xlu0 %v273_v3, %s609_s27 }
  0x2f   : > { %420 = vrot.lane.b32.xlu1 %v276_v4, %s609_s27 }
  0x30   : > { %418 = vrot.lane.b32.xlu0 %v275_v8, %s609_s27 }
  0x85   : > { %v395_v18 = vpop.permute.xlu1 %394  ;;  %v391_v19 = vpop.permute.xlu0 %390 }
  0x86   : > { %441 = vst.msk [vmem:[%s774_s7 + $0x10] sm:$0xff] %vm438_vm1, %v395_v18  ;;  %439 = vst.msk [vmem:[%s774_s7] sm:$0xff] %vm438_vm1, %v391_v19 }
  0x89   : > { %v397_v20 = vpop.permute.xlu1 %396  ;;  %v393_v21 = vpop.permute.xlu0 %392 }
  0x8a   : > { %442 = vst.msk [vmem:[%s774_s7 + $0x18] sm:$0xff] %vm438_vm1, %v397_v20  ;;  %440 = vst.msk [vmem:[%s774_s7 + $0x8] sm:$0xff] %vm438_vm1, %v393_v21 }
  0x8d   : > { %v401_v22 = vpop.permute.xlu1 %400 }
  0x8e   : > { %v399_v23 = vpop.permute.xlu0 %398  ;;  %444 = vst.msk [vmem:[%s774_s7 + $0x28] sm:$0xff] %vm438_vm1, %v401_v22 }
  0x8f   : > { %443 = vst.msk [vmem:[%s774_s7 + $0x20] sm:$0xff] %vm438_vm1, %v399_v23 }
  0x91   : > { %v405_v24 = vpop.permute.xlu1 %404 }
  0x92   : > { %v403_v25 = vpop.permute.xlu0 %402  ;;  %446 = vst.msk [vmem:[%s774_s7 + $0x38] sm:$0xff] %vm438_vm1, %v405_v24 }
  0x93   : > { %445 = vst.msk [vmem:[%s774_s7 + $0x30] sm:$0xff] %vm438_vm1, %v403_v25 }
  0x95   : > { %v409_v26 = vpop.permute.xlu1 %408 }
  0x96   : > { %v407_v27 = vpop.permute.xlu0 %406  ;;  %448 = vst.msk [vmem:[%s774_s7 + $0x48] sm:$0xff] %vm438_vm1, %v409_v26 }
  0x97   : > { %447 = vst.msk [vmem:[%s774_s7 + $0x40] sm:$0xff] %vm438_vm1, %v407_v27 }
  0x99   : > { %v413_v28 = vpop.permute.xlu1 %412 }
  0x9a   : > { %v411_v29 = vpop.permute.xlu0 %410  ;;  %450 = vst.msk [vmem:[%s774_s7 + $0x58] sm:$0xff] %vm438_vm1, %v413_v28 }
  0x9b   : > { %449 = vst.msk [vmem:[%s774_s7 + $0x50] sm:$0xff] %vm438_vm1, %v411_v29 }
  0x9d   : > { %v417_v30 = vpop.permute.xlu1 %416 }
  0x9e   : > { %v415_v31 = vpop.permute.xlu0 %414  ;;  %452 = vst.msk [vmem:[%s774_s7 + $0x68] sm:$0xff] %vm438_vm1, %v417_v30 }
  0x9f   : > { %451 = vst.msk [vmem:[%s774_s7 + $0x60] sm:$0xff] %vm438_vm1, %v415_v31 }
  0xa1   : > { %v421_v32 = vpop.permute.xlu1 %420 }
  0xa2   : > { %v419_v33 = vpop.permute.xlu0 %418  ;;  %454 = vst.msk [vmem:[%s774_s7 + $0x78] sm:$0xff] %vm438_vm1, %v421_v32 }
  0xa3   : > { %453 = vst.msk [vmem:[%s774_s7 + $0x70] sm:$0xff] %vm438_vm1, %v419_v33 }
  0xa4 PF: > { %s15_s15 = sadd.s32 1, %s607_s15  }
  0xa5   : > { %p12_p4 = scmp.ge.s32.totalorder %s15_s15, 6  }
  0xa7   :  { %14 = sbr.rel (!%p12_p4) target bundleno = 1 (0x1), region = 74 }

// kernel: fast_up_projection.4
= control target key start
LH: loop header
LB: loop body
LE: loop exit
PB: predicated region body
PF: predicated region fallthrough
CT: control target
= control target key end

     0   :  { %s3572_s21 = smov 0   ;;  %s5089_s0 = inlined_call_operand.vmem [shape: bf16[32,18,4], index: 0, kind: input, shape index: {}]   ;;  %s5090_s1 = inlined_call_operand.vmem [shape: bf16[32,18,4], index: 1, kind: input, shape index: {}]   ;;  %s5091_s2 = inlined_call_operand.vmem [shape: bf16[32,18,4], index: 2, kind: input, shape index: {}]   ;;  %s5092_s3 = inlined_call_operand.vmem [shape: bf16[36,64], index: 3, kind: input, shape index: {}]   ;;  %s5093_s4 = inlined_call_operand.vmem [shape: f32[1,64], index: 4, kind: input, shape index: {}]   ;;  %s5094_s5 = inlined_call_operand.vmem [shape: f32[512,64], index: 5, kind: output, shape index: {0}]   ;;  %s5095_s6 = inlined_call_operand.vmem [shape: f32[4,2,64], index: 6, kind: output, shape index: {1}]  }
   0x1 LB: > { %s3578_s22 = sadd.s32 4294967295, %s3534_s21   ;;  %p3033_p0 = scmp.ge.s32.totalorder %s3534_s21, 1  ;;  %s3534_s21 = sphi %s3572_s21, %s17_s21  }
   0x2   : > { %p241_p1 = scmp.lt.s32.totalorder %s3534_s21, 5 }
   0x4   : > { %p242_p2 = pnand %p3033_p0, %p241_p1 }
   0x6   : > { %245 = sbr.rel (%p242_p2) target bundleno = 420 (0x1a4), region = 40 }
   0xb   : > { %v3500_v0 = vld [vmem:[%s5092_s3] ss:$0 sps:$4 sm:$0xcc]   ;;  %vm642_vm0 = vcmask 1041408   ;;  %s3034_s25 = sshll.u32 %s3578_s22, 3  ;;  %vm617_vm3 = vcmask 31744  }
   0xc   : > { %v616_v1 = vrot.slane %v3500_v0, 2  ;;  %p289_p3 = scmp.lt.s32.totalorder %s3034_s25, 31  ;;  %v392_v2 = vld [vmem:[%s5092_s3] sm:$0x3]  ;;  %v974_v3 = vld [vmem:[%s5092_s3 + $0x4] sm:$0x3] }
   0xd   : > { %vm393_vm1 = vsmask.f32 3328  ;;  %vm394_vm2 = vsmask.f32 7440  ;;  %v3606_v5 = vsel %vm642_vm0, %v392_v2, 0  ;;  %v3637_v18 = vsel %vm642_vm0, %v974_v3, 0 }
   0xe   : > { %3481 = vmatprep.subr.msk.bf16.mxu1 %vm642_vm0, %v616_v1  ;;  %3480 = vmatprep.subr.msk.bf16.mxu0 %vm642_vm0, %v616_v1  ;;  %v644_v4 = vsel %vm642_vm0, %v616_v1, 0  ;;  %s5179_s25 = smov (!%p289_p3, %s3034_s25), 31  ;;  %v3620_v9 = vld [vmem:[%s5092_s3 + $0x4] ss:$0 sps:$4 sm:$0xcc]   ;;  %vm3652_vm4 = vmor %vm393_vm1, %vm394_vm2  ;;  %vm915_vm5 = vcmask 1042432  }
   0xf   : > { %3479 = vmatpush3.bf16.msra.mxu1 %v644_v4  ;;  %3317 = vmatpush3.bf16.msra.mxu0 %v644_v4  ;;  %s3595_s30 = smul.u32 12, %s5179_s25  ;;  %v1183_v37 = vrot.slane %v3620_v9, 2  ;;  %vm916_vm6 = vcmask 1046532   ;;  %s3040_s7 = sshll.u32 %s3578_s22, 4 }
  0x10   : > { %3482 = vmatprep.subr.msk.bf16.mxu1 %vm642_vm0, %v392_v2  ;;  %3483 = vmatprep.subr.msk.bf16.mxu0 %vm642_vm0, %v974_v3  ;;  %vm3780_vm7 = vmor %vm915_vm5, %vm916_vm6  ;;  %p4843_p4 = scmp.lt.s32.totalorder %s3040_s7, 63  ;;  %vm2708_vm5 = vcmask 523264   ;;  %p315_p5 = scmp.lt.s32.totalorder %s3578_s22, 3 }
  0x11   : > { %s3603_s9 = scalar_lea.vmem %s5089_s0, %s3595_s30  ;;  %s3845_s20 = scalar_lea.vmem %s5090_s1, %s3595_s30 }
  0x12   : > { %v3609_v6 = vld [vmem:[%s3603_s9] sm:$0xf]  ;;  %v3612_v7 = vld [vmem:[%s3603_s9 + $0x4] sm:$0xf]  ;;  %v3615_v8 = vld [vmem:[%s3603_s9 + $0x8] sm:$0x1]  ;;  %s4144_s29 = scalar_lea.vmem %s5091_s2, %s3595_s30 }
  0x13   : > { %v397_v10 = vshrl.u32 %v3609_v6, 16  ;;  %v400_v11 = vshll.u32 %v3609_v6, 16  ;;  %v406_v12 = vshll.u32 %v3612_v7, 16  ;;  %v410_v13 = vshrl.u32 %v3612_v7, 16  ;;  %v3627_v14 = vld [vmem:[%s3603_s9 + $0x30] sm:$0xf] }
  0x14   : > { %v416_v15 = vshll.u32 %v3615_v8, 16  ;;  %v3631_v16 = vld [vmem:[%s3603_s9 + $0x34] sm:$0xf]  ;;  %v3634_v17 = vld [vmem:[%s3603_s9 + $0x38] sm:$0x1]  ;;  %v493_v24 = vshrl.u32 %v3627_v14, 16 }
  0x15   : > { %v399_v19 = vrot.slane %v397_v10, 4  ;;  %v402_v20 = vrot.slane %v400_v11, 5  ;;  %v408_v21 = vrot.slane %v406_v12, 5  ;;  %v412_v22 = vrot.slane %v410_v13, 4  ;;  %v3645_v31 = vld [vmem:[%s3603_s9 + $0xc] sm:$0xf] }
  0x16   : > { %v418_v23 = vrot.slane %v416_v15, 5  ;;  %v496_v25 = vshll.u32 %v3627_v14, 16  ;;  %v502_v26 = vshll.u32 %v3631_v16, 16  ;;  %v506_v29 = vshrl.u32 %v3631_v16, 16  ;;  %v3648_v32 = vld [vmem:[%s3603_s9 + $0x10] sm:$0xf] }
  0x17   : > { %v403_v27 = vor.u32 %v402_v20, %v399_v19  ;;  %v413_v28 = vor.u32 %v412_v22, %v408_v21  ;;  %v512_v30 = vshll.u32 %v3634_v17, 16  ;;  %v495_v34 = vrot.slane %v493_v24, 4  ;;  %v3658_v43 = vld [vmem:[%s3603_s9 + $0x14] sm:$0x1]  ;;  %v3669_v55 = vld [vmem:[%s3603_s9 + $0x3c] sm:$0xf] }
  0x18   : > { %v498_v35 = vrot.slane %v496_v25, 5  ;;  %v504_v36 = vrot.slane %v502_v26, 5  ;;  %v508_v40 = vrot.slane %v506_v29, 4  ;;  %v421_v44 = vshrl.u32 %v3645_v31, 16  ;;  %v3673_v60 = vld [vmem:[%s3603_s9 + $0x40] sm:$0xf] }
  0x19   : > { %v404_v38 = vrot.slane %v403_v27, 4  ;;  %v414_v39 = vrot.slane %v413_v28, 4  ;;  %v514_v41 = vrot.slane %v512_v30, 5  ;;  %v424_v45 = vshll.u32 %v3645_v31, 16  ;;  %v3681_v1 = vld [vmem:[%s3603_s9 + $0x44] sm:$0x1] }
  0x1a   : > { %v499_v42 = vor.u32 %v498_v35, %v495_v34  ;;  %v430_v46 = vshll.u32 %v3648_v32, 16  ;;  %v509_v49 = vor.u32 %v508_v40, %v504_v36  ;;  %v434_v50 = vshrl.u32 %v3648_v32, 16  ;;  %v3687_v11 = vld [vmem:[%s3603_s9 + $0x18] sm:$0xf]  ;;  %v3694_v24 = vld [vmem:[%s3603_s9 + $0x1c] sm:$0xf] }
  0x1b   : > { %v409_v47 = vsel %vm3652_vm4, %v404_v38, %v408_v21  ;;  %v419_v48 = vsel %vm3652_vm4, %v414_v39, %v418_v23  ;;  %v423_v53 = vrot.slane %v421_v44, 4  ;;  %v426_v54 = vrot.slane %v424_v45, 5  ;;  %v3700_v28 = vld [vmem:[%s3603_s9 + $0x20] sm:$0x1]  ;;  %v3707_v38 = vld [vmem:[%s3603_s9 + $0x48] sm:$0xf] }
  0x1c   : > { %v3043_v51 = vcombine.low %v409_v47, %v419_v48  ;;  %v500_v52 = vrot.slane %v499_v42, 4  ;;  %v510_v56 = vrot.slane %v509_v49, 4  ;;  %v432_v57 = vrot.slane %v430_v46, 5  ;;  %v3713_v44 = vld [vmem:[%s5092_s3 + $0x8] sm:$0x3]  ;;  %s3216_s30 = sshll.u32 %s3578_s22, 7 }
  0x1d   : > { %v436_v58 = vrot.slane %v434_v50, 4  ;;  %v440_v59 = vshll.u32 %v3658_v43, 16  ;;  %v923_v61 = vrot.slane %v3615_v8, 5  ;;  %v427_v63 = vor.u32 %v426_v54, %v423_v53  ;;  %v3718_v49 = vld [vmem:[%s3603_s9 + $0x4c] sm:$0xf]  ;;  %s5181_s7 = smov (!%p4843_p4, %s3040_s7), 63 }
  0x1e   : > { %3318 = vmatprep.mubr.msk.bf16.mxu0 %vm617_vm3, %v3043_v51  ;;  %v505_v62 = vsel %vm3652_vm4, %v500_v52, %v504_v36  ;;  %v927_v0 = vrot.slane %v3648_v32, 5  ;;  %v515_v2 = vsel %vm3652_vm4, %v510_v56, %v514_v41  ;;  %v517_v10 = vshrl.u32 %v3669_v55, 16  ;;  %s5183_s22 = smov (!%p315_p5, %s3578_s22), 3 }
  0x1f   : > { %v437_v3 = vor.u32 %v436_v58, %v432_v57  ;;  %v442_v4 = vrot.slane %v440_v59, 5  ;;  %v3047_v12 = vcombine.low %v505_v62, %v515_v2  ;;  %v428_v13 = vrot.slane %v427_v63, 4  ;;  %v3725_v59 = vld [vmem:[%s3603_s9 + $0x50] sm:$0x1]  ;;  %s3042_s15 = sshll.u32 %s5183_s22, 1 }
  0x20   : > { %v520_v15 = vshll.u32 %v3669_v55, 16  ;;  %v526_v19 = vshll.u32 %v3673_v60, 16  ;;  %v519_v21 = vrot.slane %v517_v10, 4  ;;  %v530_v22 = vshrl.u32 %v3673_v60, 16  ;;  %s318_s18 = scalar_lea.vmem %s5095_s6, %s3042_s15 }
  0x21   : > { %v438_v20 = vrot.slane %v437_v3, 4  ;;  %v536_v23 = vshll.u32 %v3681_v1, 16  ;;  %3326 = vmatprep.mubr.msk.bf16.mxu1 %vm617_vm3, %v3047_v12  ;;  %v433_v25 = vsel %vm3652_vm4, %v428_v13, %v432_v57  ;;  %v445_v29 = vshrl.u32 %v3687_v11, 16 }
  0x22   : > { %v522_v26 = vrot.slane %v520_v15, 5  ;;  %v528_v27 = vrot.slane %v526_v19, 5  ;;  %v532_v34 = vrot.slane %v530_v22, 4  ;;  %v448_v36 = vshll.u32 %v3687_v11, 16  ;;  %v3739_v15 = vld [vmem:[%s3603_s9 + $0x28] sm:$0xf] }
  0x23   : > { %v443_v30 = vsel %vm3652_vm4, %v438_v20, %v442_v4  ;;  %v538_v35 = vrot.slane %v536_v23, 5  ;;  %v447_v41 = vrot.slane %v445_v29, 4  ;;  %v454_v42 = vshll.u32 %v3694_v24, 16  ;;  %v3731_v4 = vld [vmem:[%s3603_s9 + $0x24] sm:$0xf] }
  0x24   : > { %v3044_v39 = vcombine.low %v433_v25, %v443_v30  ;;  %v523_v40 = vor.u32 %v522_v26, %v519_v21  ;;  %v533_v45 = vor.u32 %v532_v34, %v528_v27  ;;  %v450_v46 = vrot.slane %v448_v36, 5 }
  0x25   : > { %v458_v47 = vshrl.u32 %v3694_v24, 16  ;;  %v464_v48 = vshll.u32 %v3700_v28, 16  ;;  %v456_v51 = vrot.slane %v454_v42, 5  ;;  %v541_v52 = vshrl.u32 %v3707_v38, 16 }
  0x26   : > { %3319 = vmatmul.mubr.msk.bf16.vlgmr.msra.gmra.mxu0 %vm617_vm3, %v3044_v39  ;;  %v524_v50 = vrot.slane %v523_v40, 4  ;;  %v544_v53 = vshll.u32 %v3707_v38, 16  ;;  %v534_v54 = vrot.slane %v533_v45, 4  ;;  %v451_v56 = vor.u32 %v450_v46, %v447_v41  ;;  %v3752_v39 = vld [vmem:[%s3603_s9 + $0x54] sm:$0xf] }
  0x27   : > { %3353 = vmatpush3.bf16.msra.mxu0 %v3637_v18  ;;  %v460_v57 = vrot.slane %v458_v47, 4  ;;  %v466_v58 = vrot.slane %v464_v48, 5  ;;  %v543_v63 = vrot.slane %v541_v52, 4  ;;  %v550_v3 = vshll.u32 %v3718_v49, 16  ;;  %v3759_v46 = vld [vmem:[%s3603_s9 + $0x58] sm:$0xf] }
  0x28   : > { %v529_v62 = vsel %vm3652_vm4, %v524_v50, %v528_v27  ;;  %v546_v2 = vrot.slane %v544_v53, 5  ;;  %3485 = vmatprep.subr.msk.bf16.mxu0 %vm642_vm0, %v3713_v44  ;;  %v539_v18 = vsel %vm3652_vm4, %v534_v54, %v538_v35  ;;  %v452_v10 = vrot.slane %v451_v56, 4  ;;  %v3745_v27 = vld [vmem:[%s3603_s9 + $0x2c] sm:$0x1] }
  0x29   : > { %v461_v12 = vor.u32 %v460_v57, %v456_v51  ;;  %v554_v13 = vshrl.u32 %v3718_v49, 16  ;;  %v3048_v19 = vcombine.low %v529_v62, %v539_v18  ;;  %v552_v21 = vrot.slane %v550_v3, 5  ;;  %v3770_v57 = vld [vmem:[%s3603_s9 + $0x5c] sm:$0x1]  ;;  %s3041_s9 = sshll.u32 %s5181_s7, 3 }
  0x2a   : > { %v547_v20 = vor.u32 %v546_v2, %v543_v63  ;;  %v560_v22 = vshll.u32 %v3725_v59, 16  ;;  %v457_v23 = vsel %vm3652_vm4, %v452_v10, %v456_v51  ;;  %v469_v29 = vshrl.u32 %v3731_v4, 16  ;;  %s4934_s14 = scalar_lea.vmem %s5094_s5, %s3041_s9 }
  0x2b   : > { %v462_v25 = vrot.slane %v461_v12, 4  ;;  %v556_v26 = vrot.slane %v554_v13, 4  ;;  %3327 = vmatmul.mubr.msk.bf16.vlgmr.msra.gmra.mxu1 %vm617_vm3, %v3048_v19  ;;  %v472_v35 = vshll.u32 %v3731_v4, 16  ;;  %v478_v36 = vshll.u32 %v3739_v15, 16 }
  0x2c   : > { %v548_v30 = vrot.slane %v547_v20, 4  ;;  %v562_v34 = vrot.slane %v560_v22, 5  ;;  %3335 = vmatpush3.bf16.msra.mxu1 %v3606_v5  ;;  %v471_v42 = vrot.slane %v469_v29, 4  ;;  %v482_v45 = vshrl.u32 %v3739_v15, 16 }
  0x2d   : > { %v467_v40 = vsel %vm3652_vm4, %v462_v25, %v466_v58  ;;  %v557_v41 = vor.u32 %v556_v26, %v552_v21  ;;  %v474_v50 = vrot.slane %v472_v35, 5  ;;  %v480_v51 = vrot.slane %v478_v36, 5  ;;  %3484 = vmatprep.subr.msk.bf16.mxu1 %vm642_vm0, %v1183_v37 }
  0x2e   : > { %v3045_v47 = vcombine.low %v457_v23, %v467_v40  ;;  %v553_v48 = vsel %vm3652_vm4, %v548_v30, %v552_v21  ;;  %v484_v52 = vrot.slane %v482_v45, 4  ;;  %v488_v53 = vshll.u32 %v3745_v27, 16 }
  0x2f   : > { %v558_v5 = vrot.slane %v557_v41, 4  ;;  %v565_v54 = vshrl.u32 %v3752_v39, 16  ;;  %v475_v56 = vor.u32 %v474_v50, %v471_v42  ;;  %v568_v58 = vshll.u32 %v3752_v39, 16 }
  0x30   : > { %3322 = vmatprep.mubr.msk.bf16.mxu0 %vm617_vm3, %v3045_v47  ;;  %v574_v62 = vshll.u32 %v3759_v46, 16  ;;  %v578_v63 = vshrl.u32 %v3759_v46, 16  ;;  %v485_v3 = vor.u32 %v484_v52, %v480_v51  ;;  %v490_v18 = vrot.slane %v488_v53, 5 }
  0x31   : > { %v563_v2 = vsel %vm3652_vm4, %v558_v5, %v562_v34  ;;  %v567_v10 = vrot.slane %v565_v54, 4  ;;  %v476_v13 = vrot.slane %v475_v56, 4  ;;  %v570_v19 = vrot.slane %v568_v58, 5 }
  0x32   : > { %v3049_v12 = vcombine.low %v553_v48, %v563_v2  ;;  %v576_v20 = vrot.slane %v574_v62, 5  ;;  %v486_v21 = vrot.slane %v485_v3, 4  ;;  %v580_v22 = vrot.slane %v578_v63, 4 }
  0x33   : > { %v584_v23 = vshll.u32 %v3770_v57, 16  ;;  %v3076_v26 = vrot.slane %v3609_v6, 9  ;;  %v930_v29 = vrot.slane %v3658_v43, 5  ;;  %v481_v30 = vsel %vm3652_vm4, %v476_v13, %v480_v51  ;;  %v1914_v13 = vld [vmem:[%s5092_s3 + $0xc] sm:$0x3] }
  0x34   : > { %3330 = vmatprep.mubr.msk.bf16.mxu1 %vm617_vm3, %v3049_v12  ;;  %v571_v34 = vor.u32 %v570_v19, %v567_v10  ;;  %v920_v35 = vrot.slane %v3612_v7, 5  ;;  %v491_v36 = vsel %vm3652_vm4, %v486_v21, %v490_v18  ;;  %v581_v40 = vor.u32 %v580_v22, %v576_v20 }
  0x35   : > { %v586_v41 = vrot.slane %v584_v23, 5  ;;  %v3077_v42 = vrot.slane %v3645_v31, 9  ;;  %v3046_v45 = vcombine.low %v481_v30, %v491_v36  ;;  %v3060_v51 = vcombine.low %v3609_v6, %v3612_v7  ;;  %v3836_v23 = vld [vmem:[%s5092_s3 + $0x8] ss:$0 sps:$4 sm:$0xcc]  }
  0x36   : > { %v572_v47 = vrot.slane %v571_v34, 4  ;;  %v921_v43 = vsel %vm3780_vm7, %v3076_v26, %v920_v35  ;;  %v922_v48 = vrot.slane %v920_v35, 4  ;;  %v582_v50 = vrot.slane %v581_v40, 4 }
  0x37   : > { %v928_v5 = vsel %vm3780_vm7, %v3077_v42, %v927_v0  ;;  %v929_v52 = vrot.slane %v927_v0, 4  ;;  %3323 = vmatmul.mubr.msk.bf16.gmra.mxu0 %vm617_vm3, %v3046_v45  ;;  %v3078_v6 = vrot.slane %v3687_v11, 9  ;;  %v934_v7 = vrot.slane %v3694_v24, 5 }
  0x38   : > { %v577_v53 = vsel %vm3652_vm4, %v572_v47, %v576_v20  ;;  %v924_v54 = vsel %vm3780_vm7, %v922_v48, %v923_v61  ;;  %v587_v56 = vsel %vm3652_vm4, %v582_v50, %v586_v41  ;;  %v937_v62 = vrot.slane %v3700_v28, 5 }
  0x39   : > { %v3084_v58 = vcombine.low %v921_v43, %v924_v54  ;;  %v931_v0 = vsel %vm3780_vm7, %v929_v52, %v930_v29  ;;  %v3050_v63 = vcombine.low %v577_v53, %v587_v56  ;;  %v935_v8 = vsel %vm3780_vm7, %v3078_v6, %v934_v7  ;;  %v3881_v43 = vld [vmem:[%s3845_s20 + $0x4] sm:$0xf]  ;;  %v3896_v6 = vld [vmem:[%s3845_s20 + $0x8] sm:$0x1] }
  0x3a   : > { %v936_v2 = vrot.slane %v934_v7, 4  ;;  %v3085_v61 = vcombine.low %v928_v5, %v931_v0  ;;  %v941_v3 = vrot.slane %v3739_v15, 5  ;;  %v3079_v10 = vrot.slane %v3731_v4, 9 }
  0x3b   : > { %3354 = vmatprep.mubr.msk.bf16.mxu0 %vm617_vm3, %v3084_v58  ;;  %3331 = vmatmul.mubr.msk.bf16.gmra.mxu1 %vm617_vm3, %v3050_v63  ;;  %v944_v28 = vrot.slane %v3745_v27, 5  ;;  %v948_v12 = vrot.slane %v3631_v16, 5  ;;  %v951_v19 = vrot.slane %v3634_v17, 5  ;;  %v3080_v22 = vrot.slane %v3627_v14, 9 }
  0x3c   : > { %v938_v18 = vsel %vm3780_vm7, %v936_v2, %v937_v62  ;;  %3336 = vmatprep.mubr.msk.bf16.mxu1 %vm617_vm3, %v3060_v51  ;;  %v943_v21 = vrot.slane %v941_v3, 4  ;;  %v1566_v27 = vsel %vm642_vm0, %v3713_v44, 0  ;;  %v955_v29 = vrot.slane %v3673_v60, 5 }
  0x3d   : > { %v3086_v20 = vcombine.low %v935_v8, %v938_v18  ;;  %v950_v26 = vrot.slane %v948_v12, 4  ;;  %v3061_v17 = vcombine.low %v3645_v31, %v3648_v32  ;;  %v1209_v30 = vsel %vm642_vm0, %v1183_v37, 0 }
  0x3e   : > { %v3081_v34 = vrot.slane %v3669_v55, 9  ;;  %v3854_v44 = vsel %vm642_vm0, %v1914_v13, 0  ;;  %v3062_v35 = vcombine.low %v3687_v11, %v3694_v24  ;;  %v3063_v36 = vcombine.low %v3731_v4, %v3739_v15  ;;  %v3873_v24 = vld [vmem:[%s3845_s20] sm:$0xf] }
  0x3f   : > { %3355 = vmatmul.mubr.msk.bf16.vlgmr.msra.gmra.mxu0 %vm617_vm3, %v3085_v61  ;;  %v942_v31 = vsel %vm3780_vm7, %v3079_v10, %v941_v3  ;;  %v945_v9 = vsel %vm3780_vm7, %v943_v21, %v944_v28  ;;  %v3064_v32 = vcombine.low %v3627_v14, %v3631_v16  ;;  %v949_v37 = vsel %vm3780_vm7, %v3080_v22, %v948_v12  ;;  %v3913_v61 = vld [vmem:[%s3845_s20 + $0x10] sm:$0xf] }
  0x40   : > { %3389 = vmatpush3.bf16.msra.mxu0 %v1566_v27  ;;  %3358 = vmatprep.mubr.msk.bf16.mxu0 %vm617_vm3, %v3086_v20  ;;  %v952_v11 = vsel %vm3780_vm7, %v950_v26, %v951_v19  ;;  %v1773_v40 = vrot.slane %v3836_v23, 2  ;;  %v3065_v41 = vcombine.low %v3669_v55, %v3673_v60  ;;  %v957_v42 = vrot.slane %v955_v29, 4 }
  0x41   : > { %v958_v45 = vrot.slane %v3681_v1, 5  ;;  %v962_v47 = vrot.slane %v3718_v49, 5  ;;  %3487 = vmatprep.subr.msk.bf16.mxu0 %vm642_vm0, %v1914_v13  ;;  %v3087_v48 = vcombine.low %v942_v31, %v945_v9  ;;  %v3886_v50 = vsel %vm3780_vm7, %v3081_v34, %v955_v29  ;;  %v3925_v29 = vld [vmem:[%s3845_s20 + $0x18] sm:$0xf] }
  0x42   : > { %v3066_v51 = vcombine.low %v3707_v38, %v3718_v49  ;;  %v3082_v5 = vrot.slane %v3707_v38, 9  ;;  %v3088_v1 = vcombine.low %v949_v37, %v952_v11  ;;  %v965_v52 = vrot.slane %v3725_v59, 5  ;;  %v3905_v59 = vld [vmem:[%s3845_s20 + $0xc] sm:$0xf]  ;;  %v3936_v37 = vld [vmem:[%s3845_s20 + $0x14] sm:$0x1] }
  0x43   : > { %3337 = vmatmul.mubr.msk.bf16.vlgmr.msra.gmra.mxu1 %vm617_vm3, %v3061_v17  ;;  %v1325_v53 = vshrl.u32 %v3873_v24, 16  ;;  %v1328_v54 = vshll.u32 %v3873_v24, 16  ;;  %v3067_v7 = vcombine.low %v3752_v39, %v3759_v46  ;;  %v969_v56 = vrot.slane %v3759_v46, 5 }
  0x44   : > { %3371 = vmatpush3.bf16.msra.mxu1 %v1209_v30  ;;  %3340 = vmatprep.mubr.msk.bf16.mxu1 %vm617_vm3, %v3062_v35  ;;  %v1338_v58 = vshrl.u32 %v3881_v43, 16  ;;  %v1334_v0 = vshll.u32 %v3881_v43, 16  ;;  %v959_v62 = vsel %vm3780_vm7, %v957_v42, %v958_v45  ;;  %v964_v63 = vrot.slane %v962_v47, 4  ;;  %v3933_v35 = vld [vmem:[%s3845_s20 + $0x1c] sm:$0xf] }
  0x45   : > { %v1327_v8 = vrot.slane %v1325_v53, 4  ;;  %v1330_v2 = vrot.slane %v1328_v54, 5  ;;  %3486 = vmatprep.subr.msk.bf16.mxu1 %vm642_vm0, %v1773_v40  ;;  %v3083_v3 = vrot.slane %v3752_v39, 9  ;;  %v1344_v28 = vshll.u32 %v3896_v6, 16  ;;  %v3964_v54 = vld [vmem:[%s3845_s20 + $0x20] sm:$0x1] }
  0x46   : > { %v1336_v18 = vrot.slane %v1334_v0, 5  ;;  %v1340_v10 = vrot.slane %v1338_v58, 4  ;;  %v972_v12 = vrot.slane %v3770_v57, 5  ;;  %v1349_v19 = vshrl.u32 %v3905_v59, 16 }
  0x47   : > { %3359 = vmatmul.mubr.msk.bf16.gmra.mxu0 %vm617_vm3, %v3087_v48  ;;  %v1331_v13 = vor.u32 %v1330_v2, %v1327_v8  ;;  %v1352_v20 = vshll.u32 %v3905_v59, 16  ;;  %v971_v21 = vrot.slane %v969_v56, 4  ;;  %v1362_v27 = vshrl.u32 %v3913_v61, 16 }
  0x48   : > { %3362 = vmatprep.mubr.msk.bf16.mxu0 %vm617_vm3, %v3088_v1  ;;  %v1341_v22 = vor.u32 %v1340_v10, %v1336_v18  ;;  %v1358_v26 = vshll.u32 %v3913_v61, 16  ;;  %v3089_v17 = vcombine.low %v3886_v50, %v959_v62  ;;  %v963_v57 = vsel %vm3780_vm7, %v3082_v5, %v962_v47  ;;  %v3958_v1 = vld [vmem:[%s3845_s20 + $0x24] sm:$0xf]  ;;  %v3970_v62 = vld [vmem:[%s3845_s20 + $0x28] sm:$0xf] }
  0x49   : > { %v966_v30 = vsel %vm3780_vm7, %v964_v63, %v965_v52  ;;  %v1332_v34 = vrot.slane %v1331_v13, 4  ;;  %v1346_v9 = vrot.slane %v1344_v28, 5  ;;  %v1351_v11 = vrot.slane %v1349_v19, 4  ;;  %v3984_v13 = vld [vmem:[%s3845_s20 + $0x30] sm:$0xf] }
  0x4a   : > { %v1342_v31 = vrot.slane %v1341_v22, 4  ;;  %v1354_v42 = vrot.slane %v1352_v20, 5  ;;  %v3944_v45 = vsel %vm3780_vm7, %v3083_v3, %v969_v56  ;;  %v3946_v47 = vrot.slane %v1358_v26, 5 }
  0x4b   : > { %3341 = vmatmul.mubr.msk.bf16.gmra.mxu1 %vm617_vm3, %v3063_v36  ;;  %v1364_v48 = vrot.slane %v1362_v27, 4  ;;  %v1373_v50 = vshrl.u32 %v3925_v29, 16  ;;  %v3090_v5 = vcombine.low %v963_v57, %v966_v30  ;;  %v973_v4 = vsel %vm3780_vm7, %v971_v21, %v972_v12  ;;  %v3989_v27 = vld [vmem:[%s3845_s20 + $0x2c] sm:$0x1] }
  0x4c   : > { %3344 = vmatprep.mubr.msk.bf16.mxu1 %vm617_vm3, %v3064_v32  ;;  %v1376_v15 = vshll.u32 %v3925_v29, 16  ;;  %v1386_v36 = vshrl.u32 %v3933_v35, 16  ;;  %v1337_v52 = vsel %vm3652_vm4, %v1332_v34, %v1336_v18  ;;  %v1368_v53 = vshll.u32 %v3936_v37, 16  ;;  %v3993_v34 = vld [vmem:[%s3845_s20 + $0x34] sm:$0xf] }
  0x4d   : > { %v1375_v14 = vrot.slane %v1373_v50, 4  ;;  %v1382_v16 = vshll.u32 %v3933_v35, 16  ;;  %v1347_v32 = vsel %vm3652_vm4, %v1342_v31, %v1346_v9  ;;  %v1355_v56 = vor.u32 %v1354_v42, %v1351_v11 }
  0x4e   : > { %v1378_v58 = vrot.slane %v1376_v15, 5  ;;  %v1388_v0 = vrot.slane %v1386_v36, 4  ;;  %v3100_v63 = vcombine.low %v3873_v24, %v3881_v43  ;;  %v1365_v8 = vor.u32 %v1364_v48, %v3946_v47  ;;  %v4012_v15 = vld [vmem:[%s3845_s20 + $0x3c] sm:$0xf]  ;;  %v4019_v36 = vld [vmem:[%s3845_s20 + $0x38] sm:$0x1] }
  0x4f   : > { %3363 = vmatmul.mubr.msk.bf16.gmra.mxu0 %vm617_vm3, %v3089_v17  ;;  %v3976_v2 = vrot.slane %v1382_v16, 5  ;;  %v1397_v3 = vshrl.u32 %v3958_v1, 16  ;;  %v3091_v18 = vcombine.low %v3944_v45, %v973_v4  ;;  %v1392_v28 = vshll.u32 %v3964_v54, 16 }
  0x50   : > { %3366 = vmatprep.mubr.msk.bf16.mxu0 %vm617_vm3, %v3090_v5  ;;  %v1379_v10 = vor.u32 %v1378_v58, %v1375_v14  ;;  %v1400_v12 = vshll.u32 %v3958_v1, 16  ;;  %v3117_v19 = vcombine.low %v1337_v52, %v1347_v32  ;;  %v1370_v20 = vrot.slane %v1368_v53, 5  ;;  %v4023_v53 = vld [vmem:[%s3845_s20 + $0x40] sm:$0xf] }
  0x51   : > { %v1389_v21 = vor.u32 %v1388_v0, %v3976_v2  ;;  %v1410_v22 = vshrl.u32 %v3970_v62, 16  ;;  %v1356_v26 = vrot.slane %v1355_v56, 4  ;;  %v1399_v17 = vrot.slane %v1397_v3, 4 }
  0x52   : > { %v1402_v57 = vrot.slane %v1400_v12, 5  ;;  %v1406_v30 = vshll.u32 %v3970_v62, 16  ;;  %v1366_v31 = vrot.slane %v1365_v8, 4  ;;  %v1380_v9 = vrot.slane %v1379_v10, 4 }
  0x53   : > { %3345 = vmatmul.mubr.msk.bf16.gmra.mxu1 %vm617_vm3, %v3065_v41  ;;  %v1412_v11 = vrot.slane %v1410_v22, 4  ;;  %v1421_v42 = vshrl.u32 %v3984_v13, 16  ;;  %v1390_v45 = vrot.slane %v1389_v21, 4  ;;  %v1394_v48 = vrot.slane %v1392_v28, 5  ;;  %v4041_v28 = vld [vmem:[%s3845_s20 + $0x44] sm:$0x1] }
  0x54   : > { %3348 = vmatprep.mubr.msk.bf16.mxu1 %vm617_vm3, %v3066_v51  ;;  %v4004_v50 = vrot.slane %v1406_v30, 5  ;;  %v1416_v55 = vshll.u32 %v3989_v27, 16  ;;  %v3101_v60 = vcombine.low %v3905_v59, %v3913_v61  ;;  %v1424_v41 = vshll.u32 %v3984_v13, 16  ;;  %v4046_v22 = vld [vmem:[%s3845_s20 + $0x48] sm:$0xf] }
  0x55   : > { %v1434_v5 = vshrl.u32 %v3993_v34, 16  ;;  %v1423_v4 = vrot.slane %v1421_v42, 4  ;;  %v1361_v38 = vsel %vm3652_vm4, %v1356_v26, %v3946_v47  ;;  %v1403_v49 = vor.u32 %v1402_v57, %v1399_v17 }
  0x56   : > { %v1413_v51 = vor.u32 %v1412_v11, %v4004_v50  ;;  %v1430_v52 = vshll.u32 %v3993_v34, 16  ;;  %v1371_v14 = vsel %vm3652_vm4, %v1366_v31, %v1370_v20  ;;  %v1385_v16 = vsel %vm3652_vm4, %v1380_v9, %v3976_v2  ;;  %v4053_v31 = vld [vmem:[%s3845_s20 + $0x4c] sm:$0xf] }
  0x57   : > { %3367 = vmatmul.mubr.msk.bf16.gmra.mxu0 %vm617_vm3, %v3091_v18  ;;  %v1426_v47 = vrot.slane %v1424_v41, 5  ;;  %v1436_v32 = vrot.slane %v1434_v5, 4  ;;  %v1395_v56 = vsel %vm3652_vm4, %v1390_v45, %v1394_v48  ;;  %v1418_v58 = vrot.slane %v1416_v55, 5  ;;  %v4069_v55 = vld [vmem:[%s5092_s3 + $0x10] sm:$0x3] }
  0x58   : > { %3390 = vmatprep.mubr.msk.bf16.mxu0 %vm617_vm3, %v3117_v19  ;;  %v4034_v0 = vrot.slane %v1430_v52, 5  ;;  %v1445_v8 = vshrl.u32 %v4012_v15, 16  ;;  %v1440_v18 = vshll.u32 %v4019_v36, 16  ;;  %v1448_v10 = vshll.u32 %v4012_v15, 16  ;;  %v4079_v5 = vld [vmem:[%s3845_s20 + $0x50] sm:$0x1] }
  0x59   : > { %v1427_v3 = vor.u32 %v1426_v47, %v1423_v4  ;;  %v1458_v2 = vshrl.u32 %v4023_v53, 16  ;;  %v1404_v12 = vrot.slane %v1403_v49, 4  ;;  %v1414_v19 = vrot.slane %v1413_v51, 4  ;;  %v4082_v4 = vld [vmem:[%s3845_s20 + $0x54] sm:$0xf] }
  0x5a   : > { %v1437_v20 = vor.u32 %v1436_v32, %v4034_v0  ;;  %v1454_v21 = vshll.u32 %v4023_v53, 16  ;;  %v3118_v26 = vcombine.low %v1361_v38, %v1371_v14  ;;  %v1447_v17 = vrot.slane %v1445_v8, 4  ;;  %v4095_v32 = vld [vmem:[%s3845_s20 + $0x58] sm:$0xf] }
  0x5b   : > { %3349 = vmatmul.mubr.msk.bf16.gmra.mxu1 %vm617_vm3, %v3067_v7  ;;  %v1450_v57 = vrot.slane %v1448_v10, 5  ;;  %v1460_v30 = vrot.slane %v1458_v2, 4  ;;  %v1799_v9 = vsel %vm642_vm0, %v1773_v40, 0  ;;  %v3119_v39 = vcombine.low %v1385_v16, %v1395_v56 }
  0x5c   : > { %3372 = vmatprep.mubr.msk.bf16.mxu1 %vm617_vm3, %v3100_v63  ;;  %v1428_v46 = vrot.slane %v1427_v3, 4  ;;  %v4062_v7 = vrot.slane %v1454_v21, 5  ;;  %v1438_v11 = vrot.slane %v1437_v20, 4  ;;  %v1442_v42 = vrot.slane %v1440_v18, 5 }
  0x5d   : > { %v1469_v45 = vshrl.u32 %v4046_v22, 16  ;;  %v1472_v48 = vshll.u32 %v4046_v22, 16  ;;  %v1409_v23 = vsel %vm3652_vm4, %v1404_v12, %v4004_v50  ;;  %v1419_v40 = vsel %vm3652_vm4, %v1414_v19, %v1418_v58 }
  0x5e   : > { %v1464_v63 = vshll.u32 %v4041_v28, 16  ;;  %v1482_v41 = vshrl.u32 %v4053_v31, 16  ;;  %v1451_v38 = vor.u32 %v1450_v57, %v1447_v17  ;;  %v1461_v49 = vor.u32 %v1460_v30, %v4062_v7 }
  0x5f   : > { %3391 = vmatmul.mubr.msk.bf16.vlgmr.msra.gmra.mxu0 %vm617_vm3, %v3118_v26  ;;  %v1471_v51 = vrot.slane %v1469_v45, 4  ;;  %v1474_v52 = vrot.slane %v1472_v48, 5  ;;  %v3102_v50 = vcombine.low %v3925_v29, %v3933_v35  ;;  %v1433_v14 = vsel %vm3652_vm4, %v1428_v46, %v4034_v0  ;;  %v4112_v46 = vld [vmem:[%s3845_s20 + $0x5c] sm:$0x1] }
  0x60   : > { %3425 = vmatpush3.bf16.msra.mxu0 %v3854_v44  ;;  %3394 = vmatprep.mubr.msk.bf16.mxu0 %vm617_vm3, %v3119_v39  ;;  %v1478_v16 = vshll.u32 %v4053_v31, 16  ;;  %v1484_v47 = vrot.slane %v1482_v41, 4  ;;  %v1443_v56 = vsel %vm3652_vm4, %v1438_v11, %v1442_v42  ;;  %v1488_v44 = vshll.u32 %v4079_v5, 16 }
  0x61   : > { %v1475_v58 = vor.u32 %v1474_v52, %v1471_v51  ;;  %v1493_v8 = vshrl.u32 %v4082_v4, 16  ;;  %3489 = vmatprep.subr.msk.bf16.mxu0 %vm642_vm0, %v4069_v55  ;;  %v3120_v3 = vcombine.low %v1409_v23, %v1419_v40  ;;  %v1466_v18 = vrot.slane %v1464_v63, 5 }
  0x62   : > { %v1480_v0 = vrot.slane %v1478_v16, 5  ;;  %v1496_v10 = vshll.u32 %v4082_v4, 16  ;;  %v1452_v2 = vrot.slane %v1451_v38, 4  ;;  %v1462_v12 = vrot.slane %v1461_v49, 4 }
  0x63   : > { %3373 = vmatmul.mubr.msk.bf16.vlgmr.msra.gmra.mxu1 %vm617_vm3, %v3101_v60  ;;  %v1506_v19 = vshrl.u32 %v4095_v32, 16  ;;  %v1495_v20 = vrot.slane %v1493_v8, 4  ;;  %v3121_v21 = vcombine.low %v1433_v14, %v1443_v56  ;;  %v1502_v57 = vshll.u32 %v4095_v32, 16 }
  0x64   : > { %3407 = vmatpush3.bf16.msra.mxu1 %v1799_v9  ;;  %3376 = vmatprep.mubr.msk.bf16.mxu1 %vm617_vm3, %v3102_v50  ;;  %v1485_v26 = vor.u32 %v1484_v47, %v1480_v0  ;;  %v1498_v17 = vrot.slane %v1496_v10, 5  ;;  %v1476_v30 = vrot.slane %v1475_v58, 4  ;;  %v1490_v39 = vrot.slane %v1488_v44, 5  ;;  %v4119_v9 = vld [vmem:[%s5092_s3 + $0xc] ss:$0 sps:$4 sm:$0xcc]  }
  0x65   : > { %v1508_v11 = vrot.slane %v1506_v19, 4  ;;  %v3103_v60 = vcombine.low %v3958_v1, %v3970_v62  ;;  %v1504_v45 = vrot.slane %v1502_v57, 5  ;;  %v1457_v48 = vsel %vm3652_vm4, %v1452_v2, %v4062_v7  ;;  %v4175_v19 = vld [vmem:[%s4144_s29 + $0x10] sm:$0xf] }
  0x66   : > { %v1486_v42 = vrot.slane %v1485_v26, 4  ;;  %v1467_v23 = vsel %vm3652_vm4, %v1462_v12, %v1466_v18  ;;  %v1499_v40 = vor.u32 %v1498_v17, %v1495_v20  ;;  %v1691_v63 = vrot.slane %v3881_v43, 5  ;;  %v4157_v18 = vld [vmem:[%s4144_s29 + $0x4] sm:$0xf]  ;;  %v4172_v12 = vld [vmem:[%s4144_s29 + $0xc] sm:$0xf] }
  0x67   : > { %3395 = vmatmul.mubr.msk.bf16.gmra.mxu0 %vm617_vm3, %v3120_v3  ;;  %v3104_v41 = vcombine.low %v3984_v13, %v3993_v34  ;;  %v1509_v38 = vor.u32 %v1508_v11, %v1504_v45  ;;  %v1512_v49 = vshll.u32 %v4112_v46, 16  ;;  %v1481_v51 = vsel %vm3652_vm4, %v1476_v30, %v1480_v0  ;;  %v4154_v3 = vld [vmem:[%s4144_s29] sm:$0xf] }
  0x68   : > { %3398 = vmatprep.mubr.msk.bf16.mxu0 %vm617_vm3, %v3121_v21  ;;  %v1491_v7 = vsel %vm3652_vm4, %v1486_v42, %v1490_v39  ;;  %v3122_v52 = vcombine.low %v1457_v48, %v1467_v23  ;;  %v2315_v50 = vrot.slane %v4119_v9, 2  ;;  %v1500_v43 = vrot.slane %v1499_v40, 4  ;;  %v4202_v23 = vld [vmem:[%s4144_s29 + $0x18] sm:$0xf]  ;;  %v4205_v40 = vld [vmem:[%s4144_s29 + $0x1c] sm:$0xf] }
  0x69   : > { %v3133_v14 = vrot.slane %v3873_v24, 9  ;;  %v1693_v16 = vrot.slane %v1691_v63, 4  ;;  %v1694_v47 = vrot.slane %v3896_v6, 5  ;;  %v3123_v56 = vcombine.low %v1481_v51, %v1491_v7 }
  0x6a   : > { %v1510_v58 = vrot.slane %v1509_v38, 4  ;;  %v1514_v44 = vrot.slane %v1512_v49, 5  ;;  %3488 = vmatprep.subr.msk.bf16.mxu1 %vm642_vm0, %v2315_v50  ;;  %v1698_v24 = vrot.slane %v3913_v61, 5  ;;  %v3105_v6 = vcombine.low %v4012_v15, %v4023_v53  ;;  %v4215_v49 = vld [vmem:[%s4144_s29 + $0x24] sm:$0xf] }
  0x6b   : > { %3377 = vmatmul.mubr.msk.bf16.gmra.mxu1 %vm617_vm3, %v3103_v60  ;;  %v3106_v8 = vcombine.low %v4046_v22, %v4053_v31  ;;  %v1505_v0 = vsel %vm3652_vm4, %v1500_v43, %v1504_v45  ;;  %v4164_v10 = vsel %vm3780_vm7, %v3133_v14, %v1691_v63  ;;  %v4168_v61 = vsel %vm3780_vm7, %v1693_v16, %v1694_v47  ;;  %v4224_v43 = vld [vmem:[%s4144_s29 + $0x28] sm:$0xf] }
  0x6c   : > { %3380 = vmatprep.mubr.msk.bf16.mxu1 %vm617_vm3, %v3104_v41  ;;  %v3134_v2 = vrot.slane %v3905_v59, 9  ;;  %v1515_v20 = vsel %vm3652_vm4, %v1510_v58, %v1514_v44  ;;  %v1700_v21 = vrot.slane %v1698_v24, 4  ;;  %v1701_v26 = vrot.slane %v3936_v37, 5 }
  0x6d   : > { %v1705_v17 = vrot.slane %v3933_v35, 5  ;;  %v3107_v57 = vcombine.low %v4082_v4, %v4095_v32  ;;  %v3158_v59 = vcombine.low %v4154_v3, %v4157_v18  ;;  %v2096_v30 = vshrl.u32 %v4154_v3, 16 }
  0x6e   : > { %v2099_v39 = vshll.u32 %v4154_v3, 16  ;;  %v3141_v11 = vcombine.low %v4164_v10, %v4168_v61  ;;  %v2109_v60 = vshrl.u32 %v4157_v18, 16  ;;  %v3159_v37 = vcombine.low %v4172_v12, %v4175_v19  ;;  %v4256_v10 = vld [vmem:[%s4144_s29 + $0x34] sm:$0xf] }
  0x6f   : > { %3399 = vmatmul.mubr.msk.bf16.gmra.mxu0 %vm617_vm3, %v3122_v52  ;;  %v1712_v35 = vrot.slane %v3970_v62, 5  ;;  %v3124_v42 = vcombine.low %v1505_v0, %v1515_v20  ;;  %v4197_v45 = vsel %vm3780_vm7, %v3134_v2, %v1698_v24  ;;  %v2120_v9 = vshrl.u32 %v4172_v12, 16  ;;  %v4250_v24 = vld [vmem:[%s4144_s29 + $0x30] sm:$0xf] }
  0x70   : > { %3402 = vmatprep.mubr.msk.bf16.mxu0 %vm617_vm3, %v3123_v56  ;;  %v2123_v48 = vshll.u32 %v4172_v12, 16  ;;  %v4210_v62 = vsel %vm3780_vm7, %v1700_v21, %v1701_v26  ;;  %v3135_v63 = vrot.slane %v3925_v29, 9  ;;  %v1707_v41 = vrot.slane %v1705_v17, 4  ;;  %v4269_v26 = vld [vmem:[%s4144_s29 + $0x3c] sm:$0xf] }
  0x71   : > { %v1708_v38 = vrot.slane %v3964_v54, 5  ;;  %v2133_v51 = vshrl.u32 %v4175_v19, 16  ;;  %v4219_v7 = vsel %vm642_vm0, %v2315_v50, 0  ;;  %v2570_v52 = vsel %vm642_vm0, %v4069_v55, 0 }
  0x72   : > { %v1719_v14 = vrot.slane %v3993_v34, 5  ;;  %v3160_v29 = vcombine.low %v4202_v23, %v4205_v40  ;;  %v3136_v54 = vrot.slane %v3958_v1, 9  ;;  %v1714_v16 = vrot.slane %v1712_v35, 4 }
  0x73   : > { %3381 = vmatmul.mubr.msk.bf16.gmra.mxu1 %vm617_vm3, %v3105_v6  ;;  %v1715_v47 = vrot.slane %v3989_v27, 5  ;;  %v3142_v50 = vcombine.low %v4197_v45, %v4210_v62  ;;  %v2144_v55 = vshrl.u32 %v4202_v23, 16  ;;  %v2147_v56 = vshll.u32 %v4202_v23, 16 }
  0x74   : > { %3384 = vmatprep.mubr.msk.bf16.mxu1 %vm617_vm3, %v3106_v8  ;;  %v1726_v34 = vrot.slane %v4023_v53, 5  ;;  %v4240_v1 = vsel %vm3780_vm7, %v3135_v63, %v1705_v17  ;;  %v4244_v27 = vsel %vm3780_vm7, %v1707_v41, %v1708_v38  ;;  %v2157_v58 = vshrl.u32 %v4205_v40, 16  ;;  %v4298_v41 = vld [vmem:[%s4144_s29 + $0x48] sm:$0xf] }
  0x75   : > { %v3161_v44 = vcombine.low %v4215_v49, %v4224_v43  ;;  %v2168_v53 = vshrl.u32 %v4215_v49, 16  ;;  %v3137_v6 = vrot.slane %v3984_v13, 9  ;;  %v1721_v8 = vrot.slane %v1719_v14, 4  ;;  %v4272_v13 = vld [vmem:[%s4144_s29 + $0x40] sm:$0xf] }
  0x76   : > { %v1722_v0 = vrot.slane %v4019_v36, 5  ;;  %v4260_v61 = vsel %vm3780_vm7, %v3136_v54, %v1712_v35  ;;  %v4264_v2 = vsel %vm3780_vm7, %v1714_v16, %v1715_v47  ;;  %v2171_v20 = vshll.u32 %v4215_v49, 16  ;;  %v4308_v47 = vld [vmem:[%s4144_s29 + $0x4c] sm:$0xf] }
  0x77   : > { %3403 = vmatmul.mubr.msk.bf16.gmra.mxu0 %vm617_vm3, %v3124_v42  ;;  %v3138_v21 = vrot.slane %v4012_v15, 9  ;;  %v3143_v36 = vcombine.low %v4240_v1, %v4244_v27  ;;  %v2181_v17 = vshrl.u32 %v4224_v43, 16  ;;  %v1729_v35 = vrot.slane %v4041_v28, 5 }
  0x78   : > { %3426 = vmatprep.mubr.msk.bf16.mxu0 %vm617_vm3, %v3158_v59  ;;  %v1728_v59 = vrot.slane %v1726_v34, 4  ;;  %v3162_v15 = vcombine.low %v4250_v24, %v4256_v10  ;;  %v2192_v42 = vshrl.u32 %v4250_v24, 16  ;;  %v2195_v45 = vshll.u32 %v4250_v24, 16 }
  0x79   : > { %v3144_v62 = vcombine.low %v4260_v61, %v4264_v2  ;;  %v4289_v63 = vsel %vm3780_vm7, %v3137_v6, %v1719_v14  ;;  %v4293_v28 = vsel %vm3780_vm7, %v1721_v8, %v1722_v0  ;;  %v4302_v38 = vsel %vm3780_vm7, %v3138_v21, %v1726_v34  ;;  %v4352_v8 = vld [vmem:[%s4144_s29 + $0x58] sm:$0xf] }
  0x7a   : > { %v1733_v14 = vrot.slane %v4053_v31, 5  ;;  %v4316_v1 = vsel %vm3780_vm7, %v1728_v59, %v1729_v35  ;;  %v3139_v34 = vrot.slane %v4046_v22, 9  ;;  %v1740_v27 = vrot.slane %v4095_v32, 5 }
  0x7b   : > { %3385 = vmatmul.mubr.msk.bf16.gmra.mxu1 %vm617_vm3, %v3107_v57  ;;  %v2205_v57 = vshrl.u32 %v4256_v10, 16  ;;  %v2105_v6 = vshll.u32 %v4157_v18, 16  ;;  %v3145_v31 = vcombine.low %v4289_v63, %v4293_v28  ;;  %v2101_v0 = vrot.slane %v2099_v39, 5  ;;  %v4342_v63 = vld [vmem:[%s4144_s29 + $0x54] sm:$0xf] }
  0x7c   : > { %3408 = vmatprep.mubr.msk.bf16.mxu1 %vm617_vm3, %v3141_v11  ;;  %v3163_v11 = vcombine.low %v4269_v26, %v4272_v13  ;;  %v1736_v22 = vrot.slane %v4079_v5, 5  ;;  %v3164_v32 = vcombine.low %v4298_v41, %v4308_v47  ;;  %v3146_v59 = vcombine.low %v4302_v38, %v4316_v1  ;;  %v373_v39 = vld [vmem:[%s4144_s29 + $0x14] sm:$0x1] }
  0x7d   : > { %v4333_v21 = vrot.slane %v2105_v6, 5  ;;  %v1735_v35 = vrot.slane %v1733_v14, 4  ;;  %v4347_v5 = vsel %vm3780_vm7, %v3139_v34, %v1733_v14  ;;  %v3140_v28 = vrot.slane %v4082_v4, 9 }
  0x7e   : > { %v1742_v6 = vrot.slane %v1740_v27, 4  ;;  %v2122_v4 = vrot.slane %v2120_v9, 4  ;;  %v2129_v34 = vshll.u32 %v4175_v19, 16  ;;  %v2139_v61 = vshll.u32 %v373_v39, 16 }
  0x7f   : > { %3427 = vmatmul.mubr.msk.bf16.vlgmr.msra.gmra.mxu0 %vm617_vm3, %v3159_v37  ;;  %v2098_v37 = vrot.slane %v2096_v30, 4  ;;  %v4378_v9 = vsel %vm3780_vm7, %v3140_v28, %v1740_v27  ;;  %v2153_v28 = vshll.u32 %v4205_v40, 16  ;;  %v3192_v2 = vrot.slane %v4172_v12, 9 }
  0x80   : > { %3461 = vmatpush3.bf16.msra.mxu0 %v2570_v52  ;;  %3430 = vmatprep.mubr.msk.bf16.mxu0 %vm617_vm3, %v3160_v29  ;;  %v370_v52 = vld [vmem:[%s4144_s29 + $0x8] sm:$0x1]  ;;  %v2111_v29 = vrot.slane %v2109_v60, 4  ;;  %v1743_v60 = vrot.slane %v4112_v46, 5  ;;  %v2125_v46 = vrot.slane %v2123_v48, 5  ;;  %v4389_v27 = vrot.slane %v2129_v34, 5 }
  0x81   : > { %v2102_v30 = vor.u32 %v2101_v0, %v2098_v37  ;;  %v2115_v16 = vshll.u32 %v370_v52, 16  ;;  %v3191_v0 = vrot.slane %v4154_v3, 9 }
  0x82   : > { %v2112_v14 = vor.u32 %v2111_v29, %v4333_v21  ;;  %v4382_v48 = vsel %vm3780_vm7, %v1742_v6, %v1743_v60  ;;  %v2126_v54 = vor.u32 %v2125_v46, %v2122_v4  ;;  %v2159_v6 = vrot.slane %v2157_v58, 4 }
  0x83   : > { %3409 = vmatmul.mubr.msk.bf16.vlgmr.msra.gmra.mxu1 %vm617_vm3, %v3142_v50  ;;  %v2466_v50 = vrot.slane %v4157_v18, 5  ;;  %v2103_v29 = vrot.slane %v2102_v30, 4  ;;  %v2135_v18 = vrot.slane %v2133_v51, 4  ;;  %v3148_v51 = vcombine.low %v4378_v9, %v4382_v48  ;;  %v385_v9 = vld [vmem:[%s4144_s29 + $0x44] sm:$0x1] }
  0x84   : > { %3443 = vmatpush3.bf16.msra.mxu1 %v4219_v7  ;;  %3412 = vmatprep.mubr.msk.bf16.mxu1 %vm617_vm3, %v3143_v36  ;;  %v4366_v7 = vsel %vm3780_vm7, %v1735_v35, %v1736_v22  ;;  %v3165_v36 = vcombine.low %v4342_v63, %v4352_v8  ;;  %v2469_v22 = vrot.slane %v370_v52, 5  ;;  %v2117_v35 = vrot.slane %v2115_v16, 5 }
  0x85   : > { %v2468_v37 = vrot.slane %v2466_v50, 4  ;;  %v3147_v3 = vcombine.low %v4347_v5, %v4366_v7  ;;  %v2277_v52 = vshrl.u32 %v4352_v8, 16  ;;  %v2149_v16 = vrot.slane %v2147_v56, 5 }
  0x86   : > { %v2467_v30 = vsel %vm3780_vm7, %v3191_v0, %v2466_v50  ;;  %v4407_v5 = vrot.slane %v2153_v28, 5  ;;  %v2127_v50 = vrot.slane %v2126_v54, 4  ;;  %v2473_v58 = vrot.slane %v4175_v19, 5  ;;  %v379_v28 = vld [vmem:[%s4144_s29 + $0x2c] sm:$0x1] }
  0x87   : > { %3431 = vmatmul.mubr.msk.bf16.gmra.mxu0 %vm617_vm3, %v3161_v44  ;;  %v2113_v44 = vrot.slane %v2112_v14, 4  ;;  %v2470_v56 = vsel %vm3780_vm7, %v2468_v37, %v2469_v22  ;;  %v2136_v14 = vor.u32 %v2135_v18, %v4389_v27  ;;  %v2480_v4 = vrot.slane %v4205_v40, 5 }
  0x88   : > { %3434 = vmatprep.mubr.msk.bf16.mxu0 %vm617_vm3, %v3162_v15  ;;  %v2146_v15 = vrot.slane %v2144_v55, 4  ;;  %v2108_v55 = vsel %vm3652_vm4, %v2103_v29, %v4333_v21  ;;  %v2170_v21 = vrot.slane %v2168_v53, 4  ;;  %v2173_v46 = vrot.slane %v2171_v20, 5 }
  0x89   : > { %v2118_v60 = vsel %vm3652_vm4, %v2113_v44, %v2117_v35  ;;  %v3199_v12 = vcombine.low %v2467_v30, %v2470_v56  ;;  %v2160_v54 = vor.u32 %v2159_v6, %v4407_v5  ;;  %v2177_v19 = vshll.u32 %v4224_v43, 16 }
  0x8a   : > { %v3174_v40 = vcombine.low %v2108_v55, %v2118_v60  ;;  %v2141_v53 = vrot.slane %v2139_v61, 5  ;;  %v2476_v20 = vrot.slane %v373_v39, 5  ;;  %v2487_v7 = vrot.slane %v4224_v43, 5  ;;  %v382_v60 = vld [vmem:[%s4144_s29 + $0x38] sm:$0x1] }
  0x8b   : > { %3413 = vmatmul.mubr.msk.bf16.gmra.mxu1 %vm617_vm3, %v3144_v62  ;;  %v376_v62 = vld [vmem:[%s4144_s29 + $0x20] sm:$0x1]  ;;  %v2137_v18 = vrot.slane %v2136_v14, 4  ;;  %v2475_v37 = vrot.slane %v2473_v58, 4  ;;  %v3193_v0 = vrot.slane %v4202_v23, 9  ;;  %v2482_v29 = vrot.slane %v2480_v4, 4 }
  0x8c   : > { %3416 = vmatprep.mubr.msk.bf16.mxu1 %vm617_vm3, %v3145_v31  ;;  %v2150_v31 = vor.u32 %v2149_v16, %v2146_v15  ;;  %v2163_v34 = vshll.u32 %v376_v62, 16  ;;  %v2483_v35 = vrot.slane %v376_v62, 5  ;;  %v2174_v44 = vor.u32 %v2173_v46, %v2170_v21 }
  0x8d   : > { %v4448_v15 = vrot.slane %v2177_v19, 5  ;;  %v3194_v23 = vrot.slane %v4215_v49, 9  ;;  %v2489_v16 = vrot.slane %v2487_v7, 4  ;;  %v2490_v30 = vrot.slane %v379_v28, 5 }
  0x8e   : > { %v2151_v22 = vrot.slane %v2150_v31, 4  ;;  %v2165_v39 = vrot.slane %v2163_v34, 5  ;;  %v2201_v6 = vshll.u32 %v4256_v10, 16  ;;  %v2142_v38 = vsel %vm3652_vm4, %v2137_v18, %v2141_v53 }
  0x8f   : > { %3435 = vmatmul.mubr.msk.bf16.gmra.mxu0 %vm617_vm3, %v3163_v11  ;;  %v2132_v11 = vsel %vm3652_vm4, %v2127_v50, %v4389_v27  ;;  %v2183_v27 = vrot.slane %v2181_v17, 4  ;;  %v2474_v1 = vsel %vm3780_vm7, %v3192_v2, %v2473_v58  ;;  %v2481_v43 = vsel %vm3780_vm7, %v3193_v0, %v2480_v4 }
  0x90   : > { %3438 = vmatprep.mubr.msk.bf16.mxu0 %vm617_vm3, %v3164_v32  ;;  %v2161_v32 = vrot.slane %v2160_v54, 4  ;;  %v2156_v49 = vsel %vm3652_vm4, %v2151_v22, %v4407_v5  ;;  %v2484_v17 = vsel %vm3780_vm7, %v2482_v29, %v2483_v35  ;;  %v2187_v55 = vshll.u32 %v379_v28, 16 }
  0x91   : > { %v2184_v61 = vor.u32 %v2183_v27, %v4448_v15  ;;  %v2194_v2 = vrot.slane %v2192_v42, 4  ;;  %v2197_v5 = vrot.slane %v2195_v45, 5  ;;  %v4482_v62 = vsel %vm3780_vm7, %v3194_v23, %v2487_v7 }
  0x92   : > { %v2166_v56 = vsel %vm3652_vm4, %v2161_v32, %v2165_v39  ;;  %v4489_v50 = vrot.slane %v2201_v6, 5  ;;  %v2207_v14 = vrot.slane %v2205_v57, 4  ;;  %v3175_v42 = vcombine.low %v2132_v11, %v2142_v38  ;;  %v388_v38 = vld [vmem:[%s4144_s29 + $0x50] sm:$0x1] }
  0x93   : > { %3417 = vmatmul.mubr.msk.bf16.gmra.mxu1 %vm617_vm3, %v3146_v59  ;;  %v2477_v59 = vsel %vm3780_vm7, %v2475_v37, %v2476_v20  ;;  %v3201_v31 = vcombine.low %v2481_v43, %v2484_v17  ;;  %v2494_v45 = vrot.slane %v4256_v10, 5  ;;  %v3176_v4 = vcombine.low %v2156_v49, %v2166_v56 }
  0x94   : > { %3420 = vmatprep.mubr.msk.bf16.mxu1 %vm617_vm3, %v3147_v3  ;;  %v2175_v3 = vrot.slane %v2174_v44, 4  ;;  %v3200_v58 = vcombine.low %v2474_v1, %v2477_v59  ;;  %v2189_v46 = vrot.slane %v2187_v55, 5  ;;  %v2185_v57 = vrot.slane %v2184_v61, 4 }
  0x95   : > { %v2198_v34 = vor.u32 %v2197_v5, %v2194_v2  ;;  %v2211_v10 = vshll.u32 %v382_v60, 16  ;;  %v2208_v19 = vor.u32 %v2207_v14, %v4489_v50  ;;  %v3195_v53 = vrot.slane %v4250_v24, 9 }
  0x96   : > { %v2180_v21 = vsel %vm3652_vm4, %v2175_v3, %v4448_v15  ;;  %v2497_v20 = vrot.slane %v382_v60, 5  ;;  %v5102_v7 = vshrl.u32 %v4269_v26, 16  ;;  %v2496_v18 = vrot.slane %v2494_v45, 4 }
  0x97   : > { %3439 = vmatmul.mubr.msk.bf16.gmra.mxu0 %vm617_vm3, %v3165_v36  ;;  %v4486_v36 = vsel %vm3780_vm7, %v2489_v16, %v2490_v30  ;;  %v5103_v48 = vshll.u32 %v4269_v26, 16  ;;  %v5104_v37 = vshrl.u32 %v4272_v13, 16  ;;  %v2249_v22 = vshll.u32 %v4308_v47, 16 }
  0x98   : > { %3462 = vmatprep.mubr.msk.bf16.mxu0 %vm617_vm3, %v3199_v12  ;;  %v2225_v12 = vshll.u32 %v4272_v13, 16  ;;  %v3202_v54 = vcombine.low %v4482_v62, %v4486_v36  ;;  %v2218_v11 = vrot.slane %v5102_v7, 4  ;;  %v2501_v29 = vrot.slane %v4272_v13, 5 }
  0x99   : > { %v2231_v0 = vrot.slane %v5104_v37, 4  ;;  %v5105_v24 = vshrl.u32 %v4298_v41, 16  ;;  %v5106_v44 = vshll.u32 %v4298_v41, 16  ;;  %v2190_v39 = vsel %vm3652_vm4, %v2185_v57, %v2189_v46 }
  0x9a   : > { %v2199_v28 = vrot.slane %v2198_v34, 4  ;;  %v4525_v15 = vrot.slane %v2249_v22, 5  ;;  %v5107_v27 = vshrl.u32 %v4308_v47, 16  ;;  %v2209_v13 = vrot.slane %v2208_v19, 4 }
  0x9b   : > { %3421 = vmatmul.mubr.msk.bf16.gmra.mxu1 %vm617_vm3, %v3148_v51  ;;  %v2221_v51 = vrot.slane %v5103_v48, 5  ;;  %v2242_v35 = vrot.slane %v5105_v24, 4  ;;  %v2245_v32 = vrot.slane %v5106_v44, 5  ;;  %v2213_v16 = vrot.slane %v2211_v10, 5 }
  0x9c   : > { %3444 = vmatprep.mubr.msk.bf16.mxu1 %vm617_vm3, %v3174_v40  ;;  %v4515_v40 = vrot.slane %v2225_v12, 5  ;;  %v2255_v23 = vrot.slane %v5107_v27, 4  ;;  %v2495_v30 = vsel %vm3780_vm7, %v3195_v53, %v2494_v45  ;;  %v2235_v6 = vshll.u32 %v385_v9, 16  ;;  %v391_v53 = vld [vmem:[%s4144_s29 + $0x5c] sm:$0x1] }
  0x9d   : > { %v2498_v1 = vsel %vm3780_vm7, %v2496_v18, %v2497_v20  ;;  %v2222_v59 = vor.u32 %v2221_v51, %v2218_v11  ;;  %v3196_v43 = vrot.slane %v4269_v26, 9  ;;  %v2508_v49 = vrot.slane %v4308_v47, 5 }
  0x9e   : > { %v2232_v17 = vor.u32 %v2231_v0, %v4515_v40  ;;  %v2503_v3 = vrot.slane %v2501_v29, 4  ;;  %v2504_v55 = vrot.slane %v385_v9, 5  ;;  %v2246_v56 = vor.u32 %v2245_v32, %v2242_v35 }
  0x9f   : > { %3463 = vmatmul.mubr.msk.bf16.vlgmr.msra.gmra.mxu0 %vm617_vm3, %v3200_v58  ;;  %v3177_v61 = vcombine.low %v2180_v21, %v2190_v39  ;;  %v2204_v2 = vsel %vm3652_vm4, %v2199_v28, %v4489_v50  ;;  %v2256_v5 = vor.u32 %v2255_v23, %v4525_v15  ;;  %v2259_v62 = vshll.u32 %v388_v38, 16 }
  0xa0   : > { %3466 = vmatprep.mubr.msk.bf16.mxu0 %vm617_vm3, %v3201_v31  ;;  %v2214_v26 = vsel %vm3652_vm4, %v2209_v13, %v2213_v16  ;;  %v3203_v47 = vcombine.low %v2495_v30, %v2498_v1  ;;  %v2237_v36 = vrot.slane %v2235_v6, 5  ;;  %v2273_v60 = vshll.u32 %v4352_v8, 16 }
  0xa1   : > { %v2223_v14 = vrot.slane %v2222_v59, 4  ;;  %v2510_v58 = vrot.slane %v2508_v49, 4  ;;  %v2511_v31 = vrot.slane %v388_v38, 5  ;;  %v2233_v45 = vrot.slane %v2232_v17, 4 }
  0xa2   : > { %v2502_v50 = vsel %vm3780_vm7, %v3196_v43, %v2501_v29  ;;  %v2247_v21 = vrot.slane %v2246_v56, 4  ;;  %v2257_v46 = vrot.slane %v2256_v5, 4  ;;  %v2261_v12 = vrot.slane %v2259_v62, 5 }
  0xa3   : > { %3445 = vmatmul.mubr.msk.bf16.vlgmr.msra.gmra.mxu1 %vm617_vm3, %v3175_v42  ;;  %v3197_v42 = vrot.slane %v4298_v41, 9  ;;  %v5108_v57 = vshrl.u32 %v4342_v63, 16  ;;  %v5109_v10 = vshll.u32 %v4342_v63, 16  ;;  %v3178_v19 = vcombine.low %v2204_v2, %v2214_v26 }
  0xa4   : > { %3448 = vmatprep.mubr.msk.bf16.mxu1 %vm617_vm3, %v3176_v4  ;;  %v2505_v4 = vsel %vm3780_vm7, %v2503_v3, %v2504_v55  ;;  %v2275_v20 = vrot.slane %v2273_v60, 5  ;;  %v2279_v7 = vrot.slane %v2277_v52, 4  ;;  %v2515_v11 = vrot.slane %v4352_v8, 5 }
  0xa5   : > { %v2266_v34 = vrot.slane %v5108_v57, 4  ;;  %v2269_v41 = vrot.slane %v5109_v10, 5  ;;  %v2512_v18 = vsel %vm3780_vm7, %v2510_v58, %v2511_v31  ;;  %v2228_v9 = vsel %vm3652_vm4, %v2223_v14, %v4515_v40 }
  0xa6   : > { %v2238_v48 = vsel %vm3652_vm4, %v2233_v45, %v2237_v36  ;;  %v3204_v51 = vcombine.low %v2502_v50, %v2505_v4  ;;  %v2252_v52 = vsel %vm3652_vm4, %v2247_v21, %v4525_v15  ;;  %v2262_v8 = vsel %vm3652_vm4, %v2257_v46, %v2261_v12 }
  0xa7   : > { %3467 = vmatmul.mubr.msk.bf16.gmra.mxu0 %vm617_vm3, %v3202_v54  ;;  %v2509_v54 = vsel %vm3780_vm7, %v3197_v42, %v2508_v49  ;;  %v2270_v37 = vor.u32 %v2269_v41, %v2266_v34  ;;  %v2283_v0 = vshll.u32 %v391_v53, 16  ;;  %v3198_v22 = vrot.slane %v4342_v63, 9 }
  0xa8   : > { %3470 = vmatprep.mubr.msk.bf16.mxu0 %vm617_vm3, %v3203_v47  ;;  %v3205_v40 = vcombine.low %v2509_v54, %v2512_v18  ;;  %v2280_v29 = vor.u32 %v2279_v7, %v2275_v20  ;;  %v2517_v24 = vrot.slane %v2515_v11, 4  ;;  %v2518_v35 = vrot.slane %v391_v53, 5 }
  0xa9   : > { %v3179_v44 = vcombine.low %v2228_v9, %v2238_v48  ;;  %v3180_v32 = vcombine.low %v2252_v52, %v2262_v8  ;;  %v2271_v39 = vrot.slane %v2270_v37, 4  ;;  %v2285_v15 = vrot.slane %v2283_v0, 5 }
  0xaa   : > { %v2281_v28 = vrot.slane %v2280_v29, 4  ;;  %v2516_v27 = vsel %vm3780_vm7, %v3198_v22, %v2515_v11  ;;  %v2519_v63 = vsel %vm3780_vm7, %v2517_v24, %v2518_v35 }
  0xab   : > { %3449 = vmatmul.mubr.msk.bf16.gmra.mxu1 %vm617_vm3, %v3177_v61  ;;  %v3206_v23 = vcombine.low %v2516_v27, %v2519_v63  ;;  %v2276_v13 = vsel %vm3652_vm4, %v2271_v39, %v2275_v20 }
  0xac   : > { %3452 = vmatprep.mubr.msk.bf16.mxu1 %vm617_vm3, %v3178_v19  ;;  %v2286_v16 = vsel %vm3652_vm4, %v2281_v28, %v2285_v15 }
  0xad   : > { %v3181_v30 = vcombine.low %v2276_v13, %v2286_v16 }
  0xaf   : > { %3471 = vmatmul.mubr.msk.bf16.gmra.mxu0 %vm617_vm3, %v3204_v51 }
  0xb0   : > { %3474 = vmatprep.mubr.msk.bf16.mxu0 %vm617_vm3, %v3205_v40 }
  0xb3   : > { %3453 = vmatmul.mubr.msk.bf16.gmra.mxu1 %vm617_vm3, %v3179_v44 }
  0xb4   : > { %3456 = vmatprep.mubr.msk.bf16.mxu1 %vm617_vm3, %v3180_v32 }
  0xb7   : > { %3475 = vmatmul.mubr.msk.bf16.gmra.mxu0 %vm617_vm3, %v3206_v23 }
  0xbb   : > { %3457 = vmatmul.mubr.msk.bf16.gmra.mxu1 %vm617_vm3, %v3181_v30 }
  0xe6   : > { %v3320_v6 = vpop.f32.mrf.mxu0 }
  0xe8   : > { %v680_v25 = vpop.f32.mrf.mxu0 }
  0xea   : > { %v3321_v59 = vpop.f32.mrf.mxu0 }
  0xeb   : > { %v3328_v38 = vpop.f32.mrf.mxu1 }
  0xec   : > { %v683_v49 = vpop.f32.mrf.mxu0 }
  0xed   : > { %v712_v1 = vpop.f32.mrf.mxu1 }
  0xef   : > { %v3329_v43 = vpop.f32.mrf.mxu1 }
  0xf1   : > { %v715_v17 = vpop.f32.mrf.mxu1 }
  0xf7   : > { %v3324_v3 = vpop.f32.mrf.mxu0 }
  0xf9   : > { %v696_v55 = vpop.f32.mrf.mxu0 }
  0xfb   : > { %v3332_v56 = vpop.f32.mrf.mxu1  ;;  %v3325_v61 = vpop.f32.mrf.mxu0 }
  0xfd   : > { %v728_v2 = vpop.f32.mrf.mxu1  ;;  %v699_v33 = vpop.f32.mrf.mxu0 }
  0xff   : > { %v3333_v5 = vpop.f32.mrf.mxu1  ;;  %v3356_v62 = vpop.f32.mrf.mxu0 }
 0x101   : > { %v4593_v26 = vpop.f32.mrf.mxu1  ;;  %v1060_v47 = vpop.f32.mrf.mxu0 }
 0x103   : > { %v3338_v36 = vpop.f32.mrf.mxu1  ;;  %v3357_v60 = vpop.f32.mrf.mxu0 }
 0x104   : > { %v853_v14 = vadd.f32 %v3338_v36, %v3320_v6 }
 0x105   : > { %v844_v42 = vpop.f32.mrf.mxu1  ;;  %v1063_v58 = vpop.f32.mrf.mxu0 }
 0x106   : > { %v4595_v31 = vadd.f32 %v3356_v62, %v853_v14  ;;  %v845_v45 = vadd.f32 %v844_v42, %v680_v25 }
 0x107   : > { %v3339_v50 = vpop.f32.mrf.mxu1  ;;  %v3360_v4 = vpop.f32.mrf.mxu0 }
 0x108   : > { %v4597_v21 = vadd.f32 %v1060_v47, %v845_v45  ;;  %v856_v46 = vadd.f32 %v3339_v50, %v3321_v59 }
 0x109   : > { %v847_v12 = vpop.f32.mrf.mxu1  ;;  %v1076_v57 = vpop.f32.mrf.mxu0 }
 0x10a   : > { %v4599_v34 = vadd.f32 %v3357_v60, %v856_v46  ;;  %v848_v10 = vadd.f32 %v847_v12, %v683_v49 }
 0x10b   : > { %v3342_v41 = vpop.f32.mrf.mxu1  ;;  %v3361_v19 = vpop.f32.mrf.mxu0 }
 0x10c   : > { %v4601_v53 = vadd.f32 %v1063_v58, %v848_v10  ;;  %v869_v20 = vadd.f32 %v3342_v41, %v3324_v3 }
 0x10d   : > { %v860_v7 = vpop.f32.mrf.mxu1  ;;  %v1079_v11 = vpop.f32.mrf.mxu0 }
 0x10e   : > { %v4603_v54 = vadd.f32 %v3360_v4, %v869_v20  ;;  %v861_v18 = vadd.f32 %v860_v7, %v696_v55 }
 0x10f   : > { %v3343_v9 = vpop.f32.mrf.mxu1  ;;  %v3364_v48 = vpop.f32.mrf.mxu0 }
 0x110   : > { %v4605_v51 = vadd.f32 %v1076_v57, %v861_v18  ;;  %v872_v52 = vadd.f32 %v3343_v9, %v3325_v61 }
 0x111   : > { %v863_v8 = vpop.f32.mrf.mxu1  ;;  %v1092_v37 = vpop.f32.mrf.mxu0 }
 0x112   : > { %v4607_v0 = vadd.f32 %v3361_v19, %v872_v52  ;;  %v864_v22 = vadd.f32 %v863_v8, %v699_v33 }
 0x113   : > { %v3346_v40 = vpop.f32.mrf.mxu1  ;;  %v3365_v29 = vpop.f32.mrf.mxu0 }
 0x114   : > { %v4609_v24 = vadd.f32 %v1079_v11, %v864_v22  ;;  %v885_v35 = vadd.f32 %v3346_v40, %v3328_v38 }
 0x115   : > { %v876_v44 = vpop.f32.mrf.mxu1  ;;  %v1095_v32 = vpop.f32.mrf.mxu0 }
 0x116   : > { %v4611_v39 = vadd.f32 %v3364_v48, %v885_v35  ;;  %v877_v28 = vadd.f32 %v876_v44, %v712_v1 }
 0x117   : > { %v3347_v15 = vpop.f32.mrf.mxu1  ;;  %v3368_v27 = vpop.f32.mrf.mxu0 }
 0x118   : > { %v4613_v63 = vadd.f32 %v1092_v37, %v877_v28  ;;  %v888_v23 = vadd.f32 %v3347_v15, %v3329_v43 }
 0x119   : > { %v879_v13 = vpop.f32.mrf.mxu1  ;;  %v1108_v16 = vpop.f32.mrf.mxu0 }
 0x11a   : > { %v4615_v30 = vadd.f32 %v3365_v29, %v888_v23  ;;  %v880_v6 = vadd.f32 %v879_v13, %v715_v17  ;;  %v2726_v23 = vlaneseq }
 0x11b   : > { %v3350_v25 = vpop.f32.mrf.mxu1  ;;  %v3369_v59 = vpop.f32.mrf.mxu0 }
 0x11c   : > { %v4617_v49 = vadd.f32 %v1095_v32, %v880_v6  ;;  %v901_v38 = vadd.f32 %v3350_v25, %v3332_v56 }
 0x11d   : > { %v892_v3 = vpop.f32.mrf.mxu1  ;;  %v1111_v55 = vpop.f32.mrf.mxu0 }
 0x11e   : > { %v4619_v61 = vadd.f32 %v3368_v27, %v901_v38  ;;  %v893_v1 = vadd.f32 %v892_v3, %v728_v2 }
 0x11f   : > { %v3351_v33 = vpop.f32.mrf.mxu1  ;;  %v4621_v62 = vpop.f32.mrf.mxu0 }
 0x120   : > { %v4623_v47 = vadd.f32 %v1108_v16, %v893_v1  ;;  %v904_v43 = vadd.f32 %v3351_v33, %v3333_v5 }
 0x121   : > { %v895_v36 = vpop.f32.mrf.mxu1  ;;  %v4625_v60 = vpop.f32.mrf.mxu0 }
 0x122   : > { %v4627_v17 = vadd.f32 %v3369_v59, %v904_v43  ;;  %v896_v14 = vadd.f32 %v895_v36, %v4593_v26  ;;  %v4704_v59 = vshrl.u32 %v2726_v23, 7  ;;  %v4716_v43 = vstv %s3216_s30 }
 0x123   : > { %v4630_v42 = vpop.f32.mrf.mxu1  ;;  %v4632_v56 = vpop.f32.mrf.mxu0 }
 0x124   : > { %v4634_v58 = vadd.f32 %v1111_v55, %v896_v14  ;;  %v2729_v33 = vadd.s32 16, %v4704_v59  ;;  %v2730_v36 = vadd.s32 24, %v4704_v59  ;;  %v2728_v14 = vadd.s32 8, %v4704_v59 }
 0x125   : > { %v4636_v2 = vpop.f32.mrf.mxu1  ;;  %v4638_v45 = vpop.f32.mrf.mxu0  ;;  %v2733_v23 = vadd.s32 48, %v4704_v59 }
 0x127   : > { %v4640_v50 = vpop.f32.mrf.mxu1  ;;  %v4642_v5 = vpop.f32.mrf.mxu0 }
 0x129   : > { %v4644_v4 = vpop.f32.mrf.mxu1  ;;  %v4646_v46 = vpop.f32.mrf.mxu0 }
 0x12b   : > { %v4648_v12 = vpop.f32.mrf.mxu1  ;;  %v4650_v26 = vpop.f32.mrf.mxu0 }
 0x12c   : > { %5110 = vst [vmem:[#allocation2_spill] sm:$0xff] %v4650_v26 }
 0x12d   : > { %v4652_v57 = vpop.f32.mrf.mxu1  ;;  %v4654_v10 = vpop.f32.mrf.mxu0 }
 0x12e   : > { %5111 = vst [vmem:[#allocation3_spill] sm:$0xff] %v4654_v10 }
 0x12f   : > { %v4656_v41 = vpop.f32.mrf.mxu1  ;;  %v4658_v19 = vpop.f32.mrf.mxu0 }
 0x130   : > { %5112 = vst [vmem:[#allocation4_spill] sm:$0xff] %v4658_v19 }
 0x131   : > { %v4660_v20 = vpop.f32.mrf.mxu1  ;;  %v4662_v7 = vpop.f32.mrf.mxu0 }
 0x132   : > { %5113 = vst [vmem:[#allocation5_spill] sm:$0xff] %v4662_v7  ;;  %v2735_v7 = vadd.s32 64, %v4704_v59 }
 0x133   : > { %v4664_v11 = vpop.f32.mrf.mxu1  ;;  %v4666_v18 = vpop.f32.mrf.mxu0 }
 0x134   : > { %5114 = vst [vmem:[#allocation6_spill] sm:$0xff] %v4666_v18 }
 0x135   : > { %v4668_v9 = vpop.f32.mrf.mxu1  ;;  %v4670_v48 = vpop.f32.mrf.mxu0 }
 0x136   : > { %5115 = vst [vmem:[#allocation7_spill] sm:$0xff] %v4670_v48  ;;  %v2750_v48 = vadd.s32 %v4716_v43, %v2733_v23 }
 0x137   : > { %v4672_v52 = vpop.f32.mrf.mxu1  ;;  %v4674_v8 = vpop.f32.mrf.mxu0 }
 0x138   : > { %5116 = vst [vmem:[#allocation8_spill] sm:$0xff] %v4674_v8  ;;  %v2745_v8 = vadd.s32 %v4716_v43, %v2728_v14  ;;  %v2736_v14 = vadd.s32 72, %v4704_v59  ;;  %vm2766_vm12 = vcmp.lt.s32.totalorder %v2750_v48, 512 }
 0x139   : > { %v4676_v37 = vpop.f32.mrf.mxu1  ;;  %v4678_v22 = vpop.f32.mrf.mxu0 }
 0x13a   : > { %5117 = vst [vmem:[#allocation9_spill] sm:$0xff] %v4678_v22  ;;  %v2744_v22 = vadd.s32 %v4716_v43, %v4704_v59  ;;  %vm2761_vm11 = vcmp.lt.s32.totalorder %v2745_v8, 512  ;;  %v2741_v8 = vadd.s32 112, %v4704_v59 }
 0x13b   : > { %v4680_v40 = vpop.f32.mrf.mxu1  ;;  %v4682_v29 = vpop.f32.mrf.mxu0 }
 0x13c   : > { %5118 = vst [vmem:[#allocation10_spill] sm:$0xff] %v4682_v29  ;;  %vm2760_vm9 = vcmp.lt.s32.totalorder %v2744_v22, 512 }
 0x13d   : > { %v4684_v35 = vpop.f32.mrf.mxu1  ;;  %v4686_v44 = vpop.f32.mrf.mxu0 }
 0x13e   : > { %5119 = vst [vmem:[#allocation11_spill] sm:$0xff] %v4686_v44 }
 0x13f   : > { %v4688_v32 = vpop.f32.mrf.mxu1  ;;  %v4690_v28 = vpop.f32.mrf.mxu0 }
 0x140   : > { %5120 = vst [vmem:[#allocation12_spill] sm:$0xff] %v4690_v28  ;;  %v2753_v28 = vadd.s32 %v4716_v43, %v2736_v14 }
 0x141   : > { %v4692_v15 = vpop.f32.mrf.mxu1  ;;  %v4694_v27 = vpop.f32.mrf.mxu0 }
 0x142   : > { %5121 = vst [vmem:[#allocation13_spill] sm:$0xff] %v4692_v15  ;;  %5122 = vst [vmem:[#allocation14_spill] sm:$0xff] %v4694_v27  ;;  %v2747_v27 = vadd.s32 %v4716_v43, %v2730_v36  ;;  %v2738_v36 = vadd.s32 88, %v4704_v59  ;;  %vm2769_vm3 = vcmp.lt.s32.totalorder %v2753_v28, 512 }
 0x143   : > { %v4696_v13 = vpop.f32.mrf.mxu1  ;;  %v4698_v16 = vpop.f32.mrf.mxu0 }
 0x144   : > { %5123 = vst [vmem:[#allocation15_spill] sm:$0xff] %v4698_v16  ;;  %vm2763_vm10 = vcmp.lt.s32.totalorder %v2747_v27, 512  ;;  %v1310_v27 = vadd.f32 %v4630_v42, %v4595_v31  ;;  %v1311_v31 = vadd.f32 %v4640_v50, %v4599_v34  ;;  %v1309_v42 = vadd.f32 %v4644_v4, %v4601_v53 }
 0x145   : > { %v4700_v6 = vpop.f32.mrf.mxu1  ;;  %v4702_v25 = vpop.f32.mrf.mxu0  ;;  %v4836_v50 = vadd.s32 %v4716_v43, %v2741_v8 }
 0x146   : > { %5124 = vst [vmem:[#allocation16_spill] sm:$0xff] %v4702_v25  ;;  %v1667_v4 = vadd.f32 %v4621_v62, %v1310_v27  ;;  %v1312_v62 = vadd.f32 %v4652_v57, %v4605_v51  ;;  %v1666_v8 = vadd.f32 %v4638_v45, %v1309_v42  ;;  %v1313_v57 = vadd.f32 %v4660_v20, %v4609_v24  ;;  %v5153_v42 = vld [vmem:[#allocation6_spill] sm:$0xff] }
 0x147   : > { %v4706_v38 = vpop.f32.mrf.mxu1  ;;  %v4708_v3 = vpop.f32.mrf.mxu0  ;;  %v1322_v24 = vadd.f32 %v4680_v40, %v4619_v61  ;;  %vm2774_vm6 = vcmp.lt.s32.totalorder %v4836_v50, 512 }
 0x148   : > { %5125 = vst [vmem:[#allocation17_spill] sm:$0xff] %v4706_v38  ;;  %5126 = vst [vmem:[#allocation18_spill] sm:$0xff] %v4708_v3  ;;  %v2731_v3 = vadd.s32 32, %v4704_v59  ;;  %v2755_v38 = vadd.s32 %v4716_v43, %v2738_v36  ;;  %v1900_v51 = vadd.f32 %v4696_v13, %v1667_v4 }
 0x149   : > { %v4711_v55 = vpop.f32.mrf.mxu1  ;;  %v4713_v1 = vpop.f32.mrf.mxu0  ;;  %v5145_v20 = vld [vmem:[#allocation13_spill] sm:$0xff] }
 0x14a   : > { %5127 = vst [vmem:[#allocation19_spill] sm:$0xff] %v4711_v55  ;;  %5128 = vst [vmem:[#allocation20_spill] sm:$0xff] %v4713_v1  ;;  %v2746_v1 = vadd.s32 %v4716_v43, %v2729_v33  ;;  %v2748_v18 = vadd.s32 %v4716_v43, %v2731_v3  ;;  %v2737_v33 = vadd.s32 80, %v4704_v59  ;;  %vm2771_vm2 = vcmp.lt.s32.totalorder %v2755_v38, 512 }
 0x14b   : > { %v4721_v25 = vpop.f32.mrf.mxu1  ;;  %v4723_v16 = vpop.f32.mrf.mxu0 }
 0x14c   : > { %5129 = vst [vmem:[#allocation21_spill] sm:$0xff] %v4721_v25  ;;  %5130 = vst [vmem:[#allocation22_spill] sm:$0xff] %v4723_v16  ;;  %vm2762_vm8 = vcmp.lt.s32.totalorder %v2746_v1, 512  ;;  %vm2764_vm13 = vcmp.lt.s32.totalorder %v2748_v18, 512  ;;  %v1308_v18 = vadd.f32 %v4636_v2, %v4597_v21 }
 0x14d   : > { %v4726_v44 = vpop.f32.mrf.mxu1  ;;  %v4728_v29 = vpop.f32.mrf.mxu0 }
 0x14e   : > { %5131 = vst [vmem:[#allocation23_spill] sm:$0xff] %v4726_v44  ;;  %5132 = vst [vmem:[#allocation24_spill] sm:$0xff] %v4728_v29  ;;  %v2734_v44 = vadd.s32 56, %v4704_v59  ;;  %v2732_v29 = vadd.s32 40, %v4704_v59 }
 0x14f   : > { %v4736_v25 = vpop.f32.mrf.mxu1  ;;  %v4738_v16 = vpop.f32.mrf.mxu0  ;;  %v5148_v13 = vld [vmem:[#allocation17_spill] sm:$0xff] }
 0x150   : > { %5133 = vst [vmem:[#allocation25_spill] sm:$0xff] %v4736_v25  ;;  %5134 = vst [vmem:[#allocation26_spill] sm:$0xff] %v4738_v16  ;;  %v2739_v16 = vadd.s32 96, %v4704_v59  ;;  %v2751_v10 = vadd.s32 %v4716_v43, %v2734_v44  ;;  %v2749_v55 = vadd.s32 %v4716_v43, %v2732_v29 }
 0x151   : > { %v4747_v19 = vpop.f32.mrf.mxu1  ;;  %v4749_v23 = vpop.f32.mrf.mxu0 }
 0x152   : > { %5135 = vst [vmem:[#allocation27_spill] sm:$0xff] %v4747_v19  ;;  %5136 = vst [vmem:[#allocation28_spill] sm:$0xff] %v4749_v23  ;;  %v2754_v19 = vadd.s32 %v4716_v43, %v2737_v33  ;;  %v2752_v23 = vadd.s32 %v4716_v43, %v2735_v7  ;;  %v2756_v44 = vadd.s32 %v4716_v43, %v2739_v16  ;;  %vm2767_vm14 = vcmp.lt.s32.totalorder %v2751_v10, 512 }
 0x153   : > { %v4752_v3 = vpop.f32.mrf.mxu1  ;;  %v4754_v25 = vpop.f32.mrf.mxu0  ;;  %vm2765_vm15 = vcmp.lt.s32.totalorder %v2749_v55, 512  ;;  %v1314_v10 = vadd.f32 %v4648_v12, %v4603_v54  ;;  %v1665_v55 = vadd.f32 %v4625_v60, %v1308_v18  ;;  %v1315_v60 = vadd.f32 %v4656_v41, %v4607_v0  ;;  %v5150_v18 = vld [vmem:[#allocation3_spill] sm:$0xff] }
 0x154   : > { %5137 = vst [vmem:[#allocation29_spill] sm:$0xff] %v4752_v3  ;;  %5138 = vst [vmem:[#allocation30_spill] sm:$0xff] %v4754_v25  ;;  %v5096_v3 = vmov 0.0   ;;  %vm2770_vm0 = vcmp.lt.s32.totalorder %v2754_v19, 512  ;;  %vm2768_vm1 = vcmp.lt.s32.totalorder %v2752_v23, 512  ;;  %vm2772_vm4 = vcmp.lt.s32.totalorder %v2756_v44, 512 }
 0x155   : > { %v4762_v26 = vpop.f32.mrf.mxu1  ;;  %v4764_v15 = vpop.f32.mrf.mxu0  ;;  %v4768_v25 = vsel %vm2762_vm8, 1.0, %v5096_v3  ;;  %v4772_v29 = vsel %vm2760_vm9, 1.0, %v5096_v3  ;;  %v4777_v7 = vsel %vm2763_vm10, 1.0, %v5096_v3  ;;  %v4781_v33 = vsel %vm2761_vm11, 1.0, %v5096_v3 }
 0x156   : > { %5139 = vst [vmem:[#allocation31_spill] sm:$0xff] %v4777_v7  ;;  %5140 = vst [vmem:[#allocation32_spill] sm:$0xff] %v4781_v33  ;;  %v4785_v1 = vsel %vm2766_vm12, 1.0, %v5096_v3  ;;  %v4789_v22 = vsel %vm2764_vm13, 1.0, %v5096_v3  ;;  %v2742_v3 = vadd.s32 120, %v4704_v59  ;;  %v1668_v44 = vadd.f32 %v4632_v56, %v1311_v31 }
 0x157   : > { %5141 = vst [vmem:[#allocation33_spill] sm:$0xff] %v4785_v1  ;;  %5142 = vst [vmem:[#allocation34_spill] sm:$0xff] %v4789_v22  ;;  %v4791_v36 = vpop.f32.mrf.mxu1  ;;  %v4793_v16 = vpop.f32.mrf.mxu0  ;;  %v2740_v22 = vadd.s32 104, %v4704_v59  ;;  %v5143_v1 = vmov 0.0   ;;  %v1671_v0 = vadd.f32 %v4642_v5, %v1314_v10  ;;  %v1317_v41 = vadd.f32 %v4676_v37, %v4617_v49  ;;  %v5147_v37 = vld [vmem:[#allocation12_spill] sm:$0xff] }
 0x158   : > { %v4813_v21 = vsel %vm2767_vm14, 1.0, %v5143_v1  ;;  %v4817_v2 = vsel %vm2765_vm15, 1.0, %v5143_v1  ;;  %v4825_v59 = vsel %vm2770_vm0, 1.0, %v5143_v1  ;;  %v4829_v34 = vsel %vm2768_vm1, 1.0, %v5143_v1 }
 0x159   : > { %v4800_v48 = vpop.f32.mrf.mxu1  ;;  %v4802_v14 = vpop.f32.mrf.mxu0  ;;  %v4833_v53 = vsel %vm2771_vm2, 1.0, %v5143_v1  ;;  %v4849_v19 = vsel %vm2769_vm3, 1.0, %v5143_v1  ;;  %v4853_v38 = vsel %vm2772_vm4, 1.0, %v5143_v1  ;;  %v4863_v12 = vadd.s32 %v4716_v43, %v2742_v3 }
 0x15a   : > { %v4866_v28 = vadd.s32 %v4716_v43, %v2740_v22  ;;  %v1318_v3 = vadd.f32 %v4664_v11, %v4611_v39  ;;  %v1316_v43 = vadd.f32 %v4668_v9, %v4613_v63  ;;  %v1319_v22 = vadd.f32 %v4672_v52, %v4615_v30  ;;  %v5146_v9 = vld [vmem:[#allocation2_spill] sm:$0xff] }
 0x15b   : > { %v4819_v33 = vpop.f32.mrf.mxu1  ;;  %v4821_v7 = vpop.f32.mrf.mxu0  ;;  %v1898_v39 = vadd.f32 %v4700_v6, %v1665_v55  ;;  %v1669_v63 = vadd.f32 %v4646_v46, %v1312_v62  ;;  %v1320_v30 = vadd.f32 %v4684_v35, %v4623_v47  ;;  %v1323_v5 = vadd.f32 %v4688_v32, %v4627_v17  ;;  %v5149_v46 = vld [vmem:[#allocation19_spill] sm:$0xff]  ;;  %v5151_v35 = vld [vmem:[#allocation4_spill] sm:$0xff]  ;;  %v5152_v17 = vld [vmem:[#allocation5_spill] sm:$0xff] }
 0x15c   : > { %v1321_v49 = vadd.f32 %v5145_v20, %v4634_v58  ;;  %v1672_v52 = vadd.f32 %v5146_v9, %v1315_v60  ;;  %v2081_v40 = vadd.f32 %v5147_v37, %v1900_v51  ;;  %v1901_v6 = vadd.f32 %v5148_v13, %v1668_v44  ;;  %v5154_v55 = vld [vmem:[#allocation7_spill] sm:$0xff]  ;;  %v5155_v20 = vld [vmem:[#allocation8_spill] sm:$0xff]  ;;  %v5156_v9 = vld [vmem:[#allocation14_spill] sm:$0xff] }
 0x15d   : > { %v4858_v23 = vpop.f32.mrf.mxu1  ;;  %v4860_v54 = vpop.f32.mrf.mxu0  ;;  %v1899_v27 = vadd.f32 %v5149_v46, %v1666_v8  ;;  %v1670_v47 = vadd.f32 %v5150_v18, %v1313_v57  ;;  %v1675_v31 = vadd.f32 %v5151_v35, %v1318_v3  ;;  %v1673_v32 = vadd.f32 %v5152_v17, %v1316_v43  ;;  %v5157_v44 = vld [vmem:[#allocation9_spill] sm:$0xff]  ;;  %v5158_v13 = vld [vmem:[#allocation10_spill] sm:$0xff]  ;;  %v5159_v46 = vld [vmem:[#allocation11_spill] sm:$0xff] }
 0x15e   : > { %v1676_v58 = vadd.f32 %v5153_v42, %v1319_v22  ;;  %v1674_v62 = vadd.f32 %v5154_v55, %v1317_v41  ;;  %v1679_v60 = vadd.f32 %v5155_v20, %v1322_v24  ;;  %v2079_v51 = vadd.f32 %v5156_v9, %v1898_v39  ;;  %v5160_v18 = vld [vmem:[#allocation21_spill] sm:$0xff]  ;;  %v4923_v22 = vld [vmem:[%s5093_s4] ss:$0 sm:$0xff]  ;;  %v5161_v24 = vld [vmem:[#allocation15_spill] sm:$0xff] }
 0x15f   : > { %v4881_v56 = vpop.f32.mrf.mxu1  ;;  %v3464_v45 = vpop.f32.mrf.mxu0  ;;  %v1677_v8 = vadd.f32 %v5157_v44, %v1320_v30  ;;  %v1680_v57 = vadd.f32 %v5158_v13, %v1323_v5  ;;  %v1678_v3 = vadd.f32 %v5159_v46, %v1321_v49  ;;  %v1904_v43 = vadd.f32 %v5160_v18, %v1671_v0  ;;  %v5162_v39 = vld [vmem:[#allocation16_spill] sm:$0xff]  ;;  %v5163_v30 = vld [vmem:[#allocation23_spill] sm:$0xff]  ;;  %v5164_v5 = vld [vmem:[#allocation25_spill] sm:$0xff] }
 0x160   : > { %v2082_v17 = vadd.f32 %v5161_v24, %v1901_v6  ;;  %v1902_v55 = vadd.f32 %v5163_v30, %v1669_v63  ;;  %v1905_v20 = vadd.f32 %v5164_v5, %v1672_v52  ;;  %v5165_v49 = vld [vmem:[#allocation27_spill] sm:$0xff]  ;;  %v5166_v0 = vld [vmem:[#allocation29_spill] sm:$0xff]  ;;  %v1912_v46 = vadd.f32 %v4819_v33, %v1679_v60  ;;  %v5171_v60 = vld [vmem:[#allocation26_spill] sm:$0xff] }
 0x161   : > { %v4902_v11 = vpop.f32.mrf.mxu1  ;;  %v2606_v61 = vpop.f32.mrf.mxu0  ;;  %v1903_v9 = vadd.f32 %v5165_v49, %v1670_v47  ;;  %v1908_v44 = vadd.f32 %v5166_v0, %v1675_v31  ;;  %v1909_v47 = vadd.f32 %v4791_v36, %v1676_v58  ;;  %v1907_v31 = vadd.f32 %v4800_v48, %v1674_v62  ;;  %v5170_v36 = vld [vmem:[#allocation24_spill] sm:$0xff] }
 0x162   : > { %v1910_v24 = vadd.f32 %v4858_v23, %v1677_v8  ;;  %v1913_v48 = vadd.f32 %v4881_v56, %v1680_v57  ;;  %v5172_v23 = vld [vmem:[#allocation28_spill] sm:$0xff]  ;;  %v4966_v0 = vadd.f32 %v4793_v16, %v1912_v46  ;;  %vm2775_vm7 = vcmp.lt.s32.totalorder %v4863_v12, 512 }
 0x163   : > { %v3446_v4 = vpop.f32.mrf.mxu1  ;;  %v3465_v10 = vpop.f32.mrf.mxu0  ;;  %v2084_v58 = vadd.f32 %v5170_v36, %v1903_v9  ;;  %v4963_v9 = vadd.f32 %v4764_v15, %v1907_v31  ;;  %v5175_v31 = vld [vmem:[#allocation32_spill] sm:$0xff]  ;;  %vm2773_vm8 = vcmp.lt.s32.totalorder %v4866_v28, 512  ;;  %vm2914_vm9 = vcmask 1040384  }
 0x164   : > { %v2442_v37 = vadd.f32 %v3446_v4, %v2081_v40  ;;  %v2080_v40 = vadd.f32 %v5162_v39, %v1899_v27  ;;  %v1906_v27 = vadd.f32 %v4762_v26, %v1673_v32  ;;  %v3230_v50 = vsel %vm2773_vm8, 1.0, %v5143_v1 }
 0x165   : > { %v2377_v41 = vpop.f32.mrf.mxu1  ;;  %v2609_v35 = vpop.f32.mrf.mxu0  ;;  %vm2916_vm10 = vcmask 517120  }
 0x166   : > { %v2671_v42 = vadd.f32 %v3464_v45, %v2442_v37  ;;  %v2440_v4 = vadd.f32 %v2377_v41, %v2079_v51  ;;  %v5167_v37 = vld [vmem:[#allocation18_spill] sm:$0xff]  ;;  %v4952_v8 = vadd.f32 %v5172_v23, %v1906_v27 }
 0x167   : > { %v3447_v13 = vpop.f32.mrf.mxu1  ;;  %v3468_v6 = vpop.f32.mrf.mxu0  ;;  %v2085_v52 = vadd.f32 %v5167_v37, %v1904_v43  ;;  %v5169_v43 = vld [vmem:[#allocation22_spill] sm:$0xff]  ;;  %v4979_v37 = vadd.f32 %v4902_v11, %v1678_v3 }
 0x168   : > { %v2694_v45 = vadd.f32 %v4923_v22, %v2671_v42  ;;  %v2669_v51 = vadd.f32 %v2606_v61, %v2440_v4  ;;  %v2443_v63 = vadd.f32 %v3447_v13, %v2082_v17  ;;  %v5168_v17 = vld [vmem:[#allocation20_spill] sm:$0xff]  ;;  %v2086_v42 = vadd.f32 %v5169_v43, %v1905_v20 }
 0x169   : > { %v2380_v18 = vpop.f32.mrf.mxu1  ;;  %v2622_v41 = vpop.f32.mrf.mxu0  ;;  %v2083_v39 = vadd.f32 %v5168_v17, %v1902_v55  ;;  %v2089_v4 = vadd.f32 %v5171_v60, %v1908_v44  ;;  %v5174_v44 = vld [vmem:[#allocation31_spill] sm:$0xff] }
 0x16a   : > { %2711 = vst.msk [vmem:[%s4934_s14 + $0x10] sm:$0xff] %vm2708_vm5, %v2694_v45  ;;  %v2692_v26 = vadd.f32 %v4923_v22, %v2669_v51  ;;  %v2672_v32 = vadd.f32 %v3465_v10, %v2443_v63  ;;  %v2441_v61 = vadd.f32 %v2380_v18, %v2080_v40  ;;  %v2810_v30 = vmul.f32 %v4768_v25, %v2694_v45  ;;  %v5173_v40 = vld [vmem:[#allocation30_spill] sm:$0xff] }
 0x16b   : > { %v3450_v33 = vpop.f32.mrf.mxu1  ;;  %v3469_v62 = vpop.f32.mrf.mxu0  ;;  %v4959_v55 = vadd.f32 %v5173_v40, %v1909_v47  ;;  %v4969_v25 = vadd.f32 %v4802_v14, %v1910_v24 }
 0x16c   : > { %2709 = vst.msk [vmem:[%s4934_s14] sm:$0xff] %vm2708_vm5, %v2692_v26  ;;  %v2695_v10 = vadd.f32 %v4923_v22, %v2672_v32  ;;  %v2808_v5 = vmul.f32 %v4772_v29, %v2692_v26  ;;  %v2670_v56 = vadd.f32 %v2609_v35, %v2441_v61  ;;  %v2446_v57 = vadd.f32 %v3450_v33, %v2085_v52 }
 0x16d   : > { %v2393_v20 = vpop.f32.mrf.mxu1  ;;  %v2625_v49 = vpop.f32.mrf.mxu0  ;;  %v4975_v29 = vadd.f32 %v4821_v7, %v1913_v48  ;;  %v2827_v16 = vsel %vm2708_vm5, %v2810_v30, 0.0  ;;  %v2863_v14 = vmul.f32 %v2810_v30, %v2694_v45  ;;  %v5177_v30 = vld [vmem:[#allocation34_spill] sm:$0xff] }
 0x16e   : > { %2712 = vst.msk [vmem:[%s4934_s14 + $0x18] sm:$0xff] %vm2708_vm5, %v2695_v10  ;;  %v2811_v13 = vmul.f32 %v5174_v44, %v2695_v10  ;;  %v2693_v35 = vadd.f32 %v4923_v22, %v2670_v56  ;;  %v2675_v27 = vadd.f32 %v3468_v6, %v2446_v57  ;;  %v2444_v51 = vadd.f32 %v2393_v20, %v2083_v39 }
 0x16f   : > { %v3451_v15 = vpop.f32.mrf.mxu1  ;;  %v3472_v63 = vpop.f32.mrf.mxu0  ;;  %v2861_v47 = vmul.f32 %v2808_v5, %v2692_v26  ;;  %v2824_v32 = vsel %vm2708_vm5, %v2808_v5, 0.0  ;;  %v5176_v26 = vld [vmem:[#allocation33_spill] sm:$0xff] }
 0x170   : > { %v2447_v52 = vadd.f32 %v3451_v15, %v2086_v42  ;;  %2710 = vst.msk [vmem:[%s4934_s14 + $0x8] sm:$0xff] %vm2708_vm5, %v2693_v35  ;;  %v2809_v7 = vmul.f32 %v5175_v31, %v2693_v35  ;;  %v2698_v46 = vadd.f32 %v4923_v22, %v2675_v27  ;;  %v2673_v18 = vadd.f32 %v2622_v41, %v2444_v51 }
 0x171   : > { %v2396_v6 = vpop.f32.mrf.mxu1  ;;  %v2638_v24 = vpop.f32.mrf.mxu0  ;;  %v2864_v61 = vmul.f32 %v2811_v13, %v2695_v10 }
 0x172   : > { %v2676_v11 = vadd.f32 %v3469_v62, %v2447_v52  ;;  %v2445_v3 = vadd.f32 %v2396_v6, %v2084_v58  ;;  %v2825_v17 = vsel %vm2708_vm5, %v2809_v7, 0.0  ;;  %v2862_v45 = vmul.f32 %v2809_v7, %v2693_v35  ;;  %2715 = vst.msk [vmem:[%s4934_s14 + $0x30] sm:$0xff] %vm2708_vm5, %v2698_v46 }
 0x173   : > { %v2814_v39 = vmul.f32 %v5176_v26, %v2698_v46  ;;  %v2696_v43 = vadd.f32 %v4923_v22, %v2673_v18  ;;  %v3454_v42 = vpop.f32.mrf.mxu1  ;;  %v3473_v41 = vpop.f32.mrf.mxu0  ;;  %v2826_v36 = vadd.f32 %v2825_v17, %v2824_v32  ;;  %v2880_v62 = vsel %vm2708_vm5, %v2863_v14, 0.0 }
 0x174   : > { %v2699_v48 = vadd.f32 %v4923_v22, %v2676_v11  ;;  %v2674_v33 = vadd.f32 %v2625_v49, %v2445_v3  ;;  %v2450_v60 = vadd.f32 %v3454_v42, %v2089_v4  ;;  %v2877_v58 = vsel %vm2708_vm5, %v2861_v47, 0.0 }
 0x175   : > { %v2878_v23 = vsel %vm2708_vm5, %v2862_v45, 0.0  ;;  %2713 = vst.msk [vmem:[%s4934_s14 + $0x20] sm:$0xff] %vm2708_vm5, %v2696_v43  ;;  %v2812_v10 = vmul.f32 %v5177_v30, %v2696_v43  ;;  %v2409_v40 = vpop.f32.mrf.mxu1  ;;  %v2641_v5 = vpop.f32.mrf.mxu0  ;;  %v2828_v56 = vadd.f32 %v2827_v16, %v2826_v36  ;;  %v2829_v49 = vsel %vm2708_vm5, %v2811_v13, 0.0 }
 0x176   : > { %v2879_v57 = vadd.f32 %v2878_v23, %v2877_v58  ;;  %2716 = vst.msk [vmem:[%s4934_s14 + $0x38] sm:$0xff] %vm2708_vm5, %v2699_v48  ;;  %v2815_v20 = vmul.f32 %v4813_v21, %v2699_v48  ;;  %v2697_v4 = vadd.f32 %v4923_v22, %v2674_v33  ;;  %v2882_v44 = vsel %vm2708_vm5, %v2864_v61, 0.0 }
 0x177   : > { %v2865_v35 = vmul.f32 %v2812_v10, %v2696_v43  ;;  %v2679_v27 = vadd.f32 %v3472_v63, %v2450_v60  ;;  %v3455_v51 = vpop.f32.mrf.mxu1  ;;  %v2835_v14 = vsel %vm2708_vm5, %v2814_v39, 0.0  ;;  %v2867_v52 = vmul.f32 %v2814_v39, %v2698_v46  ;;  %v3476_v18 = vpop.f32.mrf.mxu0 }
 0x178   : > { %v2881_v15 = vadd.f32 %v2880_v62, %v2879_v57  ;;  %v2830_v47 = vadd.f32 %v2829_v49, %v2828_v56  ;;  %2714 = vst.msk [vmem:[%s4934_s14 + $0x28] sm:$0xff] %vm2708_vm5, %v2697_v4  ;;  %v2831_v16 = vsel %vm2708_vm5, %v2812_v10, 0.0  ;;  %v2813_v21 = vmul.f32 %v4817_v2, %v2697_v4 }
 0x179   : > { %v2702_v31 = vadd.f32 %v4923_v22, %v2679_v27  ;;  %v2448_v13 = vadd.f32 %v2409_v40, %v4952_v8  ;;  %v2412_v7 = vpop.f32.mrf.mxu1  ;;  %v2868_v32 = vmul.f32 %v2815_v20, %v2699_v48  ;;  %v2451_v61 = vadd.f32 %v3455_v51, %v4959_v55  ;;  %v2654_v48 = vpop.f32.mrf.mxu0 }
 0x17a   : > { %v2832_v63 = vadd.f32 %v2831_v16, %v2830_v47  ;;  %v2883_v6 = vadd.f32 %v2882_v44, %v2881_v15  ;;  %v2884_v46 = vsel %vm2708_vm5, %v2865_v35, 0.0  ;;  %v2833_v11 = vsel %vm2708_vm5, %v2813_v21, 0.0 }
 0x17b   : > { %v2866_v3 = vmul.f32 %v2813_v21, %v2697_v4  ;;  %2719 = vst.msk [vmem:[%s4934_s14 + $0x50] sm:$0xff] %vm2708_vm5, %v2702_v31  ;;  %v2677_v2 = vadd.f32 %v2638_v24, %v2448_v13  ;;  %v3458_v17 = vpop.f32.mrf.mxu1  ;;  %v2680_v26 = vadd.f32 %v3473_v41, %v2451_v61  ;;  %v2449_v39 = vadd.f32 %v2412_v7, %v4963_v9 }
 0x17c   : > { %v2885_v8 = vadd.f32 %v2884_v46, %v2883_v6  ;;  %v2834_v45 = vadd.f32 %v2833_v11, %v2832_v63  ;;  %v2888_v55 = vsel %vm2708_vm5, %v2867_v52, 0.0  ;;  %v2837_v43 = vsel %vm2708_vm5, %v2815_v20, 0.0 }
 0x17d   : > { %v2886_v42 = vsel %vm2708_vm5, %v2866_v3, 0.0  ;;  %v2700_v36 = vadd.f32 %v4923_v22, %v2677_v2  ;;  %v2425_v24 = vpop.f32.mrf.mxu1  ;;  %v2703_v62 = vadd.f32 %v4923_v22, %v2680_v26  ;;  %v2678_v41 = vadd.f32 %v2641_v5, %v2449_v39 }
 0x17e   : > { %v2836_v33 = vadd.f32 %v2835_v14, %v2834_v45  ;;  %v2887_v60 = vadd.f32 %v2886_v42, %v2885_v8  ;;  %v2890_v9 = vsel %vm2708_vm5, %v2868_v32, 0.0  ;;  %v2454_v23 = vadd.f32 %v3458_v17, %v4966_v0 }
 0x17f   : > { %2717 = vst.msk [vmem:[%s4934_s14 + $0x40] sm:$0xff] %vm2708_vm5, %v2700_v36  ;;  %v2816_v58 = vmul.f32 %v4829_v34, %v2700_v36  ;;  %v2452_v30 = vadd.f32 %v2425_v24, %v4969_v25  ;;  %v3459_v10 = vpop.f32.mrf.mxu1  ;;  %v2818_v56 = vmul.f32 %v4825_v59, %v2702_v31  ;;  %2720 = vst.msk [vmem:[%s4934_s14 + $0x58] sm:$0xff] %vm2708_vm5, %v2703_v62  ;;  %v3477_v34 = vpop.f32.mrf.mxu0 }
 0x180   : > { %v2889_v40 = vadd.f32 %v2888_v55, %v2887_v60  ;;  %v2838_v57 = vadd.f32 %v2837_v43, %v2836_v33  ;;  %v2701_v5 = vadd.f32 %v4923_v22, %v2678_v41  ;;  %v2683_v49 = vadd.f32 %v3476_v18, %v2454_v23 }
 0x181   : > { %v2839_v20 = vsel %vm2708_vm5, %v2816_v58, 0.0  ;;  %v2869_v4 = vmul.f32 %v2816_v58, %v2700_v36  ;;  %v2681_v44 = vadd.f32 %v2654_v48, %v2452_v30  ;;  %v2428_v35 = vpop.f32.mrf.mxu1  ;;  %v2092_v0 = vadd.f32 %v4860_v54, %v4979_v37  ;;  %v2657_v7 = vpop.f32.mrf.mxu0 }
 0x182   : > { %v2840_v25 = vadd.f32 %v2839_v20, %v2838_v57  ;;  %v2891_v27 = vadd.f32 %v2890_v9, %v2889_v40  ;;  %v2819_v59 = vmul.f32 %v4833_v53, %v2703_v62  ;;  %2718 = vst.msk [vmem:[%s4934_s14 + $0x48] sm:$0xff] %vm2708_vm5, %v2701_v5  ;;  %v2817_v15 = vmul.f32 %v4849_v19, %v2701_v5 }
 0x183   : > { %v2892_v51 = vsel %vm2708_vm5, %v2869_v4, 0.0  ;;  %v2706_v14 = vadd.f32 %v4923_v22, %v2683_v49  ;;  %v2704_v52 = vadd.f32 %v4923_v22, %v2681_v44  ;;  %v2871_v47 = vmul.f32 %v2818_v56, %v2702_v31 }
 0x184   : > { %v2893_v16 = vadd.f32 %v2892_v51, %v2891_v27  ;;  %v2455_v21 = vadd.f32 %v3459_v10, %v4975_v29  ;;  %v2453_v54 = vadd.f32 %v2428_v35, %v2092_v0  ;;  %v2841_v37 = vsel %vm2708_vm5, %v2817_v15, 0.0 }
 0x185   : > { %v2870_v13 = vmul.f32 %v2817_v15, %v2701_v5  ;;  %2723 = vst.msk [vmem:[%s4934_s14 + $0x70] sm:$0xff] %vm2708_vm5, %v2706_v14  ;;  %v3231_v53 = vsel %vm2774_vm6, 1.0, %v5143_v1  ;;  %2721 = vst.msk [vmem:[%s4934_s14 + $0x60] sm:$0xff] %vm2708_vm5, %v2704_v52  ;;  %v2820_v19 = vmul.f32 %v4853_v38, %v2704_v52  ;;  %v2842_v18 = vadd.f32 %v2841_v37, %v2840_v25 }
 0x186   : > { %v2684_v31 = vadd.f32 %v3477_v34, %v2455_v21  ;;  %v3232_v29 = vsel %vm2775_vm7, 1.0, %v5143_v1  ;;  %v2682_v63 = vadd.f32 %v2657_v7, %v2453_v54  ;;  %v2843_v6 = vsel %vm2708_vm5, %v2818_v56, 0.0 }
 0x187   : > { %v2872_v32 = vmul.f32 %v2819_v59, %v2703_v62  ;;  %v2894_v61 = vsel %vm2708_vm5, %v2870_v13, 0.0  ;;  %v2896_v38 = vsel %vm2708_vm5, %v2871_v47, 0.0  ;;  %v2844_v46 = vadd.f32 %v2843_v6, %v2842_v18 }
 0x188   : > { %v2895_v11 = vadd.f32 %v2894_v61, %v2893_v16  ;;  %v2707_v3 = vadd.f32 %v4923_v22, %v2684_v31  ;;  %v2845_v12 = vsel %vm2708_vm5, %v2819_v59, 0.0  ;;  %v2822_v2 = vmul.f32 %v3231_v53, %v2706_v14 }
 0x189   : > { %v2873_v17 = vmul.f32 %v2820_v19, %v2704_v52  ;;  %v2705_v8 = vadd.f32 %v4923_v22, %v2682_v63  ;;  %v2846_v26 = vadd.f32 %v2845_v12, %v2844_v46  ;;  %v2898_v28 = vsel %vm2708_vm5, %v2872_v32, 0.0 }
 0x18a   : > { %v2897_v45 = vadd.f32 %v2896_v38, %v2895_v11  ;;  %2724 = vst.msk [vmem:[%s4934_s14 + $0x78] sm:$0xff] %vm2708_vm5, %v2707_v3  ;;  %v2847_v1 = vsel %vm2708_vm5, %v2820_v19, 0.0  ;;  %v2823_v39 = vmul.f32 %v3232_v29, %v2707_v3  ;;  %v2875_v36 = vmul.f32 %v2822_v2, %v2706_v14 }
 0x18b   : > { %2722 = vst.msk [vmem:[%s4934_s14 + $0x68] sm:$0xff] %vm2708_vm5, %v2705_v8  ;;  %v2821_v55 = vmul.f32 %v3230_v50, %v2705_v8  ;;  %v2848_v43 = vadd.f32 %v2847_v1, %v2846_v26  ;;  %v2900_v24 = vsel %vm2708_vm5, %v2873_v17, 0.0  ;;  %v2851_v62 = vsel %vm2708_vm5, %v2822_v2, 0.0 }
 0x18c   : > { %v2899_v42 = vadd.f32 %v2898_v28, %v2897_v45  ;;  %v2876_v41 = vmul.f32 %v2823_v39, %v2707_v3  ;;  %v2904_v30 = vsel %vm2708_vm5, %v2875_v36, 0.0  ;;  %v2853_v10 = vsel %vm2708_vm5, %v2823_v39, 0.0 }
 0x18d   : > { %v2849_v48 = vsel %vm2708_vm5, %v2821_v55, 0.0  ;;  %v2874_v22 = vmul.f32 %v2821_v55, %v2705_v8 }
 0x18e   : > { %v2901_v33 = vadd.f32 %v2900_v24, %v2899_v42  ;;  %v2850_v60 = vadd.f32 %v2849_v48, %v2848_v43  ;;  %v2906_v57 = vsel %vm2708_vm5, %v2876_v41, 0.0 }
 0x18f   : > { %v2902_v9 = vsel %vm2708_vm5, %v2874_v22, 0.0 }
 0x190   : > { %v2852_v58 = vadd.f32 %v2851_v62, %v2850_v60  ;;  %v2903_v23 = vadd.f32 %v2902_v9, %v2901_v33 }
 0x192   : > { %v2854_v40 = vadd.f32 %v2853_v10, %v2852_v58  ;;  %v2905_v56 = vadd.f32 %v2904_v30, %v2903_v23 }
 0x194   : > { %v2855_v5 = vrot.slane %v2854_v40, 4  ;;  %v2907_v20 = vadd.f32 %v2906_v57, %v2905_v56 }
 0x196   : > { %v2856_v4 = vadd.f32 %v2855_v5, %v2854_v40  ;;  %v2908_v49 = vrot.slane %v2907_v20, 4 }
 0x198   : > { %v2857_v44 = vrot.slane %v2856_v4, 2  ;;  %v2909_v34 = vadd.f32 %v2908_v49, %v2907_v20 }
 0x19a   : > { %v2858_v35 = vadd.f32 %v2857_v44, %v2856_v4  ;;  %v2910_v0 = vrot.slane %v2909_v34, 2 }
 0x19c   : > { %v2859_v25 = vrot.slane %v2858_v35, 1  ;;  %v2911_v27 = vadd.f32 %v2910_v0, %v2909_v34 }
 0x19e   : > { %v2912_v59 = vrot.slane %v2911_v27, 1  ;;  %v2860_v51 = vadd.f32 %v2859_v25, %v2858_v35 }
 0x1a0   : > { %v2913_v15 = vadd.f32 %v2912_v59, %v2911_v27 }
 0x1a2   : > { %v2915_v14 = vsel %vm2914_vm9, %v2860_v51, %v2913_v15 }
 0x1a3   : > { %2917 = vst.msk [vmem:[%s318_s18] sm:$0x3] %vm2916_vm10, %v2915_v14 }
 0x1a4 PF: > { %s17_s21 = sadd.s32 1, %s3534_s21  }
 0x1a5   : > { %p14_p6 = scmp.ge.s32.totalorder %s17_s21, 6  }
 0x1a7   :  { %16 = sbr.rel (!%p14_p6) target bundleno = 1 (0x1), region = 88 }

// kernel: fast_up_projection.7
= control target key start
LH: loop header
LB: loop body
LE: loop exit
PB: predicated region body
PF: predicated region fallthrough
CT: control target
= control target key end

     0   :  { %s586_s15 = smov 0   ;;  %s819_s0 = inlined_call_operand.vmem [shape: f32[2048,8], index: 0, kind: input, shape index: {}]   ;;  %s820_s1 = inlined_call_operand.vmem [shape: f32[2048,8], index: 1, kind: input, shape index: {}]   ;;  %s821_s2 = inlined_call_operand.vmem [shape: f32[1,8], index: 2, kind: input, shape index: {}]   ;;  %s822_s3 = inlined_call_operand.vmem [shape: f32[1,8], index: 3, kind: input, shape index: {}]   ;;  %s823_s4 = inlined_call_operand.vmem [shape: f32[2048,8], index: 4, kind: output, shape index: {}]  }
   0x1 LB: > { %s530_s16 = sadd.s32 4294967295, %s559_s15   ;;  %p534_p0 = scmp.ge.s32.totalorder %s559_s15, 1  ;;  %s559_s15 = sphi %s586_s15, %s14_s15  }
   0x2   : > { %p174_p1 = scmp.lt.s32.totalorder %s559_s15, 9 }
   0x4   : > { %p175_p2 = pnand %p534_p0, %p174_p1 }
   0x5   : > { %s535_s17 = sshll.u32 (!%p175_p2), %s530_s16, 5 }
   0x6   : > { %178 = sbr.rel (%p175_p2) target bundleno = 53 (0x35), region = 36  ;;  %p206_p3 = scmp.lt.s32.totalorder (!%p175_p2), %s535_s17, 255 }
   0xb   : > { %s825_s17 = smov (!%p206_p3, %s535_s17), 255  ;;  %v599_v0 = vld [vmem:[%s821_s2] ss:$0 sm:$0xff]  ;;  %vm429_vm0 = vcmask 64512  }
   0xc   : > { %s594_s18 = sshll.u32 %s825_s17, 3  ;;  %v617_v2 = vld [vmem:[%s822_s3] ss:$0 sm:$0xff] }
   0xd   : > { %s605_s23 = scalar_lea.vmem %s819_s0, %s594_s18  ;;  %s611_s26 = scalar_lea.vmem %s820_s1, %s594_s18 }
   0xe   : > { %v223_v1 = vld [vmem:[%s605_s23] sm:$0xff]  ;;  %v224_v3 = vld [vmem:[%s605_s23 + $0x8] sm:$0xff]  ;;  %v225_v7 = vld [vmem:[%s605_s23 + $0x10] sm:$0xff]  ;;  %s647_s5 = scalar_lea.vmem %s823_s4, %s594_s18 }
   0xf   : > { %v262_v4 = vmul.f32 %v599_v0, %v223_v1  ;;  %v333_v5 = vld [vmem:[%s611_s26] sm:$0xff]  ;;  %v263_v6 = vmul.f32 %v599_v0, %v224_v3  ;;  %v334_v8 = vld [vmem:[%s611_s26 + $0x8] sm:$0xff]  ;;  %v264_v9 = vmul.f32 %v599_v0, %v225_v7  ;;  %v226_v10 = vld [vmem:[%s605_s23 + $0x18] sm:$0xff] }
  0x10   : > { %v227_v11 = vld [vmem:[%s605_s23 + $0x20] sm:$0xff]  ;;  %v335_v14 = vld [vmem:[%s611_s26 + $0x10] sm:$0xff]  ;;  %v265_v15 = vmul.f32 %v599_v0, %v226_v10  ;;  %v336_v16 = vld [vmem:[%s611_s26 + $0x18] sm:$0xff] }
  0x11   : > { %v301_v12 = vadd.f32 %v617_v2, %v262_v4  ;;  %v302_v13 = vadd.f32 %v617_v2, %v263_v6  ;;  %v266_v17 = vmul.f32 %v599_v0, %v227_v11  ;;  %v228_v18 = vld [vmem:[%s605_s23 + $0x28] sm:$0xff]  ;;  %v303_v19 = vadd.f32 %v617_v2, %v264_v9  ;;  %v337_v20 = vld [vmem:[%s611_s26 + $0x20] sm:$0xff]  ;;  %v229_v22 = vld [vmem:[%s605_s23 + $0x30] sm:$0xff] }
  0x12   : > { %v267_v21 = vmul.f32 %v599_v0, %v228_v18  ;;  %v230_v23 = vld [vmem:[%s605_s23 + $0x38] sm:$0xff]  ;;  %v304_v26 = vadd.f32 %v617_v2, %v265_v15  ;;  %v338_v28 = vld [vmem:[%s611_s26 + $0x28] sm:$0xff]  ;;  %v268_v31 = vmul.f32 %v599_v0, %v229_v22  ;;  %v231_v33 = vld [vmem:[%s605_s23 + $0x40] sm:$0xff] }
  0x13   : > { %v365_v24 = vadd.f32 %v333_v5, %v301_v12  ;;  %v366_v25 = vadd.f32 %v334_v8, %v302_v13  ;;  %v305_v27 = vadd.f32 %v617_v2, %v266_v17  ;;  %v367_v29 = vadd.f32 %v335_v14, %v303_v19  ;;  %v232_v34 = vld [vmem:[%s605_s23 + $0x48] sm:$0xff]  ;;  %v339_v39 = vld [vmem:[%s611_s26 + $0x30] sm:$0xff]  ;;  %v340_v40 = vld [vmem:[%s611_s26 + $0x38] sm:$0xff] }
  0x14   : > { %v306_v30 = vadd.f32 %v617_v2, %v267_v21  ;;  %v269_v32 = vmul.f32 %v599_v0, %v230_v23  ;;  %v368_v37 = vadd.f32 %v336_v16, %v304_v26  ;;  %v233_v41 = vld [vmem:[%s605_s23 + $0x50] sm:$0xff]  ;;  %v307_v44 = vadd.f32 %v617_v2, %v268_v31  ;;  %v234_v46 = vld [vmem:[%s605_s23 + $0x58] sm:$0xff]  ;;  %v235_v47 = vld [vmem:[%s605_s23 + $0x60] sm:$0xff] }
  0x15   : > { %v397_v35 = vmax.f32 %v365_v24, 0.0  ;;  %v398_v36 = vmax.f32 %v366_v25, 0.0  ;;  %v369_v38 = vadd.f32 %v337_v20, %v305_v27  ;;  %v399_v42 = vmax.f32 %v367_v29, 0.0  ;;  %v236_v52 = vld [vmem:[%s605_s23 + $0x68] sm:$0xff]  ;;  %v341_v56 = vld [vmem:[%s611_s26 + $0x40] sm:$0xff]  ;;  %v343_v61 = vld [vmem:[%s611_s26 + $0x50] sm:$0xff] }
  0x16   : > { %v370_v43 = vadd.f32 %v338_v28, %v306_v30  ;;  %v308_v45 = vadd.f32 %v617_v2, %v269_v32  ;;  %v400_v48 = vmax.f32 %v368_v37, 0.0  ;;  %v270_v50 = vmul.f32 %v599_v0, %v231_v33  ;;  %v342_v57 = vld [vmem:[%s611_s26 + $0x48] sm:$0xff]  ;;  %v237_v1 = vld [vmem:[%s605_s23 + $0x70] sm:$0xff]  ;;  %v238_v3 = vld [vmem:[%s605_s23 + $0x78] sm:$0xff] }
  0x17   : > { %430 = vst.msk [vmem:[%s647_s5] sm:$0xff] %vm429_vm0, %v397_v35  ;;  %431 = vst.msk [vmem:[%s647_s5 + $0x8] sm:$0xff] %vm429_vm0, %v398_v36  ;;  %v401_v49 = vmax.f32 %v369_v38, 0.0  ;;  %v271_v51 = vmul.f32 %v599_v0, %v232_v34  ;;  %v371_v54 = vadd.f32 %v339_v39, %v307_v44  ;;  %v272_v58 = vmul.f32 %v599_v0, %v233_v41  ;;  %v344_v7 = vld [vmem:[%s611_s26 + $0x58] sm:$0xff]  ;;  %v345_v8 = vld [vmem:[%s611_s26 + $0x60] sm:$0xff] }
  0x18   : > { %432 = vst.msk [vmem:[%s647_s5 + $0x10] sm:$0xff] %vm429_vm0, %v399_v42  ;;  %v402_v53 = vmax.f32 %v370_v43, 0.0  ;;  %v372_v55 = vadd.f32 %v340_v40, %v308_v45  ;;  %433 = vst.msk [vmem:[%s647_s5 + $0x18] sm:$0xff] %vm429_vm0, %v400_v48  ;;  %v309_v59 = vadd.f32 %v617_v2, %v270_v50  ;;  %v273_v62 = vmul.f32 %v599_v0, %v234_v46  ;;  %v346_v14 = vld [vmem:[%s611_s26 + $0x68] sm:$0xff]  ;;  %v239_v19 = vld [vmem:[%s605_s23 + $0x80] sm:$0xff] }
  0x19   : > { %434 = vst.msk [vmem:[%s647_s5 + $0x20] sm:$0xff] %vm429_vm0, %v401_v49  ;;  %v310_v60 = vadd.f32 %v617_v2, %v271_v51  ;;  %v274_v63 = vmul.f32 %v599_v0, %v235_v47  ;;  %v403_v4 = vmax.f32 %v371_v54, 0.0  ;;  %v311_v6 = vadd.f32 %v617_v2, %v272_v58  ;;  %v240_v20 = vld [vmem:[%s605_s23 + $0x88] sm:$0xff]  ;;  %v347_v25 = vld [vmem:[%s611_s26 + $0x70] sm:$0xff]  ;;  %v348_v26 = vld [vmem:[%s611_s26 + $0x78] sm:$0xff] }
  0x1a   : > { %435 = vst.msk [vmem:[%s647_s5 + $0x28] sm:$0xff] %vm429_vm0, %v402_v53  ;;  %v404_v5 = vmax.f32 %v372_v55, 0.0  ;;  %v275_v9 = vmul.f32 %v599_v0, %v236_v52  ;;  %v373_v10 = vadd.f32 %v341_v56, %v309_v59  ;;  %v312_v12 = vadd.f32 %v617_v2, %v273_v62  ;;  %v241_v27 = vld [vmem:[%s605_s23 + $0x90] sm:$0xff]  ;;  %v242_v32 = vld [vmem:[%s605_s23 + $0x98] sm:$0xff]  ;;  %v243_v33 = vld [vmem:[%s605_s23 + $0xa0] sm:$0xff] }
  0x1b   : > { %v374_v11 = vadd.f32 %v342_v57, %v310_v60  ;;  %v313_v13 = vadd.f32 %v617_v2, %v274_v63  ;;  %436 = vst.msk [vmem:[%s647_s5 + $0x30] sm:$0xff] %vm429_vm0, %v403_v4  ;;  %v375_v15 = vadd.f32 %v343_v61, %v311_v6  ;;  %v276_v17 = vmul.f32 %v599_v0, %v237_v1  ;;  %v244_v38 = vld [vmem:[%s605_s23 + $0xa8] sm:$0xff]  ;;  %v349_v42 = vld [vmem:[%s611_s26 + $0x80] sm:$0xff]  ;;  %v351_v47 = vld [vmem:[%s611_s26 + $0x90] sm:$0xff] }
  0x1c   : > { %437 = vst.msk [vmem:[%s647_s5 + $0x38] sm:$0xff] %vm429_vm0, %v404_v5  ;;  %v314_v16 = vadd.f32 %v617_v2, %v275_v9  ;;  %v277_v18 = vmul.f32 %v599_v0, %v238_v3  ;;  %v405_v21 = vmax.f32 %v373_v10, 0.0  ;;  %v376_v23 = vadd.f32 %v344_v7, %v312_v12  ;;  %v350_v43 = vld [vmem:[%s611_s26 + $0x88] sm:$0xff]  ;;  %v245_v50 = vld [vmem:[%s605_s23 + $0xb0] sm:$0xff]  ;;  %v246_v51 = vld [vmem:[%s605_s23 + $0xb8] sm:$0xff] }
  0x1d   : > { %v406_v22 = vmax.f32 %v374_v11, 0.0  ;;  %v377_v24 = vadd.f32 %v345_v8, %v313_v13  ;;  %v407_v28 = vmax.f32 %v375_v15, 0.0  ;;  %v315_v30 = vadd.f32 %v617_v2, %v276_v17  ;;  %v352_v55 = vld [vmem:[%s611_s26 + $0x98] sm:$0xff]  ;;  %v353_v56 = vld [vmem:[%s611_s26 + $0xa0] sm:$0xff]  ;;  %v354_v62 = vld [vmem:[%s611_s26 + $0xa8] sm:$0xff] }
  0x1e   : > { %v378_v29 = vadd.f32 %v346_v14, %v314_v16  ;;  %v316_v31 = vadd.f32 %v617_v2, %v277_v18  ;;  %438 = vst.msk [vmem:[%s647_s5 + $0x40] sm:$0xff] %vm429_vm0, %v405_v21  ;;  %v408_v34 = vmax.f32 %v376_v23, 0.0  ;;  %v278_v36 = vmul.f32 %v599_v0, %v239_v19  ;;  %v247_v5 = vld [vmem:[%s605_s23 + $0xc0] sm:$0xff]  ;;  %v248_v6 = vld [vmem:[%s605_s23 + $0xc8] sm:$0xff]  ;;  %v355_v11 = vld [vmem:[%s611_s26 + $0xb0] sm:$0xff] }
  0x1f   : > { %439 = vst.msk [vmem:[%s647_s5 + $0x48] sm:$0xff] %vm429_vm0, %v406_v22  ;;  %v409_v35 = vmax.f32 %v377_v24, 0.0  ;;  %v279_v37 = vmul.f32 %v599_v0, %v240_v20  ;;  %440 = vst.msk [vmem:[%s647_s5 + $0x50] sm:$0xff] %vm429_vm0, %v407_v28  ;;  %v379_v40 = vadd.f32 %v347_v25, %v315_v30  ;;  %v280_v44 = vmul.f32 %v599_v0, %v241_v27  ;;  %v356_v12 = vld [vmem:[%s611_s26 + $0xb8] sm:$0xff]  ;;  %v249_v13 = vld [vmem:[%s605_s23 + $0xd0] sm:$0xff] }
  0x20   : > { %v410_v39 = vmax.f32 %v378_v29, 0.0  ;;  %v380_v41 = vadd.f32 %v348_v26, %v316_v31  ;;  %441 = vst.msk [vmem:[%s647_s5 + $0x58] sm:$0xff] %vm429_vm0, %v408_v34  ;;  %v317_v45 = vadd.f32 %v617_v2, %v278_v36  ;;  %v281_v48 = vmul.f32 %v599_v0, %v242_v32  ;;  %v250_v18 = vld [vmem:[%s605_s23 + $0xd8] sm:$0xff]  ;;  %v251_v19 = vld [vmem:[%s605_s23 + $0xe0] sm:$0xff]  ;;  %v252_v24 = vld [vmem:[%s605_s23 + $0xe8] sm:$0xff] }
  0x21   : > { %442 = vst.msk [vmem:[%s647_s5 + $0x60] sm:$0xff] %vm429_vm0, %v409_v35  ;;  %v318_v46 = vadd.f32 %v617_v2, %v279_v37  ;;  %v282_v49 = vmul.f32 %v599_v0, %v243_v33  ;;  %v411_v52 = vmax.f32 %v379_v40, 0.0  ;;  %v319_v54 = vadd.f32 %v617_v2, %v280_v44  ;;  %v357_v28 = vld [vmem:[%s611_s26 + $0xc0] sm:$0xff]  ;;  %v358_v29 = vld [vmem:[%s611_s26 + $0xc8] sm:$0xff]  ;;  %v359_v33 = vld [vmem:[%s611_s26 + $0xd0] sm:$0xff] }
  0x22   : > { %443 = vst.msk [vmem:[%s647_s5 + $0x68] sm:$0xff] %vm429_vm0, %v410_v39  ;;  %v412_v53 = vmax.f32 %v380_v41, 0.0  ;;  %v283_v57 = vmul.f32 %v599_v0, %v244_v38  ;;  %v381_v58 = vadd.f32 %v349_v42, %v317_v45  ;;  %v320_v60 = vadd.f32 %v617_v2, %v281_v48  ;;  %v253_v36 = vld [vmem:[%s605_s23 + $0xf0] sm:$0xff]  ;;  %v254_v37 = vld [vmem:[%s605_s23 + $0xf8] sm:$0xff]  ;;  %v361_v42 = vld [vmem:[%s611_s26 + $0xe0] sm:$0xff] }
  0x23   : > { %v382_v59 = vadd.f32 %v350_v43, %v318_v46  ;;  %v321_v61 = vadd.f32 %v617_v2, %v282_v49  ;;  %444 = vst.msk [vmem:[%s647_s5 + $0x70] sm:$0xff] %vm429_vm0, %v411_v52  ;;  %v383_v63 = vadd.f32 %v351_v47, %v319_v54  ;;  %v284_v3 = vmul.f32 %v599_v0, %v245_v50  ;;  %v360_v41 = vld [vmem:[%s611_s26 + $0xd8] sm:$0xff]  ;;  %v362_v48 = vld [vmem:[%s611_s26 + $0xe8] sm:$0xff] }
  0x24   : > { %445 = vst.msk [vmem:[%s647_s5 + $0x78] sm:$0xff] %vm429_vm0, %v412_v53  ;;  %v322_v1 = vadd.f32 %v617_v2, %v283_v57  ;;  %v285_v4 = vmul.f32 %v599_v0, %v246_v51  ;;  %v413_v7 = vmax.f32 %v381_v58, 0.0  ;;  %v384_v9 = vadd.f32 %v352_v55, %v320_v60  ;;  %v363_v57 = vld [vmem:[%s611_s26 + $0xf0] sm:$0xff]  ;;  %v364_v58 = vld [vmem:[%s611_s26 + $0xf8] sm:$0xff] }
  0x25   : > { %v414_v8 = vmax.f32 %v382_v59, 0.0  ;;  %v385_v10 = vadd.f32 %v353_v56, %v321_v61  ;;  %v415_v14 = vmax.f32 %v383_v63, 0.0  ;;  %v323_v16 = vadd.f32 %v617_v2, %v284_v3 }
  0x26   : > { %v386_v15 = vadd.f32 %v354_v62, %v322_v1  ;;  %v324_v17 = vadd.f32 %v617_v2, %v285_v4  ;;  %446 = vst.msk [vmem:[%s647_s5 + $0x80] sm:$0xff] %vm429_vm0, %v413_v7  ;;  %v416_v20 = vmax.f32 %v384_v9, 0.0  ;;  %v286_v22 = vmul.f32 %v599_v0, %v247_v5 }
  0x27   : > { %447 = vst.msk [vmem:[%s647_s5 + $0x88] sm:$0xff] %vm429_vm0, %v414_v8  ;;  %v417_v21 = vmax.f32 %v385_v10, 0.0  ;;  %v287_v23 = vmul.f32 %v599_v0, %v248_v6  ;;  %448 = vst.msk [vmem:[%s647_s5 + $0x90] sm:$0xff] %vm429_vm0, %v415_v14  ;;  %v387_v26 = vadd.f32 %v355_v11, %v323_v16  ;;  %v288_v30 = vmul.f32 %v599_v0, %v249_v13 }
  0x28   : > { %v418_v25 = vmax.f32 %v386_v15, 0.0  ;;  %v388_v27 = vadd.f32 %v356_v12, %v324_v17  ;;  %449 = vst.msk [vmem:[%s647_s5 + $0x98] sm:$0xff] %vm429_vm0, %v416_v20  ;;  %v325_v31 = vadd.f32 %v617_v2, %v286_v22  ;;  %v289_v34 = vmul.f32 %v599_v0, %v250_v18 }
  0x29   : > { %450 = vst.msk [vmem:[%s647_s5 + $0xa0] sm:$0xff] %vm429_vm0, %v417_v21  ;;  %v326_v32 = vadd.f32 %v617_v2, %v287_v23  ;;  %v290_v35 = vmul.f32 %v599_v0, %v251_v19  ;;  %v419_v38 = vmax.f32 %v387_v26, 0.0  ;;  %v327_v40 = vadd.f32 %v617_v2, %v288_v30 }
  0x2a   : > { %451 = vst.msk [vmem:[%s647_s5 + $0xa8] sm:$0xff] %vm429_vm0, %v418_v25  ;;  %v420_v39 = vmax.f32 %v388_v27, 0.0  ;;  %v291_v43 = vmul.f32 %v599_v0, %v252_v24  ;;  %v389_v44 = vadd.f32 %v357_v28, %v325_v31  ;;  %v328_v46 = vadd.f32 %v617_v2, %v289_v34 }
  0x2b   : > { %v390_v45 = vadd.f32 %v358_v29, %v326_v32  ;;  %v329_v47 = vadd.f32 %v617_v2, %v290_v35  ;;  %452 = vst.msk [vmem:[%s647_s5 + $0xb0] sm:$0xff] %vm429_vm0, %v419_v38  ;;  %v391_v49 = vadd.f32 %v359_v33, %v327_v40  ;;  %v292_v51 = vmul.f32 %v599_v0, %v253_v36 }
  0x2c   : > { %453 = vst.msk [vmem:[%s647_s5 + $0xb8] sm:$0xff] %vm429_vm0, %v420_v39  ;;  %v330_v50 = vadd.f32 %v617_v2, %v291_v43  ;;  %v293_v52 = vmul.f32 %v599_v0, %v254_v37  ;;  %v421_v53 = vmax.f32 %v389_v44, 0.0  ;;  %v392_v55 = vadd.f32 %v360_v41, %v328_v46 }
  0x2d   : > { %v422_v54 = vmax.f32 %v390_v45, 0.0  ;;  %v393_v56 = vadd.f32 %v361_v42, %v329_v47  ;;  %v423_v59 = vmax.f32 %v391_v49, 0.0  ;;  %v331_v61 = vadd.f32 %v617_v2, %v292_v51 }
  0x2e   : > { %v394_v60 = vadd.f32 %v362_v48, %v330_v50  ;;  %v332_v62 = vadd.f32 %v617_v2, %v293_v52  ;;  %454 = vst.msk [vmem:[%s647_s5 + $0xc0] sm:$0xff] %vm429_vm0, %v421_v53  ;;  %v424_v0 = vmax.f32 %v392_v55, 0.0 }
  0x2f   : > { %455 = vst.msk [vmem:[%s647_s5 + $0xc8] sm:$0xff] %vm429_vm0, %v422_v54  ;;  %v425_v63 = vmax.f32 %v393_v56, 0.0  ;;  %456 = vst.msk [vmem:[%s647_s5 + $0xd0] sm:$0xff] %vm429_vm0, %v423_v59  ;;  %v395_v3 = vadd.f32 %v363_v57, %v331_v61 }
  0x30   : > { %v426_v1 = vmax.f32 %v394_v60, 0.0  ;;  %v396_v4 = vadd.f32 %v364_v58, %v332_v62  ;;  %457 = vst.msk [vmem:[%s647_s5 + $0xd8] sm:$0xff] %vm429_vm0, %v424_v0 }
  0x31   : > { %458 = vst.msk [vmem:[%s647_s5 + $0xe0] sm:$0xff] %vm429_vm0, %v425_v63  ;;  %v427_v5 = vmax.f32 %v395_v3, 0.0 }
  0x32   : > { %459 = vst.msk [vmem:[%s647_s5 + $0xe8] sm:$0xff] %vm429_vm0, %v426_v1  ;;  %v428_v6 = vmax.f32 %v396_v4, 0.0 }
  0x33   : > { %460 = vst.msk [vmem:[%s647_s5 + $0xf0] sm:$0xff] %vm429_vm0, %v427_v5 }
  0x34   : > { %461 = vst.msk [vmem:[%s647_s5 + $0xf8] sm:$0xff] %vm429_vm0, %v428_v6 }
  0x35 PF: > { %s14_s15 = sadd.s32 1, %s559_s15  }
  0x36   : > { %p11_p4 = scmp.ge.s32.totalorder %s14_s15, 10  }
  0x38   :  { %13 = sbr.rel (!%p11_p4) target bundleno = 1 (0x1), region = 69 }

// kernel: fast_up_projection.6
= control target key start
LH: loop header
LB: loop body
LE: loop exit
PB: predicated region body
PF: predicated region fallthrough
CT: control target
= control target key end

     0   :  { %s5995_s21 = smov 0   ;;  %s9002_s0 = inlined_call_operand.vmem [shape: bf16[64,34,8], index: 0, kind: input, shape index: {}]   ;;  %s9003_s1 = inlined_call_operand.vmem [shape: bf16[64,34,8], index: 1, kind: input, shape index: {}]   ;;  %s9004_s2 = inlined_call_operand.vmem [shape: bf16[64,34,8], index: 2, kind: input, shape index: {}]   ;;  %s9005_s3 = inlined_call_operand.vmem [shape: bf16[72,8], index: 3, kind: input, shape index: {}]   ;;  %s9006_s4 = inlined_call_operand.vmem [shape: f32[1,8], index: 4, kind: input, shape index: {}]   ;;  %s9007_s5 = inlined_call_operand.vmem [shape: f32[2048,8], index: 5, kind: output, shape index: {0}]   ;;  %s9008_s6 = inlined_call_operand.vmem [shape: f32[8,2,8], index: 6, kind: output, shape index: {1}]  }
   0x1 LB: > { %s6001_s22 = sadd.s32 4294967295, %s5957_s21   ;;  %p5064_p0 = scmp.ge.s32.totalorder %s5957_s21, 1  ;;  %s5957_s21 = sphi %s5995_s21, %s17_s21  }
   0x2   : > { %p241_p1 = scmp.lt.s32.totalorder %s5957_s21, 9 }
   0x4   : > { %p242_p2 = pnand %p5064_p0, %p241_p1 }
   0x6   : > { %245 = sbr.rel (%p242_p2) target bundleno = 591 (0x24f), region = 40 }
   0xb   : > { %v796_v0 = vld [vmem:[%s9005_s3 + $0x4] sm:$0xf]  ;;  %vm894_vm0 = vcmask 1043456   ;;  %s5065_s25 = sshll.u32 %s6001_s22, 3  ;;  %v440_v2 = vld [vmem:[%s9005_s3] sm:$0xf] }
   0xc   : > { %5884 = vmatprep.subr.msk.bf16.mxu1 %vm894_vm0, %v796_v0  ;;  %5883 = vmatprep.subr.msk.bf16.mxu0 %vm894_vm0, %v796_v0  ;;  %v896_v1 = vsel %vm894_vm0, %v796_v0, 0  ;;  %p289_p3 = scmp.lt.s32.totalorder %s5065_s25, 63  ;;  %v6018_v3 = vld [vmem:[%s9005_s3 + $0x8] sm:$0xf]  ;;  %vm441_vm1 = vsmask.f32 3328 }
   0xd   : > { %5882 = vmatpush3.bf16.msra.mxu1 %v896_v1  ;;  %5576 = vmatpush3.bf16.msra.mxu0 %v896_v1  ;;  %vm442_vm2 = vsmask.f32 7440  ;;  %v6032_v4 = vsel %vm894_vm0, %v440_v2, 0  ;;  %vm845_vm3 = vcmask 64512   ;;  %v1564_v58 = vsel %vm894_vm0, %v6018_v3, 0  ;;  %s5071_s7 = sshll.u32 %s6001_s22, 5 }
   0xe   : > { %s9392_s25 = smov (!%p289_p3, %s5065_s25), 63  ;;  %5885 = vmatprep.subr.msk.bf16.mxu1 %vm894_vm0, %v440_v2  ;;  %5886 = vmatprep.subr.msk.bf16.mxu0 %vm894_vm0, %v6018_v3  ;;  %vm6071_vm4 = vmor %vm441_vm1, %vm442_vm2  ;;  %vm1359_vm5 = vcmask 1042432   ;;  %vm1360_vm6 = vcmask 1046532   ;;  %p8596_p4 = scmp.lt.s32.totalorder %s5071_s7, 255 }
   0xf   : > { %s6023_s30 = smul.u32 20, %s9392_s25  ;;  %vm6326_vm7 = vmor %vm1359_vm5, %vm1360_vm6  ;;  %p315_p5 = scmp.lt.s32.totalorder %s6001_s22, 7 }
  0x10   : > { %s9394_s7 = smov (!%p8596_p4, %s5071_s7), 255 }
  0x11   : > { %s6029_s9 = scalar_lea.vmem %s9002_s0, %s6023_s30  ;;  %s6522_s20 = scalar_lea.vmem %s9003_s1, %s6023_s30 }
  0x12   : > { %v6035_v5 = vld [vmem:[%s6029_s9] sm:$0xf]  ;;  %v6038_v6 = vld [vmem:[%s6029_s9 + $0x4] sm:$0xf]  ;;  %v6041_v7 = vld [vmem:[%s6029_s9 + $0x8] sm:$0xf]  ;;  %s7045_s29 = scalar_lea.vmem %s9004_s2, %s6023_s30 }
  0x13   : > { %v6044_v8 = vld [vmem:[%s6029_s9 + $0xc] sm:$0xf]  ;;  %v445_v9 = vshrl.u32 %v6035_v5, 16  ;;  %v448_v10 = vshll.u32 %v6035_v5, 16  ;;  %v454_v11 = vshll.u32 %v6038_v6, 16  ;;  %v458_v12 = vshrl.u32 %v6038_v6, 16 }
  0x14   : > { %v464_v13 = vshll.u32 %v6041_v7, 16  ;;  %v468_v14 = vshrl.u32 %v6041_v7, 16  ;;  %v6055_v16 = vld [vmem:[%s6029_s9 + $0x50] sm:$0xf]  ;;  %v6058_v17 = vld [vmem:[%s6029_s9 + $0x54] sm:$0xf] }
  0x15   : > { %v447_v19 = vrot.slane %v445_v9, 4  ;;  %v450_v20 = vrot.slane %v448_v10, 5  ;;  %v456_v21 = vrot.slane %v454_v11, 5  ;;  %v460_v22 = vrot.slane %v458_v12, 4  ;;  %v6063_v23 = vld [vmem:[%s6029_s9 + $0x58] sm:$0xf] }
  0x16   : > { %v466_v24 = vrot.slane %v464_v13, 5  ;;  %v470_v25 = vrot.slane %v468_v14, 4  ;;  %v621_v26 = vshrl.u32 %v6055_v16, 16  ;;  %v624_v27 = vshll.u32 %v6055_v16, 16  ;;  %v6078_v45 = vld [vmem:[%s6029_s9 + $0x10] sm:$0x1] }
  0x17   : > { %v451_v28 = vor.u32 %v450_v20, %v447_v19  ;;  %v461_v29 = vor.u32 %v460_v22, %v456_v21  ;;  %v630_v30 = vshll.u32 %v6058_v17, 16  ;;  %v634_v31 = vshrl.u32 %v6058_v17, 16  ;;  %v6086_v50 = vld [vmem:[%s6029_s9 + $0x5c] sm:$0xf]  ;;  %v6096_v62 = vld [vmem:[%s6029_s9 + $0x60] sm:$0x1] }
  0x18   : > { %v471_v33 = vor.u32 %v470_v25, %v466_v24  ;;  %v623_v34 = vrot.slane %v621_v26, 4  ;;  %v626_v35 = vrot.slane %v624_v27, 5  ;;  %v640_v36 = vshll.u32 %v6063_v23, 16  ;;  %9061 = vst [vmem:[#allocation2_spill] sm:$0xff] %v6096_v62  ;;  %v6100_v0 = vld [vmem:[%s6029_s9 + $0x14] sm:$0xf] }
  0x19   : > { %v452_v37 = vrot.slane %v451_v28, 4  ;;  %v462_v38 = vrot.slane %v461_v29, 4  ;;  %v632_v39 = vrot.slane %v630_v30, 5  ;;  %v636_v40 = vrot.slane %v634_v31, 4  ;;  %v6108_v10 = vld [vmem:[%s6029_s9 + $0x18] sm:$0xf] }
  0x1a   : > { %v472_v41 = vrot.slane %v471_v33, 4  ;;  %v627_v42 = vor.u32 %v626_v35, %v623_v34  ;;  %v642_v43 = vrot.slane %v640_v36, 5  ;;  %v644_v44 = vshrl.u32 %v6063_v23, 16  ;;  %v6122_v29 = vld [vmem:[%s6029_s9 + $0x64] sm:$0xf]  ;;  %s5387_s30 = sshll.u32 %s6001_s22, 8 }
  0x1b   : > { %v457_v46 = vsel %vm6071_vm4, %v452_v37, %v456_v21  ;;  %v467_v47 = vsel %vm6071_vm4, %v462_v38, %v466_v24  ;;  %v637_v48 = vor.u32 %v636_v40, %v632_v39  ;;  %v474_v49 = vshll.u32 %v6044_v8, 16  ;;  %v6112_v21 = vld [vmem:[%s6029_s9 + $0x1c] sm:$0xf]  ;;  %v6125_v35 = vld [vmem:[%s6029_s9 + $0x68] sm:$0xf]  ;;  %s9396_s22 = smov (!%p315_p5, %s6001_s22), 7 }
  0x1c   : > { %v5074_v51 = vcombine.low %v457_v46, %v467_v47  ;;  %v628_v52 = vrot.slane %v627_v42, 4  ;;  %v646_v53 = vrot.slane %v644_v44, 4  ;;  %v478_v54 = vshrl.u32 %v6044_v8, 16  ;;  %v6134_v44 = vld [vmem:[%s9005_s3 + $0x10] sm:$0xf]  ;;  %s5073_s15 = sshll.u32 %s9396_s22, 1 }
  0x1d   : > { %v638_v55 = vrot.slane %v637_v48, 4  ;;  %v476_v56 = vrot.slane %v474_v49, 5  ;;  %v484_v57 = vshll.u32 %v6078_v45, 16  ;;  %v650_v63 = vshll.u32 %v6086_v50, 16  ;;  %v6137_v48 = vld [vmem:[%s6029_s9 + $0x6c] sm:$0xf]  ;;  %s318_s18 = scalar_lea.vmem %s9008_s6, %s5073_s15 }
  0x1e   : > { %5577 = vmatprep.mubr.msk.bf16.mxu0 %vm845_vm3, %v5074_v51  ;;  %v633_v59 = vsel %vm6071_vm4, %v628_v52, %v632_v39  ;;  %v647_v60 = vor.u32 %v646_v53, %v642_v43  ;;  %v480_v61 = vrot.slane %v478_v54, 4  ;;  %v654_v9 = vshrl.u32 %v6086_v50, 16  ;;  %v6311_v18 = vld [vmem:[%s6029_s9 + $0x9c] sm:$0x1] }
  0x1f   : > { %v643_v1 = vsel %vm6071_vm4, %v638_v55, %v642_v43  ;;  %v477_v2 = vsel %vm6071_vm4, %v472_v41, %v476_v56  ;;  %v486_v3 = vrot.slane %v484_v57, 5  ;;  %v652_v14 = vrot.slane %v650_v63, 5  ;;  %v6151_v63 = vld [vmem:[%s9005_s3 + $0xc] sm:$0xf] }
  0x20   : > { %v648_v11 = vrot.slane %v647_v60, 4  ;;  %v5082_v12 = vcombine.low %v633_v59, %v643_v1  ;;  %v481_v13 = vor.u32 %v480_v61, %v476_v56  ;;  %v656_v19 = vrot.slane %v654_v9, 4  ;;  %v6146_v56 = vld [vmem:[%s6029_s9 + $0x20] sm:$0xf]  ;;  %v6157_v9 = vld [vmem:[%s6029_s9 + $0x24] sm:$0x1] }
  0x21   : > { %v660_v20 = vshll.u32 %v6096_v62, 16  ;;  %v489_v22 = vshrl.u32 %v6100_v0, 16  ;;  %v492_v24 = vshll.u32 %v6100_v0, 16  ;;  %v498_v27 = vshll.u32 %v6108_v10, 16 }
  0x22   : > { %5593 = vmatprep.mubr.msk.bf16.mxu1 %vm845_vm3, %v5082_v12  ;;  %v482_v25 = vrot.slane %v481_v13, 4  ;;  %v653_v26 = vsel %vm6071_vm4, %v648_v11, %v652_v14  ;;  %v502_v28 = vshrl.u32 %v6108_v10, 16  ;;  %v657_v30 = vor.u32 %v656_v19, %v652_v14  ;;  %v6168_v19 = vld [vmem:[%s6029_s9 + $0x70] sm:$0xf] }
  0x23   : > { %v662_v31 = vrot.slane %v660_v20, 5  ;;  %v491_v33 = vrot.slane %v489_v22, 4  ;;  %v494_v34 = vrot.slane %v492_v24, 5  ;;  %v500_v37 = vrot.slane %v498_v27, 5 }
  0x24   : > { %v487_v36 = vsel %vm6071_vm4, %v482_v25, %v486_v3  ;;  %v504_v38 = vrot.slane %v502_v28, 4  ;;  %v508_v39 = vshll.u32 %v6112_v21, 16  ;;  %v658_v41 = vrot.slane %v657_v30, 4 }
  0x25   : > { %v5075_v40 = vcombine.low %v477_v2, %v487_v36  ;;  %v495_v42 = vor.u32 %v494_v34, %v491_v33  ;;  %v665_v43 = vshrl.u32 %v6122_v29, 16  ;;  %v668_v49 = vshll.u32 %v6122_v29, 16  ;;  %v6176_v34 = vld [vmem:[%s6029_s9 + $0x74] sm:$0x1] }
  0x26   : > { %v505_v46 = vor.u32 %v504_v38, %v500_v37  ;;  %v510_v47 = vrot.slane %v508_v39, 5  ;;  %v674_v51 = vshll.u32 %v6125_v35, 16  ;;  %v663_v52 = vsel %vm6071_vm4, %v658_v41, %v662_v31  ;;  %v6184_v41 = vld [vmem:[%s6029_s9 + $0x28] sm:$0xf] }
  0x27   : > { %5578 = vmatmul.mubr.msk.bf16.vlgmr.msra.gmra.mxu0 %vm845_vm3, %v5075_v40  ;;  %v496_v53 = vrot.slane %v495_v42, 4  ;;  %v667_v54 = vrot.slane %v665_v43, 4  ;;  %v678_v55 = vshrl.u32 %v6125_v35, 16  ;;  %v5083_v57 = vcombine.low %v653_v26, %v663_v52 }
  0x28   : > { %5644 = vmatpush3.bf16.msra.mxu0 %v1564_v58  ;;  %v506_v59 = vrot.slane %v505_v46, 4  ;;  %v670_v60 = vrot.slane %v668_v49, 5  ;;  %v676_v61 = vrot.slane %v674_v51, 5  ;;  %v684_v3 = vshll.u32 %v6137_v48, 16  ;;  %v6189_v49 = vld [vmem:[%s6029_s9 + $0x2c] sm:$0xf] }
  0x29   : > { %v501_v1 = vsel %vm6071_vm4, %v496_v53, %v500_v37  ;;  %v680_v2 = vrot.slane %v678_v55, 4  ;;  %v512_v11 = vshrl.u32 %v6112_v21, 16  ;;  %5888 = vmatprep.subr.msk.bf16.mxu0 %vm894_vm0, %v6134_v44  ;;  %5594 = vmatmul.mubr.msk.bf16.vlgmr.msra.gmra.mxu1 %vm845_vm3, %v5083_v57  ;;  %v518_v13 = vshll.u32 %v6146_v56, 16 }
  0x2a   : > { %v511_v58 = vsel %vm6071_vm4, %v506_v59, %v510_v47  ;;  %v671_v12 = vor.u32 %v670_v60, %v667_v54  ;;  %v522_v14 = vshrl.u32 %v6146_v56, 16  ;;  %5610 = vmatpush3.bf16.msra.mxu1 %v6032_v4  ;;  %v686_v24 = vrot.slane %v684_v3, 5  ;;  %v6195_v59 = vld [vmem:[%s6029_s9 + $0x30] sm:$0xf] }
  0x2b   : > { %v5076_v20 = vcombine.low %v501_v1, %v511_v58  ;;  %v681_v22 = vor.u32 %v680_v2, %v676_v61  ;;  %v514_v25 = vrot.slane %v512_v11, 4  ;;  %v520_v27 = vrot.slane %v518_v13, 5  ;;  %5887 = vmatprep.subr.msk.bf16.mxu1 %vm894_vm0, %v6151_v63  ;;  %v6204_v58 = vld [vmem:[%s6029_s9 + $0x78] sm:$0xf] }
  0x2c   : > { %v672_v26 = vrot.slane %v671_v12, 4  ;;  %v524_v28 = vrot.slane %v522_v14, 4  ;;  %v528_v30 = vshll.u32 %v6157_v9, 16  ;;  %v688_v4 = vshrl.u32 %v6137_v48, 16 }
  0x2d   : > { %5581 = vmatprep.mubr.msk.bf16.mxu0 %vm845_vm3, %v5076_v20  ;;  %v682_v31 = vrot.slane %v681_v22, 4  ;;  %v515_v33 = vor.u32 %v514_v25, %v510_v47  ;;  %v694_v36 = vshll.u32 %v6168_v19, 16  ;;  %v698_v40 = vshrl.u32 %v6168_v19, 16  ;;  %v6207_v22 = vld [vmem:[%s6029_s9 + $0x7c] sm:$0xf] }
  0x2e   : > { %v677_v37 = vsel %vm6071_vm4, %v672_v26, %v676_v61  ;;  %v525_v38 = vor.u32 %v524_v28, %v520_v27  ;;  %v530_v39 = vrot.slane %v528_v30, 5  ;;  %v690_v46 = vrot.slane %v688_v4, 4 }
  0x2f   : > { %v687_v42 = vsel %vm6071_vm4, %v682_v31, %v686_v24  ;;  %v516_v43 = vrot.slane %v515_v33, 4  ;;  %v696_v47 = vrot.slane %v694_v36, 5  ;;  %v700_v53 = vrot.slane %v698_v40, 4  ;;  %v6215_v31 = vld [vmem:[%s6029_s9 + $0x80] sm:$0xf] }
  0x30   : > { %v5084_v51 = vcombine.low %v677_v37, %v687_v42  ;;  %v526_v52 = vrot.slane %v525_v38, 4  ;;  %v704_v54 = vshll.u32 %v6176_v34, 16  ;;  %v691_v57 = vor.u32 %v690_v46, %v686_v24  ;;  %v6223_v40 = vld [vmem:[%s6029_s9 + $0x34] sm:$0xf] }
  0x31   : > { %v521_v55 = vsel %vm6071_vm4, %v516_v43, %v520_v27  ;;  %v533_v60 = vshrl.u32 %v6184_v41, 16  ;;  %v536_v61 = vshll.u32 %v6184_v41, 16  ;;  %v701_v2 = vor.u32 %v700_v53, %v696_v47 }
  0x32   : > { %5597 = vmatprep.mubr.msk.bf16.mxu1 %vm845_vm3, %v5084_v51  ;;  %v531_v1 = vsel %vm6071_vm4, %v526_v52, %v530_v39  ;;  %v706_v3 = vrot.slane %v704_v54, 5  ;;  %v542_v11 = vshll.u32 %v6189_v49, 16  ;;  %v692_v13 = vrot.slane %v691_v57, 4 }
  0x33   : > { %v5077_v12 = vcombine.low %v521_v55, %v531_v1  ;;  %v535_v14 = vrot.slane %v533_v60, 4  ;;  %v538_v20 = vrot.slane %v536_v61, 5  ;;  %v702_v24 = vrot.slane %v701_v2, 4  ;;  %v6228_v55 = vld [vmem:[%s6029_s9 + $0x38] sm:$0x1] }
  0x34   : > { %v544_v25 = vrot.slane %v542_v11, 5  ;;  %v546_v26 = vshrl.u32 %v6189_v49, 16  ;;  %v552_v27 = vshll.u32 %v6195_v59, 16  ;;  %v697_v28 = vsel %vm6071_vm4, %v692_v13, %v696_v47 }
  0x35   : > { %5582 = vmatmul.mubr.msk.bf16.gmra.mxu0 %vm845_vm3, %v5077_v12  ;;  %v539_v30 = vor.u32 %v538_v20, %v535_v14  ;;  %v709_v33 = vshrl.u32 %v6204_v58, 16  ;;  %v712_v4 = vshll.u32 %v6204_v58, 16  ;;  %v707_v36 = vsel %vm6071_vm4, %v702_v24, %v706_v3 }
  0x36   : > { %v548_v37 = vrot.slane %v546_v26, 4  ;;  %v554_v38 = vrot.slane %v552_v27, 5  ;;  %v718_v39 = vshll.u32 %v6207_v22, 16  ;;  %v5085_v42 = vcombine.low %v697_v28, %v707_v36  ;;  %v6238_v26 = vld [vmem:[%s6029_s9 + $0x84] sm:$0xf] }
  0x37   : > { %v540_v43 = vrot.slane %v539_v30, 4  ;;  %v711_v46 = vrot.slane %v709_v33, 4  ;;  %v714_v47 = vrot.slane %v712_v4, 5  ;;  %v722_v53 = vshrl.u32 %v6207_v22, 16  ;;  %v6243_v30 = vld [vmem:[%s6029_s9 + $0x88] sm:$0x1] }
  0x38   : > { %v549_v51 = vor.u32 %v548_v37, %v544_v25  ;;  %v720_v52 = vrot.slane %v718_v39, 5  ;;  %v728_v54 = vshll.u32 %v6215_v31, 16  ;;  %5598 = vmatmul.mubr.msk.bf16.gmra.mxu1 %vm845_vm3, %v5085_v42  ;;  %v556_v61 = vshrl.u32 %v6195_v59, 16  ;;  %v6247_v4 = vld [vmem:[%s6029_s9 + $0x3c] sm:$0xf] }
  0x39   : > { %v545_v57 = vsel %vm6071_vm4, %v540_v43, %v544_v25  ;;  %v715_v60 = vor.u32 %v714_v47, %v711_v46  ;;  %v562_v1 = vshll.u32 %v6223_v40, 16  ;;  %v724_v3 = vrot.slane %v722_v53, 4 }
  0x3a   : > { %v550_v2 = vrot.slane %v549_v51, 4  ;;  %v730_v11 = vrot.slane %v728_v54, 5  ;;  %v566_v12 = vshrl.u32 %v6223_v40, 16  ;;  %v558_v14 = vrot.slane %v556_v61, 4 }
  0x3b   : > { %v716_v13 = vrot.slane %v715_v60, 4  ;;  %v564_v20 = vrot.slane %v562_v1, 5  ;;  %v572_v24 = vshll.u32 %v6228_v55, 16  ;;  %v725_v27 = vor.u32 %v724_v3, %v720_v52 }
  0x3c   : > { %v555_v25 = vsel %vm6071_vm4, %v550_v2, %v554_v38  ;;  %v568_v28 = vrot.slane %v566_v12, 4  ;;  %v732_v33 = vshrl.u32 %v6215_v31, 16  ;;  %v559_v39 = vor.u32 %v558_v14, %v554_v38  ;;  %v6259_v2 = vld [vmem:[%s6029_s9 + $0x40] sm:$0xf] }
  0x3d   : > { %v5078_v36 = vcombine.low %v545_v57, %v555_v25  ;;  %v721_v37 = vsel %vm6071_vm4, %v716_v13, %v720_v52  ;;  %v574_v42 = vrot.slane %v572_v24, 5  ;;  %v726_v43 = vrot.slane %v725_v27, 4  ;;  %v6264_v24 = vld [vmem:[%s6029_s9 + $0x44] sm:$0xf]  ;;  %v6267_v25 = vld [vmem:[%s6029_s9 + $0x8c] sm:$0xf] }
  0x3e   : > { %v569_v46 = vor.u32 %v568_v28, %v564_v20  ;;  %v734_v47 = vrot.slane %v732_v33, 4  ;;  %v738_v51 = vshll.u32 %v6238_v26, 16  ;;  %v560_v53 = vrot.slane %v559_v39, 4 }
  0x3f   : > { %5585 = vmatprep.mubr.msk.bf16.mxu0 %vm845_vm3, %v5078_v36  ;;  %v742_v54 = vshrl.u32 %v6238_v26, 16  ;;  %v748_v57 = vshll.u32 %v6243_v30, 16  ;;  %v577_v60 = vshrl.u32 %v6247_v4, 16  ;;  %v731_v38 = vsel %vm6071_vm4, %v726_v43, %v730_v11  ;;  %v6276_v43 = vld [vmem:[%s6029_s9 + $0x90] sm:$0xf] }
  0x40   : > { %v570_v52 = vrot.slane %v569_v46, 4  ;;  %v735_v61 = vor.u32 %v734_v47, %v730_v11  ;;  %v740_v1 = vrot.slane %v738_v51, 5  ;;  %v5086_v3 = vcombine.low %v721_v37, %v731_v38 }
  0x41   : > { %v565_v12 = vsel %vm6071_vm4, %v560_v53, %v564_v20  ;;  %v744_v13 = vrot.slane %v742_v54, 4  ;;  %v750_v14 = vrot.slane %v748_v57, 5  ;;  %v579_v33 = vrot.slane %v577_v60, 4  ;;  %v6284_v60 = vld [vmem:[%s6029_s9 + $0x94] sm:$0xf] }
  0x42   : > { %v575_v27 = vsel %vm6071_vm4, %v570_v52, %v574_v42  ;;  %v736_v28 = vrot.slane %v735_v61, 4  ;;  %v580_v11 = vshll.u32 %v6247_v4, 16  ;;  %5601 = vmatprep.mubr.msk.bf16.mxu1 %vm845_vm3, %v5086_v3  ;;  %v586_v20 = vshll.u32 %v6259_v2, 16 }
  0x43   : > { %v5079_v36 = vcombine.low %v565_v12, %v575_v27  ;;  %v745_v37 = vor.u32 %v744_v13, %v740_v1  ;;  %v590_v39 = vshrl.u32 %v6259_v2, 16  ;;  %v596_v42 = vshll.u32 %v6264_v24, 16 }
  0x44   : > { %v741_v46 = vsel %vm6071_vm4, %v736_v28, %v740_v1  ;;  %v582_v47 = vrot.slane %v580_v11, 5  ;;  %v753_v51 = vshrl.u32 %v6267_v25, 16  ;;  %v588_v54 = vrot.slane %v586_v20, 5  ;;  %v6292_v11 = vld [vmem:[%s6029_s9 + $0x48] sm:$0xf] }
  0x45   : > { %5586 = vmatmul.mubr.msk.bf16.gmra.mxu0 %vm845_vm3, %v5079_v36  ;;  %v746_v53 = vrot.slane %v745_v37, 4  ;;  %v592_v57 = vrot.slane %v590_v39, 4  ;;  %v756_v38 = vshll.u32 %v6267_v25, 16  ;;  %v598_v61 = vrot.slane %v596_v42, 5 }
  0x46   : > { %v583_v52 = vor.u32 %v582_v47, %v579_v33  ;;  %v755_v3 = vrot.slane %v753_v51, 4  ;;  %v762_v1 = vshll.u32 %v6276_v43, 16  ;;  %v766_v28 = vshrl.u32 %v6276_v43, 16  ;;  %v6296_v51 = vld [vmem:[%s6029_s9 + $0x4c] sm:$0x1] }
  0x47   : > { %v751_v12 = vsel %vm6071_vm4, %v746_v53, %v750_v14  ;;  %v593_v13 = vor.u32 %v592_v57, %v588_v54  ;;  %v758_v27 = vrot.slane %v756_v38, 5  ;;  %v772_v33 = vshll.u32 %v6284_v60, 16 }
  0x48   : > { %v5087_v36 = vcombine.low %v741_v46, %v751_v12  ;;  %v584_v37 = vrot.slane %v583_v52, 4  ;;  %v764_v20 = vrot.slane %v762_v1, 5  ;;  %v768_v42 = vrot.slane %v766_v28, 4 }
  0x49   : > { %v594_v39 = vrot.slane %v593_v13, 4  ;;  %v759_v47 = vor.u32 %v758_v27, %v755_v3  ;;  %v600_v14 = vshrl.u32 %v6264_v24, 16  ;;  %v774_v57 = vrot.slane %v772_v33, 5  ;;  %v6307_v13 = vld [vmem:[%s6029_s9 + $0x98] sm:$0xf]  ;;  %s5072_s9 = sshll.u32 %s9394_s7, 3 }
  0x4a   : > { %5602 = vmatmul.mubr.msk.bf16.gmra.mxu1 %vm845_vm3, %v5087_v36  ;;  %v589_v53 = vsel %vm6071_vm4, %v584_v37, %v588_v54  ;;  %v606_v46 = vshll.u32 %v6292_v11, 16  ;;  %v610_v38 = vshrl.u32 %v6292_v11, 16  ;;  %v769_v1 = vor.u32 %v768_v42, %v764_v20  ;;  %s8704_s14 = scalar_lea.vmem %s9007_s5, %s5072_s9 }
  0x4b   : > { %v599_v52 = vsel %vm6071_vm4, %v594_v39, %v598_v61  ;;  %v760_v3 = vrot.slane %v759_v47, 4  ;;  %v602_v12 = vrot.slane %v600_v14, 4  ;;  %v616_v36 = vshll.u32 %v6296_v51, 16 }
  0x4c   : > { %v5080_v27 = vcombine.low %v589_v53, %v599_v52  ;;  %v608_v28 = vrot.slane %v606_v46, 5  ;;  %v612_v15 = vrot.slane %v610_v38, 4  ;;  %v770_v37 = vrot.slane %v769_v1, 4 }
  0x4d   : > { %v765_v54 = vsel %vm6071_vm4, %v760_v3, %v764_v20  ;;  %v603_v33 = vor.u32 %v602_v12, %v598_v61  ;;  %v776_v62 = vshrl.u32 %v6284_v60, 16  ;;  %v618_v47 = vrot.slane %v616_v36, 5 }
  0x4e   : > { %5589 = vmatprep.mubr.msk.bf16.mxu0 %vm845_vm3, %v5080_v27  ;;  %v613_v39 = vor.u32 %v612_v15, %v608_v28  ;;  %v782_v42 = vshll.u32 %v6307_v13, 16  ;;  %v786_v14 = vshrl.u32 %v6307_v13, 16  ;;  %v775_v53 = vsel %vm6071_vm4, %v770_v37, %v774_v57 }
  0x4f   : > { %v604_v46 = vrot.slane %v603_v33, 4  ;;  %v778_v38 = vrot.slane %v776_v62, 4  ;;  %v792_v52 = vshll.u32 %v6311_v18, 16  ;;  %v5088_v20 = vcombine.low %v765_v54, %v775_v53 }
  0x50   : > { %v614_v3 = vrot.slane %v613_v39, 4  ;;  %v784_v61 = vrot.slane %v782_v42, 5  ;;  %v788_v1 = vrot.slane %v786_v14, 4  ;;  %v5138_v37 = vrot.slane %v6035_v5, 9 }
  0x51   : > { %v609_v12 = vsel %vm6071_vm4, %v604_v46, %v608_v28  ;;  %v779_v15 = vor.u32 %v778_v38, %v774_v57  ;;  %v794_v27 = vrot.slane %v792_v52, 5  ;;  %5605 = vmatprep.mubr.msk.bf16.mxu1 %vm845_vm3, %v5088_v20  ;;  %v1364_v33 = vrot.slane %v6038_v6, 5 }
  0x52   : > { %v619_v62 = vsel %vm6071_vm4, %v614_v3, %v618_v47  ;;  %v789_v54 = vor.u32 %v788_v1, %v784_v61  ;;  %v1367_v28 = vrot.slane %v6041_v7, 5  ;;  %v1373_v57 = vrot.slane %v6078_v45, 5 }
  0x53   : > { %v5081_v39 = vcombine.low %v609_v12, %v619_v62  ;;  %v780_v42 = vrot.slane %v779_v15, 4  ;;  %v1370_v14 = vrot.slane %v6044_v8, 5  ;;  %v1365_v46 = vsel %vm6326_vm7, %v5138_v37, %v1364_v33 }
  0x54   : > { %v790_v53 = vrot.slane %v789_v54, 4  ;;  %v1366_v38 = vrot.slane %v1364_v33, 4  ;;  %v1369_v52 = vrot.slane %v1367_v28, 4  ;;  %v5139_v3 = vrot.slane %v6100_v0, 9 }
  0x55   : > { %5590 = vmatmul.mubr.msk.bf16.gmra.mxu0 %vm845_vm3, %v5081_v39  ;;  %v785_v47 = vsel %vm6071_vm4, %v780_v42, %v784_v61  ;;  %v1372_v20 = vrot.slane %v1370_v14, 4  ;;  %v1377_v45 = vrot.slane %v6108_v10, 5  ;;  %v1380_v37 = vrot.slane %v6112_v21, 5 }
  0x56   : > { %v795_v1 = vsel %vm6071_vm4, %v790_v53, %v794_v27  ;;  %v1368_v12 = vsel %vm6326_vm7, %v1366_v38, %v1367_v28  ;;  %v1371_v15 = vsel %vm6326_vm7, %v1369_v52, %v1370_v14  ;;  %v1383_v28 = vrot.slane %v6146_v56, 5 }
  0x57   : > { %v5089_v62 = vcombine.low %v785_v47, %v795_v1  ;;  %v5146_v54 = vcombine.low %v1365_v46, %v1368_v12  ;;  %v1374_v61 = vsel %vm6326_vm7, %v1372_v20, %v1373_v57  ;;  %v1378_v33 = vsel %vm6326_vm7, %v5139_v3, %v1377_v45 }
  0x58   : > { %v1379_v39 = vrot.slane %v1377_v45, 4  ;;  %v1382_v42 = vrot.slane %v1380_v37, 4  ;;  %v5147_v27 = vcombine.low %v1371_v15, %v1374_v61  ;;  %v5140_v14 = vrot.slane %v6184_v41, 9 }
  0x59   : > { %5606 = vmatmul.mubr.msk.bf16.gmra.mxu1 %vm845_vm3, %v5089_v62  ;;  %5645 = vmatprep.mubr.msk.bf16.mxu0 %vm845_vm3, %v5146_v54  ;;  %v9064_v53 = vcombine.low %v6035_v5, %v6038_v6  ;;  %v1386_v46 = vrot.slane %v6157_v9, 5  ;;  %v1390_v38 = vrot.slane %v6189_v49, 5  ;;  %v1393_v52 = vrot.slane %v6195_v59, 5  ;;  %v6379_v9 = vld [vmem:[%s9005_s3 + $0x18] sm:$0xf] }
  0x5a   : > { %v1381_v57 = vsel %vm6326_vm7, %v1379_v39, %v1380_v37  ;;  %v2534_v47 = vsel %vm894_vm0, %v6134_v44, 0  ;;  %v1385_v3 = vrot.slane %v1383_v28, 4  ;;  %v1396_v45 = vrot.slane %v6223_v40, 5 }
  0x5b   : > { %5611 = vmatprep.mubr.msk.bf16.mxu1 %vm845_vm3, %v9064_v53  ;;  %v5148_v20 = vcombine.low %v1378_v33, %v1381_v57  ;;  %v5108_v5 = vcombine.low %v6100_v0, %v6108_v10  ;;  %v1384_v6 = vsel %vm6326_vm7, %v1382_v42, %v1383_v28  ;;  %v1392_v1 = vrot.slane %v1390_v38, 4  ;;  %v6401_v42 = vld [vmem:[%s9005_s3 + $0x14] sm:$0xf] }
  0x5c   : > { %v1391_v44 = vsel %vm6326_vm7, %v5140_v14, %v1390_v38  ;;  %v1395_v12 = vrot.slane %v1393_v52, 4  ;;  %v1398_v15 = vrot.slane %v1396_v45, 4  ;;  %v1399_v37 = vrot.slane %v6228_v55, 5 }
  0x5d   : > { %5646 = vmatmul.mubr.msk.bf16.vlgmr.msra.gmra.mxu0 %vm845_vm3, %v5147_v27  ;;  %v1387_v0 = vsel %vm6326_vm7, %v1385_v3, %v1386_v46  ;;  %v1394_v10 = vsel %vm6326_vm7, %v1392_v1, %v1393_v52  ;;  %v5141_v62 = vrot.slane %v6247_v4, 9  ;;  %v1403_v54 = vrot.slane %v6259_v2, 5 }
  0x5e   : > { %5712 = vmatpush3.bf16.msra.mxu0 %v2534_v47  ;;  %5649 = vmatprep.mubr.msk.bf16.mxu0 %vm845_vm3, %v5148_v20  ;;  %v1889_v61 = vsel %vm894_vm0, %v6151_v63, 0  ;;  %v1406_v33 = vrot.slane %v6264_v24, 5  ;;  %v1409_v39 = vrot.slane %v6292_v11, 5  ;;  %v9065_v27 = vcombine.low %v6041_v7, %v6044_v8 }
  0x5f   : > { %5890 = vmatprep.subr.msk.bf16.mxu0 %vm894_vm0, %v6379_v9  ;;  %v1405_v55 = vrot.slane %v1403_v54, 4  ;;  %v5149_v28 = vcombine.low %v1384_v6, %v1387_v0  ;;  %v5150_v63 = vcombine.low %v1391_v44, %v1394_v10  ;;  %v1397_v14 = vsel %vm6326_vm7, %v1395_v12, %v1396_v45 }
  0x60   : > { %v1400_v53 = vsel %vm6326_vm7, %v1398_v15, %v1399_v37  ;;  %v1404_v57 = vsel %vm6326_vm7, %v5141_v62, %v1403_v54  ;;  %v1408_v7 = vrot.slane %v1406_v33, 4  ;;  %v1416_v8 = vrot.slane %v6058_v17, 5 }
  0x61   : > { %5612 = vmatmul.mubr.msk.bf16.vlgmr.msra.gmra.mxu1 %vm845_vm3, %v9065_v27  ;;  %v1407_v46 = vsel %vm6326_vm7, %v1405_v55, %v1406_v33  ;;  %v1411_v38 = vrot.slane %v1409_v39, 4  ;;  %v1412_v52 = vrot.slane %v6296_v51, 5  ;;  %v5142_v47 = vrot.slane %v6055_v16, 9 }
  0x62   : > { %5678 = vmatpush3.bf16.msra.mxu1 %v1889_v61  ;;  %5615 = vmatprep.mubr.msk.bf16.mxu1 %vm845_vm3, %v5108_v5  ;;  %v5109_v20 = vcombine.low %v6112_v21, %v6146_v56  ;;  %v5110_v3 = vcombine.low %v6184_v41, %v6189_v49  ;;  %v1418_v45 = vrot.slane %v1416_v8, 4  ;;  %v1419_v5 = vrot.slane %v6063_v23, 5 }
  0x63   : > { %5889 = vmatprep.subr.msk.bf16.mxu1 %vm894_vm0, %v6401_v42  ;;  %v5111_v6 = vcombine.low %v6195_v59, %v6223_v40  ;;  %v5151_v51 = vcombine.low %v1397_v14, %v1400_v53  ;;  %v5112_v1 = vcombine.low %v6247_v4, %v6259_v2  ;;  %v5152_v44 = vcombine.low %v1404_v57, %v1407_v46 }
  0x64   : > { %v1410_v21 = vsel %vm6326_vm7, %v1408_v7, %v1409_v39  ;;  %v1422_v56 = vrot.slane %v6086_v50, 5  ;;  %v5143_v41 = vrot.slane %v6122_v29, 9  ;;  %v1429_v49 = vrot.slane %v6125_v35, 5 }
  0x65   : > { %5650 = vmatmul.mubr.msk.bf16.gmra.mxu0 %vm845_vm3, %v5149_v28  ;;  %v1413_v12 = vsel %vm6326_vm7, %v1411_v38, %v1412_v52  ;;  %v1417_v59 = vsel %vm6326_vm7, %v5142_v47, %v1416_v8  ;;  %v1432_v40 = vrot.slane %v6137_v48, 5  ;;  %v5117_v4 = vcombine.low %v6137_v48, %v6168_v19 }
  0x66   : > { %5653 = vmatprep.mubr.msk.bf16.mxu0 %vm845_vm3, %v5150_v63  ;;  %v1420_v2 = vsel %vm6326_vm7, %v1418_v45, %v1419_v5  ;;  %v6448_v15 = vsel %vm6326_vm7, %v5143_v41, %v1429_v49  ;;  %v1431_v37 = vrot.slane %v1429_v49, 4  ;;  %v1435_v0 = vrot.slane %v6168_v19, 5 }
  0x67   : > { %v1434_v10 = vrot.slane %v1432_v40, 4  ;;  %v1438_v62 = vrot.slane %v6176_v34, 5  ;;  %v5118_v54 = vcombine.low %v6204_v58, %v6207_v22  ;;  %v5144_v61 = vrot.slane %v6204_v58, 9 }
  0x68   : > { %v1433_v33 = vsel %vm6326_vm7, %v1431_v37, %v1432_v40  ;;  %v1437_v55 = vrot.slane %v1435_v0, 4  ;;  %v1442_v39 = vrot.slane %v6207_v22, 5  ;;  %v1445_v27 = vrot.slane %v6215_v31, 5 }
  0x69   : > { %5616 = vmatmul.mubr.msk.bf16.gmra.mxu1 %vm845_vm3, %v5109_v20  ;;  %v5156_v28 = vcombine.low %v6448_v15, %v1433_v33  ;;  %v6464_v34 = vsel %vm6326_vm7, %v1434_v10, %v1435_v0  ;;  %v5119_v63 = vcombine.low %v6215_v31, %v6238_v26  ;;  %v1448_v14 = vrot.slane %v6238_v26, 5  ;;  %v9066_v33 = vld [vmem:[#allocation2_spill] sm:$0xff] }
  0x6a   : > { %5619 = vmatprep.mubr.msk.bf16.mxu1 %vm845_vm3, %v5110_v3  ;;  %v6471_v53 = vsel %vm6326_vm7, %v1437_v55, %v1438_v62  ;;  %v6475_v57 = vsel %vm6326_vm7, %v5144_v61, %v1442_v39  ;;  %v1444_v46 = vrot.slane %v1442_v39, 4  ;;  %v1447_v7 = vrot.slane %v1445_v27, 4 }
  0x6b   : > { %v5157_v8 = vcombine.low %v6464_v34, %v6471_v53  ;;  %v1450_v38 = vrot.slane %v1448_v14, 4  ;;  %v1451_v52 = vrot.slane %v6243_v30, 5  ;;  %v5120_v47 = vcombine.low %v6267_v25, %v6276_v43 }
  0x6c   : > { %v6486_v20 = vsel %vm6326_vm7, %v1444_v46, %v1445_v27  ;;  %v6490_v3 = vsel %vm6326_vm7, %v1447_v7, %v1448_v14  ;;  %v5145_v45 = vrot.slane %v6267_v25, 9  ;;  %v5121_v49 = vcombine.low %v6284_v60, %v6307_v13  ;;  %v6553_v46 = vld [vmem:[%s6522_s20 + $0xc] sm:$0xf]  ;;  %v6556_v7 = vld [vmem:[%s6522_s20 + $0x14] sm:$0xf] }
  0x6d   : > { %5654 = vmatmul.mubr.msk.bf16.gmra.mxu0 %vm845_vm3, %v5151_v51  ;;  %v1455_v51 = vrot.slane %v6276_v43, 5  ;;  %v5158_v30 = vcombine.low %v6475_v57, %v6486_v20  ;;  %v6498_v41 = vsel %vm6326_vm7, %v1450_v38, %v1451_v52  ;;  %v5153_v0 = vcombine.low %v1410_v21, %v1413_v12  ;;  %v6535_v12 = vld [vmem:[%s6522_s20] sm:$0xf]  ;;  %9067 = vst [vmem:[#allocation2_spill] sm:$0xff] %v6553_v46 }
  0x6e   : > { %5657 = vmatprep.mubr.msk.bf16.mxu0 %vm845_vm3, %v5152_v44  ;;  %v1458_v44 = vrot.slane %v6284_v60, 5  ;;  %v5159_v40 = vcombine.low %v6490_v3, %v6498_v41  ;;  %v1421_v10 = vrot.slane %v1419_v5, 4  ;;  %v5154_v62 = vcombine.low %v1417_v59, %v1420_v2  ;;  %v6538_v59 = vld [vmem:[%s6522_s20 + $0x4] sm:$0xf]  ;;  %v6547_v2 = vld [vmem:[%s6522_s20 + $0x8] sm:$0xf] }
  0x6f   : > { %v6507_v15 = vsel %vm6326_vm7, %v5145_v45, %v1455_v51  ;;  %v1457_v37 = vrot.slane %v1455_v51, 4  ;;  %v1424_v61 = vrot.slane %v1422_v56, 4  ;;  %v1425_v55 = vrot.slane %v9066_v33, 5  ;;  %9068 = vst [vmem:[#allocation3_spill] sm:$0xff] %v6556_v7  ;;  %v6563_v51 = vld [vmem:[%s6522_s20 + $0x18] sm:$0xf] }
  0x70   : > { %v5113_v5 = vcombine.low %v6264_v24, %v6292_v11  ;;  %v2098_v11 = vshrl.u32 %v6538_v59, 16  ;;  %v5115_v14 = vcombine.low %v6063_v23, %v6086_v50  ;;  %v5116_v38 = vcombine.low %v6122_v29, %v6125_v35  ;;  %9069 = vst [vmem:[#allocation4_spill] sm:$0xff] %v6563_v51 }
  0x71   : > { %5620 = vmatmul.mubr.msk.bf16.gmra.mxu1 %vm845_vm3, %v5111_v6  ;;  %v6514_v39 = vsel %vm6326_vm7, %v1457_v37, %v1458_v44  ;;  %v5114_v6 = vcombine.low %v6055_v16, %v6058_v17  ;;  %v1426_v21 = vsel %vm6326_vm7, %v1424_v61, %v1425_v55  ;;  %v2085_v16 = vshrl.u32 %v6535_v12, 16 }
  0x72   : > { %5623 = vmatprep.mubr.msk.bf16.mxu1 %vm845_vm3, %v5112_v1  ;;  %v5160_v27 = vcombine.low %v6507_v15, %v6514_v39  ;;  %v1423_v1 = vsel %vm6326_vm7, %v1421_v10, %v1422_v56  ;;  %v2088_v17 = vshll.u32 %v6535_v12, 16  ;;  %v2094_v56 = vshll.u32 %v6538_v59, 16 }
  0x73   : > { %v5155_v24 = vcombine.low %v1423_v1, %v1426_v21  ;;  %v1461_v52 = vrot.slane %v6307_v13, 5  ;;  %v2087_v45 = vrot.slane %v2085_v16, 4  ;;  %v2100_v23 = vrot.slane %v2098_v11, 4  ;;  %v6585_v11 = vld [vmem:[%s6522_s20 + $0x10] sm:$0x1] }
  0x74   : > { %v2090_v37 = vrot.slane %v2088_v17, 5  ;;  %v2104_v50 = vshll.u32 %v6547_v2, 16  ;;  %v2108_v10 = vshrl.u32 %v6547_v2, 16  ;;  %v2114_v29 = vshll.u32 %v6553_v46, 16  ;;  %9070 = vst [vmem:[#allocation5_spill] sm:$0xff] %v6585_v11 }
  0x75   : > { %5658 = vmatmul.mubr.msk.bf16.gmra.mxu0 %vm845_vm3, %v5153_v0  ;;  %v6565_v0 = vrot.slane %v2094_v56, 5  ;;  %v2129_v35 = vshrl.u32 %v6556_v7, 16  ;;  %v2142_v61 = vshrl.u32 %v6563_v51, 16  ;;  %v2138_v33 = vshll.u32 %v6563_v51, 16 }
  0x76   : > { %5661 = vmatprep.mubr.msk.bf16.mxu0 %vm845_vm3, %v5154_v62  ;;  %v2118_v62 = vshrl.u32 %v6553_v46, 16  ;;  %v1460_v55 = vrot.slane %v1458_v44, 4  ;;  %v1463_v1 = vrot.slane %v1461_v52, 4  ;;  %v2091_v21 = vor.u32 %v2090_v37, %v2087_v45 }
  0x77   : > { %v6582_v16 = vrot.slane %v2104_v50, 5  ;;  %v2110_v17 = vrot.slane %v2108_v10, 4  ;;  %v6587_v56 = vrot.slane %v2114_v29, 5  ;;  %v6593_v44 = vrot.slane %v2138_v33, 5  ;;  %v6614_v10 = vld [vmem:[%s6522_s20 + $0x28] sm:$0xf] }
  0x78   : > { %v2144_v45 = vrot.slane %v2142_v61, 4  ;;  %v6606_v34 = vsel %vm6326_vm7, %v1460_v55, %v1461_v52  ;;  %9071 = vst [vmem:[#allocation6_spill] sm:$0xff] %v6614_v10  ;;  %v6619_v29 = vld [vmem:[%s6522_s20 + $0x2c] sm:$0xf]  ;;  %v2173_v48 = vshrl.u32 %v6614_v10, 16  ;;  %v2176_v19 = vshll.u32 %v6614_v10, 16 }
  0x79   : > { %5624 = vmatmul.mubr.msk.bf16.gmra.mxu1 %vm845_vm3, %v5113_v5  ;;  %v1464_v5 = vrot.slane %v6311_v18, 5  ;;  %v2111_v20 = vor.u32 %v2110_v17, %v6582_v16  ;;  %9072 = vst [vmem:[#allocation7_spill] sm:$0xff] %v6619_v29  ;;  %v2182_v58 = vshll.u32 %v6619_v29, 16  ;;  %v6649_v17 = vld [vmem:[%s6522_s20 + $0x30] sm:$0xf]  ;;  %v5179_v15 = vcombine.low %v6547_v2, %v6553_v46 }
  0x7a   : > { %5627 = vmatprep.mubr.msk.bf16.mxu1 %vm845_vm3, %v5114_v6  ;;  %v6579_v6 = vld [vmem:[%s6522_s20 + $0x1c] sm:$0xf]  ;;  %v2178_v3 = vrot.slane %v2176_v19, 5  ;;  %v6676_v39 = vsel %vm894_vm0, %v6401_v42, 0  ;;  %v3264_v19 = vsel %vm894_vm0, %v6379_v9, 0 }
  0x7b   : > { %v2148_v37 = vshll.u32 %v6579_v6, 16  ;;  %v2152_v50 = vshrl.u32 %v6579_v6, 16  ;;  %v6610_v53 = vsel %vm6326_vm7, %v1463_v1, %v1464_v5  ;;  %v5178_v5 = vcombine.low %v6535_v12, %v6538_v59 }
  0x7c   : > { %v2186_v1 = vshrl.u32 %v6619_v29, 16  ;;  %v6668_v41 = vrot.slane %v2182_v58, 5 }
  0x7d   : > { %5662 = vmatmul.mubr.msk.bf16.gmra.mxu0 %vm845_vm3, %v5155_v24  ;;  %v2101_v24 = vor.u32 %v2100_v23, %v6565_v0  ;;  %v6601_v23 = vld [vmem:[%s6522_s20 + $0x20] sm:$0xf]  ;;  %v2154_v33 = vrot.slane %v2152_v50, 4 }
  0x7e   : > { %5665 = vmatprep.mubr.msk.bf16.mxu0 %vm845_vm3, %v5156_v28  ;;  %v2132_v28 = vshll.u32 %v6556_v7, 16  ;;  %v2162_v61 = vshrl.u32 %v6601_v23, 16  ;;  %v2158_v55 = vshll.u32 %v6601_v23, 16 }
  0x7f   : > { %v2102_v57 = vrot.slane %v2101_v24, 4 }
  0x80   : > { %v2134_v18 = vrot.slane %v2132_v28, 5  ;;  %v6626_v28 = vrot.slane %v2148_v37, 5  ;;  %v2164_v37 = vrot.slane %v2162_v61, 4  ;;  %v6666_v50 = vrot.slane %v2158_v55, 5 }
  0x81   : > { %5628 = vmatmul.mubr.msk.bf16.gmra.mxu1 %vm845_vm3, %v5115_v14  ;;  %v2120_v14 = vrot.slane %v2118_v62, 4  ;;  %v2092_v62 = vrot.slane %v2091_v21, 4  ;;  %v2112_v21 = vrot.slane %v2111_v20, 4 }
  0x82   : > { %5631 = vmatprep.mubr.msk.bf16.mxu1 %vm845_vm3, %v5116_v38  ;;  %v2131_v38 = vrot.slane %v2129_v35, 4  ;;  %v2145_v35 = vor.u32 %v2144_v45, %v6593_v44 }
  0x83   : > { %v2097_v22 = vsel %vm6071_vm4, %v2092_v62, %v6565_v0  ;;  %v6663_v0 = vld [vmem:[%s6522_s20 + $0x24] sm:$0x1]  ;;  %v2117_v20 = vsel %vm6071_vm4, %v2112_v21, %v6587_v56 }
  0x84   : > { %v2135_v52 = vor.u32 %v2134_v18, %v2131_v38  ;;  %v2146_v45 = vrot.slane %v2145_v35, 4  ;;  %v2168_v42 = vshll.u32 %v6663_v0, 16  ;;  %v6707_v35 = vld [vmem:[%s6522_s20 + $0x40] sm:$0xf] }
  0x85   : > { %5666 = vmatmul.mubr.msk.bf16.gmra.mxu0 %vm845_vm3, %v5157_v8  ;;  %v2124_v8 = vshll.u32 %v6585_v11, 16  ;;  %v2230_v58 = vshrl.u32 %v6707_v35, 16 }
  0x86   : > { %5669 = vmatprep.mubr.msk.bf16.mxu0 %vm845_vm3, %v5158_v30  ;;  %v2121_v30 = vor.u32 %v2120_v14, %v6587_v56  ;;  %v6652_v14 = vld [vmem:[%s6522_s20 + $0x34] sm:$0xf]  ;;  %v2136_v18 = vrot.slane %v2135_v52, 4  ;;  %v6691_v52 = vld [vmem:[%s6522_s20 + $0x3c] sm:$0xf]  ;;  %v2151_v26 = vsel %vm6071_vm4, %v2146_v45, %v6626_v28  ;;  %v2165_v56 = vor.u32 %v2164_v37, %v6666_v50 }
  0x87   : > { %v2126_v24 = vrot.slane %v2124_v8, 5  ;;  %v2206_v8 = vshrl.u32 %v6652_v14, 16  ;;  %v2202_v62 = vshll.u32 %v6652_v14, 16 }
  0x88   : > { %v2122_v38 = vrot.slane %v2121_v30, 4  ;;  %v2141_v31 = vsel %vm6071_vm4, %v2136_v18, %v6593_v44  ;;  %v6728_v18 = vld [vmem:[%s6522_s20 + $0x44] sm:$0xf] }
  0x89   : > { %5632 = vmatmul.mubr.msk.bf16.gmra.mxu1 %vm845_vm3, %v5117_v4  ;;  %v5161_v4 = vcombine.low %v6606_v34, %v6610_v53  ;;  %v2175_v34 = vrot.slane %v2173_v48, 4  ;;  %v2192_v53 = vshll.u32 %v6649_v17, 16  ;;  %v2208_v43 = vrot.slane %v2206_v8, 4 }
  0x8a   : > { %5635 = vmatprep.mubr.msk.bf16.mxu1 %vm845_vm3, %v5118_v54  ;;  %v2107_v54 = vsel %vm6071_vm4, %v2102_v57, %v6582_v16  ;;  %v2155_v16 = vor.u32 %v2154_v33, %v6626_v28  ;;  %v2127_v30 = vsel %vm6071_vm4, %v2122_v38, %v2126_v24  ;;  %v6715_v55 = vrot.slane %v2202_v62, 5 }
  0x8b   : > { %v5210_v57 = vcombine.low %v2097_v22, %v2107_v54  ;;  %v2179_v61 = vor.u32 %v2178_v3, %v2175_v34  ;;  %v6710_v25 = vrot.slane %v2192_v53, 5  ;;  %v2217_v28 = vshrl.u32 %v6691_v52, 16  ;;  %v6739_v34 = vld [vmem:[%s6522_s20 + $0x50] sm:$0xf] }
  0x8c   : > { %v2220_v48 = vshll.u32 %v6691_v52, 16  ;;  %v2226_v22 = vshll.u32 %v6707_v35, 16  ;;  %v5211_v54 = vcombine.low %v2117_v20, %v2127_v30  ;;  %v5212_v21 = vcombine.low %v2141_v31, %v2151_v26  ;;  %9073 = vst [vmem:[#allocation8_spill] sm:$0xff] %v6739_v34 }
  0x8d   : > { %5670 = vmatmul.mubr.msk.bf16.gmra.mxu0 %vm845_vm3, %v5159_v40  ;;  %v2188_v40 = vrot.slane %v2186_v1, 4  ;;  %v5180_v1 = vcombine.low %v6556_v7, %v6563_v51  ;;  %v2166_v24 = vrot.slane %v2165_v56, 4  ;;  %v2170_v38 = vrot.slane %v2168_v42, 5  ;;  %v6773_v56 = vld [vmem:[%s6522_s20 + $0x5c] sm:$0xf] }
  0x8e   : > { %5673 = vmatprep.mubr.msk.bf16.mxu0 %vm845_vm3, %v5160_v27  ;;  %v2196_v27 = vshrl.u32 %v6649_v17, 16  ;;  %v2180_v45 = vrot.slane %v2179_v61, 4  ;;  %v2219_v53 = vrot.slane %v2217_v28, 4  ;;  %v2222_v8 = vrot.slane %v2220_v48, 5  ;;  %v6934_v7 = vld [vmem:[%s6522_s20 + $0x90] sm:$0xf] }
  0x8f   : > { %v2189_v33 = vor.u32 %v2188_v40, %v6668_v41  ;;  %v2209_v40 = vor.u32 %v2208_v43, %v6715_v55  ;;  %v2232_v62 = vrot.slane %v2230_v58, 4  ;;  %v2240_v30 = vshrl.u32 %v6728_v18, 16 }
  0x90   : > { %v2198_v44 = vrot.slane %v2196_v27, 4  ;;  %v6744_v27 = vld [vmem:[%s6522_s20 + $0x54] sm:$0xf]  ;;  %v2261_v60 = vshrl.u32 %v6739_v34, 16  ;;  %v2264_v13 = vshll.u32 %v6739_v34, 16  ;;  %v2185_v31 = vsel %vm6071_vm4, %v2180_v45, %v6668_v41 }
  0x91   : > { %5636 = vmatmul.mubr.msk.bf16.gmra.mxu1 %vm845_vm3, %v5119_v63  ;;  %v6703_v63 = vrot.slane %v2155_v16, 4  ;;  %v2190_v37 = vrot.slane %v2189_v33, 4  ;;  %9074 = vst [vmem:[#allocation9_spill] sm:$0xff] %v6744_v27  ;;  %v2274_v26 = vshrl.u32 %v6744_v27, 16  ;;  %v2210_v43 = vrot.slane %v2209_v40, 4 }
  0x92   : > { %5639 = vmatprep.mubr.msk.bf16.mxu1 %vm845_vm3, %v5120_v47  ;;  %v6713_v47 = vld [vmem:[%s6522_s20 + $0x38] sm:$0x1]  ;;  %v2199_v3 = vor.u32 %v2198_v44, %v6710_v25  ;;  %v6781_v41 = vld [vmem:[%s9005_s3 + $0x20] sm:$0xf]  ;;  %v2223_v28 = vor.u32 %v2222_v8, %v2219_v53  ;;  %v2266_v45 = vrot.slane %v2264_v13, 5  ;;  %v2294_v40 = vshrl.u32 %v6773_v56, 16 }
  0x93   : > { %v2161_v9 = vsel %vm6071_vm4, %v6703_v63, %v6666_v50  ;;  %v2212_v16 = vshll.u32 %v6713_v47, 16  ;;  %v6750_v50 = vrot.slane %v2226_v22, 5  ;;  %v6769_v63 = vld [vmem:[%s6522_s20 + $0x58] sm:$0xf]  ;;  %v2195_v61 = vsel %vm6071_vm4, %v2190_v37, %v6710_v25  ;;  %9075 = vst [vmem:[#allocation10_spill] sm:$0xff] %v6781_v41 }
  0x94   : > { %v2200_v33 = vrot.slane %v2199_v3, 4  ;;  %v2242_v25 = vrot.slane %v2240_v30, 4  ;;  %v6791_v37 = vld [vmem:[%s6522_s20 + $0x4c] sm:$0x1]  ;;  %v2280_v3 = vshll.u32 %v6769_v63, 16  ;;  %v2284_v53 = vshrl.u32 %v6769_v63, 16 }
  0x95   : > { %5674 = vmatmul.mubr.msk.bf16.gmra.mxu0 %vm845_vm3, %v5161_v4  ;;  %v6731_v4 = vld [vmem:[%s6522_s20 + $0x48] sm:$0xf]  ;;  %v2214_v44 = vrot.slane %v2212_v16, 5  ;;  %v2233_v48 = vor.u32 %v2232_v62, %v6750_v50  ;;  %9076 = vst [vmem:[#allocation11_spill] sm:$0xff] %v6791_v37  ;;  %v2290_v8 = vshll.u32 %v6773_v56, 16  ;;  %v2224_v30 = vrot.slane %v2223_v28, 4 }
  0x96   : > { %5713 = vmatprep.mubr.msk.bf16.mxu0 %vm845_vm3, %v5210_v57  ;;  %v2236_v57 = vshll.u32 %v6728_v18, 16  ;;  %v2250_v20 = vshrl.u32 %v6731_v4, 16  ;;  %v2246_v42 = vshll.u32 %v6731_v4, 16  ;;  %v6806_v62 = vld [vmem:[%s9005_s3 + $0x1c] sm:$0xf]  ;;  %v5182_v28 = vcombine.low %v6614_v10, %v6619_v29 }
  0x97   : > { %9077 = vst [vmem:[#allocation12_spill] sm:$0xff] %v6806_v62  ;;  %v6895_v29 = vld [vmem:[%s6522_s20 + $0x7c] sm:$0xf] }
  0x98   : > { %v6785_v58 = vrot.slane %v2236_v57, 5  ;;  %v2252_v22 = vrot.slane %v2250_v20, 4  ;;  %v5214_v57 = vcombine.low %v2185_v31, %v2195_v61  ;;  %v2215_v20 = vsel %vm6071_vm4, %v2210_v43, %v2214_v44 }
  0x99   : > { %5640 = vmatmul.mubr.msk.bf16.gmra.mxu1 %vm845_vm3, %v5121_v49  ;;  %v2171_v49 = vsel %vm6071_vm4, %v2166_v24, %v2170_v38  ;;  %v6788_v24 = vrot.slane %v2246_v42, 5  ;;  %v2263_v38 = vrot.slane %v2261_v60, 4  ;;  %v6818_v42 = vld [vmem:[%s6522_s20 + $0x64] sm:$0xf]  ;;  %v2286_v61 = vrot.slane %v2284_v53, 4 }
  0x9a   : > { %5679 = vmatprep.mubr.msk.bf16.mxu1 %vm845_vm3, %v5178_v5  ;;  %v2270_v5 = vshll.u32 %v6744_v27, 16  ;;  %v2243_v60 = vor.u32 %v2242_v25, %v6785_v58  ;;  %v2305_v43 = vshrl.u32 %v6818_v42, 16  ;;  %v2308_v44 = vshll.u32 %v6818_v42, 16 }
  0x9b   : > { %v2253_v13 = vor.u32 %v2252_v22, %v6788_v24  ;;  %v2267_v31 = vor.u32 %v2266_v45, %v2263_v38  ;;  %v2229_v38 = vsel %vm6071_vm4, %v2224_v30, %v6750_v50 }
  0x9c   : > { %v6793_v16 = vrot.slane %v2270_v5, 5  ;;  %v6832_v5 = vrot.slane %v2280_v3, 5  ;;  %v2307_v50 = vrot.slane %v2305_v43, 4  ;;  %v2310_v30 = vrot.slane %v2308_v44, 5 }
  0x9d   : > { %5714 = vmatmul.mubr.msk.bf16.vlgmr.msra.gmra.mxu0 %vm845_vm3, %v5211_v54  ;;  %v2276_v54 = vrot.slane %v2274_v26, 4  ;;  %v2254_v53 = vrot.slane %v2253_v13, 4 }
  0x9e   : > { %5780 = vmatpush3.bf16.msra.mxu0 %v3264_v19  ;;  %5717 = vmatprep.mubr.msk.bf16.mxu0 %vm845_vm3, %v5212_v21  ;;  %v5181_v19 = vcombine.low %v6579_v6, %v6601_v23  ;;  %v5213_v21 = vcombine.low %v2161_v9, %v2171_v49  ;;  %v2205_v9 = vsel %vm6071_vm4, %v2200_v33, %v6715_v55  ;;  %v2256_v55 = vshll.u32 %v6791_v37, 16  ;;  %v6829_v49 = vld [vmem:[%s6522_s20 + $0x68] sm:$0xf] }
  0x9f   : > { %5892 = vmatprep.subr.msk.bf16.mxu0 %vm894_vm0, %v6781_v41  ;;  %v2277_v26 = vor.u32 %v2276_v54, %v6793_v16  ;;  %v6839_v33 = vrot.slane %v2290_v8, 5  ;;  %v2318_v22 = vshrl.u32 %v6829_v49, 16  ;;  %v2314_v25 = vshll.u32 %v6829_v49, 16 }
  0xa0   : > { %v2244_v54 = vrot.slane %v2243_v60, 4  ;;  %v2258_v3 = vrot.slane %v2256_v55, 5  ;;  %v2268_v8 = vrot.slane %v2267_v31, 4  ;;  %v5183_v55 = vcombine.low %v6649_v17, %v6652_v14 }
  0xa1   : > { %5680 = vmatmul.mubr.msk.bf16.vlgmr.msra.gmra.mxu1 %vm845_vm3, %v5179_v15  ;;  %v2234_v15 = vrot.slane %v2233_v48, 4  ;;  %v5215_v48 = vcombine.low %v2205_v9, %v2215_v20  ;;  %v2278_v9 = vrot.slane %v2277_v26, 4 }
  0xa2   : > { %5746 = vmatpush3.bf16.msra.mxu1 %v6676_v39  ;;  %5683 = vmatprep.mubr.msk.bf16.mxu1 %vm845_vm3, %v5180_v1  ;;  %v2296_v39 = vrot.slane %v2294_v40, 4  ;;  %v6837_v1 = vld [vmem:[%s6522_s20 + $0x60] sm:$0x1]  ;;  %v6856_v40 = vld [vmem:[%s6522_s20 + $0x6c] sm:$0xf]  ;;  %v2259_v43 = vsel %vm6071_vm4, %v2254_v53, %v2258_v3  ;;  %v2273_v44 = vsel %vm6071_vm4, %v2268_v8, %v6793_v16 }
  0xa3   : > { %5891 = vmatprep.subr.msk.bf16.mxu1 %vm894_vm0, %v6806_v62  ;;  %9078 = vst [vmem:[#allocation13_spill] sm:$0xff] %v6837_v1  ;;  %v2239_v45 = vsel %vm6071_vm4, %v2234_v15, %v6785_v58  ;;  %v2300_v20 = vshll.u32 %v6837_v1, 16  ;;  %v6865_v58 = vrot.slane %v2314_v25, 5  ;;  %v2320_v15 = vrot.slane %v2318_v22, 4  ;;  %v6901_v53 = vld [vmem:[%s6522_s20 + $0x74] sm:$0x1] }
  0xa4   : > { %v2297_v10 = vor.u32 %v2296_v39, %v6839_v33  ;;  %v2324_v60 = vshll.u32 %v6856_v40, 16  ;;  %v5216_v31 = vcombine.low %v2229_v38, %v2239_v45  ;;  %v2328_v26 = vshrl.u32 %v6856_v40, 16  ;;  %9079 = vst [vmem:[#allocation14_spill] sm:$0xff] %v6901_v53 }
  0xa5   : > { %5718 = vmatmul.mubr.msk.bf16.gmra.mxu0 %vm845_vm3, %v5213_v21  ;;  %v6859_v21 = vld [vmem:[%s6522_s20 + $0x70] sm:$0xf]  ;;  %v2283_v22 = vsel %vm6071_vm4, %v2278_v9, %v6832_v5  ;;  %v2302_v45 = vrot.slane %v2300_v20, 5  ;;  %v2362_v20 = vshrl.u32 %v6895_v29, 16 }
  0xa6   : > { %5721 = vmatprep.mubr.msk.bf16.mxu0 %vm845_vm3, %v5214_v57  ;;  %v2287_v57 = vor.u32 %v2286_v61, %v6832_v5  ;;  %v2338_v13 = vshrl.u32 %v6859_v21, 16  ;;  %v2334_v39 = vshll.u32 %v6859_v21, 16  ;;  %v2249_v61 = vsel %vm6071_vm4, %v2244_v54, %v6788_v24 }
  0xa7   : > { %v6892_v38 = vrot.slane %v2297_v10, 4  ;;  %v2311_v24 = vor.u32 %v2310_v30, %v2307_v50  ;;  %v2321_v54 = vor.u32 %v2320_v15, %v6865_v58  ;;  %v2326_v16 = vrot.slane %v2324_v60, 5 }
  0xa8   : > { %v6890_v25 = vrot.slane %v2287_v57, 4  ;;  %v2340_v3 = vrot.slane %v2338_v13, 4  ;;  %v2330_v5 = vrot.slane %v2328_v26, 4  ;;  %v6903_v8 = vrot.slane %v2334_v39, 5  ;;  %v6918_v13 = vld [vmem:[%s6522_s20 + $0x80] sm:$0xf] }
  0xa9   : > { %5684 = vmatmul.mubr.msk.bf16.gmra.mxu1 %vm845_vm3, %v5181_v19  ;;  %v5184_v19 = vcombine.low %v6691_v52, %v6707_v35  ;;  %v2358_v57 = vshll.u32 %v6895_v29, 16  ;;  %v5217_v50 = vcombine.low %v2249_v61, %v2259_v43  ;;  %v5186_v30 = vcombine.low %v6739_v34, %v6744_v27  ;;  %v6955_v27 = vld [vmem:[%s6522_s20 + $0x88] sm:$0x1] }
  0xaa   : > { %5687 = vmatprep.mubr.msk.bf16.mxu1 %vm845_vm3, %v5182_v28  ;;  %v6885_v28 = vld [vmem:[%s6522_s20 + $0x78] sm:$0xf]  ;;  %v5218_v15 = vcombine.low %v2273_v44, %v2283_v22  ;;  %v2293_v60 = vsel %vm6071_vm4, %v6890_v25, %v6839_v33  ;;  %v2303_v26 = vsel %vm6071_vm4, %v6892_v38, %v2302_v45  ;;  %v2312_v39 = vrot.slane %v2311_v24, 4  ;;  %v6929_v44 = vld [vmem:[%s6522_s20 + $0x8c] sm:$0xf] }
  0xab   : > { %v2349_v10 = vshrl.u32 %v6885_v28, 16  ;;  %v2352_v9 = vshll.u32 %v6885_v28, 16  ;;  %v2322_v61 = vrot.slane %v2321_v54, 4  ;;  %v2344_v43 = vshll.u32 %v6901_v53, 16 }
  0xac   : > { %v2331_v22 = vor.u32 %v2330_v5, %v2326_v16  ;;  %v2341_v33 = vor.u32 %v2340_v3, %v6903_v8  ;;  %v2364_v62 = vrot.slane %v2362_v20, 4  ;;  %v2368_v38 = vshll.u32 %v6918_v13, 16 }
  0xad   : > { %5722 = vmatmul.mubr.msk.bf16.gmra.mxu0 %vm845_vm3, %v5215_v48  ;;  %v5185_v48 = vcombine.low %v6728_v18, %v6731_v4  ;;  %v2351_v25 = vrot.slane %v2349_v10, 4  ;;  %v2354_v41 = vrot.slane %v2352_v9, 5  ;;  %v2372_v45 = vshrl.u32 %v6918_v13, 16 }
  0xae   : > { %5725 = vmatprep.mubr.msk.bf16.mxu0 %vm845_vm3, %v5216_v31  ;;  %v6921_v31 = vld [vmem:[%s6522_s20 + $0x84] sm:$0xf]  ;;  %v2396_v3 = vshll.u32 %v6929_v44, 16  ;;  %v2317_v5 = vsel %vm6071_vm4, %v2312_v39, %v6865_v58  ;;  %v2346_v10 = vrot.slane %v2344_v43, 5  ;;  %v2406_v9 = vshrl.u32 %v6934_v7, 16 }
  0xaf   : > { %v2382_v24 = vshrl.u32 %v6921_v31, 16  ;;  %v2378_v54 = vshll.u32 %v6921_v31, 16  ;;  %v2402_v20 = vshll.u32 %v6934_v7, 16  ;;  %v2332_v53 = vrot.slane %v2331_v22, 4 }
  0xb0   : > { %v2342_v11 = vrot.slane %v2341_v33, 4  ;;  %v2355_v1 = vor.u32 %v2354_v41, %v2351_v25  ;;  %v2370_v51 = vrot.slane %v2368_v38, 5  ;;  %v2374_v58 = vrot.slane %v2372_v45, 4  ;;  %v6975_v38 = vld [vmem:[%s6522_s20 + $0x98] sm:$0xf] }
  0xb1   : > { %5688 = vmatmul.mubr.msk.bf16.gmra.mxu1 %vm845_vm3, %v5183_v55  ;;  %v6936_v55 = vrot.slane %v2358_v57, 5  ;;  %v2327_v57 = vsel %vm6071_vm4, %v2322_v61, %v2326_v16  ;;  %v6957_v39 = vrot.slane %v2378_v54, 5  ;;  %v2384_v43 = vrot.slane %v2382_v24, 4  ;;  %v6961_v16 = vld [vmem:[%s6522_s20 + $0x94] sm:$0xf] }
  0xb2   : > { %5691 = vmatprep.mubr.msk.bf16.mxu1 %vm845_vm3, %v5184_v19  ;;  %v2393_v19 = vshrl.u32 %v6929_v44, 16  ;;  %v2398_v46 = vrot.slane %v2396_v3, 5  ;;  %v5220_v37 = vcombine.low %v2317_v5, %v2327_v57  ;;  %v6963_v61 = vrot.slane %v2402_v20, 5 }
  0xb3   : > { %v2408_v41 = vrot.slane %v2406_v9, 4  ;;  %v2347_v22 = vsel %vm6071_vm4, %v2342_v11, %v2346_v10  ;;  %v2356_v33 = vrot.slane %v2355_v1, 4  ;;  %v2388_v25 = vshll.u32 %v6955_v27, 16 }
  0xb4   : > { %v2395_v34 = vrot.slane %v2393_v19, 4  ;;  %v2385_v45 = vor.u32 %v2384_v43, %v6957_v39  ;;  %v2755_v54 = vrot.slane %v6579_v6, 5  ;;  %v2758_v20 = vrot.slane %v6601_v23, 5  ;;  %v6999_v43 = vld [vmem:[%s6522_s20 + $0x9c] sm:$0x1] }
  0xb5   : > { %5726 = vmatmul.mubr.msk.bf16.gmra.mxu0 %vm845_vm3, %v5217_v50  ;;  %v2365_v50 = vor.u32 %v2364_v62, %v6936_v55  ;;  %v2337_v62 = vsel %vm6071_vm4, %v2332_v53, %v6903_v8  ;;  %v2412_v53 = vshll.u32 %v6961_v16, 16  ;;  %v2409_v1 = vor.u32 %v2408_v41, %v6963_v61  ;;  %v7203_v6 = vld [vmem:[%s7045_s29 + $0x1c] sm:$0xf] }
  0xb6   : > { %5729 = vmatprep.mubr.msk.bf16.mxu0 %vm845_vm3, %v5218_v15  ;;  %v5219_v15 = vcombine.low %v2293_v60, %v2303_v26  ;;  %v2375_v26 = vor.u32 %v2374_v58, %v2370_v51  ;;  %v2399_v24 = vor.u32 %v2398_v46, %v2395_v34  ;;  %v5221_v11 = vcombine.low %v2337_v62, %v2347_v22 }
  0xb7   : > { %v2366_v60 = vrot.slane %v2365_v50, 4  ;;  %v2416_v8 = vshrl.u32 %v6961_v16, 16  ;;  %v2361_v19 = vsel %vm6071_vm4, %v2356_v33, %v6936_v55  ;;  %v2390_v3 = vrot.slane %v2388_v25, 5 }
  0xb8   : > { %v2426_v46 = vshrl.u32 %v6975_v38, 16  ;;  %v2422_v34 = vshll.u32 %v6975_v38, 16  ;;  %v2376_v10 = vrot.slane %v2375_v26, 4  ;;  %v2757_v9 = vrot.slane %v2755_v54, 4 }
  0xb9   : > { %5692 = vmatmul.mubr.msk.bf16.gmra.mxu1 %vm845_vm3, %v5185_v48  ;;  %v5187_v48 = vcombine.low %v6769_v63, %v6773_v56  ;;  %v2371_v5 = vsel %vm6071_vm4, %v2366_v60, %v2370_v51  ;;  %v2386_v57 = vrot.slane %v2385_v45, 4  ;;  %v2414_v50 = vrot.slane %v2412_v53, 5 }
  0xba   : > { %5695 = vmatprep.mubr.msk.bf16.mxu1 %vm845_vm3, %v5186_v30  ;;  %v5188_v30 = vcombine.low %v6818_v42, %v6829_v49  ;;  %v2761_v58 = vrot.slane %v6663_v0, 5  ;;  %v2410_v55 = vrot.slane %v2409_v1, 4  ;;  %v7003_v51 = vsel %vm6326_vm7, %v2757_v9, %v2758_v20 }
  0xbb   : > { %v2760_v41 = vrot.slane %v2758_v20, 4  ;;  %v5222_v62 = vcombine.low %v2361_v19, %v2371_v5  ;;  %v7006_v23 = vrot.slane %v2422_v34, 5  ;;  %v2428_v22 = vrot.slane %v2426_v46, 4 }
  0xbc   : > { %v5189_v0 = vcombine.low %v6856_v40, %v6859_v21  ;;  %v2381_v33 = vsel %vm6071_vm4, %v2376_v10, %v6957_v39  ;;  %v2432_v60 = vshll.u32 %v6999_v43, 16  ;;  %v5190_v39 = vcombine.low %v6885_v28, %v6895_v29 }
  0xbd   : > { %5730 = vmatmul.mubr.msk.bf16.gmra.mxu0 %vm845_vm3, %v5219_v15  ;;  %v2418_v15 = vrot.slane %v2416_v8, 4  ;;  %v7015_v25 = vsel %vm6326_vm7, %v2760_v41, %v2761_v58  ;;  %v2429_v1 = vor.u32 %v2428_v22, %v7006_v23  ;;  %v2774_v19 = vrot.slane %v6713_v47, 5  ;;  %v7071_v41 = vld [vmem:[%s7045_s29 + $0x4] sm:$0xf] }
  0xbe   : > { %5733 = vmatprep.mubr.msk.bf16.mxu0 %vm845_vm3, %v5220_v37  ;;  %v2400_v37 = vrot.slane %v2399_v24, 4  ;;  %v5253_v26 = vcombine.low %v7003_v51, %v7015_v25  ;;  %v2415_v24 = vsel %vm6071_vm4, %v2410_v55, %v2414_v50  ;;  %v2434_v34 = vrot.slane %v2432_v60, 5  ;;  %v9080_v60 = vld [vmem:[#allocation11_spill] sm:$0xff] }
  0xbf   : > { %v2419_v53 = vor.u32 %v2418_v15, %v2414_v50  ;;  %v5242_v5 = vrot.slane %v6535_v12, 9  ;;  %v5245_v12 = vrot.slane %v6691_v52, 9  ;;  %v2430_v20 = vrot.slane %v2429_v1, 4  ;;  %v7066_v15 = vld [vmem:[%s7045_s29] sm:$0xf] }
  0xc0   : > { %v2405_v45 = vsel %vm6071_vm4, %v2400_v37, %v6963_v61  ;;  %v2739_v61 = vrot.slane %v6538_v59, 5  ;;  %v2742_v59 = vrot.slane %v6547_v2, 5  ;;  %v2778_v37 = vrot.slane %v6707_v35, 5 }
  0xc1   : > { %5696 = vmatmul.mubr.msk.bf16.gmra.mxu1 %vm845_vm3, %v5187_v48  ;;  %v2391_v48 = vsel %vm6071_vm4, %v2386_v57, %v2390_v3  ;;  %v5191_v3 = vcombine.low %v6918_v13, %v6921_v31  ;;  %v5224_v10 = vcombine.low %v2405_v45, %v2415_v24  ;;  %v2420_v9 = vrot.slane %v2419_v53, 4 }
  0xc2   : > { %5699 = vmatprep.mubr.msk.bf16.mxu1 %vm845_vm3, %v5188_v30  ;;  %v2768_v30 = vrot.slane %v6649_v17, 5  ;;  %v5223_v46 = vcombine.low %v2381_v33, %v2391_v48  ;;  %v2781_v50 = vrot.slane %v6728_v18, 5  ;;  %v5192_v58 = vcombine.low %v6929_v44, %v6934_v7 }
  0xc3   : > { %v5193_v55 = vcombine.low %v6961_v16, %v6975_v38  ;;  %v2741_v2 = vrot.slane %v2739_v61, 4  ;;  %v2780_v35 = vrot.slane %v2778_v37, 4  ;;  %v2784_v22 = vrot.slane %v6731_v4, 5 }
  0xc4   : > { %v2770_v8 = vrot.slane %v2768_v30, 4  ;;  %v2783_v18 = vrot.slane %v2781_v50, 4  ;;  %v2740_v33 = vsel %vm6326_vm7, %v5242_v5, %v2739_v61  ;;  %v2744_v48 = vrot.slane %v2742_v59, 4 }
  0xc5   : > { %5734 = vmatmul.mubr.msk.bf16.gmra.mxu0 %vm845_vm3, %v5221_v11  ;;  %v2771_v11 = vrot.slane %v6652_v14, 5  ;;  %v2435_v45 = vsel %vm6071_vm4, %v2430_v20, %v2434_v34  ;;  %v7090_v4 = vsel %vm6326_vm7, %v2780_v35, %v2781_v50  ;;  %v2743_v53 = vsel %vm6326_vm7, %v2741_v2, %v2742_v59  ;;  %v9082_v34 = vld [vmem:[#allocation8_spill] sm:$0xff]  ;;  %v7118_v2 = vld [vmem:[%s7045_s29 + $0x8] sm:$0xf]  ;;  %v7121_v35 = vld [vmem:[%s7045_s29 + $0xc] sm:$0xf] }
  0xc6   : > { %5737 = vmatprep.mubr.msk.bf16.mxu0 %vm845_vm3, %v5222_v62  ;;  %v7075_v62 = vsel %vm6326_vm7, %v5245_v12, %v2778_v37  ;;  %v7094_v24 = vsel %vm6326_vm7, %v2783_v18, %v2784_v22  ;;  %v5282_v1 = vcombine.low %v7066_v15, %v7071_v41  ;;  %v5246_v5 = vrot.slane %v9082_v34, 9 }
  0xc7   : > { %v7049_v14 = vsel %vm6326_vm7, %v2770_v8, %v2771_v11  ;;  %v2773_v47 = vrot.slane %v2771_v11, 4  ;;  %v2794_v20 = vrot.slane %v6769_v63, 5  ;;  %v5250_v37 = vcombine.low %v2740_v33, %v2743_v53  ;;  %v7352_v11 = vld [vmem:[%s7045_s29 + $0x58] sm:$0xf] }
  0xc8   : > { %v2797_v63 = vrot.slane %v6773_v56, 5  ;;  %v3493_v53 = vshrl.u32 %v7121_v35, 16  ;;  %v5283_v34 = vcombine.low %v7118_v2, %v7121_v35  ;;  %v7156_v56 = vld [vmem:[%s7045_s29 + $0x18] sm:$0xf]  ;;  %v5249_v17 = vrot.slane %v6929_v44, 9  ;;  %9106 = vst [vmem:[#allocation15_spill] sm:$0xff] %v7352_v11 }
  0xc9   : > { %5700 = vmatmul.mubr.msk.bf16.gmra.mxu1 %vm845_vm3, %v5189_v0  ;;  %v7057_v57 = vsel %vm6326_vm7, %v2773_v47, %v2774_v19  ;;  %v2425_v0 = vsel %vm6071_vm4, %v2420_v9, %v7006_v23  ;;  %v2786_v23 = vrot.slane %v2784_v22, 4  ;;  %v9081_v19 = vld [vmem:[#allocation2_spill] sm:$0xff]  ;;  %v9083_v47 = vld [vmem:[#allocation9_spill] sm:$0xff]  ;;  %v9084_v22 = vld [vmem:[#allocation4_spill] sm:$0xff]  ;;  %v3659_v8 = vshrl.u32 %v7352_v11, 16 }
  0xca   : > { %5703 = vmatprep.mubr.msk.bf16.mxu1 %vm845_vm3, %v5190_v39  ;;  %v2787_v39 = vrot.slane %v9080_v60, 5  ;;  %v5225_v9 = vcombine.low %v2425_v0, %v2435_v45  ;;  %v2752_v0 = vrot.slane %v9084_v22, 5  ;;  %v2796_v60 = vrot.slane %v2794_v20, 4  ;;  %v9086_v45 = vld [vmem:[#allocation5_spill] sm:$0xff]  ;;  %v7280_v44 = vld [vmem:[%s7045_s29 + $0x34] sm:$0xf] }
  0xcb   : > { %9093 = vst [vmem:[#allocation11_spill] sm:$0xff] %v7280_v44 }
  0xcc   : > { %v7106_v61 = vsel %vm6326_vm7, %v2786_v23, %v2787_v39  ;;  %v9085_v39 = vld [vmem:[#allocation13_spill] sm:$0xff]  ;;  %v2748_v23 = vrot.slane %v9086_v45, 5  ;;  %v5247_v45 = vrot.slane %v6818_v42, 9  ;;  %v2754_v50 = vrot.slane %v2752_v0, 4 }
  0xcd   : > { %5738 = vmatmul.mubr.msk.bf16.gmra.mxu0 %vm845_vm3, %v5223_v46  ;;  %v2745_v46 = vrot.slane %v9081_v19, 5 }
  0xce   : > { %5741 = vmatprep.mubr.msk.bf16.mxu0 %vm845_vm3, %v5224_v10  ;;  %v2791_v10 = vrot.slane %v9083_v47, 5  ;;  %v2799_v47 = vrot.slane %v2797_v63, 4 }
  0xcf   : > { %v2747_v33 = vrot.slane %v2745_v46, 4 }
  0xd0   : > { %v2793_v18 = vrot.slane %v2791_v10, 4 }
  0xd1   : > { %5704 = vmatmul.mubr.msk.bf16.gmra.mxu1 %vm845_vm3, %v5191_v3  ;;  %v7125_v3 = vsel %vm6326_vm7, %v5246_v5, %v2791_v10  ;;  %v7143_v5 = vsel %vm6326_vm7, %v2796_v60, %v2797_v63  ;;  %v2746_v10 = vsel %vm6326_vm7, %v2744_v48, %v2745_v46  ;;  %v2807_v48 = vrot.slane %v6856_v40, 5 }
  0xd2   : > { %5707 = vmatprep.mubr.msk.bf16.mxu1 %vm845_vm3, %v5192_v58  ;;  %v2800_v58 = vrot.slane %v9085_v39, 5  ;;  %v7134_v19 = vsel %vm6326_vm7, %v2793_v18, %v2794_v20  ;;  %v9087_v20 = vld [vmem:[#allocation12_spill] sm:$0xff]  ;;  %v2749_v46 = vsel %vm6326_vm7, %v2747_v33, %v2748_v23  ;;  %v7166_v63 = vrot.slane %v3493_v53, 4 }
  0xd3   : > { %v3909_v18 = vsel %vm894_vm0, %v9087_v20, 0  ;;  %v7152_v39 = vld [vmem:[%s7045_s29 + $0x14] sm:$0xf]  ;;  %v9089_v20 = vld [vmem:[#allocation10_spill] sm:$0xff]  ;;  %v2810_v33 = vrot.slane %v6859_v21, 5 }
  0xd4   : > { %v7160_v60 = vsel %vm6326_vm7, %v2799_v47, %v2800_v58  ;;  %v2809_v58 = vrot.slane %v2807_v48, 4  ;;  %v5284_v53 = vcombine.low %v7152_v39, %v7156_v56  ;;  %v9090_v47 = vld [vmem:[#allocation7_spill] sm:$0xff] }
  0xd5   : > { %5742 = vmatmul.mubr.msk.bf16.gmra.mxu0 %vm845_vm3, %v5225_v9  ;;  %v9088_v9 = vld [vmem:[#allocation3_spill] sm:$0xff] }
  0xd6   : > { %5781 = vmatprep.mubr.msk.bf16.mxu0 %vm845_vm3, %v5282_v1  ;;  %v5243_v22 = vrot.slane %v9088_v9, 9  ;;  %v2804_v1 = vrot.slane %v6829_v49, 5  ;;  %v4314_v9 = vsel %vm894_vm0, %v9089_v20, 0  ;;  %v9091_v20 = vld [vmem:[#allocation14_spill] sm:$0xff] }
  0xd7   : > { %v2813_v42 = vrot.slane %v9091_v20, 5 }
  0xd8   : > { %v7178_v49 = vsel %vm6326_vm7, %v5247_v45, %v2804_v1  ;;  %v2806_v40 = vrot.slane %v2804_v1, 4  ;;  %v2753_v23 = vsel %vm6326_vm7, %v5243_v22, %v2752_v0  ;;  %v2756_v45 = vsel %vm6326_vm7, %v2754_v50, %v2755_v54  ;;  %v7209_v50 = vld [vmem:[%s7045_s29 + $0x20] sm:$0xf]  ;;  %v7220_v54 = vld [vmem:[%s7045_s29 + $0x28] sm:$0xf] }
  0xd9   : > { %5708 = vmatmul.mubr.msk.bf16.gmra.mxu1 %vm845_vm3, %v5193_v55  ;;  %v2765_v55 = vrot.slane %v9090_v47, 5  ;;  %v2812_v0 = vrot.slane %v2810_v33, 4  ;;  %v5251_v22 = vcombine.low %v2746_v10, %v2749_v46  ;;  %v5248_v10 = vrot.slane %v6885_v28, 9  ;;  %v7338_v1 = vld [vmem:[%s7045_s29 + $0x54] sm:$0xf] }
  0xda   : > { %5747 = vmatprep.mubr.msk.bf16.mxu1 %vm845_vm3, %v5250_v37  ;;  %v7194_v21 = vsel %vm6326_vm7, %v2806_v40, %v2807_v48  ;;  %v7198_v37 = vsel %vm6326_vm7, %v2809_v58, %v2810_v33  ;;  %v9092_v48 = vld [vmem:[#allocation6_spill] sm:$0xff]  ;;  %v2817_v46 = vrot.slane %v6895_v29, 5  ;;  %v5252_v33 = vcombine.low %v2753_v23, %v2756_v45  ;;  %9101 = vst [vmem:[#allocation3_spill] sm:$0xff] %v7338_v1 }
  0xdb   : > { %v5244_v40 = vrot.slane %v9092_v48, 9  ;;  %v7214_v58 = vsel %vm6326_vm7, %v2812_v0, %v2813_v42  ;;  %v2767_v20 = vrot.slane %v2765_v55, 4  ;;  %v2820_v47 = vrot.slane %v6918_v13, 5 }
  0xdc   : > { %v3527_v42 = vshrl.u32 %v7203_v6, 16  ;;  %v3533_v28 = vshll.u32 %v7209_v50, 16  ;;  %v7232_v29 = vsel %vm6326_vm7, %v5248_v10, %v2817_v46  ;;  %v5285_v23 = vcombine.low %v7203_v6, %v7209_v50 }
  0xdd   : > { %5782 = vmatmul.mubr.msk.bf16.vlgmr.msra.gmra.mxu0 %vm845_vm3, %v5283_v34  ;;  %v7223_v34 = vld [vmem:[%s7045_s29 + $0x2c] sm:$0xf]  ;;  %v2823_v45 = vrot.slane %v6921_v31, 5  ;;  %v2826_v0 = vrot.slane %v6955_v27, 5  ;;  %v3537_v13 = vshrl.u32 %v7209_v50, 16  ;;  %v2766_v48 = vsel %vm6326_vm7, %v5244_v40, %v2765_v55 }
  0xde   : > { %5848 = vmatpush3.bf16.msra.mxu0 %v4314_v9  ;;  %5785 = vmatprep.mubr.msk.bf16.mxu0 %vm845_vm3, %v5284_v53  ;;  %v2819_v9 = vrot.slane %v2817_v46, 4  ;;  %v2822_v53 = vrot.slane %v2820_v47, 4  ;;  %v5286_v10 = vcombine.low %v7220_v54, %v7223_v34  ;;  %v2769_v27 = vsel %vm6326_vm7, %v2767_v20, %v2768_v30  ;;  %v7283_v30 = vld [vmem:[%s7045_s29 + $0x3c] sm:$0xf] }
  0xdf   : > { %v7262_v40 = vrot.slane %v3533_v28, 5  ;;  %v5254_v28 = vcombine.low %v2766_v48, %v2769_v27 }
  0xe0   : > { %v7246_v46 = vsel %vm6326_vm7, %v2819_v9, %v2820_v47  ;;  %v7257_v55 = vsel %vm6326_vm7, %v2822_v53, %v2823_v45  ;;  %v2830_v9 = vrot.slane %v6934_v7, 5  ;;  %v2833_v53 = vrot.slane %v6961_v16, 5  ;;  %v7324_v47 = vld [vmem:[%s7045_s29 + $0x48] sm:$0xf] }
  0xe1   : > { %5748 = vmatmul.mubr.msk.bf16.vlgmr.msra.gmra.mxu1 %vm845_vm3, %v5251_v22  ;;  %v2825_v22 = vrot.slane %v2823_v45, 4  ;;  %v3581_v45 = vshrl.u32 %v7280_v44, 16  ;;  %9098 = vst [vmem:[#allocation13_spill] sm:$0xff] %v7324_v47 }
  0xe2   : > { %5814 = vmatpush3.bf16.msra.mxu1 %v3909_v18  ;;  %5751 = vmatprep.mubr.msk.bf16.mxu1 %vm845_vm3, %v5252_v33  ;;  %v7260_v18 = vrot.slane %v3527_v42, 4  ;;  %v7267_v33 = vld [vmem:[%s7045_s29 + $0x30] sm:$0xf]  ;;  %v7276_v42 = vrot.slane %v3537_v13, 4  ;;  %v7293_v7 = vsel %vm6326_vm7, %v5249_v17, %v2830_v9  ;;  %v2832_v16 = vrot.slane %v2830_v9, 4 }
  0xe3   : > { %v7271_v20 = vsel %vm6326_vm7, %v2825_v22, %v2826_v0  ;;  %v7289_v0 = vld [vmem:[%s7045_s29 + $0x40] sm:$0xf]  ;;  %9094 = vst [vmem:[#allocation2_spill] sm:$0xff] %v7293_v7  ;;  %v2835_v48 = vrot.slane %v2833_v53, 4  ;;  %v3571_v27 = vshrl.u32 %v7267_v33, 16  ;;  %v3577_v22 = vshll.u32 %v7280_v44, 16 }
  0xe4   : > { %v7305_v17 = vsel %vm6326_vm7, %v2832_v16, %v2833_v53  ;;  %v5287_v13 = vcombine.low %v7267_v33, %v7280_v44  ;;  %v5288_v53 = vcombine.low %v7283_v30, %v7289_v0  ;;  %v7321_v16 = vld [vmem:[%s7045_s29 + $0x44] sm:$0xf]  ;;  %v9141_v7 = vshrl.u32 %v7071_v41, 16 }
  0xe5   : > { %5786 = vmatmul.mubr.msk.bf16.gmra.mxu0 %vm845_vm3, %v5285_v23  ;;  %v2836_v23 = vrot.slane %v6975_v38, 5  ;;  %9096 = vst [vmem:[#allocation9_spill] sm:$0xff] %v7305_v17  ;;  %v3615_v25 = vshrl.u32 %v7321_v16, 16  ;;  %v7346_v51 = vrot.slane %v3571_v27, 4  ;;  %v7376_v27 = vld [vmem:[%s7045_s29 + $0x6c] sm:$0xf] }
  0xe6   : > { %5789 = vmatprep.mubr.msk.bf16.mxu0 %vm845_vm3, %v5286_v10  ;;  %v2839_v10 = vrot.slane %v6999_v43, 5  ;;  %v7335_v43 = vld [vmem:[%s7045_s29 + $0x50] sm:$0xf] }
  0xe7   : > { %v7299_v31 = vpop.f32.mrf.mxu0  ;;  %v7309_v38 = vsel %vm6326_vm7, %v2835_v48, %v2836_v23  ;;  %v2838_v9 = vrot.slane %v2836_v23, 4  ;;  %v3625_v23 = vshrl.u32 %v7324_v47, 16  ;;  %9100 = vst [vmem:[#allocation12_spill] sm:$0xff] %v7335_v43  ;;  %9104 = vst [vmem:[#allocation14_spill] sm:$0xff] %v7346_v51  ;;  %v7389_v51 = vld [vmem:[%s7045_s29 + $0x70] sm:$0xf] }
  0xe8   : > { %9095 = vst [vmem:[#allocation8_spill] sm:$0xff] %v7299_v31  ;;  %9097 = vst [vmem:[#allocation4_spill] sm:$0xff] %v7309_v38  ;;  %v9137_v38 = vcombine.low %v7094_v24, %v7106_v61  ;;  %v9145_v24 = vshll.u32 %v7152_v39, 16 }
  0xe9   : > { %5752 = vmatmul.mubr.msk.bf16.gmra.mxu1 %vm845_vm3, %v5253_v26  ;;  %v7326_v48 = vpop.f32.mrf.mxu0  ;;  %v3621_v26 = vshll.u32 %v7324_v47, 16  ;;  %v7340_v12 = vpop.f32.mrf.mxu1  ;;  %v7344_v59 = vsel %vm6326_vm7, %v2838_v9, %v2839_v10  ;;  %v7362_v9 = vld [vmem:[%s7045_s29 + $0x5c] sm:$0xf]  ;;  %v7373_v10 = vld [vmem:[%s7045_s29 + $0x64] sm:$0xf] }
  0xea   : > { %9099 = vst [vmem:[#allocation5_spill] sm:$0xff] %v7326_v48  ;;  %5755 = vmatprep.mubr.msk.bf16.mxu1 %vm845_vm3, %v5254_v28  ;;  %9102 = vst [vmem:[#allocation10_spill] sm:$0xff] %v7340_v12  ;;  %v7348_v28 = vrot.slane %v3577_v22, 5  ;;  %v7356_v48 = vrot.slane %v3581_v45, 4  ;;  %v5289_v22 = vcombine.low %v7321_v16, %v7324_v47  ;;  %v3665_v45 = vshll.u32 %v7362_v9, 16 }
  0xeb   : > { %9103 = vst [vmem:[#allocation7_spill] sm:$0xff] %v7344_v59  ;;  %9108 = vst [vmem:[#allocation17_spill] sm:$0xff] %v7362_v9  ;;  %v3669_v52 = vshrl.u32 %v7362_v9, 16  ;;  %v7370_v12 = vpop.f32.mrf.mxu0  ;;  %v7381_v31 = vrot.slane %v3621_v26, 5  ;;  %v7383_v59 = vrot.slane %v3625_v23, 4  ;;  %v7386_v44 = vpop.f32.mrf.mxu1  ;;  %v3709_v26 = vshll.u32 %v7389_v51, 16 }
  0xec   : > { %9105 = vst [vmem:[#allocation6_spill] sm:$0xff] %v7348_v28  ;;  %9107 = vst [vmem:[#allocation16_spill] sm:$0xff] %v7356_v48  ;;  %v3713_v47 = vshrl.u32 %v7389_v51, 16  ;;  %v9116_v48 = vcombine.low %v7049_v14, %v7057_v57 }
  0xed   : > { %5790 = vmatmul.mubr.msk.bf16.gmra.mxu0 %vm845_vm3, %v5287_v13  ;;  %9109 = vst [vmem:[#allocation18_spill] sm:$0xff] %v7370_v12  ;;  %9110 = vst [vmem:[#allocation19_spill] sm:$0xff] %v7373_v10  ;;  %v7379_v13 = vrot.slane %v3615_v25, 4  ;;  %v5290_v12 = vcombine.low %v7335_v43, %v7338_v1  ;;  %v3703_v25 = vshrl.u32 %v7376_v27, 16  ;;  %v7415_v23 = vrot.slane %v3669_v52, 4  ;;  %v7427_v14 = vpop.f32.mrf.mxu1 }
  0xee   : > { %5793 = vmatprep.mubr.msk.bf16.mxu0 %vm845_vm3, %v5288_v53  ;;  %9112 = vst [vmem:[#allocation21_spill] sm:$0xff] %v7381_v31  ;;  %9113 = vst [vmem:[#allocation22_spill] sm:$0xff] %v7383_v59  ;;  %v7395_v53 = vld [vmem:[%s7045_s29 + $0x68] sm:$0xf]  ;;  %v7405_v59 = vld [vmem:[%s7045_s29 + $0x78] sm:$0xf]  ;;  %v9121_v1 = vcombine.low %v7075_v62, %v7090_v4 }
  0xef   : > { %9111 = vst [vmem:[#allocation20_spill] sm:$0xff] %v7379_v13  ;;  %9114 = vst [vmem:[#allocation23_spill] sm:$0xff] %v7386_v44  ;;  %v7411_v31 = vrot.slane %v3659_v8, 4  ;;  %v7413_v13 = vrot.slane %v3665_v45, 5  ;;  %v7418_v44 = vpop.f32.mrf.mxu0  ;;  %v7421_v43 = vld [vmem:[%s7045_s29 + $0x7c] sm:$0xf] }
  0xf0   : > { %9115 = vst [vmem:[#allocation24_spill] sm:$0xff] %v7395_v53  ;;  %9119 = vst [vmem:[#allocation27_spill] sm:$0xff] %v7415_v23  ;;  %v7435_v45 = vld [vmem:[%s7045_s29 + $0x80] sm:$0xf]  ;;  %v7439_v62 = vrot.slane %v3703_v25, 4  ;;  %v7441_v4 = vrot.slane %v3709_v26, 5 }
  0xf1   : > { %5756 = vmatmul.mubr.msk.bf16.gmra.mxu1 %vm845_vm3, %v9116_v48  ;;  %9117 = vst [vmem:[#allocation25_spill] sm:$0xff] %v7411_v31  ;;  %9118 = vst [vmem:[#allocation26_spill] sm:$0xff] %v7413_v13  ;;  %v7447_v52 = vrot.slane %v3713_v47, 4  ;;  %v3747_v8 = vshrl.u32 %v7435_v45, 16  ;;  %v3469_v47 = vshll.u32 %v7071_v41, 16 }
  0xf2   : > { %9120 = vst [vmem:[#allocation28_spill] sm:$0xff] %v7418_v44  ;;  %5759 = vmatprep.mubr.msk.bf16.mxu1 %vm845_vm3, %v9121_v1  ;;  %9122 = vst [vmem:[#allocation29_spill] sm:$0xff] %v7427_v14  ;;  %v7445_v14 = vld [vmem:[%s7045_s29 + $0x84] sm:$0xf]  ;;  %v7453_v44 = vld [vmem:[%s7045_s29 + $0x8c] sm:$0xf] }
  0xf3   : > { %9123 = vst [vmem:[#allocation30_spill] sm:$0xff] %v7439_v62  ;;  %9124 = vst [vmem:[#allocation31_spill] sm:$0xff] %v7441_v4  ;;  %v3753_v48 = vshll.u32 %v7445_v14, 16  ;;  %v3757_v57 = vshrl.u32 %v7445_v14, 16  ;;  %v7467_v4 = vpop.f32.mrf.mxu1  ;;  %v7472_v62 = vld [vmem:[%s7045_s29 + $0x94] sm:$0xf] }
  0xf4   : > { %9125 = vst [vmem:[#allocation32_spill] sm:$0xff] %v7445_v14  ;;  %9126 = vst [vmem:[#allocation33_spill] sm:$0xff] %v7447_v52  ;;  %v7464_v52 = vld [vmem:[%s7045_s29 + $0x90] sm:$0xf]  ;;  %v9132_v1 = vshll.u32 %v7066_v15, 16  ;;  %v7486_v13 = vrot.slane %v3747_v8, 4 }
  0xf5   : > { %9127 = vst [vmem:[#allocation34_spill] sm:$0xff] %v7453_v44  ;;  %5794 = vmatmul.mubr.msk.bf16.gmra.mxu0 %vm845_vm3, %v5289_v22  ;;  %v7456_v25 = vpop.f32.mrf.mxu0  ;;  %9129 = vst [vmem:[#allocation36_spill] sm:$0xff] %v7467_v4  ;;  %v7481_v23 = vld [vmem:[%s7045_s29 + $0x98] sm:$0xf]  ;;  %v3483_v4 = vshrl.u32 %v7118_v2, 16  ;;  %v3489_v22 = vshll.u32 %v7121_v35, 16 }
  0xf6   : > { %9128 = vst [vmem:[#allocation35_spill] sm:$0xff] %v7456_v25  ;;  %5797 = vmatprep.mubr.msk.bf16.mxu0 %vm845_vm3, %v5290_v12  ;;  %9130 = vst [vmem:[#allocation37_spill] sm:$0xff] %v7472_v62  ;;  %v9131_v25 = vshrl.u32 %v7066_v15, 16  ;;  %v3465_v31 = vrot.slane %v9132_v1, 5  ;;  %v3479_v12 = vshll.u32 %v7118_v2, 16  ;;  %v7488_v28 = vrot.slane %v3753_v48, 5 }
  0xf7   : > { %9133 = vst [vmem:[#allocation38_spill] sm:$0xff] %v7481_v23  ;;  %9134 = vst [vmem:[#allocation39_spill] sm:$0xff] %v7486_v13  ;;  %v7498_v17 = vpop.f32.mrf.mxu0  ;;  %v4114_v48 = vrot.slane %v7071_v41, 5  ;;  %v3475_v8 = vrot.slane %v9141_v7, 4  ;;  %v9142_v41 = vcombine.low %v7352_v11, %v7362_v9 }
  0xf8   : > { %v3462_v26 = vrot.slane %v9131_v25, 4  ;;  %9135 = vst [vmem:[#allocation40_spill] sm:$0xff] %v7488_v28  ;;  %v7490_v25 = vrot.slane %v3757_v57, 4  ;;  %9138 = vst [vmem:[#allocation42_spill] sm:$0xff] %v7498_v17  ;;  %v9139_v57 = vcombine.low %v7125_v3, %v7134_v19  ;;  %v7508_v1 = vpop.f32.mrf.mxu1  ;;  %v7519_v13 = vrot.slane %v3479_v12, 5 }
  0xf9   : > { %5760 = vmatmul.mubr.msk.bf16.gmra.mxu1 %vm845_vm3, %v9137_v38  ;;  %9140 = vst [vmem:[#allocation43_spill] sm:$0xff] %v7508_v1  ;;  %v7512_v38 = vrot.slane %v3469_v47, 5  ;;  %v3485_v28 = vrot.slane %v3483_v4, 4  ;;  %v7521_v17 = vrot.slane %v3489_v22, 5  ;;  %v3513_v3 = vshll.u32 %v7156_v56, 16  ;;  %v7532_v7 = vpop.f32.mrf.mxu0 }
  0xfa   : > { %9136 = vst [vmem:[#allocation41_spill] sm:$0xff] %v7490_v25  ;;  %5763 = vmatprep.mubr.msk.bf16.mxu1 %vm845_vm3, %v9139_v57  ;;  %v3466_v61 = vor.u32 %v3465_v31, %v3462_v26  ;;  %v7517_v25 = vld [vmem:[%s7045_s29 + $0x10] sm:$0x1]  ;;  %v3791_v19 = vshrl.u32 %v7472_v62, 16  ;;  %v3797_v57 = vshll.u32 %v7481_v23, 16  ;;  %v5346_v26 = vrot.slane %v7066_v15, 9  ;;  %v7543_v15 = vpop.f32.mrf.mxu1 }
  0xfb   : > { %9143 = vst [vmem:[#allocation44_spill] sm:$0xff] %v7532_v7  ;;  %v4116_v4 = vrot.slane %v4114_v48, 4  ;;  %v4117_v47 = vrot.slane %v7118_v2, 5  ;;  %v9144_v22 = vshrl.u32 %v7152_v39, 16  ;;  %v3509_v1 = vrot.slane %v9145_v24, 5  ;;  %9147 = vst [vmem:[#allocation45_spill] sm:$0xff] %v7543_v15 }
  0xfc   : > { %v9146_v31 = vcombine.low %v7373_v10, %v7395_v53  ;;  %v7545_v9 = vrot.slane %v3466_v61, 4  ;;  %v3499_v7 = vshll.u32 %v7517_v25, 16  ;;  %v3523_v2 = vshll.u32 %v7203_v6, 16 }
  0xfd   : > { %5798 = vmatmul.mubr.msk.bf16.gmra.mxu0 %vm845_vm3, %v9142_v41  ;;  %v3506_v12 = vrot.slane %v9144_v22, 4  ;;  %v3476_v41 = vor.u32 %v3475_v8, %v7512_v38  ;;  %v3486_v22 = vor.u32 %v3485_v28, %v7519_v13  ;;  %v3496_v24 = vor.u32 %v7166_v63, %v7521_v17  ;;  %v7567_v63 = vpop.f32.mrf.mxu0 }
  0xfe   : > { %5801 = vmatprep.mubr.msk.bf16.mxu0 %vm845_vm3, %v9146_v31  ;;  %v7553_v11 = vrot.slane %v3513_v3, 5  ;;  %v9148_v53 = vshrl.u32 %v7156_v56, 16  ;;  %v7557_v10 = vrot.slane %v3791_v19, 4  ;;  %v7559_v61 = vrot.slane %v3797_v57, 5 }
  0xff   : > { %v4120_v15 = vrot.slane %v7121_v35, 5  ;;  %v9151_v62 = vcombine.low %v7143_v5, %v7160_v60  ;;  %v7571_v28 = vsel %vm6326_vm7, %v5346_v26, %v4114_v48  ;;  %v3510_v3 = vor.u32 %v3509_v1, %v3506_v12  ;;  %v7582_v5 = vpop.f32.mrf.mxu1 }
 0x100   : > { %v3519_v31 = vrot.slane %v9148_v53, 4  ;;  %9149 = vst [vmem:[#allocation46_spill] sm:$0xff] %v7557_v10  ;;  %9150 = vst [vmem:[#allocation47_spill] sm:$0xff] %v7559_v61  ;;  %v7575_v53 = vsel %vm6326_vm7, %v4116_v4, %v4117_v47  ;;  %v4127_v19 = vrot.slane %v7156_v56, 5  ;;  %v9152_v35 = vcombine.low %v7178_v49, %v7194_v21  ;;  %v409_v4 = vld [vmem:[%s7045_s29 + $0x24] sm:$0x1] }
 0x101   : > { %5764 = vmatmul.mubr.msk.bf16.gmra.mxu1 %vm845_vm3, %v9151_v62  ;;  %9153 = vst [vmem:[#allocation48_spill] sm:$0xff] %v7582_v5  ;;  %v3477_v60 = vrot.slane %v3476_v41, 4  ;;  %v3501_v62 = vrot.slane %v3499_v7, 5  ;;  %v4119_v57 = vrot.slane %v4117_v47, 4  ;;  %v3525_v8 = vrot.slane %v3523_v2, 5 }
 0x102   : > { %5767 = vmatprep.mubr.msk.bf16.mxu1 %vm845_vm3, %v9152_v35  ;;  %v3472_v48 = vsel %vm6071_vm4, %v7545_v9, %v7512_v38  ;;  %v3487_v26 = vrot.slane %v3486_v22, 4  ;;  %v3497_v1 = vrot.slane %v3496_v24, 4  ;;  %v3520_v56 = vor.u32 %v3519_v31, %v7553_v11  ;;  %v7744_v61 = vld [vmem:[%s7045_s29 + $0x4c] sm:$0x1] }
 0x103   : > { %v4122_v12 = vrot.slane %v4120_v15, 4  ;;  %v4123_v49 = vrot.slane %v7517_v25, 5  ;;  %v5347_v7 = vrot.slane %v7152_v39, 9  ;;  %v9154_v47 = vcombine.low %v7376_v27, %v7389_v51  ;;  %v7603_v25 = vpop.f32.mrf.mxu1 }
 0x104   : > { %v3511_v9 = vrot.slane %v3510_v3, 4  ;;  %v4129_v38 = vrot.slane %v4127_v19, 4  ;;  %v4130_v2 = vrot.slane %v7203_v6, 5  ;;  %v3540_v22 = vor.u32 %v7276_v42, %v7262_v40  ;;  %9155 = vst [vmem:[#allocation49_spill] sm:$0xff] %v7603_v25  ;;  %v9179_v25 = vld [vmem:[#allocation11_spill] sm:$0xff] }
 0x105   : > { %5802 = vmatmul.mubr.msk.bf16.gmra.mxu0 %vm845_vm3, %v9154_v47  ;;  %v7598_v41 = vpop.f32.mrf.mxu0  ;;  %v9156_v24 = vcombine.low %v7405_v59, %v7421_v43  ;;  %v3482_v39 = vsel %vm6071_vm4, %v3477_v60, %v7519_v13  ;;  %v7614_v31 = vsel %vm6326_vm7, %v4119_v57, %v4120_v15  ;;  %v3530_v6 = vor.u32 %v7260_v18, %v3525_v8 }
 0x106   : > { %v3543_v3 = vshll.u32 %v409_v4, 16  ;;  %v3492_v42 = vsel %vm6071_vm4, %v3487_v26, %v7521_v17  ;;  %v3502_v35 = vsel %vm6071_vm4, %v3497_v1, %v3501_v62  ;;  %v3521_v47 = vrot.slane %v3520_v56, 4 }
 0x107   : > { %5805 = vmatprep.mubr.msk.bf16.mxu0 %vm845_vm3, %v9156_v24  ;;  %v3557_v24 = vshll.u32 %v7223_v34, 16  ;;  %v7625_v13 = vsel %vm6326_vm7, %v4122_v12, %v4123_v49  ;;  %v7629_v15 = vsel %vm6326_vm7, %v5347_v7, %v4127_v19  ;;  %v9157_v18 = vshrl.u32 %v7220_v54, 16  ;;  %v7639_v26 = vpop.f32.mrf.mxu0 }
 0x108   : > { %v9158_v57 = vshll.u32 %v7220_v54, 16  ;;  %v9159_v62 = vcombine.low %v7198_v37, %v7214_v58  ;;  %v3516_v1 = vsel %vm6071_vm4, %v3511_v9, %v7553_v11  ;;  %v7646_v19 = vsel %vm6326_vm7, %v4129_v38, %v4130_v2 }
 0x109   : > { %v3550_v60 = vrot.slane %v9157_v18, 4  ;;  %v4132_v56 = vrot.slane %v4130_v2, 4  ;;  %v3541_v12 = vrot.slane %v3540_v22, 4  ;;  %v9160_v49 = vcombine.low %v7232_v29, %v7246_v46 }
 0x10a   : > { %v3553_v17 = vrot.slane %v9158_v57, 5  ;;  %5768 = vmatmul.mubr.msk.bf16.gmra.mxu1 %vm845_vm3, %v9159_v62  ;;  %v7652_v37 = vpop.f32.mrf.mxu1  ;;  %v3531_v58 = vrot.slane %v3530_v6, 4  ;;  %v3545_v7 = vrot.slane %v3543_v3, 5  ;;  %v9162_v18 = vrot.slane %v7209_v50, 5 }
 0x10b   : > { %5771 = vmatprep.mubr.msk.bf16.mxu1 %vm845_vm3, %v9160_v49  ;;  %9161 = vst [vmem:[#allocation50_spill] sm:$0xff] %v7652_v37  ;;  %v4136_v62 = vrot.slane %v409_v4, 5  ;;  %v3526_v11 = vsel %vm6071_vm4, %v3521_v47, %v3525_v8  ;;  %v7658_v9 = vrot.slane %v3557_v24, 5  ;;  %v9163_v38 = vshrl.u32 %v7223_v34, 16  ;;  %v7675_v47 = vpop.f32.mrf.mxu0 }
 0x10c   : > { %v4135_v57 = vrot.slane %v9162_v18, 4  ;;  %v3567_v29 = vshll.u32 %v7267_v33, 16  ;;  %v7663_v46 = vcombine.low %v3472_v48, %v3482_v39  ;;  %v7665_v22 = vcombine.low %v3492_v42, %v3502_v35  ;;  %v7673_v8 = vpop.f32.mrf.mxu1 }
 0x10d   : > { %v3563_v2 = vrot.slane %v9163_v38, 4  ;;  %v3554_v3 = vor.u32 %v3553_v17, %v3550_v60  ;;  %v9164_v4 = vcombine.low %v7435_v45, %v7445_v14  ;;  %9165 = vst [vmem:[#allocation51_spill] sm:$0xff] %v7673_v8  ;;  %v9166_v39 = vmov %v9162_v18 }
 0x10e   : > { %v7683_v42 = vsel %vm6326_vm7, %v4132_v56, %v9166_v39  ;;  %v4140_v35 = vrot.slane %v7223_v34, 5  ;;  %v3601_v24 = vshll.u32 %v7289_v0, 16  ;;  %v9167_v60 = vcombine.low %v7453_v44, %v7464_v52  ;;  %v9204_v44 = vld [vmem:[#allocation15_spill] sm:$0xff] }
 0x10f   : > { %5806 = vmatmul.mubr.msk.bf16.gmra.mxu0 %vm845_vm3, %v9164_v4  ;;  %v7691_v17 = vcombine.low %v3516_v1, %v3526_v11  ;;  %v3546_v49 = vsel %vm6071_vm4, %v3541_v12, %v3545_v7  ;;  %v7697_v50 = vsel %vm6326_vm7, %v4135_v57, %v4136_v62  ;;  %v3611_v56 = vshll.u32 %v7321_v16, 16  ;;  %v414_v11 = vld [vmem:[%s7045_s29 + $0x38] sm:$0x1] }
 0x110   : > { %5809 = vmatprep.mubr.msk.bf16.mxu0 %vm845_vm3, %v9167_v60  ;;  %v3536_v34 = vsel %vm6071_vm4, %v3531_v58, %v7262_v40  ;;  %v3564_v18 = vor.u32 %v3563_v2, %v7658_v9  ;;  %v7704_v38 = vrot.slane %v3567_v29, 5  ;;  %v4143_v1 = vrot.slane %v7267_v33, 5  ;;  %v7719_v58 = vpop.f32.mrf.mxu1  ;;  %v7721_v33 = vpop.f32.mrf.mxu0 }
 0x111   : > { %v7708_v4 = vrot.slane %v3554_v3, 4  ;;  %v5348_v12 = vrot.slane %v7220_v54, 9  ;;  %v9168_v7 = vshrl.u32 %v7283_v30, 16  ;;  %v9169_v62 = vshll.u32 %v7283_v30, 16  ;;  %9171 = vst [vmem:[#allocation52_spill] sm:$0xff] %v7719_v58 }
 0x112   : > { %v9170_v40 = vcombine.low %v7257_v55, %v7271_v20  ;;  %v4142_v54 = vrot.slane %v4140_v35, 4  ;;  %v7725_v29 = vrot.slane %v3601_v24, 5  ;;  %v9172_v3 = vshrl.u32 %v7289_v0, 16  ;;  %v9176_v20 = vld [vmem:[#allocation6_spill] sm:$0xff] }
 0x113   : > { %v3594_v57 = vrot.slane %v9168_v7, 4  ;;  %v3597_v39 = vrot.slane %v9169_v62, 5  ;;  %v9173_v7 = vld [vmem:[#allocation2_spill] sm:$0xff]  ;;  %v9174_v62 = vld [vmem:[#allocation9_spill] sm:$0xff]  ;;  %v7733_v55 = vcombine.low %v3536_v34, %v3546_v49  ;;  %v3587_v21 = vshll.u32 %v414_v11, 16 }
 0x114   : > { %5772 = vmatmul.mubr.msk.bf16.gmra.mxu1 %vm845_vm3, %v9170_v40  ;;  %v3607_v60 = vrot.slane %v9172_v3, 4  ;;  %v9175_v48 = vcombine.low %v9173_v7, %v9174_v62  ;;  %v9177_v40 = vld [vmem:[#allocation16_spill] sm:$0xff]  ;;  %v7737_v58 = vrot.slane %v3611_v56, 5  ;;  %v3565_v2 = vrot.slane %v3564_v18, 4  ;;  %v9178_v24 = vld [vmem:[#allocation14_spill] sm:$0xff]  ;;  %v7754_v18 = vpop.f32.mrf.mxu1  ;;  %v9183_v62 = vld [vmem:[#allocation37_spill] sm:$0xff] }
 0x115   : > { %v3584_v6 = vor.u32 %v9177_v40, %v9176_v20  ;;  %v3574_v8 = vor.u32 %v9178_v24, %v7704_v38  ;;  %v4145_v37 = vrot.slane %v4143_v1, 4  ;;  %v9180_v3 = vrot.slane %v9179_v25, 5  ;;  %9181 = vst [vmem:[#allocation2_spill] sm:$0xff] %v7754_v18  ;;  %v7756_v7 = vpop.f32.mrf.mxu0 }
 0x116   : > { %5775 = vmatprep.mubr.msk.bf16.mxu1 %vm845_vm3, %v9175_v48  ;;  %v3560_v48 = vsel %vm6071_vm4, %v7708_v4, %v7658_v9  ;;  %v7752_v49 = vsel %vm6326_vm7, %v5348_v12, %v4140_v35  ;;  %v4149_v56 = vrot.slane %v414_v11, 5  ;;  %v3598_v34 = vor.u32 %v3597_v39, %v3594_v57  ;;  %9182 = vst [vmem:[#allocation9_spill] sm:$0xff] %v7756_v7  ;;  %v9186_v57 = vld [vmem:[#allocation20_spill] sm:$0xff] }
 0x117   : > { %v4148_v5 = vrot.slane %v9180_v3, 4  ;;  %v9184_v40 = vcombine.low %v9183_v62, %v7481_v23  ;;  %v7764_v24 = vsel %vm6326_vm7, %v4142_v54, %v4143_v1  ;;  %v3608_v9 = vor.u32 %v3607_v60, %v7725_v29  ;;  %v9187_v3 = vld [vmem:[#allocation21_spill] sm:$0xff]  ;;  %v7778_v54 = vpop.f32.mrf.mxu0 }
 0x118   : > { %v4153_v35 = vrot.slane %v7289_v0, 5  ;;  %v4156_v11 = vrot.slane %v7321_v16, 5  ;;  %v9185_v4 = vcombine.low %v7571_v28, %v7575_v53  ;;  %v3585_v12 = vrot.slane %v3584_v6, 4  ;;  %9189 = vst [vmem:[#allocation6_spill] sm:$0xff] %v7778_v54  ;;  %v9196_v6 = vld [vmem:[#allocation13_spill] sm:$0xff] }
 0x119   : > { %5810 = vmatmul.mubr.msk.bf16.gmra.mxu0 %vm845_vm3, %v9184_v40  ;;  %v3618_v39 = vor.u32 %v9186_v57, %v7737_v58  ;;  %v9188_v40 = vld [vmem:[#allocation22_spill] sm:$0xff]  ;;  %v3631_v1 = vshll.u32 %v7744_v61, 16  ;;  %v3570_v0 = vsel %vm6071_vm4, %v3565_v2, %v7704_v38  ;;  %v3575_v16 = vrot.slane %v3574_v8, 4  ;;  %v7796_v10 = vpop.f32.mrf.mxu1  ;;  %v9192_v8 = vld [vmem:[#allocation4_spill] sm:$0xff] }
 0x11a   : > { %5849 = vmatprep.mubr.msk.bf16.mxu0 %vm845_vm3, %v9185_v4  ;;  %v3628_v18 = vor.u32 %v9188_v40, %v9187_v3  ;;  %v3589_v60 = vrot.slane %v3587_v21, 5  ;;  %v9190_v28 = vrot.slane %v9179_v25, 5  ;;  %v7793_v4 = vsel %vm6326_vm7, %v4148_v5, %v4149_v56  ;;  %9191 = vst [vmem:[#allocation16_spill] sm:$0xff] %v7796_v10  ;;  %v9193_v21 = vld [vmem:[#allocation7_spill] sm:$0xff]  ;;  %v7802_v25 = vpop.f32.mrf.mxu0 }
 0x11b   : > { %v3599_v57 = vrot.slane %v3598_v34, 4  ;;  %v5349_v40 = vrot.slane %v7283_v30, 9  ;;  %v9194_v38 = vcombine.low %v9192_v8, %v9193_v21  ;;  %9195 = vst [vmem:[#allocation14_spill] sm:$0xff] %v7802_v25  ;;  %v4155_v2 = vrot.slane %v4153_v35, 4  ;;  %v9198_v34 = vld [vmem:[#allocation3_spill] sm:$0xff]  ;;  %v7809_v14 = vpop.f32.mrf.mxu1 }
 0x11c   : > { %v7787_v53 = vsel %vm6326_vm7, %v4145_v37, %v9190_v28  ;;  %v3609_v37 = vrot.slane %v3608_v9, 4  ;;  %v4158_v28 = vrot.slane %v4156_v11, 4  ;;  %v9197_v23 = vrot.slane %v9196_v6, 5  ;;  %9199 = vst [vmem:[#allocation11_spill] sm:$0xff] %v7809_v14  ;;  %v7811_v8 = vpop.f32.mrf.mxu0  ;;  %v9201_v9 = vld [vmem:[#allocation12_spill] sm:$0xff]  ;;  %v9275_v32 = vld [vmem:[#allocation2_spill] sm:$0xff] }
 0x11d   : > { %5776 = vmatmul.mubr.msk.bf16.gmra.mxu1 %vm845_vm3, %v9194_v38  ;;  %v3619_v5 = vrot.slane %v3618_v39, 4  ;;  %v3629_v30 = vrot.slane %v3628_v18, 4  ;;  %v3633_v56 = vrot.slane %v3631_v1, 5  ;;  %v3645_v10 = vshll.u32 %v9198_v34, 16  ;;  %9200 = vst [vmem:[#allocation20_spill] sm:$0xff] %v7811_v8  ;;  %v7828_v1 = vpop.f32.mrf.mxu1 }
 0x11e   : > { %v4161_v62 = vrot.slane %v9197_v23, 4  ;;  %5815 = vmatprep.mubr.msk.bf16.mxu1 %vm845_vm3, %v7663_v46  ;;  %v4162_v21 = vrot.slane %v7744_v61, 5  ;;  %v9202_v38 = vshrl.u32 %v9201_v9, 16  ;;  %v9203_v54 = vshll.u32 %v9201_v9, 16  ;;  %9205 = vst [vmem:[#allocation21_spill] sm:$0xff] %v7828_v1 }
 0x11f   : > { %v3655_v7 = vshll.u32 %v9204_v44, 16  ;;  %v7819_v46 = vcombine.low %v3560_v48, %v3570_v0  ;;  %v3580_v18 = vsel %vm6071_vm4, %v3575_v16, %v9176_v20  ;;  %v3590_v39 = vsel %vm6071_vm4, %v3585_v12, %v3589_v60  ;;  %v7862_v60 = vld [vmem:[%s7045_s29 + $0x60] sm:$0x1] }
 0x120   : > { %v3638_v25 = vrot.slane %v9202_v38, 4  ;;  %v3641_v23 = vrot.slane %v9203_v54, 5  ;;  %v5647_v38 = vpop.f32.mrf.mxu0  ;;  %v9206_v54 = vcombine.low %v7614_v31, %v7625_v13  ;;  %v3604_v48 = vsel %vm6071_vm4, %v3599_v57, %v7725_v29 }
 0x121   : > { %v3614_v20 = vsel %vm6071_vm4, %v3609_v37, %v7737_v58  ;;  %v7842_v12 = vsel %vm6326_vm7, %v5349_v40, %v4153_v35  ;;  %v7846_v0 = vsel %vm6326_vm7, %v4155_v2, %v4156_v11  ;;  %v9207_v31 = vcombine.low %v7629_v15, %v7646_v19  ;;  %v7864_v11 = vpop.f32.mrf.mxu1 }
 0x122   : > { %5850 = vmatmul.mubr.msk.bf16.vlgmr.msra.gmra.mxu0 %vm845_vm3, %v9206_v54  ;;  %v3624_v13 = vsel %vm6071_vm4, %v3619_v5, %v9187_v3  ;;  %v3634_v58 = vsel %vm6071_vm4, %v3629_v30, %v3633_v56  ;;  %v7857_v29 = vrot.slane %v3645_v10, 5  ;;  %v9208_v35 = vshrl.u32 %v9198_v34, 16  ;;  %9209 = vst [vmem:[#allocation22_spill] sm:$0xff] %v7864_v11  ;;  %v1600_v57 = vpop.f32.mrf.mxu0  ;;  %v9221_v11 = vld [vmem:[#allocation24_spill] sm:$0xff] }
 0x123   : > { %5853 = vmatprep.mubr.msk.bf16.mxu0 %vm845_vm3, %v9207_v31  ;;  %v9210_v15 = vrot.slane %v9196_v6, 5  ;;  %v7874_v3 = vsel %vm6326_vm7, %v4161_v62, %v4162_v21  ;;  %v3642_v10 = vor.u32 %v3641_v23, %v3638_v25  ;;  %v7876_v40 = vrot.slane %v3655_v7, 5  ;;  %v5613_v30 = vpop.f32.mrf.mxu1  ;;  %v9211_v7 = vld [vmem:[#allocation26_spill] sm:$0xff]  ;;  %v9212_v25 = vld [vmem:[#allocation27_spill] sm:$0xff]  ;;  %v9214_v31 = vld [vmem:[#allocation25_spill] sm:$0xff] }
 0x124   : > { %v3651_v16 = vrot.slane %v9208_v35, 4  ;;  %v7878_v37 = vcombine.low %v3580_v18, %v3590_v39  ;;  %v5350_v5 = vrot.slane %v9201_v9, 9  ;;  %v4166_v6 = vrot.slane %v9198_v34, 5  ;;  %v9213_v18 = vld [vmem:[#allocation8_spill] sm:$0xff] }
 0x125   : > { %v7870_v19 = vsel %vm6326_vm7, %v4158_v28, %v9210_v15  ;;  %5816 = vmatmul.mubr.msk.bf16.vlgmr.msra.gmra.mxu1 %vm845_vm3, %v7665_v22  ;;  %v5648_v28 = vpop.f32.mrf.mxu0  ;;  %v7886_v56 = vcombine.low %v3604_v48, %v3614_v20  ;;  %v7888_v62 = vcombine.low %v3624_v13, %v3634_v58  ;;  %v3672_v21 = vor.u32 %v9212_v25, %v9211_v7  ;;  %v1224_v54 = vpop.f32.mrf.mxu1  ;;  %v9215_v58 = vld [vmem:[#allocation19_spill] sm:$0xff] }
 0x126   : > { %v3675_v23 = vshll.u32 %v7862_v60, 16  ;;  %v1233_v39 = vadd.f32 %v5613_v30, %v9213_v18  ;;  %5819 = vmatprep.mubr.msk.bf16.mxu1 %vm845_vm3, %v7691_v17  ;;  %v3652_v22 = vor.u32 %v3651_v16, %v7857_v29  ;;  %v4169_v9 = vrot.slane %v9204_v44, 5  ;;  %v9219_v18 = vld [vmem:[#allocation5_spill] sm:$0xff] }
 0x127   : > { %v1603_v48 = vpop.f32.mrf.mxu0  ;;  %v7900_v20 = vrot.slane %v3642_v10, 4  ;;  %v3662_v13 = vor.u32 %v9214_v31, %v7876_v40  ;;  %v9216_v35 = vshrl.u32 %v9215_v58, 16  ;;  %v9217_v30 = vshll.u32 %v9215_v58, 16  ;;  %v5614_v10 = vpop.f32.mrf.mxu1 }
 0x128   : > { %v7908_v25 = vadd.f32 %v5647_v38, %v1233_v39  ;;  %v1225_v34 = vadd.f32 %v1224_v54, %v9219_v18  ;;  %v7913_v44 = vsel %vm6326_vm7, %v5350_v5, %v4166_v6  ;;  %v4168_v16 = vrot.slane %v4166_v6, 4  ;;  %v9222_v54 = vld [vmem:[#allocation18_spill] sm:$0xff] }
 0x129   : > { %v3682_v15 = vrot.slane %v9216_v35, 4  ;;  %v3685_v17 = vrot.slane %v9217_v30, 5  ;;  %v5651_v2 = vpop.f32.mrf.mxu0  ;;  %v9220_v31 = vcombine.low %v7683_v42, %v7697_v50  ;;  %v3673_v35 = vrot.slane %v3672_v21, 4  ;;  %v1227_v42 = vpop.f32.mrf.mxu1  ;;  %v9224_v21 = vld [vmem:[#allocation17_spill] sm:$0xff] }
 0x12a   : > { %9218 = vst [vmem:[#allocation4_spill] sm:$0xff] %v7908_v25  ;;  %v3677_v61 = vrot.slane %v3675_v23, 5  ;;  %v3689_v30 = vshll.u32 %v9221_v11, 16  ;;  %v3699_v38 = vshll.u32 %v7376_v27, 16  ;;  %v7921_v39 = vadd.f32 %v1600_v57, %v1225_v34  ;;  %v9226_v34 = vld [vmem:[#allocation28_spill] sm:$0xff] }
 0x12b   : > { %5854 = vmatmul.mubr.msk.bf16.gmra.mxu0 %vm845_vm3, %v9220_v31  ;;  %v1236_v18 = vadd.f32 %v5614_v10, %v9222_v54  ;;  %v9223_v5 = vcombine.low %v7752_v49, %v7764_v24  ;;  %v3653_v6 = vrot.slane %v3652_v22, 4  ;;  %v4171_v25 = vrot.slane %v4169_v9, 4  ;;  %v1616_v50 = vpop.f32.mrf.mxu0  ;;  %v5617_v22 = vpop.f32.mrf.mxu1 }
 0x12c   : > { %v3663_v31 = vrot.slane %v3662_v13, 4  ;;  %v9225_v23 = vrot.slane %v9224_v21, 5  ;;  %v4175_v14 = vrot.slane %v7862_v60, 5  ;;  %v3686_v8 = vor.u32 %v3685_v17, %v3682_v15  ;;  %v429_v21 = vld [vmem:[%s7045_s29 + $0x74] sm:$0x1] }
 0x12d   : > { %5857 = vmatprep.mubr.msk.bf16.mxu0 %vm845_vm3, %v9223_v5  ;;  %v7931_v57 = vadd.f32 %v5648_v28, %v1236_v18  ;;  %v1228_v10 = vadd.f32 %v1227_v42, %v9226_v34  ;;  %v3648_v49 = vsel %vm6071_vm4, %v7900_v20, %v7857_v29  ;;  %v7940_v24 = vsel %vm6326_vm7, %v4168_v16, %v4169_v9  ;;  %v5652_v13 = vpop.f32.mrf.mxu0  ;;  %v9228_v9 = vld [vmem:[#allocation35_spill] sm:$0xff]  ;;  %v9230_v5 = vld [vmem:[#allocation42_spill] sm:$0xff] }
 0x12e   : > { %v4174_v1 = vrot.slane %v9225_v23, 4  ;;  %5820 = vmatmul.mubr.msk.bf16.gmra.mxu1 %vm845_vm3, %v7733_v55  ;;  %v3678_v60 = vsel %vm6071_vm4, %v3673_v35, %v3677_v61  ;;  %v7946_v28 = vrot.slane %v3689_v30, 5  ;;  %v9227_v15 = vshrl.u32 %v9221_v11, 16  ;;  %v1240_v35 = vpop.f32.mrf.mxu1 }
 0x12f   : > { %v7950_v54 = vrot.slane %v3699_v38, 5  ;;  %v7952_v29 = vadd.f32 %v1603_v48, %v1228_v10  ;;  %v1249_v20 = vadd.f32 %v5617_v22, %v9228_v9  ;;  %5823 = vmatprep.mubr.msk.bf16.mxu1 %vm845_vm3, %v7819_v46  ;;  %v3658_v55 = vsel %vm6071_vm4, %v3653_v6, %v7876_v40  ;;  %v1619_v30 = vpop.f32.mrf.mxu0  ;;  %v9235_v10 = vld [vmem:[#allocation44_spill] sm:$0xff] }
 0x130   : > { %v3695_v17 = vrot.slane %v9227_v15, 4  ;;  %v9229_v61 = vmov %v9225_v23  ;;  %v3668_v48 = vsel %vm6071_vm4, %v3663_v31, %v9211_v7  ;;  %v7971_v38 = vsel %vm6326_vm7, %v4174_v1, %v4175_v14  ;;  %v5618_v23 = vpop.f32.mrf.mxu1  ;;  %v9232_v1 = vld [vmem:[#allocation30_spill] sm:$0xff] }
 0x131   : > { %v7964_v16 = vsel %vm6326_vm7, %v4171_v25, %v9229_v61  ;;  %v7973_v46 = vrot.slane %v3686_v8, 4  ;;  %v4179_v40 = vrot.slane %v9221_v11, 5  ;;  %v7976_v18 = vadd.f32 %v5651_v2, %v1249_v20  ;;  %v5655_v34 = vpop.f32.mrf.mxu0  ;;  %v9233_v2 = vld [vmem:[#allocation31_spill] sm:$0xff] }
 0x132   : > { %v1241_v6 = vadd.f32 %v1240_v35, %v9230_v5  ;;  %v5351_v25 = vrot.slane %v9215_v58, 9  ;;  %v4182_v42 = vrot.slane %v7376_v27, 5  ;;  %v9231_v7 = vcombine.low %v7787_v53, %v7793_v4  ;;  %v9234_v58 = vld [vmem:[#allocation33_spill] sm:$0xff] }
 0x133   : > { %v5362_v14 = vcombine.low %v7913_v44, %v7940_v24  ;;  %v3696_v8 = vor.u32 %v3695_v17, %v7946_v28  ;;  %v3706_v11 = vor.u32 %v9232_v1, %v7950_v54  ;;  %v3716_v31 = vor.u32 %v9234_v58, %v9233_v2  ;;  %v1243_v24 = vpop.f32.mrf.mxu1  ;;  %v1632_v15 = vpop.f32.mrf.mxu0 }
 0x134   : > { %5858 = vmatmul.mubr.msk.bf16.gmra.mxu0 %vm845_vm3, %v9231_v7  ;;  %v7993_v27 = vadd.f32 %v1616_v50, %v1241_v6  ;;  %v1252_v22 = vadd.f32 %v5618_v23, %v9235_v10  ;;  %v9236_v53 = vcombine.low %v7842_v12, %v7846_v0  ;;  %v8000_v4 = vcombine.low %v3648_v49, %v3658_v55 }
 0x135   : > { %v8002_v44 = vcombine.low %v3668_v48, %v3678_v60  ;;  %v5363_v17 = vcombine.low %v7964_v16, %v7971_v38  ;;  %v3692_v50 = vsel %vm6071_vm4, %v7973_v46, %v7946_v28  ;;  %v4181_v9 = vrot.slane %v4179_v40, 4  ;;  %v5621_v60 = vpop.f32.mrf.mxu1  ;;  %v5656_v55 = vpop.f32.mrf.mxu0 }
 0x136   : > { %5861 = vmatprep.mubr.msk.bf16.mxu0 %vm845_vm3, %v9236_v53  ;;  %v3719_v20 = vshll.u32 %v429_v21, 16  ;;  %v8010_v61 = vadd.f32 %v5652_v13, %v1252_v22  ;;  %v1244_v12 = vadd.f32 %v1243_v24, %v7567_v63  ;;  %v8015_v0 = vsel %vm6326_vm7, %v5351_v25, %v4179_v40  ;;  %5824 = vmatmul.mubr.msk.bf16.gmra.mxu1 %vm845_vm3, %v7878_v37 }
 0x137   : > { %v4184_v49 = vrot.slane %v4182_v42, 4  ;;  %v3697_v35 = vrot.slane %v3696_v8, 4  ;;  %v8019_v48 = vrot.slane %v3706_v11, 4  ;;  %v8021_v28 = vrot.slane %v3716_v31, 4  ;;  %5827 = vmatprep.mubr.msk.bf16.mxu1 %vm845_vm3, %v7886_v56  ;;  %v1256_v25 = vpop.f32.mrf.mxu1  ;;  %v1635_v23 = vpop.f32.mrf.mxu0 }
 0x138   : > { %v3733_v13 = vshll.u32 %v7421_v43, 16  ;;  %v8024_v46 = vadd.f32 %v1619_v30, %v1244_v12  ;;  %v1265_v63 = vadd.f32 %v5621_v60, %v7598_v41  ;;  %v9237_v40 = vshrl.u32 %v7405_v59, 16 }
 0x139   : > { %v9238_v37 = vshll.u32 %v7405_v59, 16  ;;  %v8035_v7 = vsel %vm6326_vm7, %v4181_v9, %v4182_v42  ;;  %v9239_v30 = vrot.slane %v7389_v51, 5  ;;  %v4188_v1 = vrot.slane %v429_v21, 5  ;;  %v5622_v10 = vpop.f32.mrf.mxu1  ;;  %v5659_v22 = vpop.f32.mrf.mxu0 }
 0x13a   : > { %v3726_v5 = vrot.slane %v9237_v40, 4  ;;  %v3743_v41 = vshll.u32 %v7435_v45, 16  ;;  %v8040_v11 = vadd.f32 %v5655_v34, %v1265_v63  ;;  %v1257_v56 = vadd.f32 %v1256_v25, %v7639_v26 }
 0x13b   : > { %v3729_v6 = vrot.slane %v9238_v37, 5  ;;  %v4187_v8 = vrot.slane %v9239_v30, 4  ;;  %v8043_v58 = vrot.slane %v3719_v20, 5  ;;  %v4192_v31 = vrot.slane %v7421_v43, 5  ;;  %v1259_v51 = vpop.f32.mrf.mxu1  ;;  %v1648_v12 = vpop.f32.mrf.mxu0  ;;  %v9243_v37 = vld [vmem:[#allocation9_spill] sm:$0xff] }
 0x13c   : > { %v9240_v42 = vcombine.low %v7870_v19, %v7874_v3  ;;  %v3702_v21 = vsel %vm6071_vm4, %v3697_v35, %v7950_v54  ;;  %v9241_v34 = vmov %v9239_v30  ;;  %v8059_v53 = vrot.slane %v3733_v13, 5 }
 0x13d   : > { %v8057_v26 = vsel %vm6326_vm7, %v4184_v49, %v9241_v34  ;;  %v9242_v24 = vshrl.u32 %v7421_v43, 16  ;;  %v8063_v20 = vadd.f32 %v1632_v15, %v1257_v56  ;;  %v1268_v19 = vadd.f32 %v5622_v10, %v7675_v47  ;;  %v5625_v13 = vpop.f32.mrf.mxu1  ;;  %v5660_v63 = vpop.f32.mrf.mxu0 }
 0x13e   : > { %5862 = vmatmul.mubr.msk.bf16.gmra.mxu0 %vm845_vm3, %v9240_v42  ;;  %v5364_v3 = vcombine.low %v8015_v0, %v8035_v7  ;;  %v3730_v54 = vor.u32 %v3729_v6, %v3726_v5  ;;  %v3712_v49 = vsel %vm6071_vm4, %v8019_v48, %v9233_v2  ;;  %v8075_v43 = vsel %vm6326_vm7, %v4187_v8, %v4188_v1  ;;  %v9244_v7 = vld [vmem:[#allocation39_spill] sm:$0xff]  ;;  %v9245_v1 = vld [vmem:[#allocation34_spill] sm:$0xff] }
 0x13f   : > { %v3739_v9 = vrot.slane %v9242_v24, 4  ;;  %5865 = vmatprep.mubr.msk.bf16.mxu0 %vm845_vm3, %v5362_v14  ;;  %v8077_v15 = vrot.slane %v3743_v41, 5  ;;  %v5352_v47 = vrot.slane %v7405_v59, 9  ;;  %v8080_v14 = vadd.f32 %v5656_v55, %v1268_v19  ;;  %5828 = vmatmul.mubr.msk.bf16.gmra.mxu1 %vm845_vm3, %v7888_v62  ;;  %v1272_v6 = vpop.f32.mrf.mxu1  ;;  %v1651_v25 = vpop.f32.mrf.mxu0  ;;  %v434_v24 = vld [vmem:[%s7045_s29 + $0x88] sm:$0x1] }
 0x140   : > { %v1260_v0 = vadd.f32 %v1259_v51, %v7721_v33  ;;  %v4194_v60 = vrot.slane %v4192_v31, 4  ;;  %v4195_v35 = vrot.slane %v7435_v45, 5  ;;  %v5324_v40 = vcombine.low %v3692_v50, %v3702_v21  ;;  %5831 = vmatprep.mubr.msk.bf16.mxu1 %vm845_vm3, %v8000_v4  ;;  %v9248_v4 = vld [vmem:[#allocation6_spill] sm:$0xff]  ;;  %v9250_v51 = vld [vmem:[#allocation41_spill] sm:$0xff] }
 0x141   : > { %v3722_v5 = vsel %vm6071_vm4, %v8021_v28, %v8043_v58  ;;  %v3740_v59 = vor.u32 %v3739_v9, %v8059_v53  ;;  %v3777_v55 = vshll.u32 %v7464_v52, 16  ;;  %v1281_v45 = vadd.f32 %v5625_v13, %v9243_v37  ;;  %v5626_v9 = vpop.f32.mrf.mxu1  ;;  %v5663_v19 = vpop.f32.mrf.mxu0  ;;  %v439_v58 = vld [vmem:[%s7045_s29 + $0x9c] sm:$0x1] }
 0x142   : > { %v8092_v33 = vadd.f32 %v1635_v23, %v1260_v0  ;;  %v5365_v62 = vcombine.low %v8057_v26, %v8075_v43  ;;  %v3731_v50 = vrot.slane %v3730_v54, 4  ;;  %v3750_v30 = vor.u32 %v9244_v7, %v8077_v15  ;;  %v9249_v54 = vld [vmem:[#allocation40_spill] sm:$0xff] }
 0x143   : > { %v4193_v8 = vsel %vm6326_vm7, %v5352_v47, %v4192_v31  ;;  %v9246_v23 = vshrl.u32 %v9245_v1, 16  ;;  %v9247_v56 = vshll.u32 %v9245_v1, 16  ;;  %v8107_v42 = vadd.f32 %v5659_v22, %v1281_v45  ;;  %v9253_v45 = vld [vmem:[#allocation32_spill] sm:$0xff] }
 0x144   : > { %v1273_v21 = vadd.f32 %v1272_v6, %v9248_v4  ;;  %v4196_v34 = vsel %vm6326_vm7, %v4194_v60, %v4195_v35  ;;  %v4197_v26 = vrot.slane %v4195_v35, 4  ;;  %v3741_v31 = vrot.slane %v3740_v59, 4  ;;  %v9252_v60 = vld [vmem:[#allocation14_spill] sm:$0xff]  ;;  %v1664_v59 = vpop.f32.mrf.mxu0 }
 0x145   : > { %v3770_v41 = vrot.slane %v9246_v23, 4  ;;  %v3773_v10 = vrot.slane %v9247_v56, 5  ;;  %v3760_v43 = vor.u32 %v9250_v51, %v9249_v54  ;;  %v8119_v22 = vrot.slane %v3777_v55, 5  ;;  %v9255_v56 = vld [vmem:[#allocation20_spill] sm:$0xff] }
 0x146   : > { %5866 = vmatmul.mubr.msk.bf16.gmra.mxu0 %vm845_vm3, %v5363_v17  ;;  %v9251_v47 = vshrl.u32 %v7464_v52, 16  ;;  %v8123_v13 = vadd.f32 %v1648_v12, %v1273_v21  ;;  %v1284_v35 = vadd.f32 %v5626_v9, %v9252_v60  ;;  %v3736_v16 = vsel %vm6071_vm4, %v3731_v50, %v8059_v53  ;;  %v1275_v17 = vpop.f32.mrf.mxu1  ;;  %v9256_v21 = vld [vmem:[#allocation37_spill] sm:$0xff] }
 0x147   : > { %5869 = vmatprep.mubr.msk.bf16.mxu0 %vm845_vm3, %v5364_v3  ;;  %v4205_v38 = vrot.slane %v7464_v52, 5  ;;  %v8131_v37 = vrot.slane %v3750_v30, 4  ;;  %v3763_v55 = vshll.u32 %v434_v24, 16  ;;  %v9254_v6 = vrot.slane %v9253_v45, 5  ;;  %5832 = vmatmul.mubr.msk.bf16.gmra.mxu1 %vm845_vm3, %v8002_v44  ;;  %v5664_v52 = vpop.f32.mrf.mxu0 }
 0x148   : > { %v3783_v0 = vrot.slane %v9251_v47, 4  ;;  %v3774_v12 = vor.u32 %v3773_v10, %v3770_v41  ;;  %v8135_v23 = vadd.f32 %v5660_v63, %v1284_v35  ;;  %v1276_v4 = vadd.f32 %v1275_v17, %v9255_v56  ;;  %v5629_v51 = vpop.f32.mrf.mxu1  ;;  %v9257_v10 = vld [vmem:[#allocation10_spill] sm:$0xff]  ;;  %5835 = vmatprep.mubr.msk.bf16.mxu1 %vm845_vm3, %v5324_v40 }
 0x149   : > { %v4200_v7 = vrot.slane %v9254_v6, 4  ;;  %v4201_v3 = vrot.slane %v434_v24, 5  ;;  %v3787_v9 = vshll.u32 %v9256_v21, 16  ;;  %v3746_v53 = vsel %vm6071_vm4, %v3741_v31, %v8077_v15  ;;  %v1667_v35 = vpop.f32.mrf.mxu0  ;;  %v9260_v56 = vld [vmem:[#allocation38_spill] sm:$0xff] }
 0x14a   : > { %v5366_v50 = vcombine.low %v4193_v8, %v4196_v34  ;;  %v3784_v30 = vor.u32 %v3783_v0, %v8119_v22  ;;  %v5353_v63 = vrot.slane %v9245_v1, 9  ;;  %v8146_v41 = vadd.f32 %v1651_v25, %v1276_v4  ;;  %v1288_v44 = vpop.f32.mrf.mxu1  ;;  %v9259_v25 = vld [vmem:[#allocation23_spill] sm:$0xff] }
 0x14b   : > { %v1297_v24 = vadd.f32 %v5629_v51, %v9257_v10  ;;  %v4207_v47 = vrot.slane %v4205_v38, 4  ;;  %v4208_v60 = vrot.slane %v9256_v21, 5  ;;  %v3761_v17 = vrot.slane %v3760_v43, 4 }
 0x14c   : > { %v3765_v6 = vrot.slane %v3763_v55, 5  ;;  %v9258_v15 = vrot.slane %v9253_v45, 5  ;;  %v3775_v34 = vrot.slane %v3774_v12, 4  ;;  %v1289_v31 = vadd.f32 %v1288_v44, %v9259_v25  ;;  %v5630_v43 = vpop.f32.mrf.mxu1  ;;  %v5667_v55 = vpop.f32.mrf.mxu0  ;;  %v9262_v12 = vld [vmem:[#allocation29_spill] sm:$0xff] }
 0x14d   : > { %v8155_v1 = vadd.f32 %v5663_v19, %v1297_v24  ;;  %v4202_v40 = vsel %vm6326_vm7, %v4200_v7, %v4201_v3  ;;  %v3789_v0 = vrot.slane %v3787_v9, 5  ;;  %v9261_v4 = vshrl.u32 %v9260_v56, 16  ;;  %v9265_v24 = vld [vmem:[#allocation47_spill] sm:$0xff] }
 0x14e   : > { %v4199_v8 = vsel %vm6326_vm7, %v4197_v26, %v9258_v15  ;;  %v5325_v26 = vcombine.low %v3712_v49, %v3722_v5  ;;  %5870 = vmatmul.mubr.msk.bf16.gmra.mxu0 %vm845_vm3, %v5365_v62  ;;  %v5326_v19 = vcombine.low %v3736_v16, %v3746_v53  ;;  %v3785_v45 = vrot.slane %v3784_v30, 4  ;;  %v1291_v51 = vpop.f32.mrf.mxu1  ;;  %v1680_v2 = vpop.f32.mrf.mxu0  ;;  %v9264_v53 = vld [vmem:[#allocation46_spill] sm:$0xff] }
 0x14f   : > { %v3803_v21 = vrot.slane %v9261_v4, 4  ;;  %v8173_v7 = vadd.f32 %v1664_v59, %v1289_v31  ;;  %v1300_v3 = vadd.f32 %v5630_v43, %v9262_v12  ;;  %5873 = vmatprep.mubr.msk.bf16.mxu0 %vm845_vm3, %v5366_v50  ;;  %v4206_v9 = vsel %vm6326_vm7, %v5353_v63, %v4205_v38  ;;  %v9263_v38 = vld [vmem:[#allocation36_spill] sm:$0xff]  ;;  %v9268_v31 = vld [vmem:[#allocation45_spill] sm:$0xff] }
 0x150   : > { %v4209_v28 = vsel %vm6326_vm7, %v4207_v47, %v4208_v60  ;;  %v3756_v48 = vsel %vm6071_vm4, %v8131_v37, %v9249_v54  ;;  %v3766_v49 = vsel %vm6071_vm4, %v3761_v17, %v3765_v6  ;;  %v5367_v5 = vcombine.low %v4199_v8, %v4202_v40  ;;  %v5633_v63 = vpop.f32.mrf.mxu1  ;;  %5836 = vmatmul.mubr.msk.bf16.gmra.mxu1 %vm845_vm3, %v5325_v26  ;;  %v5668_v10 = vpop.f32.mrf.mxu0  ;;  %v9269_v12 = vld [vmem:[#allocation48_spill] sm:$0xff] }
 0x151   : > { %v3780_v62 = vsel %vm6071_vm4, %v3775_v34, %v8119_v22  ;;  %v8191_v16 = vadd.f32 %v5664_v52, %v1300_v3  ;;  %v1292_v59 = vadd.f32 %v1291_v51, %v9263_v38  ;;  %v3794_v50 = vor.u32 %v9264_v53, %v3789_v0  ;;  %v9266_v22 = vld [vmem:[#allocation43_spill] sm:$0xff]  ;;  %5839 = vmatprep.mubr.msk.bf16.mxu1 %vm845_vm3, %v5326_v19 }
 0x152   : > { %v4210_v30 = vrot.slane %v4208_v60, 4  ;;  %v3790_v54 = vsel %vm6071_vm4, %v3785_v45, %v3789_v0  ;;  %v5368_v37 = vcombine.low %v4206_v9, %v4209_v28  ;;  %v3804_v47 = vor.u32 %v3803_v21, %v9265_v24  ;;  %v1304_v8 = vpop.f32.mrf.mxu1  ;;  %v1683_v34 = vpop.f32.mrf.mxu0 }
 0x153   : > { %v3807_v44 = vshll.u32 %v439_v58, 16  ;;  %v8199_v17 = vadd.f32 %v1667_v35, %v1292_v59  ;;  %v1313_v52 = vadd.f32 %v5633_v63, %v9266_v22  ;;  %v9267_v6 = vrot.slane %v9260_v56, 5  ;;  %v9272_v56 = vld [vmem:[#allocation50_spill] sm:$0xff] }
 0x154   : > { %v4214_v15 = vrot.slane %v439_v58, 5  ;;  %v1305_v40 = vadd.f32 %v1304_v8, %v9268_v31  ;;  %v5327_v0 = vcombine.low %v3756_v48, %v3766_v49  ;;  %v5634_v4 = vpop.f32.mrf.mxu1  ;;  %v5671_v21 = vpop.f32.mrf.mxu0  ;;  %v3795_v35 = vrot.slane %v3794_v50, 4  ;;  %v9271_v49 = vld [vmem:[#allocation49_spill] sm:$0xff] }
 0x155   : > { %v4213_v60 = vrot.slane %v9267_v6, 4  ;;  %v8205_v25 = vadd.f32 %v5667_v55, %v1313_v52  ;;  %v5328_v43 = vcombine.low %v3780_v62, %v3790_v54  ;;  %v3805_v26 = vrot.slane %v3804_v47, 4  ;;  %v9273_v54 = vld [vmem:[#allocation51_spill] sm:$0xff] }
 0x156   : > { %5874 = vmatmul.mubr.msk.bf16.gmra.mxu0 %vm845_vm3, %v5367_v5  ;;  %v3809_v45 = vrot.slane %v3807_v44, 5  ;;  %v8209_v19 = vadd.f32 %v1680_v2, %v1305_v40  ;;  %v1316_v3 = vadd.f32 %v5634_v4, %v9269_v12  ;;  %v9270_v55 = vmov %v9267_v6  ;;  %v1307_v58 = vpop.f32.mrf.mxu1  ;;  %v1696_v51 = vpop.f32.mrf.mxu0  ;;  %v9274_v6 = vld [vmem:[#allocation52_spill] sm:$0xff] }
 0x157   : > { %5877 = vmatprep.mubr.msk.bf16.mxu0 %vm845_vm3, %v5368_v37  ;;  %v4212_v9 = vsel %vm6326_vm7, %v4210_v30, %v9270_v55  ;;  %v4215_v28 = vsel %vm6326_vm7, %v4213_v60, %v4214_v15  ;;  %v1308_v5 = vadd.f32 %v1307_v58, %v9271_v49  ;;  %v3800_v36 = vsel %vm6071_vm4, %v3795_v35, %v9265_v24  ;;  %v9276_v4 = vld [vmem:[#allocation16_spill] sm:$0xff] }
 0x158   : > { %v8219_v48 = vadd.f32 %v5668_v10, %v1316_v3  ;;  %v5637_v2 = vpop.f32.mrf.mxu1  ;;  %5840 = vmatmul.mubr.msk.bf16.gmra.mxu1 %vm845_vm3, %v5327_v0  ;;  %v5672_v62 = vpop.f32.mrf.mxu0  ;;  %v5369_v38 = vcombine.low %v4212_v9, %v4215_v28  ;;  %v3810_v50 = vsel %vm6071_vm4, %v3805_v26, %v3809_v45  ;;  %v9277_v45 = vld [vmem:[#allocation11_spill] sm:$0xff]  ;;  %v9278_v28 = vld [vmem:[#allocation21_spill] sm:$0xff] }
 0x159   : > { %v8223_v59 = vadd.f32 %v1683_v34, %v1308_v5  ;;  %v1329_v53 = vadd.f32 %v5637_v2, %v9272_v56  ;;  %5843 = vmatprep.mubr.msk.bf16.mxu1 %vm845_vm3, %v5328_v43  ;;  %v5329_v22 = vcombine.low %v3800_v36, %v3810_v50  ;;  %v9279_v2 = vld [vmem:[#allocation22_spill] sm:$0xff]  ;;  %v9280_v36 = vld [vmem:[#allocation4_spill] sm:$0xff] }
 0x15a   : > { %v1320_v30 = vpop.f32.mrf.mxu1  ;;  %v1699_v63 = vpop.f32.mrf.mxu0 }
 0x15b   : > { %v8232_v10 = vadd.f32 %v5671_v21, %v1329_v53  ;;  %v1321_v37 = vadd.f32 %v1320_v30, %v9273_v54 }
 0x15c   : > { %v5638_v47 = vpop.f32.mrf.mxu1  ;;  %v5675_v44 = vpop.f32.mrf.mxu0 }
 0x15d   : > { %v8236_v52 = vadd.f32 %v1696_v51, %v1321_v37  ;;  %v1332_v60 = vadd.f32 %v5638_v47, %v9274_v6 }
 0x15e   : > { %5878 = vmatmul.mubr.msk.bf16.gmra.mxu0 %vm845_vm3, %v5369_v38  ;;  %v1323_v15 = vpop.f32.mrf.mxu1  ;;  %v1712_v24 = vpop.f32.mrf.mxu0 }
 0x15f   : > { %v8239_v8 = vadd.f32 %v5672_v62, %v1332_v60  ;;  %v1324_v34 = vadd.f32 %v1323_v15, %v9275_v32 }
 0x160   : > { %v5641_v31 = vpop.f32.mrf.mxu1  ;;  %5844 = vmatmul.mubr.msk.bf16.gmra.mxu1 %vm845_vm3, %v5329_v22  ;;  %v5676_v40 = vpop.f32.mrf.mxu0 }
 0x161   : > { %v8243_v0 = vadd.f32 %v1699_v63, %v1324_v34  ;;  %v1345_v21 = vadd.f32 %v5641_v31, %v9276_v4 }
 0x162   : > { %v1336_v35 = vpop.f32.mrf.mxu1  ;;  %v1715_v43 = vpop.f32.mrf.mxu0 }
 0x163   : > { %v8246_v26 = vadd.f32 %v5675_v44, %v1345_v21  ;;  %v1337_v12 = vadd.f32 %v1336_v35, %v9277_v45 }
 0x164   : > { %v5642_v3 = vpop.f32.mrf.mxu1  ;;  %v5715_v55 = vpop.f32.mrf.mxu0 }
 0x165   : > { %v8249_v9 = vadd.f32 %v1712_v24, %v1337_v12  ;;  %v1348_v58 = vadd.f32 %v5642_v3, %v9278_v28 }
 0x166   : > { %v1339_v51 = vpop.f32.mrf.mxu1  ;;  %v2570_v49 = vpop.f32.mrf.mxu0 }
 0x167   : > { %v8252_v5 = vadd.f32 %v5676_v40, %v1348_v58  ;;  %v1340_v62 = vadd.f32 %v1339_v51, %v9279_v2 }
 0x168   : > { %v5681_v38 = vpop.f32.mrf.mxu1  ;;  %v5716_v56 = vpop.f32.mrf.mxu0 }
 0x169   : > { %v8255_v53 = vadd.f32 %v1715_v43, %v1340_v62  ;;  %v2054_v50 = vadd.f32 %v5681_v38, %v9280_v36 }
 0x16a   : > { %v1925_v30 = vpop.f32.mrf.mxu1  ;;  %v2573_v63 = vpop.f32.mrf.mxu0 }
 0x16b   : > { %v8258_v54 = vadd.f32 %v5715_v55, %v2054_v50  ;;  %v2052_v37 = vadd.f32 %v1925_v30, %v7921_v39 }
 0x16c   : > { %v5682_v47 = vpop.f32.mrf.mxu1  ;;  %v5719_v44 = vpop.f32.mrf.mxu0 }
 0x16d   : > { %v8261_v22 = vadd.f32 %v2570_v49, %v2052_v37  ;;  %v2055_v6 = vadd.f32 %v5682_v47, %v7931_v57 }
 0x16e   : > { %v1928_v60 = vpop.f32.mrf.mxu1  ;;  %v2586_v15 = vpop.f32.mrf.mxu0 }
 0x16f   : > { %v8264_v24 = vadd.f32 %v5716_v56, %v2055_v6  ;;  %v2053_v32 = vadd.f32 %v1928_v60, %v7952_v29 }
 0x170   : > { %v5685_v34 = vpop.f32.mrf.mxu1  ;;  %v5720_v31 = vpop.f32.mrf.mxu0 }
 0x171   : > { %v8267_v40 = vadd.f32 %v2573_v63, %v2053_v32  ;;  %v2058_v4 = vadd.f32 %v5685_v34, %v7976_v18 }
 0x172   : > { %v1941_v21 = vpop.f32.mrf.mxu1  ;;  %v2589_v39 = vpop.f32.mrf.mxu0 }
 0x173   : > { %v8270_v35 = vadd.f32 %v5719_v44, %v2058_v4  ;;  %v2056_v43 = vadd.f32 %v1941_v21, %v7993_v27 }
 0x174   : > { %v5686_v45 = vpop.f32.mrf.mxu1  ;;  %v5723_v57 = vpop.f32.mrf.mxu0 }
 0x175   : > { %v8273_v12 = vadd.f32 %v2586_v15, %v2056_v43  ;;  %v2059_v3 = vadd.f32 %v5686_v45, %v8010_v61 }
 0x176   : > { %v1944_v55 = vpop.f32.mrf.mxu1  ;;  %v2602_v29 = vpop.f32.mrf.mxu0 }
 0x177   : > { %v8276_v28 = vadd.f32 %v5720_v31, %v2059_v3  ;;  %v2057_v58 = vadd.f32 %v1944_v55, %v8024_v46 }
 0x178   : > { %v5689_v51 = vpop.f32.mrf.mxu1  ;;  %v5724_v18 = vpop.f32.mrf.mxu0 }
 0x179   : > { %v8279_v49 = vadd.f32 %v2589_v39, %v2057_v58  ;;  %v2062_v2 = vadd.f32 %v5689_v51, %v8040_v11 }
 0x17a   : > { %v1957_v62 = vpop.f32.mrf.mxu1  ;;  %v2605_v27 = vpop.f32.mrf.mxu0 }
 0x17b   : > { %v8282_v38 = vadd.f32 %v5723_v57, %v2062_v2  ;;  %v2060_v56 = vadd.f32 %v1957_v62, %v8063_v20 }
 0x17c   : > { %v5690_v36 = vpop.f32.mrf.mxu1  ;;  %v5727_v61 = vpop.f32.mrf.mxu0 }
 0x17d   : > { %v8285_v50 = vadd.f32 %v2602_v29, %v2060_v56  ;;  %v2063_v30 = vadd.f32 %v5690_v36, %v8080_v14 }
 0x17e   : > { %v1960_v63 = vpop.f32.mrf.mxu1  ;;  %v2618_v46 = vpop.f32.mrf.mxu0 }
 0x17f   : > { %v8288_v37 = vadd.f32 %v5724_v18, %v2063_v30  ;;  %v2061_v47 = vadd.f32 %v1960_v63, %v8092_v33 }
 0x180   : > { %v5693_v44 = vpop.f32.mrf.mxu1  ;;  %v5728_v11 = vpop.f32.mrf.mxu0 }
 0x181   : > { %9281 = vst [vmem:[#allocation7_spill] sm:$0xff] %v8288_v37  ;;  %v8291_v6 = vadd.f32 %v2605_v27, %v2061_v47  ;;  %v2066_v60 = vadd.f32 %v5693_v44, %v8107_v42 }
 0x182   : > { %v1973_v15 = vpop.f32.mrf.mxu1  ;;  %v2621_v20 = vpop.f32.mrf.mxu0 }
 0x183   : > { %9282 = vst [vmem:[#allocation13_spill] sm:$0xff] %v8291_v6  ;;  %v8294_v32 = vadd.f32 %v5727_v61, %v2066_v60  ;;  %v2064_v34 = vadd.f32 %v1973_v15, %v8123_v13 }
 0x184   : > { %v5694_v31 = vpop.f32.mrf.mxu1  ;;  %v5731_v14 = vpop.f32.mrf.mxu0 }
 0x185   : > { %9283 = vst [vmem:[#allocation3_spill] sm:$0xff] %v8294_v32  ;;  %v8297_v4 = vadd.f32 %v2618_v46, %v2064_v34  ;;  %v2067_v21 = vadd.f32 %v5694_v31, %v8135_v23 }
 0x186   : > { %v1976_v39 = vpop.f32.mrf.mxu1  ;;  %v2634_v33 = vpop.f32.mrf.mxu0 }
 0x187   : > { %9284 = vst [vmem:[#allocation12_spill] sm:$0xff] %v8297_v4  ;;  %v8300_v43 = vadd.f32 %v5728_v11, %v2067_v21  ;;  %v2065_v45 = vadd.f32 %v1976_v39, %v8146_v41 }
 0x188   : > { %v5697_v57 = vpop.f32.mrf.mxu1  ;;  %v5732_v42 = vpop.f32.mrf.mxu0 }
 0x189   : > { %v8303_v3 = vadd.f32 %v2621_v20, %v2065_v45  ;;  %v2070_v55 = vadd.f32 %v5697_v57, %v8155_v1 }
 0x18a   : > { %v1989_v29 = vpop.f32.mrf.mxu1  ;;  %v2637_v13 = vpop.f32.mrf.mxu0 }
 0x18b   : > { %9285 = vst [vmem:[#allocation15_spill] sm:$0xff] %v8303_v3  ;;  %v8306_v58 = vadd.f32 %v5731_v14, %v2070_v55  ;;  %v2068_v51 = vadd.f32 %v1989_v29, %v8173_v7 }
 0x18c   : > { %v5698_v18 = vpop.f32.mrf.mxu1  ;;  %v5735_v23 = vpop.f32.mrf.mxu0 }
 0x18d   : > { %9286 = vst [vmem:[#allocation26_spill] sm:$0xff] %v8306_v58  ;;  %v8309_v2 = vadd.f32 %v2634_v33, %v2068_v51  ;;  %v2071_v62 = vadd.f32 %v5698_v18, %v8191_v16 }
 0x18e   : > { %v1992_v27 = vpop.f32.mrf.mxu1  ;;  %v2650_v41 = vpop.f32.mrf.mxu0 }
 0x18f   : > { %9287 = vst [vmem:[#allocation27_spill] sm:$0xff] %v8309_v2  ;;  %v8312_v56 = vadd.f32 %v5732_v42, %v2071_v62  ;;  %v2069_v36 = vadd.f32 %v1992_v27, %v8199_v17 }
 0x190   : > { %v5701_v61 = vpop.f32.mrf.mxu1  ;;  %v5736_v1 = vpop.f32.mrf.mxu0 }
 0x191   : > { %v8315_v30 = vadd.f32 %v2637_v13, %v2069_v36  ;;  %v2074_v63 = vadd.f32 %v5701_v61, %v8205_v25 }
 0x192   : > { %v2005_v46 = vpop.f32.mrf.mxu1  ;;  %v2653_v7 = vpop.f32.mrf.mxu0 }
 0x193   : > { %v8318_v47 = vadd.f32 %v5735_v23, %v2074_v63  ;;  %v2072_v44 = vadd.f32 %v2005_v46, %v8209_v19 }
 0x194   : > { %v5702_v11 = vpop.f32.mrf.mxu1  ;;  %v5739_v16 = vpop.f32.mrf.mxu0 }
 0x195   : > { %v8321_v60 = vadd.f32 %v2650_v41, %v2072_v44  ;;  %v2075_v15 = vadd.f32 %v5702_v11, %v8219_v48 }
 0x196   : > { %v2008_v20 = vpop.f32.mrf.mxu1  ;;  %v2666_v17 = vpop.f32.mrf.mxu0 }
 0x197   : > { %v8324_v34 = vadd.f32 %v5736_v1, %v2075_v15  ;;  %v2073_v31 = vadd.f32 %v2008_v20, %v8223_v59 }
 0x198   : > { %v5705_v14 = vpop.f32.mrf.mxu1  ;;  %v5740_v25 = vpop.f32.mrf.mxu0 }
 0x199   : > { %9288 = vst [vmem:[#allocation8_spill] sm:$0xff] %v8324_v34  ;;  %v8327_v21 = vadd.f32 %v2653_v7, %v2073_v31  ;;  %v2078_v39 = vadd.f32 %v5705_v14, %v8232_v10 }
 0x19a   : > { %v2021_v33 = vpop.f32.mrf.mxu1  ;;  %v2669_v19 = vpop.f32.mrf.mxu0 }
 0x19b   : > { %v8330_v45 = vadd.f32 %v5739_v16, %v2078_v39  ;;  %v2076_v57 = vadd.f32 %v2021_v33, %v8236_v52 }
 0x19c   : > { %v5706_v42 = vpop.f32.mrf.mxu1  ;;  %v5743_v48 = vpop.f32.mrf.mxu0 }
 0x19d   : > { %9289 = vst [vmem:[#allocation25_spill] sm:$0xff] %v8330_v45  ;;  %v8333_v55 = vadd.f32 %v2666_v17, %v2076_v57  ;;  %v2079_v29 = vadd.f32 %v5706_v42, %v8239_v8 }
 0x19e   : > { %v2024_v13 = vpop.f32.mrf.mxu1  ;;  %v2682_v59 = vpop.f32.mrf.mxu0 }
 0x19f   : > { %v8336_v51 = vadd.f32 %v5740_v25, %v2079_v29  ;;  %v2077_v18 = vadd.f32 %v2024_v13, %v8243_v0  ;;  %v4581_v29 = vlaneseq }
 0x1a0   : > { %v5709_v23 = vpop.f32.mrf.mxu1  ;;  %v5744_v10 = vpop.f32.mrf.mxu0 }
 0x1a1   : > { %v8339_v62 = vadd.f32 %v2669_v19, %v2077_v18  ;;  %v2082_v27 = vadd.f32 %v5709_v23, %v8246_v26 }
 0x1a2   : > { %v2037_v41 = vpop.f32.mrf.mxu1  ;;  %v2685_v52 = vpop.f32.mrf.mxu0 }
 0x1a3   : > { %v8342_v36 = vadd.f32 %v5743_v48, %v2082_v27  ;;  %v2080_v61 = vadd.f32 %v2037_v41, %v8249_v9 }
 0x1a4   : > { %v5710_v1 = vpop.f32.mrf.mxu1  ;;  %v8345_v8 = vpop.f32.mrf.mxu0 }
 0x1a5   : > { %v8347_v63 = vadd.f32 %v2682_v59, %v2080_v61  ;;  %v2083_v46 = vadd.f32 %v5710_v1, %v8252_v5 }
 0x1a6   : > { %v2040_v0 = vpop.f32.mrf.mxu1  ;;  %v8350_v7 = vpop.f32.mrf.mxu0 }
 0x1a7   : > { %v8352_v44 = vadd.f32 %v5744_v10, %v2083_v46  ;;  %v2081_v26 = vadd.f32 %v2040_v0, %v8255_v53  ;;  %v8397_v10 = vshrl.u32 %v4581_v29, 7 }
 0x1a8   : > { %v8355_v11 = vpop.f32.mrf.mxu1  ;;  %v8357_v16 = vpop.f32.mrf.mxu0 }
 0x1a9   : > { %v8359_v15 = vadd.f32 %v2685_v52, %v2081_v26  ;;  %v4584_v1 = vadd.s32 16, %v8397_v10  ;;  %v8411_v26 = vstv %s5387_s30  ;;  %v4585_v45 = vadd.s32 24, %v8397_v10 }
 0x1aa   : > { %v8361_v9 = vpop.f32.mrf.mxu1  ;;  %v8363_v20 = vpop.f32.mrf.mxu0  ;;  %v4583_v29 = vadd.s32 8, %v8397_v10  ;;  %v4588_v34 = vadd.s32 48, %v8397_v10 }
 0x1ac   : > { %v8365_v17 = vpop.f32.mrf.mxu1  ;;  %v8367_v5 = vpop.f32.mrf.mxu0  ;;  %v4616_v2 = vadd.s32 %v8411_v26, %v4583_v29  ;;  %v4621_v58 = vadd.s32 %v8411_v26, %v4588_v34  ;;  %v4593_v29 = vadd.s32 88, %v8397_v10  ;;  %v4591_v34 = vadd.s32 72, %v8397_v10 }
 0x1ae   : > { %v8369_v31 = vpop.f32.mrf.mxu1  ;;  %v8371_v14 = vpop.f32.mrf.mxu0  ;;  %vm4648_vm11 = vcmp.lt.s32.totalorder %v4616_v2, 2048  ;;  %vm4653_vm12 = vcmp.lt.s32.totalorder %v4621_v58, 2048 }
 0x1b0   : > { %v8373_v25 = vpop.f32.mrf.mxu1  ;;  %v8375_v53 = vpop.f32.mrf.mxu0 }
 0x1b2   : > { %v8377_v39 = vpop.f32.mrf.mxu1  ;;  %v8379_v33 = vpop.f32.mrf.mxu0 }
 0x1b3   : > { %9290 = vst [vmem:[#allocation19_spill] sm:$0xff] %v8379_v33  ;;  %v4618_v33 = vadd.s32 %v8411_v26, %v4585_v45  ;;  %v4590_v45 = vadd.s32 64, %v8397_v10 }
 0x1b4   : > { %v8381_v19 = vpop.f32.mrf.mxu1  ;;  %v8383_v57 = vpop.f32.mrf.mxu0 }
 0x1b5   : > { %9291 = vst [vmem:[#allocation5_spill] sm:$0xff] %v8383_v57  ;;  %v4615_v57 = vadd.s32 %v8411_v26, %v8397_v10  ;;  %vm4650_vm10 = vcmp.lt.s32.totalorder %v4618_v33, 2048 }
 0x1b6   : > { %v8385_v42 = vpop.f32.mrf.mxu1  ;;  %v8387_v48 = vpop.f32.mrf.mxu0 }
 0x1b7   : > { %9292 = vst [vmem:[#allocation24_spill] sm:$0xff] %v8387_v48  ;;  %vm4647_vm9 = vcmp.lt.s32.totalorder %v4615_v57, 2048  ;;  %v4624_v57 = vadd.s32 %v8411_v26, %v4591_v34  ;;  %v4597_v34 = vadd.s32 120, %v8397_v10 }
 0x1b8   : > { %v8389_v13 = vpop.f32.mrf.mxu1  ;;  %v8391_v59 = vpop.f32.mrf.mxu0 }
 0x1b9   : > { %9293 = vst [vmem:[#allocation18_spill] sm:$0xff] %v8391_v59  ;;  %v4617_v59 = vadd.s32 %v8411_v26, %v4584_v1  ;;  %v4587_v1 = vadd.s32 40, %v8397_v10  ;;  %vm4656_vm4 = vcmp.lt.s32.totalorder %v4624_v57, 2048 }
 0x1ba   : > { %v8393_v18 = vpop.f32.mrf.mxu1  ;;  %v8395_v23 = vpop.f32.mrf.mxu0 }
 0x1bb   : > { %9294 = vst [vmem:[#allocation17_spill] sm:$0xff] %v8393_v18  ;;  %9295 = vst [vmem:[#allocation28_spill] sm:$0xff] %v8395_v23  ;;  %vm4649_vm8 = vcmp.lt.s32.totalorder %v4617_v59, 2048 }
 0x1bc   : > { %v8399_v27 = vpop.f32.mrf.mxu1  ;;  %v8401_v41 = vpop.f32.mrf.mxu0 }
 0x1bd   : > { %9296 = vst [vmem:[#allocation35_spill] sm:$0xff] %v8399_v27  ;;  %9297 = vst [vmem:[#allocation42_spill] sm:$0xff] %v8401_v41 }
 0x1be   : > { %v8404_v52 = vpop.f32.mrf.mxu1  ;;  %v8406_v61 = vpop.f32.mrf.mxu0 }
 0x1bf   : > { %9298 = vst [vmem:[#allocation30_spill] sm:$0xff] %v8404_v52  ;;  %9299 = vst [vmem:[#allocation31_spill] sm:$0xff] %v8406_v61  ;;  %v4620_v52 = vadd.s32 %v8411_v26, %v4587_v1  ;;  %v4594_v1 = vadd.s32 96, %v8397_v10 }
 0x1c0   : > { %v8409_v46 = vpop.f32.mrf.mxu1  ;;  %v5796_v0 = vpop.f32.mrf.mxu0 }
 0x1c1   : > { %9300 = vst [vmem:[#allocation33_spill] sm:$0xff] %v8409_v46  ;;  %v4592_v46 = vadd.s32 80, %v8397_v10  ;;  %vm4652_vm15 = vcmp.lt.s32.totalorder %v4620_v52, 2048 }
 0x1c2   : > { %v8416_v23 = vpop.f32.mrf.mxu1  ;;  %v8418_v41 = vpop.f32.mrf.mxu0 }
 0x1c3   : > { %9301 = vst [vmem:[#allocation44_spill] sm:$0xff] %v8416_v23  ;;  %9302 = vst [vmem:[#allocation9_spill] sm:$0xff] %v8418_v41  ;;  %v4586_v23 = vadd.s32 32, %v8397_v10  ;;  %v4589_v41 = vadd.s32 56, %v8397_v10 }
 0x1c4   : > { %v5762_v61 = vpop.f32.mrf.mxu1  ;;  %v8421_v48 = vpop.f32.mrf.mxu0 }
 0x1c5   : > { %9303 = vst [vmem:[#allocation39_spill] sm:$0xff] %v8421_v48  ;;  %v3117_v3 = vadd.f32 %v5762_v61, %v8300_v43 }
 0x1c6   : > { %v8432_v4 = vpop.f32.mrf.mxu1  ;;  %v8434_v48 = vpop.f32.mrf.mxu0 }
 0x1c7   : > { %9304 = vst [vmem:[#allocation34_spill] sm:$0xff] %v8432_v4  ;;  %9305 = vst [vmem:[#allocation6_spill] sm:$0xff] %v8434_v48  ;;  %v8440_v32 = vadd.f32 %v5796_v0, %v3117_v3  ;;  %v4619_v48 = vadd.s32 %v8411_v26, %v4586_v23  ;;  %v4622_v4 = vadd.s32 %v8411_v26, %v4589_v41  ;;  %v4596_v41 = vadd.s32 112, %v8397_v10 }
 0x1c8   : > { %v8442_v43 = vpop.f32.mrf.mxu1  ;;  %v5800_v61 = vpop.f32.mrf.mxu0  ;;  %v4625_v3 = vadd.s32 %v8411_v26, %v4592_v46  ;;  %v4623_v0 = vadd.s32 %v8411_v26, %v4590_v45 }
 0x1c9   : > { %9306 = vst [vmem:[#allocation40_spill] sm:$0xff] %v8440_v32  ;;  %9307 = vst [vmem:[#allocation41_spill] sm:$0xff] %v8442_v43  ;;  %v4626_v32 = vadd.s32 %v8411_v26, %v4593_v29  ;;  %v9057_v43 = vmov 0.0   ;;  %vm4651_vm13 = vcmp.lt.s32.totalorder %v4619_v48, 2048  ;;  %vm4654_vm14 = vcmp.lt.s32.totalorder %v4622_v4, 2048 }
 0x1ca   : > { %v8447_v6 = vpop.f32.mrf.mxu1  ;;  %v3367_v27 = vpop.f32.mrf.mxu0  ;;  %v8455_v37 = vsel %vm4649_vm8, 1.0, %v9057_v43  ;;  %v8458_v23 = vsel %vm4647_vm9, 1.0, %v9057_v43  ;;  %v8464_v45 = vsel %vm4650_vm10, 1.0, %v9057_v43  ;;  %v8468_v29 = vsel %vm4648_vm11, 1.0, %v9057_v43 }
 0x1cb   : > { %9308 = vst [vmem:[#allocation14_spill] sm:$0xff] %v8447_v6  ;;  %9309 = vst [vmem:[#allocation32_spill] sm:$0xff] %v8455_v37  ;;  %v8472_v59 = vsel %vm4653_vm12, 1.0, %v9057_v43  ;;  %vm4657_vm0 = vcmp.lt.s32.totalorder %v4625_v3, 2048  ;;  %vm4655_vm1 = vcmp.lt.s32.totalorder %v4623_v0, 2048  ;;  %vm4658_vm2 = vcmp.lt.s32.totalorder %v4626_v32, 2048 }
 0x1cc   : > { %9310 = vst [vmem:[#allocation20_spill] sm:$0xff] %v8458_v23  ;;  %v5766_v6 = vpop.f32.mrf.mxu1  ;;  %v5803_v46 = vpop.f32.mrf.mxu0  ;;  %9311 = vst [vmem:[#allocation37_spill] sm:$0xff] %v8468_v29  ;;  %v4629_v58 = vadd.s32 %v8411_v26, %v4596_v41  ;;  %v4627_v43 = vadd.s32 %v8411_v26, %v4594_v1  ;;  %v4630_v48 = vadd.s32 %v8411_v26, %v4597_v34  ;;  %v4600_v41 = vadd.s32 144, %v8397_v10 }
 0x1cd   : > { %9312 = vst [vmem:[#allocation10_spill] sm:$0xff] %v8472_v59  ;;  %v3121_v23 = vadd.f32 %v5766_v6, %v8312_v56  ;;  %v9315_v6 = vmov 0.0   ;;  %v4598_v32 = vadd.s32 128, %v8397_v10 }
 0x1ce   : > { %v3042_v37 = vpop.f32.mrf.mxu1  ;;  %v3380_v18 = vpop.f32.mrf.mxu0  ;;  %v8484_v4 = vsel %vm4651_vm13, 1.0, %v9315_v6  ;;  %v8487_v56 = vsel %vm4654_vm14, 1.0, %v9315_v6  ;;  %v8505_v34 = vsel %vm4655_vm1, 1.0, %v9315_v6  ;;  %vm4661_vm5 = vcmp.lt.s32.totalorder %v4629_v58, 2048 }
 0x1cf   : > { %v8476_v2 = vadd.f32 %v5800_v61, %v3121_v23  ;;  %v3119_v33 = vadd.f32 %v3042_v37, %v8315_v30  ;;  %9316 = vst [vmem:[#allocation29_spill] sm:$0xff] %v8484_v4  ;;  %9317 = vst [vmem:[#allocation36_spill] sm:$0xff] %v8487_v56  ;;  %v4595_v61 = vadd.s32 104, %v8397_v10  ;;  %v8496_v30 = vsel %vm4652_vm15, 1.0, %v9315_v6 }
 0x1d0   : > { %v5769_v59 = vpop.f32.mrf.mxu1  ;;  %v8481_v29 = vpop.f32.mrf.mxu0  ;;  %9319 = vst [vmem:[#allocation47_spill] sm:$0xff] %v8496_v30  ;;  %9321 = vst [vmem:[#allocation45_spill] sm:$0xff] %v8505_v34  ;;  %vm4659_vm6 = vcmp.lt.s32.totalorder %v4627_v43, 2048  ;;  %vm4662_vm7 = vcmp.lt.s32.totalorder %v4630_v48, 2048 }
 0x1d1   : > { %9313 = vst [vmem:[#allocation23_spill] sm:$0xff] %v8476_v2  ;;  %9314 = vst [vmem:[#allocation38_spill] sm:$0xff] %v8481_v29  ;;  %v8491_v23 = vadd.f32 %v3367_v27, %v3119_v33  ;;  %v3124_v37 = vadd.f32 %v5769_v59, %v8318_v47  ;;  %v8501_v2 = vsel %vm4657_vm0, 1.0, %v9315_v6  ;;  %v8509_v27 = vsel %vm4658_vm2, 1.0, %v9315_v6 }
 0x1d2   : > { %v3055_v1 = vpop.f32.mrf.mxu1  ;;  %v3383_v29 = vpop.f32.mrf.mxu0  ;;  %9320 = vst [vmem:[#allocation43_spill] sm:$0xff] %v8501_v2  ;;  %9322 = vst [vmem:[#allocation48_spill] sm:$0xff] %v8509_v27  ;;  %v8513_v47 = vsel %vm4656_vm4, 1.0, %v9315_v6  ;;  %v4628_v0 = vadd.s32 %v8411_v26, %v4595_v61  ;;  %v4603_v61 = vadd.s32 168, %v8397_v10  ;;  %v4608_v27 = vadd.s32 208, %v8397_v10 }
 0x1d3   : > { %9318 = vst [vmem:[#allocation46_spill] sm:$0xff] %v8491_v23  ;;  %9323 = vst [vmem:[#allocation49_spill] sm:$0xff] %v8513_v47  ;;  %v8515_v52 = vadd.f32 %v5803_v46, %v3124_v37  ;;  %v3122_v59 = vadd.f32 %v3055_v1, %v8321_v60  ;;  %v4601_v23 = vadd.s32 152, %v8397_v10  ;;  %v4633_v46 = vadd.s32 %v8411_v26, %v4600_v41 }
 0x1d4   : > { %v8518_v3 = vpop.f32.mrf.mxu1  ;;  %v8520_v33 = vpop.f32.mrf.mxu0  ;;  %v4599_v37 = vadd.s32 136, %v8397_v10  ;;  %v4604_v60 = vadd.s32 176, %v8397_v10  ;;  %v4602_v47 = vadd.s32 160, %v8397_v10  ;;  %v8541_v41 = vsel %vm4659_vm6, 1.0, %v9315_v6 }
 0x1d5   : > { %9324 = vst [vmem:[#allocation50_spill] sm:$0xff] %v8515_v52  ;;  %9325 = vst [vmem:[#allocation51_spill] sm:$0xff] %v8520_v33  ;;  %v8525_v57 = vadd.f32 %v3380_v18, %v3122_v59  ;;  %v4605_v33 = vadd.s32 184, %v8397_v10  ;;  %v8537_v18 = vsel %vm4661_vm5, 1.0, %v9315_v6  ;;  %v4606_v59 = vadd.s32 192, %v8397_v10 }
 0x1d6   : > { %v3058_v1 = vpop.f32.mrf.mxu1  ;;  %v3396_v52 = vpop.f32.mrf.mxu0  ;;  %9327 = vst [vmem:[#allocation2_spill] sm:$0xff] %v8537_v18  ;;  %9328 = vst [vmem:[#allocation16_spill] sm:$0xff] %v8541_v41  ;;  %v8548_v30 = vsel %vm4662_vm7, 1.0, %v9315_v6  ;;  %vm4660_vm8 = vcmp.lt.s32.totalorder %v4628_v0, 2048  ;;  %v4634_v58 = vadd.s32 %v8411_v26, %v4601_v23  ;;  %vm4665_vm9 = vcmp.lt.s32.totalorder %v4633_v46, 2048 }
 0x1d7   : > { %9326 = vst [vmem:[#allocation52_spill] sm:$0xff] %v8525_v57  ;;  %v3123_v34 = vadd.f32 %v3058_v1, %v8327_v21  ;;  %9329 = vst [vmem:[#allocation11_spill] sm:$0xff] %v8548_v30  ;;  %v4631_v21 = vadd.s32 %v8411_v26, %v4598_v32  ;;  %v4632_v43 = vadd.s32 %v8411_v26, %v4599_v37 }
 0x1d8   : > { %v8544_v57 = vpop.f32.mrf.mxu1  ;;  %v5808_v2 = vpop.f32.mrf.mxu0  ;;  %v4637_v41 = vadd.s32 %v8411_v26, %v4604_v60  ;;  %v4635_v4 = vadd.s32 %v8411_v26, %v4602_v47  ;;  %v4638_v48 = vadd.s32 %v8411_v26, %v4605_v33  ;;  %v4636_v30 = vadd.s32 %v8411_v26, %v4603_v61 }
 0x1d9   : > { %v8552_v1 = vadd.f32 %v3383_v29, %v3123_v34  ;;  %v4641_v0 = vadd.s32 %v8411_v26, %v4608_v27  ;;  %v8562_v29 = vsel %vm4660_vm8, 1.0, %v9315_v6  ;;  %v4639_v23 = vadd.s32 %v8411_v26, %v4606_v59 }
 0x1da   : > { %v3071_v18 = vpop.f32.mrf.mxu1  ;;  %v3399_v56 = vpop.f32.mrf.mxu0  ;;  %v4609_v34 = vadd.s32 216, %v8397_v10  ;;  %v8567_v47 = vsel %vm4665_vm9, 1.0, %v9315_v6  ;;  %vm4663_vm10 = vcmp.lt.s32.totalorder %v4631_v21, 2048  ;;  %vm4666_vm11 = vcmp.lt.s32.totalorder %v4634_v58, 2048 }
 0x1db   : > { %9330 = vst [vmem:[#allocation21_spill] sm:$0xff] %v8552_v1  ;;  %v3126_v32 = vadd.f32 %v3071_v18, %v8333_v55  ;;  %v4607_v33 = vadd.s32 200, %v8397_v10  ;;  %vm4664_vm12 = vcmp.lt.s32.totalorder %v4632_v43, 2048  ;;  %vm4669_vm13 = vcmp.lt.s32.totalorder %v4637_v41, 2048 }
 0x1dc   : > { %v5774_v46 = vpop.f32.mrf.mxu1  ;;  %v5811_v37 = vpop.f32.mrf.mxu0  ;;  %vm4667_vm14 = vcmp.lt.s32.totalorder %v4635_v4, 2048  ;;  %vm4670_vm15 = vcmp.lt.s32.totalorder %v4638_v48, 2048  ;;  %vm4668_vm0 = vcmp.lt.s32.totalorder %v4636_v30, 2048  ;;  %vm4673_vm1 = vcmp.lt.s32.totalorder %v4641_v0, 2048 }
 0x1dd   : > { %v8570_v27 = vadd.f32 %v3396_v52, %v3126_v32  ;;  %v3129_v55 = vadd.f32 %v5774_v46, %v8336_v51  ;;  %vm4671_vm2 = vcmp.lt.s32.totalorder %v4639_v23, 2048  ;;  %v4642_v52 = vadd.s32 %v8411_v26, %v4609_v34 }
 0x1de   : > { %v3074_v60 = vpop.f32.mrf.mxu1  ;;  %v3412_v61 = vpop.f32.mrf.mxu0  ;;  %v8580_v51 = vsel %vm4663_vm10, 1.0, %v9315_v6  ;;  %v8584_v46 = vsel %vm4666_vm11, 1.0, %v9315_v6  ;;  %v8588_v1 = vsel %vm4664_vm12, 1.0, %v9315_v6  ;;  %v8602_v21 = vsel %vm4669_vm13, 1.0, %v9315_v6 }
 0x1df   : > { %9331 = vst [vmem:[#allocation22_spill] sm:$0xff] %v8570_v27  ;;  %v8574_v18 = vadd.f32 %v5808_v2, %v3129_v55  ;;  %v3127_v59 = vadd.f32 %v3074_v60, %v8339_v62  ;;  %v4640_v2 = vadd.s32 %v8411_v26, %v4607_v33  ;;  %v8606_v58 = vsel %vm4667_vm14, 1.0, %v9315_v6 }
 0x1e0   : > { %v5777_v32 = vpop.f32.mrf.mxu1  ;;  %v5812_v27 = vpop.f32.mrf.mxu0  ;;  %v8618_v41 = vsel %vm4673_vm1, 1.0, %v9315_v6  ;;  %v8622_v4 = vsel %vm4671_vm2, 1.0, %v9315_v6  ;;  %v3104_v33 = vadd.f32 %v8355_v11, %v8258_v54  ;;  %vm4674_vm4 = vcmp.lt.s32.totalorder %v4642_v52, 2048 }
 0x1e1   : > { %v8591_v62 = vadd.f32 %v3399_v56, %v3127_v59  ;;  %v3132_v34 = vadd.f32 %v5777_v32, %v8342_v36  ;;  %v8610_v56 = vsel %vm4670_vm15, 1.0, %v9315_v6  ;;  %v8614_v36 = vsel %vm4668_vm0, 1.0, %v9315_v6  ;;  %9334 = vst [vmem:[#allocation53_spill] sm:$0xff] %v8618_v41 }
 0x1e2   : > { %v3087_v43 = vpop.f32.mrf.mxu1  ;;  %v3415_v55 = vpop.f32.mrf.mxu0  ;;  %v3102_v30 = vadd.f32 %v8361_v9, %v8261_v22  ;;  %vm4672_vm5 = vcmp.lt.s32.totalorder %v4640_v2, 2048  ;;  %v4612_v32 = vadd.s32 240, %v8397_v10  ;;  %v4610_v23 = vadd.s32 224, %v8397_v10 }
 0x1e3   : > { %9332 = vst [vmem:[#allocation4_spill] sm:$0xff] %v8591_v62  ;;  %v8626_v48 = vadd.f32 %v5811_v37, %v3132_v34  ;;  %v3130_v60 = vadd.f32 %v3087_v43, %v8347_v63  ;;  %v3105_v41 = vadd.f32 %v8365_v17, %v8264_v24  ;;  %v4613_v22 = vadd.s32 248, %v8397_v10  ;;  %v8685_v43 = vld [vmem:[%s9006_s4] ss:$0 sm:$0xff] }
 0x1e4   : > { %v5778_v0 = vpop.f32.mrf.mxu1  ;;  %v5851_v59 = vpop.f32.mrf.mxu0  ;;  %v3103_v63 = vadd.f32 %v8369_v31, %v8267_v40  ;;  %v3108_v11 = vadd.f32 %v8373_v25, %v8270_v35  ;;  %v3106_v9 = vadd.f32 %v8377_v39, %v8273_v12  ;;  %v3429_v37 = vadd.f32 %v8345_v8, %v3104_v33 }
 0x1e5   : > { %v8635_v62 = vadd.f32 %v3412_v61, %v3130_v60  ;;  %v3133_v54 = vadd.f32 %v5778_v0, %v8352_v44  ;;  %v8653_v44 = vsel %vm4674_vm4, 1.0, %v9315_v6  ;;  %v3109_v61 = vadd.f32 %v8381_v19, %v8276_v28 }
 0x1e6   : > { %v3090_v24 = vpop.f32.mrf.mxu1  ;;  %v4350_v17 = vpop.f32.mrf.mxu0  ;;  %v3427_v35 = vadd.f32 %v8350_v7, %v3102_v30  ;;  %v8664_v25 = vsel %vm4672_vm5, 1.0, %v9315_v6  ;;  %v8667_v39 = vadd.s32 %v8411_v26, %v4612_v32  ;;  %v8670_v8 = vadd.s32 %v8411_v26, %v4610_v23  ;;  %v9338_v32 = vld [vmem:[#allocation7_spill] sm:$0xff] }
 0x1e7   : > { %v8658_v34 = vadd.f32 %v5812_v27, %v3133_v54  ;;  %v3131_v40 = vadd.f32 %v3090_v24, %v8359_v15  ;;  %9335 = vst [vmem:[#allocation54_spill] sm:$0xff] %v8664_v25  ;;  %v3430_v28 = vadd.f32 %v8357_v16, %v3105_v41  ;;  %v8677_v7 = vadd.s32 %v8411_v26, %v4613_v22  ;;  %v9339_v23 = vld [vmem:[#allocation35_spill] sm:$0xff]  ;;  %v9340_v22 = vld [vmem:[#allocation13_spill] sm:$0xff]  ;;  %v9345_v24 = vld [vmem:[#allocation44_spill] sm:$0xff] }
 0x1e8   : > { %v5817_v31 = vpop.f32.mrf.mxu1  ;;  %v5852_v12 = vpop.f32.mrf.mxu0  ;;  %v3428_v15 = vadd.f32 %v8363_v20, %v3103_v63  ;;  %v3433_v52 = vadd.f32 %v8367_v5, %v3108_v11  ;;  %v3431_v2 = vadd.f32 %v8371_v14, %v3106_v9  ;;  %v3434_v41 = vadd.f32 %v8375_v53, %v3109_v61  ;;  %v9337_v14 = vld [vmem:[#allocation17_spill] sm:$0xff]  ;;  %v9341_v63 = vld [vmem:[#allocation30_spill] sm:$0xff]  ;;  %v9344_v9 = vld [vmem:[#allocation12_spill] sm:$0xff] }
 0x1e9   : > { %v8673_v19 = vadd.f32 %v3415_v55, %v3131_v40  ;;  %v4074_v27 = vadd.f32 %v5817_v31, %v3429_v37  ;;  %v8688_v55 = vadd.s32 232, %v8397_v10  ;;  %v3107_v60 = vadd.f32 %v8385_v42, %v8279_v49  ;;  %v9342_v42 = vld [vmem:[#allocation3_spill] sm:$0xff]  ;;  %v9347_v40 = vld [vmem:[#allocation34_spill] sm:$0xff] }
 0x1ea   : > { %v3945_v33 = vpop.f32.mrf.mxu1  ;;  %v4353_v16 = vpop.f32.mrf.mxu0  ;;  %v3112_v5 = vadd.f32 %v8389_v13, %v8282_v38  ;;  %v3110_v0 = vadd.f32 %v9337_v14, %v8285_v50  ;;  %v3113_v54 = vadd.f32 %v9339_v23, %v9338_v32  ;;  %v3111_v10 = vadd.f32 %v9341_v63, %v9340_v22  ;;  %v9346_v61 = vld [vmem:[#allocation15_spill] sm:$0xff]  ;;  %v9348_v31 = vld [vmem:[#allocation26_spill] sm:$0xff] }
 0x1eb   : > { %9336 = vst [vmem:[#allocation55_spill] sm:$0xff] %v8673_v19  ;;  %v4479_v20 = vadd.f32 %v5851_v59, %v4074_v27  ;;  %v4072_v30 = vadd.f32 %v3945_v33, %v3427_v35  ;;  %v9343_v59 = vld [vmem:[#allocation33_spill] sm:$0xff]  ;;  %v3114_v37 = vadd.f32 %v9345_v24, %v9344_v9  ;;  %v3115_v35 = vadd.f32 %v9347_v40, %v9346_v61  ;;  %v9350_v14 = vld [vmem:[#allocation27_spill] sm:$0xff]  ;;  %v9351_v32 = vld [vmem:[#allocation14_spill] sm:$0xff] }
 0x1ec   : > { %v5818_v49 = vpop.f32.mrf.mxu1  ;;  %v5855_v53 = vpop.f32.mrf.mxu0  ;;  %v3116_v38 = vadd.f32 %v9343_v59, %v9342_v42  ;;  %v9349_v27 = vld [vmem:[#allocation41_spill] sm:$0xff]  ;;  %v3118_v23 = vadd.f32 %v9351_v32, %v9350_v14  ;;  %v9353_v42 = vld [vmem:[#allocation19_spill] sm:$0xff]  ;;  %v9355_v61 = vld [vmem:[#allocation24_spill] sm:$0xff]  ;;  %vm4675_vm6 = vcmp.lt.s32.totalorder %v8670_v8, 2048  ;;  %vm4677_vm7 = vcmp.lt.s32.totalorder %v8667_v39, 2048 }
 0x1ed   : > { %v4518_v13 = vadd.f32 %v8685_v43, %v4479_v20  ;;  %v4477_v50 = vadd.f32 %v4350_v17, %v4072_v30  ;;  %v4075_v11 = vadd.f32 %v5818_v49, %v3430_v28  ;;  %v3120_v33 = vadd.f32 %v9349_v27, %v9348_v31  ;;  %v9352_v20 = vld [vmem:[#allocation32_spill] sm:$0xff]  ;;  %v9354_v9 = vld [vmem:[#allocation5_spill] sm:$0xff]  ;;  %v9356_v31 = vld [vmem:[#allocation18_spill] sm:$0xff] }
 0x1ee   : > { %v3948_v22 = vpop.f32.mrf.mxu1  ;;  %v4366_v63 = vpop.f32.mrf.mxu0  ;;  %v3432_v59 = vadd.f32 %v9353_v42, %v3107_v60  ;;  %v3437_v24 = vadd.f32 %v9354_v9, %v3112_v5  ;;  %v8724_v40 = vadd.f32 %v9355_v61, %v3110_v0  ;;  %v8727_v27 = vadd.f32 %v9356_v31, %v3113_v54  ;;  %v9357_v19 = vld [vmem:[#allocation28_spill] sm:$0xff]  ;;  %v9359_v60 = vld [vmem:[#allocation31_spill] sm:$0xff]  ;;  %v9361_v61 = vld [vmem:[#allocation9_spill] sm:$0xff] }
 0x1ef   : > { %4550 = vst.msk [vmem:[%s8704_s14 + $0x10] sm:$0xff] %vm845_vm3, %v4518_v13  ;;  %v4745_v17 = vmul.f32 %v9352_v20, %v4518_v13  ;;  %v4516_v28 = vadd.f32 %v8685_v43, %v4477_v50  ;;  %v4480_v30 = vadd.f32 %v5852_v12, %v4075_v11  ;;  %v4073_v49 = vadd.f32 %v3948_v22, %v3428_v15  ;;  %v9358_v20 = vld [vmem:[#allocation42_spill] sm:$0xff]  ;;  %v9360_v0 = vld [vmem:[#allocation20_spill] sm:$0xff] }
 0x1f0   : > { %v5821_v14 = vpop.f32.mrf.mxu1  ;;  %v5856_v32 = vpop.f32.mrf.mxu0  ;;  %v8730_v25 = vadd.f32 %v9357_v19, %v3111_v10  ;;  %v8733_v50 = vadd.f32 %v9358_v20, %v3116_v38  ;;  %v8739_v5 = vadd.f32 %v9359_v60, %v3114_v37  ;;  %v8743_v19 = vadd.f32 %v9361_v61, %v3115_v35  ;;  %v9362_v10 = vld [vmem:[#allocation39_spill] sm:$0xff]  ;;  %v9365_v60 = vld [vmem:[#allocation25_spill] sm:$0xff] }
 0x1f1   : > { %v4846_v12 = vmul.f32 %v4745_v17, %v4518_v13  ;;  %4548 = vst.msk [vmem:[%s8704_s14] sm:$0xff] %vm845_vm3, %v4516_v28  ;;  %v4519_v15 = vadd.f32 %v8685_v43, %v4480_v30  ;;  %v4743_v54 = vmul.f32 %v9360_v0, %v4516_v28  ;;  %v4478_v11 = vadd.f32 %v4353_v16, %v4073_v49  ;;  %v9363_v13 = vld [vmem:[#allocation6_spill] sm:$0xff]  ;;  %v9364_v30 = vld [vmem:[#allocation8_spill] sm:$0xff] }
 0x1f2   : > { %v4078_v22 = vadd.f32 %v5821_v14, %v3433_v52  ;;  %v3961_v42 = vpop.f32.mrf.mxu1  ;;  %v4369_v9 = vpop.f32.mrf.mxu0  ;;  %v8746_v38 = vadd.f32 %v9362_v10, %v3120_v33  ;;  %v8749_v31 = vadd.f32 %v9363_v13, %v3118_v23  ;;  %v8756_v16 = vadd.f32 %v8518_v3, %v9364_v30  ;;  %v9366_v3 = vld [vmem:[#allocation37_spill] sm:$0xff] }
 0x1f3   : > { %4551 = vst.msk [vmem:[%s8704_s14 + $0x18] sm:$0xff] %vm845_vm3, %v4519_v15  ;;  %v4746_v37 = vmul.f32 %v8464_v45, %v4519_v15  ;;  %v4517_v52 = vadd.f32 %v8685_v43, %v4478_v11  ;;  %v4076_v35 = vadd.f32 %v3961_v42, %v3431_v2  ;;  %v8761_v33 = vadd.f32 %v8544_v57, %v9365_v60 }
 0x1f4   : > { %v4483_v49 = vadd.f32 %v5855_v53, %v4078_v22  ;;  %v5822_v14 = vpop.f32.mrf.mxu1  ;;  %v5859_v20 = vpop.f32.mrf.mxu0  ;;  %v4778_v23 = vsel %vm845_vm3, %v4745_v17, 0.0  ;;  %v4879_v0 = vsel %vm845_vm3, %v4846_v12, 0.0  ;;  %v4844_v61 = vmul.f32 %v4743_v54, %v4516_v28 }
 0x1f5   : > { %v4079_v45 = vadd.f32 %v5822_v14, %v3434_v41  ;;  %4549 = vst.msk [vmem:[%s8704_s14 + $0x8] sm:$0xff] %vm845_vm3, %v4517_v52  ;;  %v4744_v10 = vmul.f32 %v9366_v3, %v4517_v52  ;;  %v4481_v2 = vadd.f32 %v4366_v63, %v4076_v35  ;;  %v4775_v42 = vsel %vm845_vm3, %v4743_v54, 0.0  ;;  %v9367_v41 = vld [vmem:[#allocation10_spill] sm:$0xff] }
 0x1f6   : > { %v4522_v53 = vadd.f32 %v8685_v43, %v4483_v49  ;;  %v3964_v11 = vpop.f32.mrf.mxu1  ;;  %v4382_v22 = vpop.f32.mrf.mxu0  ;;  %v4847_v57 = vmul.f32 %v4746_v37, %v4519_v15  ;;  %vm4678_vm8 = vcmp.lt.s32.totalorder %v8677_v7, 2048  ;;  %vm4945_vm10 = vcmask 1040384  }
 0x1f7   : > { %v4484_v13 = vadd.f32 %v5856_v32, %v4079_v45  ;;  %v4077_v17 = vadd.f32 %v3964_v11, %v3432_v59  ;;  %v4776_v30 = vsel %vm845_vm3, %v4744_v10, 0.0  ;;  %v4845_v12 = vmul.f32 %v4744_v10, %v4517_v52  ;;  %v9368_v52 = vld [vmem:[#allocation29_spill] sm:$0xff] }
 0x1f8   : > { %4554 = vst.msk [vmem:[%s8704_s14 + $0x30] sm:$0xff] %vm845_vm3, %v4522_v53  ;;  %v4749_v28 = vmul.f32 %v9367_v41, %v4522_v53  ;;  %v4520_v14 = vadd.f32 %v8685_v43, %v4481_v2  ;;  %v5825_v49 = vpop.f32.mrf.mxu1  ;;  %v5860_v63 = vpop.f32.mrf.mxu0  ;;  %v4777_v35 = vadd.f32 %v4776_v30, %v4775_v42  ;;  %v4876_v32 = vsel %vm845_vm3, %v4844_v61, 0.0  ;;  %v9369_v42 = vld [vmem:[#allocation36_spill] sm:$0xff] }
 0x1f9   : > { %v4523_v60 = vadd.f32 %v8685_v43, %v4484_v13  ;;  %v4482_v54 = vadd.f32 %v4369_v9, %v4077_v17  ;;  %v4082_v15 = vadd.f32 %v5825_v49, %v3437_v24  ;;  %v4877_v59 = vsel %vm845_vm3, %v4845_v12, 0.0 }
 0x1fa   : > { %v4850_v45 = vmul.f32 %v4749_v28, %v4522_v53  ;;  %4552 = vst.msk [vmem:[%s8704_s14 + $0x20] sm:$0xff] %vm845_vm3, %v4520_v14  ;;  %v4747_v3 = vmul.f32 %v9368_v52, %v4520_v14  ;;  %v3977_v10 = vpop.f32.mrf.mxu1  ;;  %v4385_v11 = vpop.f32.mrf.mxu0  ;;  %v4779_v2 = vadd.f32 %v4778_v23, %v4777_v35  ;;  %v4878_v41 = vadd.f32 %v4877_v59, %v4876_v32 }
 0x1fb   : > { %4555 = vst.msk [vmem:[%s8704_s14 + $0x38] sm:$0xff] %vm845_vm3, %v4523_v60  ;;  %v4750_v13 = vmul.f32 %v9369_v42, %v4523_v60  ;;  %v4521_v24 = vadd.f32 %v8685_v43, %v4482_v54  ;;  %v4780_v9 = vsel %vm845_vm3, %v4746_v37, 0.0  ;;  %v4881_v61 = vsel %vm845_vm3, %v4847_v57, 0.0  ;;  %v9370_v54 = vld [vmem:[#allocation47_spill] sm:$0xff] }
 0x1fc   : > { %v4848_v53 = vmul.f32 %v4747_v3, %v4520_v14  ;;  %v4487_v17 = vadd.f32 %v5859_v20, %v4082_v15  ;;  %v5826_v30 = vpop.f32.mrf.mxu1  ;;  %v4880_v49 = vadd.f32 %v4879_v0, %v4878_v41  ;;  %v4786_v52 = vsel %vm845_vm3, %v4749_v28, 0.0 }
 0x1fd   : > { %v4887_v23 = vsel %vm845_vm3, %v4850_v45, 0.0  ;;  %v4781_v35 = vadd.f32 %v4780_v9, %v4779_v2  ;;  %4553 = vst.msk [vmem:[%s8704_s14 + $0x28] sm:$0xff] %vm845_vm3, %v4521_v24  ;;  %v4782_v32 = vsel %vm845_vm3, %v4747_v3, 0.0  ;;  %v4748_v59 = vmul.f32 %v9370_v54, %v4521_v24 }
 0x1fe   : > { %v5863_v12 = vpop.f32.mrf.mxu0  ;;  %v4526_v37 = vadd.f32 %v8685_v43, %v4487_v17  ;;  %v4080_v57 = vadd.f32 %v3977_v10, %v8724_v40  ;;  %v3980_v20 = vpop.f32.mrf.mxu1  ;;  %v4882_v0 = vadd.f32 %v4881_v61, %v4880_v49  ;;  %v4851_v41 = vmul.f32 %v4750_v13, %v4523_v60  ;;  %v9371_v61 = vld [vmem:[#allocation43_spill] sm:$0xff] }
 0x1ff   : > { %v4783_v15 = vadd.f32 %v4782_v32, %v4781_v35  ;;  %v4083_v28 = vadd.f32 %v5826_v30, %v8727_v27  ;;  %v4883_v45 = vsel %vm845_vm3, %v4848_v53, 0.0  ;;  %v4784_v2 = vsel %vm845_vm3, %v4748_v59, 0.0 }
 0x200   : > { %v4398_v14 = vpop.f32.mrf.mxu0  ;;  %v4849_v42 = vmul.f32 %v4748_v59, %v4521_v24  ;;  %4558 = vst.msk [vmem:[%s8704_s14 + $0x50] sm:$0xff] %vm845_vm3, %v4526_v37  ;;  %v4485_v3 = vadd.f32 %v4382_v22, %v4080_v57  ;;  %v5829_v9 = vpop.f32.mrf.mxu1  ;;  %v4884_v17 = vadd.f32 %v4883_v45, %v4882_v0  ;;  %v4081_v35 = vadd.f32 %v3980_v20, %v8730_v25  ;;  %v9372_v25 = vld [vmem:[#allocation45_spill] sm:$0xff] }
 0x201   : > { %v4785_v40 = vadd.f32 %v4784_v2, %v4783_v15  ;;  %v4488_v10 = vadd.f32 %v5860_v63, %v4083_v28  ;;  %v4788_v60 = vsel %vm845_vm3, %v4750_v13, 0.0  ;;  %v4753_v53 = vmul.f32 %v9371_v61, %v4526_v37 }
 0x202   : > { %v5864_v54 = vpop.f32.mrf.mxu0  ;;  %v4885_v27 = vsel %vm845_vm3, %v4849_v42, 0.0  ;;  %v4524_v30 = vadd.f32 %v8685_v43, %v4485_v3  ;;  %v3993_v24 = vpop.f32.mrf.mxu1  ;;  %v4486_v57 = vadd.f32 %v4385_v11, %v4081_v35  ;;  %v4889_v63 = vsel %vm845_vm3, %v4851_v41, 0.0 }
 0x203   : > { %v4787_v22 = vadd.f32 %v4786_v52, %v4785_v40  ;;  %v4886_v32 = vadd.f32 %v4885_v27, %v4884_v17  ;;  %v4527_v59 = vadd.f32 %v8685_v43, %v4488_v10  ;;  %v4086_v20 = vadd.f32 %v5829_v9, %v8733_v50  ;;  %v9373_v52 = vld [vmem:[#allocation48_spill] sm:$0xff] }
 0x204   : > { %v4401_v49 = vpop.f32.mrf.mxu0  ;;  %4556 = vst.msk [vmem:[%s8704_s14 + $0x40] sm:$0xff] %vm845_vm3, %v4524_v30  ;;  %v4751_v13 = vmul.f32 %v9372_v25, %v4524_v30  ;;  %v4084_v15 = vadd.f32 %v3993_v24, %v8739_v5  ;;  %v5830_v0 = vpop.f32.mrf.mxu1  ;;  %v4525_v11 = vadd.f32 %v8685_v43, %v4486_v57  ;;  %v4854_v9 = vmul.f32 %v4753_v53, %v4526_v37 }
 0x205   : > { %v4888_v45 = vadd.f32 %v4887_v23, %v4886_v32  ;;  %v4789_v2 = vadd.f32 %v4788_v60, %v4787_v22  ;;  %4559 = vst.msk [vmem:[%s8704_s14 + $0x58] sm:$0xff] %vm845_vm3, %v4527_v59  ;;  %v4754_v42 = vmul.f32 %v9373_v52, %v4527_v59  ;;  %v4491_v17 = vadd.f32 %v5863_v12, %v4086_v20  ;;  %v9374_v60 = vld [vmem:[#allocation49_spill] sm:$0xff]  ;;  %v9375_v32 = vld [vmem:[#allocation40_spill] sm:$0xff] }
 0x206   : > { %v5867_v28 = vpop.f32.mrf.mxu0  ;;  %v4790_v41 = vsel %vm845_vm3, %v4751_v13, 0.0  ;;  %v4852_v3 = vmul.f32 %v4751_v13, %v4524_v30  ;;  %v4489_v40 = vadd.f32 %v4398_v14, %v4084_v15  ;;  %v3996_v10 = vpop.f32.mrf.mxu1  ;;  %4557 = vst.msk [vmem:[%s8704_s14 + $0x48] sm:$0xff] %vm845_vm3, %v4525_v11  ;;  %v4752_v61 = vmul.f32 %v9374_v60, %v4525_v11  ;;  %v9376_v13 = vld [vmem:[#allocation2_spill] sm:$0xff]  ;;  %v9377_v15 = vld [vmem:[#allocation16_spill] sm:$0xff] }
 0x207   : > { %v4791_v5 = vadd.f32 %v4790_v41, %v4789_v2  ;;  %v4890_v35 = vadd.f32 %v4889_v63, %v4888_v45  ;;  %v4855_v27 = vmul.f32 %v4754_v42, %v4527_v59  ;;  %v4530_v24 = vadd.f32 %v8685_v43, %v4491_v17 }
 0x208   : > { %v4414_v50 = vpop.f32.mrf.mxu0  ;;  %v4891_v23 = vsel %vm845_vm3, %v4852_v3, 0.0  ;;  %v4528_v30 = vadd.f32 %v8685_v43, %v4489_v40  ;;  %v5833_v12 = vpop.f32.mrf.mxu1  ;;  %v4794_v22 = vsel %vm845_vm3, %v4753_v53, 0.0  ;;  %v4087_v57 = vadd.f32 %v5830_v0, %v9375_v32 }
 0x209   : > { %v4892_v37 = vadd.f32 %v4891_v23, %v4890_v35  ;;  %v4085_v59 = vadd.f32 %v3996_v10, %v8743_v19  ;;  %v4792_v63 = vsel %vm845_vm3, %v4752_v61, 0.0  ;;  %v4853_v25 = vmul.f32 %v4752_v61, %v4525_v11  ;;  %4562 = vst.msk [vmem:[%s8704_s14 + $0x70] sm:$0xff] %vm845_vm3, %v4530_v24 }
 0x20a   : > { %v5868_v14 = vpop.f32.mrf.mxu0  ;;  %v4757_v20 = vmul.f32 %v9376_v13, %v4530_v24  ;;  %4560 = vst.msk [vmem:[%s8704_s14 + $0x60] sm:$0xff] %vm845_vm3, %v4528_v30  ;;  %v4755_v45 = vmul.f32 %v9377_v15, %v4528_v30  ;;  %v4009_v2 = vpop.f32.mrf.mxu1  ;;  %v4793_v53 = vadd.f32 %v4792_v63, %v4791_v5  ;;  %v4492_v41 = vadd.f32 %v5864_v54, %v4087_v57  ;;  %v9380_v13 = vld [vmem:[#allocation38_spill] sm:$0xff] }
 0x20b   : > { %v4490_v3 = vadd.f32 %v4401_v49, %v4085_v59  ;;  %v4090_v0 = vadd.f32 %v5833_v12, %v8746_v38  ;;  %v4895_v19 = vsel %vm845_vm3, %v4854_v9, 0.0  ;;  %v4796_v11 = vsel %vm845_vm3, %v4754_v42, 0.0  ;;  %v9378_v59 = vld [vmem:[#allocation11_spill] sm:$0xff] }
 0x20c   : > { %v8833_v52 = vpop.f32.mrf.mxu0  ;;  %v4897_v17 = vsel %vm845_vm3, %v4855_v27, 0.0  ;;  %v4893_v40 = vsel %vm845_vm3, %v4853_v25, 0.0  ;;  %v5834_v10 = vpop.f32.mrf.mxu1  ;;  %v4795_v23 = vadd.f32 %v4794_v22, %v4793_v53  ;;  %v4858_v61 = vmul.f32 %v4757_v20, %v4530_v24 }
 0x20d   : > { %v4894_v60 = vadd.f32 %v4893_v40, %v4892_v37  ;;  %v4531_v54 = vadd.f32 %v8685_v43, %v4492_v41  ;;  %v4856_v49 = vmul.f32 %v4755_v45, %v4528_v30  ;;  %v4529_v38 = vadd.f32 %v8685_v43, %v4490_v3  ;;  %v9379_v37 = vld [vmem:[#allocation23_spill] sm:$0xff] }
 0x20e   : > { %v5871_v35 = vpop.f32.mrf.mxu0  ;;  %v4495_v5 = vadd.f32 %v5867_v28, %v4090_v0  ;;  %v4088_v9 = vadd.f32 %v4009_v2, %v8749_v31  ;;  %v4012_v42 = vpop.f32.mrf.mxu1  ;;  %v4797_v32 = vadd.f32 %v4796_v11, %v4795_v23  ;;  %v4798_v57 = vsel %vm845_vm3, %v4755_v45, 0.0  ;;  %v9381_v45 = vld [vmem:[#allocation51_spill] sm:$0xff] }
 0x20f   : > { %v4896_v27 = vadd.f32 %v4895_v19, %v4894_v60  ;;  %4563 = vst.msk [vmem:[%s8704_s14 + $0x78] sm:$0xff] %vm845_vm3, %v4531_v54  ;;  %v4758_v22 = vmul.f32 %v9378_v59, %v4531_v54  ;;  %4561 = vst.msk [vmem:[%s8704_s14 + $0x68] sm:$0xff] %vm845_vm3, %v4529_v38  ;;  %v4756_v24 = vmul.f32 %v8562_v29, %v4529_v38  ;;  %v4899_v29 = vsel %vm845_vm3, %v4856_v49, 0.0  ;;  %v9383_v59 = vld [vmem:[#allocation50_spill] sm:$0xff] }
 0x210   : > { %v4430_v12 = vpop.f32.mrf.mxu0  ;;  %v4534_v30 = vadd.f32 %v8685_v43, %v4495_v5  ;;  %v4493_v28 = vadd.f32 %v4414_v50, %v4088_v9  ;;  %v4091_v31 = vadd.f32 %v5834_v10, %v9379_v37  ;;  %v5837_v63 = vpop.f32.mrf.mxu1  ;;  %v3450_v15 = vadd.f32 %v9380_v13, %v8756_v16 }
 0x211   : > { %v3453_v2 = vadd.f32 %v9381_v45, %v8761_v33  ;;  %v4799_v53 = vadd.f32 %v4798_v57, %v4797_v32  ;;  %v4898_v41 = vadd.f32 %v4897_v17, %v4896_v27  ;;  %v4800_v3 = vsel %vm845_vm3, %v4756_v24, 0.0 }
 0x212   : > { %v5872_v25 = vpop.f32.mrf.mxu0  ;;  %v4857_v50 = vmul.f32 %v4756_v24, %v4529_v38  ;;  %4566 = vst.msk [vmem:[%s8704_s14 + $0x90] sm:$0xff] %vm845_vm3, %v4534_v30  ;;  %v4532_v0 = vadd.f32 %v8685_v43, %v4493_v28  ;;  %v4025_v19 = vpop.f32.mrf.mxu1  ;;  %v4859_v10 = vmul.f32 %v4758_v22, %v4531_v54  ;;  %v4496_v23 = vadd.f32 %v5868_v14, %v4091_v31  ;;  %v9382_v54 = vld [vmem:[#allocation46_spill] sm:$0xff] }
 0x213   : > { %v4900_v40 = vadd.f32 %v4899_v29, %v4898_v41  ;;  %v4801_v16 = vadd.f32 %v4800_v3, %v4799_v53  ;;  %v4802_v33 = vsel %vm845_vm3, %v4757_v20, 0.0  ;;  %v4903_v60 = vsel %vm845_vm3, %v4858_v61, 0.0  ;;  %v9384_v41 = vld [vmem:[#allocation52_spill] sm:$0xff] }
 0x214   : > { %v4433_v11 = vpop.f32.mrf.mxu0  ;;  %v4901_v17 = vsel %vm845_vm3, %v4857_v50, 0.0  ;;  %4564 = vst.msk [vmem:[%s8704_s14 + $0x80] sm:$0xff] %vm845_vm3, %v4532_v0  ;;  %v4759_v49 = vmul.f32 %v8580_v51, %v4532_v0  ;;  %v5838_v38 = vpop.f32.mrf.mxu1  ;;  %v4535_v32 = vadd.f32 %v8685_v43, %v4496_v23  ;;  %v4089_v57 = vadd.f32 %v4012_v42, %v9382_v54 }
 0x215   : > { %v4803_v9 = vadd.f32 %v4802_v33, %v4801_v16  ;;  %v4902_v27 = vadd.f32 %v4901_v17, %v4900_v40  ;;  %v4804_v14 = vsel %vm845_vm3, %v4758_v22, 0.0  ;;  %v4761_v20 = vmul.f32 %v8567_v47, %v4534_v30 }
 0x216   : > { %v5875_v5 = vpop.f32.mrf.mxu0  ;;  %v4860_v61 = vmul.f32 %v4759_v49, %v4532_v0  ;;  %v4094_v24 = vadd.f32 %v5837_v63, %v9383_v59  ;;  %v4028_v28 = vpop.f32.mrf.mxu1  ;;  %v4905_v51 = vsel %vm845_vm3, %v4859_v10, 0.0  ;;  %4567 = vst.msk [vmem:[%s8704_s14 + $0x98] sm:$0xff] %vm845_vm3, %v4535_v32  ;;  %v4494_v45 = vadd.f32 %v8833_v52, %v4089_v57 }
 0x217   : > { %v4904_v31 = vadd.f32 %v4903_v60, %v4902_v27  ;;  %v4805_v13 = vadd.f32 %v4804_v14, %v4803_v9  ;;  %v4806_v53 = vsel %vm845_vm3, %v4759_v49, 0.0  ;;  %v4092_v22 = vadd.f32 %v4025_v19, %v9384_v41  ;;  %v9385_v19 = vld [vmem:[#allocation21_spill] sm:$0xff]  ;;  %v9386_v27 = vld [vmem:[#allocation22_spill] sm:$0xff] }
 0x218   : > { %v4446_v37 = vpop.f32.mrf.mxu0  ;;  %v4499_v42 = vadd.f32 %v5871_v35, %v4094_v24  ;;  %v4095_v29 = vadd.f32 %v5838_v38, %v3450_v15  ;;  %v5841_v47 = vpop.f32.mrf.mxu1  ;;  %v4907_v50 = vsel %vm845_vm3, %v4860_v61, 0.0  ;;  %v4762_v0 = vmul.f32 %v8584_v46, %v4535_v32 }
 0x219   : > { %v4807_v3 = vadd.f32 %v4806_v53, %v4805_v13  ;;  %v4906_v63 = vadd.f32 %v4905_v51, %v4904_v31  ;;  %v4533_v40 = vadd.f32 %v8685_v43, %v4494_v45  ;;  %v4497_v52 = vadd.f32 %v4430_v12, %v4092_v22 }
 0x21a   : > { %v4538_v10 = vadd.f32 %v8685_v43, %v4499_v42  ;;  %v4500_v16 = vadd.f32 %v5872_v25, %v4095_v29  ;;  %v4041_v23 = vpop.f32.mrf.mxu1  ;;  %v5876_v35 = vpop.f32.mrf.mxu0  ;;  %v4093_v15 = vadd.f32 %v4028_v28, %v9385_v19  ;;  %v4098_v60 = vadd.f32 %v5841_v47, %v3453_v2 }
 0x21b   : > { %v4908_v33 = vadd.f32 %v4907_v50, %v4906_v63  ;;  %v8887_v17 = vsel %vm4675_vm6, 1.0, %v9315_v6  ;;  %v4862_v49 = vmul.f32 %v4761_v20, %v4534_v30  ;;  %4565 = vst.msk [vmem:[%s8704_s14 + $0x88] sm:$0xff] %vm845_vm3, %v4533_v40  ;;  %v4760_v46 = vmul.f32 %v8588_v1, %v4533_v40 }
 0x21c   : > { %4570 = vst.msk [vmem:[%s8704_s14 + $0xb0] sm:$0xff] %vm845_vm3, %v4538_v10  ;;  %v4536_v12 = vadd.f32 %v8685_v43, %v4497_v52  ;;  %v4539_v25 = vadd.f32 %v8685_v43, %v4500_v16  ;;  %v5842_v38 = vpop.f32.mrf.mxu1  ;;  %v4498_v2 = vadd.f32 %v4433_v11, %v4093_v15  ;;  %v4503_v9 = vadd.f32 %v5875_v5, %v4098_v60  ;;  %v4449_v11 = vpop.f32.mrf.mxu0 }
 0x21d   : > { %v4096_v8 = vadd.f32 %v4041_v23, %v9386_v27  ;;  %v8899_v54 = vadd.s32 %v8411_v26, %v8688_v55  ;;  %v4863_v30 = vmul.f32 %v4762_v0, %v4535_v32  ;;  %v4808_v57 = vsel %vm845_vm3, %v4760_v46, 0.0 }
 0x21e   : > { %v4861_v14 = vmul.f32 %v4760_v46, %v4533_v40  ;;  %v4765_v1 = vmul.f32 %v8602_v21, %v4538_v10  ;;  %4568 = vst.msk [vmem:[%s8704_s14 + $0xa0] sm:$0xff] %vm845_vm3, %v4536_v12  ;;  %4571 = vst.msk [vmem:[%s8704_s14 + $0xb8] sm:$0xff] %vm845_vm3, %v4539_v25  ;;  %v4044_v61 = vpop.f32.mrf.mxu1  ;;  %v4810_v5 = vsel %vm845_vm3, %v4761_v20, 0.0  ;;  %v4809_v59 = vadd.f32 %v4808_v57, %v4807_v3 }
 0x21f   : > { %v4763_v26 = vmul.f32 %v8606_v58, %v4536_v12  ;;  %v4537_v55 = vadd.f32 %v8685_v43, %v4498_v2  ;;  %v4911_v32 = vsel %vm845_vm3, %v4862_v49, 0.0  ;;  %v8913_v21 = vadd.f32 %v8685_v43, %v4503_v9 }
 0x220   : > { %v4909_v24 = vsel %vm845_vm3, %v4861_v14, 0.0  ;;  %v4501_v28 = vadd.f32 %v4446_v37, %v4096_v8  ;;  %v5845_v51 = vpop.f32.mrf.mxu1  ;;  %v4812_v31 = vsel %vm845_vm3, %v4762_v0, 0.0  ;;  %v4811_v13 = vadd.f32 %v4810_v5, %v4809_v59  ;;  %v5879_v37 = vpop.f32.mrf.mxu0  ;;  %v9388_v14 = vld [vmem:[#allocation53_spill] sm:$0xff] }
 0x221   : > { %v4910_v45 = vadd.f32 %v4909_v24, %v4908_v33  ;;  %v4864_v20 = vmul.f32 %v4763_v26, %v4536_v12  ;;  %4569 = vst.msk [vmem:[%s8704_s14 + $0xa8] sm:$0xff] %vm845_vm3, %v4537_v55  ;;  %v4913_v58 = vsel %vm845_vm3, %v4863_v30, 0.0  ;;  %v4866_v53 = vmul.f32 %v4765_v1, %v4538_v10  ;;  %4574 = vst.msk [vmem:[%s8704_s14 + $0xd0] sm:$0xff] %vm845_vm3, %v8913_v21  ;;  %v9387_v33 = vld [vmem:[#allocation4_spill] sm:$0xff] }
 0x222   : > { %v4764_v42 = vmul.f32 %v8614_v36, %v4537_v55  ;;  %v4099_v41 = vadd.f32 %v5842_v38, %v8574_v18  ;;  %v4057_v22 = vpop.f32.mrf.mxu1  ;;  %v4813_v47 = vadd.f32 %v4812_v31, %v4811_v13  ;;  %v4766_v3 = vmul.f32 %v8610_v56, %v4539_v25  ;;  %v4462_v60 = vpop.f32.mrf.mxu0 }
 0x223   : > { %v4912_v29 = vadd.f32 %v4911_v32, %v4910_v45  ;;  %v4540_v63 = vadd.f32 %v8685_v43, %v4501_v28  ;;  %v4818_v50 = vsel %vm845_vm3, %v4765_v1, 0.0  ;;  %v4814_v0 = vsel %vm845_vm3, %v4763_v26, 0.0  ;;  %v9389_v28 = vld [vmem:[#allocation54_spill] sm:$0xff] }
 0x224   : > { %v4816_v36 = vsel %vm845_vm3, %v4764_v42, 0.0  ;;  %v4865_v40 = vmul.f32 %v4764_v42, %v4537_v55  ;;  %v4815_v10 = vadd.f32 %v4814_v0, %v4813_v47  ;;  %v4915_v16 = vsel %vm845_vm3, %v4864_v20, 0.0  ;;  %v5846_v49 = vpop.f32.mrf.mxu1  ;;  %v5880_v5 = vpop.f32.mrf.mxu0 }
 0x225   : > { %v4914_v52 = vadd.f32 %v4913_v58, %v4912_v29  ;;  %4572 = vst.msk [vmem:[%s8704_s14 + $0xc0] sm:$0xff] %vm845_vm3, %v4540_v63  ;;  %v4767_v18 = vmul.f32 %v8622_v4, %v4540_v63  ;;  %v4504_v56 = vadd.f32 %v5876_v35, %v4099_v41  ;;  %v4097_v19 = vadd.f32 %v4044_v61, %v9387_v33 }
 0x226   : > { %v4917_v23 = vsel %vm845_vm3, %v4865_v40, 0.0  ;;  %v4102_v15 = vadd.f32 %v5845_v51, %v8626_v48  ;;  %v4919_v46 = vsel %vm845_vm3, %v4866_v53, 0.0  ;;  %v4820_v38 = vsel %vm845_vm3, %v4766_v3, 0.0  ;;  %v4060_v58 = vpop.f32.mrf.mxu1 }
 0x227   : > { %v4916_v12 = vadd.f32 %v4915_v16, %v4914_v52  ;;  %v4817_v2 = vadd.f32 %v4816_v36, %v4815_v10  ;;  %v4867_v9 = vmul.f32 %v4766_v3, %v4539_v25  ;;  %v4543_v4 = vadd.f32 %v8685_v43, %v4504_v56  ;;  %v4465_v10 = vpop.f32.mrf.mxu0 }
 0x228   : > { %v4502_v27 = vadd.f32 %v4449_v11, %v4097_v19  ;;  %v4507_v35 = vadd.f32 %v5879_v37, %v4102_v15  ;;  %v4100_v30 = vadd.f32 %v4057_v22, %v8635_v62  ;;  %v4103_v57 = vadd.f32 %v5846_v49, %v8658_v34 }
 0x229   : > { %v4819_v8 = vadd.f32 %v4818_v50, %v4817_v2  ;;  %v4918_v48 = vadd.f32 %v4917_v23, %v4916_v12  ;;  %v4769_v1 = vmul.f32 %v9388_v14, %v8913_v21  ;;  %v4868_v61 = vmul.f32 %v4767_v18, %v4540_v63  ;;  %4575 = vst.msk [vmem:[%s8704_s14 + $0xd8] sm:$0xff] %vm845_vm3, %v4543_v4  ;;  %v9390_v63 = vld [vmem:[#allocation55_spill] sm:$0xff] }
 0x22a   : > { %v4541_v25 = vadd.f32 %v8685_v43, %v4502_v27  ;;  %v4546_v11 = vadd.f32 %v8685_v43, %v4507_v35  ;;  %v4505_v55 = vadd.f32 %v4462_v60, %v4100_v30  ;;  %v4508_v32 = vadd.f32 %v5880_v5, %v4103_v57 }
 0x22b   : > { %v4920_v59 = vadd.f32 %v4919_v46, %v4918_v48  ;;  %v4821_v26 = vadd.f32 %v4820_v38, %v4819_v8  ;;  %v4921_v62 = vsel %vm845_vm3, %v4867_v9, 0.0  ;;  %v4822_v34 = vsel %vm845_vm3, %v4767_v18, 0.0 }
 0x22c   : > { %v4770_v24 = vmul.f32 %v8653_v44, %v4543_v4  ;;  %4573 = vst.msk [vmem:[%s8704_s14 + $0xc8] sm:$0xff] %vm845_vm3, %v4541_v25  ;;  %v4768_v51 = vmul.f32 %v9389_v28, %v4541_v25  ;;  %4578 = vst.msk [vmem:[%s8704_s14 + $0xf0] sm:$0xff] %vm845_vm3, %v4546_v11  ;;  %v4544_v45 = vadd.f32 %v8685_v43, %v4505_v55  ;;  %v4923_v42 = vsel %vm845_vm3, %v4868_v61, 0.0 }
 0x22d   : > { %v4823_v31 = vadd.f32 %v4822_v34, %v4821_v26  ;;  %v4922_v13 = vadd.f32 %v4921_v62, %v4920_v59  ;;  %v4547_v20 = vadd.f32 %v8685_v43, %v4508_v32  ;;  %v4870_v53 = vmul.f32 %v4769_v1, %v8913_v21 }
 0x22e   : > { %v4824_v44 = vsel %vm845_vm3, %v4768_v51, 0.0  ;;  %v4869_v41 = vmul.f32 %v4768_v51, %v4541_v25  ;;  %4576 = vst.msk [vmem:[%s8704_s14 + $0xe0] sm:$0xff] %vm845_vm3, %v4544_v45  ;;  %v4771_v29 = vmul.f32 %v8887_v17, %v4544_v45  ;;  %vm4676_vm9 = vcmp.lt.s32.totalorder %v8899_v54, 2048 }
 0x22f   : > { %v4924_v37 = vadd.f32 %v4923_v42, %v4922_v13  ;;  %v4825_v22 = vadd.f32 %v4824_v44, %v4823_v31  ;;  %4579 = vst.msk [vmem:[%s8704_s14 + $0xf8] sm:$0xff] %vm845_vm3, %v4547_v20  ;;  %v4826_v47 = vsel %vm845_vm3, %v4769_v1, 0.0  ;;  %v4871_v3 = vmul.f32 %v4770_v24, %v4543_v4 }
 0x230   : > { %v4925_v21 = vsel %vm845_vm3, %v4869_v41, 0.0  ;;  %v4101_v50 = vadd.f32 %v4060_v58, %v9390_v63  ;;  %v5418_v40 = vsel %vm4677_vm7, 1.0, %v9315_v6  ;;  %v4927_v17 = vsel %vm845_vm3, %v4870_v53, 0.0 }
 0x231   : > { %v4827_v0 = vadd.f32 %v4826_v47, %v4825_v22  ;;  %v4926_v36 = vadd.f32 %v4925_v21, %v4924_v37  ;;  %v4828_v52 = vsel %vm845_vm3, %v4770_v24, 0.0  ;;  %v4872_v16 = vmul.f32 %v4771_v29, %v4544_v45 }
 0x232   : > { %v4506_v18 = vadd.f32 %v4465_v10, %v4101_v50  ;;  %v5419_v33 = vsel %vm4678_vm8, 1.0, %v9315_v6  ;;  %v5417_v19 = vsel %vm4676_vm9, 1.0, %v9315_v6  ;;  %v4929_v39 = vsel %vm845_vm3, %v4871_v3, 0.0 }
 0x233   : > { %v4928_v23 = vadd.f32 %v4927_v17, %v4926_v36  ;;  %v4829_v56 = vadd.f32 %v4828_v52, %v4827_v0  ;;  %v4773_v15 = vmul.f32 %v5418_v40, %v4546_v11  ;;  %v4830_v60 = vsel %vm845_vm3, %v4771_v29, 0.0 }
 0x234   : > { %v4545_v49 = vadd.f32 %v8685_v43, %v4506_v18  ;;  %v4931_v38 = vsel %vm845_vm3, %v4872_v16, 0.0  ;;  %v4774_v2 = vmul.f32 %v5419_v33, %v4547_v20 }
 0x235   : > { %v4831_v46 = vadd.f32 %v4830_v60, %v4829_v56  ;;  %v4930_v12 = vadd.f32 %v4929_v39, %v4928_v23  ;;  %v4874_v4 = vmul.f32 %v4773_v15, %v4546_v11  ;;  %v4834_v35 = vsel %vm845_vm3, %v4773_v15, 0.0 }
 0x236   : > { %4577 = vst.msk [vmem:[%s8704_s14 + $0xe8] sm:$0xff] %vm845_vm3, %v4545_v49  ;;  %v4772_v7 = vmul.f32 %v5417_v19, %v4545_v49  ;;  %v4875_v8 = vmul.f32 %v4774_v2, %v4547_v20  ;;  %v4836_v14 = vsel %vm845_vm3, %v4774_v2, 0.0 }
 0x237   : > { %v4932_v9 = vadd.f32 %v4931_v38, %v4930_v12  ;;  %v4935_v57 = vsel %vm845_vm3, %v4874_v4, 0.0 }
 0x238   : > { %v4832_v6 = vsel %vm845_vm3, %v4772_v7, 0.0  ;;  %v4873_v54 = vmul.f32 %v4772_v7, %v4545_v49  ;;  %v4937_v25 = vsel %vm845_vm3, %v4875_v8, 0.0 }
 0x239   : > { %v4833_v27 = vadd.f32 %v4832_v6, %v4831_v46 }
 0x23a   : > { %v4933_v43 = vsel %vm845_vm3, %v4873_v54, 0.0  ;;  %vm4947_vm3 = vcmask 58368  }
 0x23b   : > { %v4835_v48 = vadd.f32 %v4834_v35, %v4833_v27  ;;  %v4934_v30 = vadd.f32 %v4933_v43, %v4932_v9 }
 0x23d   : > { %v4837_v1 = vadd.f32 %v4836_v14, %v4835_v48  ;;  %v4936_v61 = vadd.f32 %v4935_v57, %v4934_v30 }
 0x23f   : > { %v4838_v11 = vrot.slane %v4837_v1, 4  ;;  %v4938_v5 = vadd.f32 %v4937_v25, %v4936_v61 }
 0x241   : > { %v4839_v59 = vadd.f32 %v4838_v11, %v4837_v1  ;;  %v4939_v26 = vrot.slane %v4938_v5, 4 }
 0x243   : > { %v4840_v55 = vrot.slane %v4839_v59, 2  ;;  %v4940_v32 = vadd.f32 %v4939_v26, %v4938_v5 }
 0x245   : > { %v4841_v62 = vadd.f32 %v4840_v55, %v4839_v59  ;;  %v4941_v34 = vrot.slane %v4940_v32, 2 }
 0x247   : > { %v4842_v24 = vrot.slane %v4841_v62, 1  ;;  %v4942_v28 = vadd.f32 %v4941_v34, %v4940_v32 }
 0x249   : > { %v4943_v51 = vrot.slane %v4942_v28, 1  ;;  %v4843_v31 = vadd.f32 %v4842_v24, %v4841_v62 }
 0x24b   : > { %v4944_v13 = vadd.f32 %v4943_v51, %v4942_v28 }
 0x24d   : > { %v4946_v45 = vsel %vm4945_vm10, %v4843_v31, %v4944_v13 }
 0x24e   : > { %4948 = vst.msk [vmem:[%s318_s18] sm:$0x3] %vm4947_vm3, %v4946_v45 }
 0x24f PF: > { %s17_s21 = sadd.s32 1, %s5957_s21  }
 0x250   : > { %p14_p6 = scmp.ge.s32.totalorder %s17_s21, 10  }
 0x252   :  { %16 = sbr.rel (!%p14_p6) target bundleno = 1 (0x1), region = 88 }

</bundles_post_ra>
